<compile_context>
chip_gen: v7x
topology: tpu7x:2x2x1
jax: 0.10.0
libtpu: 0.0.40
codegen_flags: <defaults>
</compile_context>

<pallas_src>
import functools

import jax
import jax.numpy as jnp
from jax.experimental import pallas as pl
from jax.experimental.pallas import tpu as pltpu


# ---------------------------------------------------------------------------
# Fused pos-MLP + AttentionMIL pooling + classifier head, tiled over N.
# ---------------------------------------------------------------------------
def _fused_mil_kernel(feat_ref, coords_ref,
                      wp1a_ref, wp1b_ref, bp1_ref, wp2_ref, bp2_ref,
                      w1a_ref, w1b_ref, b1_ref, w2_ref, b2_ref,
                      wc1a_ref, wc1b_ref, bc1_ref, wc2_ref, bc2_ref,
                      mf_ref, mp_ref, a_ref, y_ref,
                      max_sc, sum_sc, accf_sc, accp_sc,
                      *, n_valid, tile_n):
    i = pl.program_id(0)
    n_steps = pl.num_programs(0)

    @pl.when(i == 0)
    def _init():
        max_sc[...] = jnp.full(max_sc.shape, -jnp.inf, max_sc.dtype)
        sum_sc[...] = jnp.zeros(sum_sc.shape, sum_sc.dtype)
        accf_sc[...] = jnp.zeros(accf_sc.shape, accf_sc.dtype)
        accp_sc[...] = jnp.zeros(accp_sc.shape, accp_sc.dtype)

    # ---- Streamed tile; zero rows past N (last tile overhangs, OOB = garbage).
    row = i * tile_n + jax.lax.broadcasted_iota(jnp.int32, (tile_n, 1), 0)
    rvalid = row < n_valid                                               # (TN, 1)
    feat = jnp.where(rvalid, feat_ref[...], 0).astype(feat_ref.dtype)    # (TN, F)
    coords = jnp.where(rvalid, coords_ref[...], 0).astype(jnp.float32)   # (TN, 2)

    # ---- Positional MLP (fused): Linear(2,P) as two VPU FMAs -> ReLU -> Linear(P,P).
    hp = (coords[:, 0:1] * wp1a_ref[...].astype(jnp.float32)
          + coords[:, 1:2] * wp1b_ref[...].astype(jnp.float32)
          + bp1_ref[...].astype(jnp.float32))
    hp = jnp.maximum(hp, 0.0)                                            # (TN, P) f32
    pos = jnp.dot(hp.astype(wp2_ref.dtype), wp2_ref[...],
                  preferred_element_type=jnp.float32)
    pos = pos + bp2_ref[...].astype(jnp.float32)                         # (TN, P) f32
    pos_x = pos.astype(feat.dtype)                                       # pos segment of x

    # ---- Attention logits, lane-dense (1, TN):
    #      tanh(x @ W1 + b1) @ w2 + b2 with x @ W1 = feat @ W1[:F] + pos @ W1[F:].
    z = jnp.dot(feat, w1a_ref[...], preferred_element_type=jnp.float32)
    z = z + jnp.dot(pos_x, w1b_ref[...], preferred_element_type=jnp.float32)
    z = jnp.tanh(z + b1_ref[...].astype(jnp.float32))                    # (TN, H) f32
    w2_row = w2_ref[...].astype(jnp.float32)                             # (1, H)
    s_row = jax.lax.dot_general(w2_row, z, (((1,), (1,)), ((), ())),
                                preferred_element_type=jnp.float32)      # (1, TN)
    s_row = s_row + b2_ref[0, 0]
    col = i * tile_n + jax.lax.broadcasted_iota(jnp.int32, (1, tile_n), 1)
    cvalid = col < n_valid
    s_row = jnp.where(cvalid, s_row, -jnp.inf)

    # Stash raw scores directly in the resident attention-weight output block.
    off = pl.multiple_of(i * tile_n, tile_n)
    a_ref[:, pl.ds(off, tile_n)] = s_row

    # ---- Online softmax update (flash-style, f32 state).
    m_prev = max_sc[...]                                                 # (1, 1)
    m_new = jnp.maximum(m_prev, jnp.max(s_row, axis=-1, keepdims=True))
    alpha = jnp.exp(m_prev - m_new)                                      # (1, 1)
    p_row = jnp.where(cvalid, jnp.exp(s_row - m_new), 0.0)               # (1, TN)
    sum_sc[...] = alpha * sum_sc[...] + jnp.sum(p_row, axis=-1, keepdims=True)
    p_cast = p_row.astype(feat.dtype)
    accf_sc[...] = alpha * accf_sc[...] + jnp.dot(
        p_cast, feat, preferred_element_type=jnp.float32)                # (1, F) MXU
    accp_sc[...] = alpha * accp_sc[...] + jnp.dot(
        p_cast, pos_x, preferred_element_type=jnp.float32)               # (1, P) MXU
    max_sc[...] = m_new

    # ---- Finalize on the last N-tile.
    @pl.when(i == n_steps - 1)
    def _finalize():
        inv_l = 1.0 / sum_sc[...]                                        # (1,1), exact
        mf = accf_sc[...] * inv_l                                        # (1, F) f32
        mp = accp_sc[...] * inv_l                                        # (1, P) f32
        mf_ref[...] = mf.astype(mf_ref.dtype)
        mp_ref[...] = mp.astype(mp_ref.dtype)
        # Normalize the stashed raw scores in place (masked entries hold -inf -> 0).
        a_ref[...] = jnp.exp(a_ref[...] - max_sc[...]) * inv_l
        # Classifier head: Linear(F+P, C) -> ReLU -> Linear(C, 1) -> Sigmoid.
        hc = jnp.dot(mf, wc1a_ref[...].astype(jnp.float32),
                     preferred_element_type=jnp.float32)
        hc = hc + jnp.dot(mp, wc1b_ref[...].astype(jnp.float32),
                          preferred_element_type=jnp.float32)
        hc = jnp.maximum(hc + bc1_ref[...].astype(jnp.float32), 0.0)     # (1, C)
        logit = jnp.sum(hc * wc2_ref[...].astype(jnp.float32),
                        axis=-1, keepdims=True) + bc2_ref[0, 0]          # (1, 1)
        y_ref[...] = jax.nn.sigmoid(logit).astype(y_ref.dtype)


def mil_forward(patch_features, coords, params, *, tile_n=1024):
    """Post-backbone MILModel forward.

    patch_features: (N, F); coords: (N, 2).
    params: wp1 (2,P) bp1 (1,P) wp2 (P,P) bp2 (1,P);
            w1 (F+P,H) b1 (1,H) w2 (H,1) b2 (1,1);
            wc1 (F+P,C) bc1 (1,C) wc2 (C,1) bc2 (1,1).
    Returns (y_pred (1,1) f32, attention weights (N,1) f32, bag embedding M (F+P,)).
    """
    n, f = patch_features.shape
    pdim = params["wp1"].shape[1]
    h = params["w1"].shape[1]
    c = params["wc1"].shape[1]
    assert params["w1"].shape[0] == f + pdim
    assert params["wc1"].shape[0] == f + pdim

    # Large N-tiles (amortize per-step overhead), clamped to the bag size,
    # multiple of 128 so the lane-dense score row stays aligned.
    n_round = ((n + 127) // 128) * 128
    tile_n = min(int(tile_n), n_round)
    tile_n = max(128, (tile_n // 128) * 128)
    n_tiles = pl.cdiv(n, tile_n)
    n_pad = n_tiles * tile_n

    dtype = patch_features.dtype

    # Split / reshape the weights once in the wrapper (tiny, one-time).
    wp1 = params["wp1"]
    wp1_r0 = wp1[0:1, :]
    wp1_r1 = wp1[1:2, :]
    bp1 = jnp.reshape(params["bp1"], (1, pdim))
    wp2 = params["wp2"]
    bp2 = jnp.reshape(params["bp2"], (1, pdim))
    w1a = params["w1"][:f, :]
    w1b = params["w1"][f:, :]
    b1 = jnp.reshape(params["b1"], (1, h))
    w2_row = jnp.reshape(params["w2"], (1, h))
    b2 = jnp.reshape(params["b2"], (1, 1)).astype(jnp.float32)
    wc1a = params["wc1"][:f, :]
    wc1b = params["wc1"][f:, :]
    bc1 = jnp.reshape(params["bc1"], (1, c))
    wc2_row = jnp.reshape(params["wc2"], (1, c))
    bc2 = jnp.reshape(params["bc2"], (1, 1)).astype(jnp.float32)

    # Explicit scoped-VMEM budget (matters on v5e's 16 MiB default once tiles /
    # bags get large): double-buffered streamed tiles + the resident score block
    # (sublane-padded to 8 rows) + resident weights + slack.
    itemsize = jnp.dtype(dtype).itemsize
    vmem_bytes = (2 * tile_n * (f + 8) * itemsize
                  + 2 * 8 * n_pad * 4
                  + 4 * (f + pdim) * (h + c) * 4
                  + (2 << 20))
    vmem_limit = int(min(64 << 20, max(32 << 20, vmem_bytes)))

    kernel = functools.partial(_fused_mil_kernel, n_valid=n, tile_n=tile_n)
    resident = lambda i: (0, 0)
    streamed = lambda i: (i, 0)

    mf, mp, a, y = pl.pallas_call(
        kernel,
        out_shape=(
            jax.ShapeDtypeStruct((1, f), dtype),            # bag embedding, feature segment
            jax.ShapeDtypeStruct((1, pdim), dtype),          # bag embedding, pos segment
            jax.ShapeDtypeStruct((1, n_pad), jnp.float32),   # attention weights (lane-dense)
            jax.ShapeDtypeStruct((1, 1), jnp.float32),       # classifier output
        ),
        grid=(n_tiles,),
        in_specs=[
            pl.BlockSpec((tile_n, f), streamed),             # patch features streamed over N
            pl.BlockSpec((tile_n, 2), streamed),             # coords streamed over N
            pl.BlockSpec((1, pdim), resident),               # wp1 row 0
            pl.BlockSpec((1, pdim), resident),               # wp1 row 1
            pl.BlockSpec((1, pdim), resident),               # bp1
            pl.BlockSpec((pdim, pdim), resident),            # wp2
            pl.BlockSpec((1, pdim), resident),               # bp2
            pl.BlockSpec((f, h), resident),                  # W1[:F]
            pl.BlockSpec((pdim, h), resident),               # W1[F:]
            pl.BlockSpec((1, h), resident),                  # b1
            pl.BlockSpec((1, h), resident),                  # w2 as a row
            pl.BlockSpec(memory_space=pltpu.MemorySpace.SMEM),  # b2 scalar
            pl.BlockSpec((f, c), resident),                  # WC1[:F]
            pl.BlockSpec((pdim, c), resident),               # WC1[F:]
            pl.BlockSpec((1, c), resident),                  # bc1
            pl.BlockSpec((1, c), resident),                  # wc2 as a row
            pl.BlockSpec(memory_space=pltpu.MemorySpace.SMEM),  # bc2 scalar
        ],
        out_specs=(
            pl.BlockSpec((1, f), resident),
            pl.BlockSpec((1, pdim), resident),
            pl.BlockSpec((1, n_pad), resident),              # resident: scores stashed + finalized in place
            pl.BlockSpec((1, 1), resident),
        ),
        scratch_shapes=[
            pltpu.VMEM((1, 1), jnp.float32),                 # running max
            pltpu.VMEM((1, 1), jnp.float32),                 # running exp-sum
            pltpu.VMEM((1, f), jnp.float32),                 # bag accumulator (feature segment)
            pltpu.VMEM((1, pdim), jnp.float32),              # bag accumulator (pos segment)
        ],
        compiler_params=pltpu.CompilerParams(
            dimension_semantics=("arbitrary",),              # N is the sequential reduction axis
            vmem_limit_bytes=vmem_limit,
        ),
    )(patch_features, coords, wp1_r0, wp1_r1, bp1, wp2, bp2,
      w1a, w1b, b1, w2_row, b2, wc1a, wc1b, bc1, wc2_row, bc2)

    attn = a[0, :n].reshape(n, 1)
    m = jnp.concatenate([mf[0], mp[0]], axis=0)
    return y, attn, m


# ---------------------------------------------------------------------------
# Pure-JAX reference (mirrors the PyTorch forward, post-backbone).
# ---------------------------------------------------------------------------
def mil_forward_ref(patch_features, coords, params):
    pos = jnp.maximum(coords @ params["wp1"] + params["bp1"], 0.0) @ params["wp2"] + params["bp2"]
    x = jnp.concatenate([patch_features, pos], axis=1)
    s = jnp.tanh(x @ params["w1"] + params["b1"]) @ params["w2"] + params["b2"]   # (N, 1)
    a = jax.nn.softmax(s, axis=0)
    m = jnp.sum(a * x, axis=0)
    hc = jnp.maximum(m[None, :] @ params["wc1"] + params["bc1"], 0.0)
    y = jax.nn.sigmoid(hc @ params["wc2"] + params["bc2"])
    return y, a, m


if __name__ == "__main__":
    # Shapes consistent with MILModel: patch_feature_dim=128, pos_dim=32,
    # hidden_dim=64, classifier hidden 64.  N=2000 with tile_n=1024 -> 2 N-tiles
    # with a ragged last tile, exercising online softmax + in-kernel masking.
    N, FEAT, POS, HID, CLS = 2000, 128, 32, 64, 64

    key = jax.random.PRNGKey(0)
    keys = jax.random.split(key, 14)
    feat = jax.random.normal(keys[0], (N, FEAT), jnp.float32)   # stand-in for ResNet patch features
    coords = jax.random.uniform(keys[1], (N, 2), jnp.float32)

    def init(k, shape, scale=0.1):
        return jax.random.normal(k, shape, jnp.float32) * scale

    params = dict(
        wp1=init(keys[2], (2, POS)),           bp1=init(keys[3], (1, POS)),
        wp2=init(keys[4], (POS, POS)),         bp2=init(keys[5], (1, POS)),
        w1=init(keys[6], (FEAT + POS, HID)),   b1=init(keys[7], (1, HID)),
        w2=init(keys[8], (HID, 1)),            b2=init(keys[9], (1, 1)),
        wc1=init(keys[10], (FEAT + POS, CLS)), bc1=init(keys[11], (1, CLS)),
        wc2=init(keys[12], (CLS, 1)),          bc2=init(keys[13], (1, 1)),
    )

    y, a, m = jax.block_until_ready(mil_forward(feat, coords, params, tile_n=1024))
    y_r, a_r, m_r = mil_forward_ref(feat, coords, params)

    assert y.shape == (1, 1) and a.shape == (N, 1) and m.shape == (FEAT + POS,)
    assert bool(jnp.allclose(jnp.sum(a), 1.0, atol=1e-4))
    assert bool(jnp.allclose(y, y_r, rtol=1e-4, atol=1e-5))
    assert bool(jnp.allclose(a, a_r, rtol=1e-3, atol=1e-6))
    assert bool(jnp.allclose(m, m_r, rtol=1e-3, atol=1e-4))

    print("KERNEL_OK")
</pallas_src>

<mosaic_0001>
module attributes {stable_mosaic.version = 11 : i64} {
  func.func @_fused_mil_kernel(%arg0: i32, %arg1: memref<1024x128xf32, #tpu.memory_space<vmem>>, %arg2: memref<1024x2xf32, #tpu.memory_space<vmem>>, %arg3: memref<1x32xf32, #tpu.memory_space<vmem>>, %arg4: memref<1x32xf32, #tpu.memory_space<vmem>>, %arg5: memref<1x32xf32, #tpu.memory_space<vmem>>, %arg6: memref<32x32xf32, #tpu.memory_space<vmem>>, %arg7: memref<1x32xf32, #tpu.memory_space<vmem>>, %arg8: memref<128x64xf32, #tpu.memory_space<vmem>>, %arg9: memref<32x64xf32, #tpu.memory_space<vmem>>, %arg10: memref<1x64xf32, #tpu.memory_space<vmem>>, %arg11: memref<1x64xf32, #tpu.memory_space<vmem>>, %arg12: memref<1x1xf32, #tpu.memory_space<smem>>, %arg13: memref<128x64xf32, #tpu.memory_space<vmem>>, %arg14: memref<32x64xf32, #tpu.memory_space<vmem>>, %arg15: memref<1x64xf32, #tpu.memory_space<vmem>>, %arg16: memref<1x64xf32, #tpu.memory_space<vmem>>, %arg17: memref<1x1xf32, #tpu.memory_space<smem>>, %arg18: memref<1x128xf32, #tpu.memory_space<vmem>>, %arg19: memref<1x32xf32, #tpu.memory_space<vmem>>, %arg20: memref<1x2048xf32, #tpu.memory_space<vmem>>, %arg21: memref<1x1xf32, #tpu.memory_space<vmem>>, %arg22: memref<1x1xf32, #tpu.memory_space<vmem>>, %arg23: memref<1x1xf32, #tpu.memory_space<vmem>>, %arg24: memref<1x128xf32, #tpu.memory_space<vmem>>, %arg25: memref<1x32xf32, #tpu.memory_space<vmem>>) attributes {dimension_semantics = [#tpu.dimension_semantics<arbitrary>], iteration_bounds = array<i64: 2>, scalar_prefetch = 0 : i64, scratch_operands = 4 : i64, tpu.core_type = #tpu.core_type<tc>, window_params = [{transform_indices = @transform_0, window_bounds = array<i64: 1024, 128>}, {transform_indices = @transform_1, window_bounds = array<i64: 1024, 2>}, {pipeline_mode = #tpu.pipeline_mode<synchronous>, transform_indices = @transform_2, window_bounds = array<i64: 1, 32>}, {pipeline_mode = #tpu.pipeline_mode<synchronous>, transform_indices = @transform_3, window_bounds = array<i64: 1, 32>}, {pipeline_mode = #tpu.pipeline_mode<synchronous>, transform_indices = @transform_4, window_bounds = array<i64: 1, 32>}, {pipeline_mode = #tpu.pipeline_mode<synchronous>, transform_indices = @transform_5, window_bounds = array<i64: 32, 32>}, {pipeline_mode = #tpu.pipeline_mode<synchronous>, transform_indices = @transform_6, window_bounds = array<i64: 1, 32>}, {pipeline_mode = #tpu.pipeline_mode<synchronous>, transform_indices = @transform_7, window_bounds = array<i64: 128, 64>}, {pipeline_mode = #tpu.pipeline_mode<synchronous>, transform_indices = @transform_8, window_bounds = array<i64: 32, 64>}, {pipeline_mode = #tpu.pipeline_mode<synchronous>, transform_indices = @transform_9, window_bounds = array<i64: 1, 64>}, {pipeline_mode = #tpu.pipeline_mode<synchronous>, transform_indices = @transform_10, window_bounds = array<i64: 1, 64>}, {transform_indices = @transform_11, window_bounds = array<i64: 1, 1>}, {pipeline_mode = #tpu.pipeline_mode<synchronous>, transform_indices = @transform_12, window_bounds = array<i64: 128, 64>}, {pipeline_mode = #tpu.pipeline_mode<synchronous>, transform_indices = @transform_13, window_bounds = array<i64: 32, 64>}, {pipeline_mode = #tpu.pipeline_mode<synchronous>, transform_indices = @transform_14, window_bounds = array<i64: 1, 64>}, {pipeline_mode = #tpu.pipeline_mode<synchronous>, transform_indices = @transform_15, window_bounds = array<i64: 1, 64>}, {transform_indices = @transform_16, window_bounds = array<i64: 1, 1>}, {pipeline_mode = #tpu.pipeline_mode<synchronous>, transform_indices = @transform_17, window_bounds = array<i64: 1, 128>}, {pipeline_mode = #tpu.pipeline_mode<synchronous>, transform_indices = @transform_18, window_bounds = array<i64: 1, 32>}, {pipeline_mode = #tpu.pipeline_mode<synchronous>, transform_indices = @transform_19, window_bounds = array<i64: 1, 2048>}, {pipeline_mode = #tpu.pipeline_mode<synchronous>, transform_indices = @transform_20, window_bounds = array<i64: 1, 1>}]} {
    %c0_i32 = arith.constant 0 : i32
    %0 = arith.cmpi eq, %arg0, %c0_i32 : i32
    %1 = arith.extui %0 : i1 to i32
    %c0_i32_0 = arith.constant 0 : i32
    %2 = arith.cmpi ne, %1, %c0_i32_0 : i32
    scf.if %2 {
      %cst_57 = arith.constant 0xFF800000 : f32
      %101 = vector.broadcast %cst_57 : f32 to vector<1x1xf32>
      %c0_58 = arith.constant 0 : index
      %c0_59 = arith.constant 0 : index
      %102 = vector.load %arg22[%c0_58, %c0_59] : memref<1x1xf32, #tpu.memory_space<vmem>>, vector<1x1xf32>
      tpu.vector_store %arg22[%c0_58, %c0_59], %101 {strides = array<i32>} : memref<1x1xf32, #tpu.memory_space<vmem>>, vector<1x1xf32>,
      %cst_60 = arith.constant 0.000000e+00 : f32
      %103 = vector.broadcast %cst_60 : f32 to vector<1x1xf32>
      %c0_61 = arith.constant 0 : index
      %c0_62 = arith.constant 0 : index
      %104 = vector.load %arg23[%c0_61, %c0_62] : memref<1x1xf32, #tpu.memory_space<vmem>>, vector<1x1xf32>
      tpu.vector_store %arg23[%c0_61, %c0_62], %103 {strides = array<i32>} : memref<1x1xf32, #tpu.memory_space<vmem>>, vector<1x1xf32>,
      %cst_63 = arith.constant 0.000000e+00 : f32
      %105 = vector.broadcast %cst_63 : f32 to vector<1x128xf32>
      %c0_64 = arith.constant 0 : index
      %c0_65 = arith.constant 0 : index
      %106 = vector.load %arg24[%c0_64, %c0_65] : memref<1x128xf32, #tpu.memory_space<vmem>>, vector<1x128xf32>
      tpu.vector_store %arg24[%c0_64, %c0_65], %105 {strides = array<i32>} : memref<1x128xf32, #tpu.memory_space<vmem>>, vector<1x128xf32>,
      %cst_66 = arith.constant 0.000000e+00 : f32
      %107 = vector.broadcast %cst_66 : f32 to vector<1x32xf32>
      %c0_67 = arith.constant 0 : index
      %c0_68 = arith.constant 0 : index
      %108 = vector.load %arg25[%c0_67, %c0_68] : memref<1x32xf32, #tpu.memory_space<vmem>>, vector<1x32xf32>
      tpu.vector_store %arg25[%c0_67, %c0_68], %107 {strides = array<i32>} : memref<1x32xf32, #tpu.memory_space<vmem>>, vector<1x32xf32>,
    } else {
    }
    %c1024_i32 = arith.constant 1024 : i32
    %3 = arith.muli %arg0, %c1024_i32 : i32
    %4 = tpu.iota {dimensions = array<i32: 0>} : vector<1024x1xi32>
    %5 = vector.broadcast %3 : i32 to vector<1024x1xi32>
    %6 = arith.addi %5, %4 : vector<1024x1xi32>
    %c2000_i32 = arith.constant 2000 : i32
    %7 = vector.broadcast %c2000_i32 : i32 to vector<1024x1xi32>
    %8 = arith.cmpi slt, %6, %7 : vector<1024x1xi32>
    %c0 = arith.constant 0 : index
    %c0_1 = arith.constant 0 : index
    %9 = vector.load %arg1[%c0, %c0_1] : memref<1024x128xf32, #tpu.memory_space<vmem>>, vector<1024x128xf32>
    %c0_i32_2 = arith.constant 0 : i32
    %10 = arith.sitofp %c0_i32_2 : i32 to f32
    %11 = vector.shape_cast %8 : vector<1024x1xi1> to vector<1024x1xi1>
    %12 = vector.broadcast %11 : vector<1024x1xi1> to vector<1024x128xi1>
    %13 = vector.broadcast %10 : f32 to vector<1024x128xf32>
    %14 = arith.select %12, %9, %13 : vector<1024x128xi1>, vector<1024x128xf32>
    %c0_3 = arith.constant 0 : index
    %c0_4 = arith.constant 0 : index
    %15 = vector.load %arg2[%c0_3, %c0_4] : memref<1024x2xf32, #tpu.memory_space<vmem>>, vector<1024x2xf32>
    %c0_i32_5 = arith.constant 0 : i32
    %16 = arith.sitofp %c0_i32_5 : i32 to f32
    %17 = vector.shape_cast %8 : vector<1024x1xi1> to vector<1024x1xi1>
    %18 = vector.broadcast %17 : vector<1024x1xi1> to vector<1024x2xi1>
    %19 = vector.broadcast %16 : f32 to vector<1024x2xf32>
    %20 = arith.select %18, %15, %19 : vector<1024x2xi1>, vector<1024x2xf32>
    %21 = vector.extract_strided_slice %20 {offsets = [0, 0], sizes = [1024, 1], strides = [1, 1]} : vector<1024x2xf32> to vector<1024x1xf32>
    %c0_6 = arith.constant 0 : index
    %c0_7 = arith.constant 0 : index
    %22 = vector.load %arg3[%c0_6, %c0_7] : memref<1x32xf32, #tpu.memory_space<vmem>>, vector<1x32xf32>
    %23 = vector.broadcast %21 : vector<1024x1xf32> to vector<1024x32xf32>
    %24 = vector.broadcast %22 : vector<1x32xf32> to vector<1024x32xf32>
    %25 = arith.mulf %23, %24 : vector<1024x32xf32>
    %26 = vector.extract_strided_slice %20 {offsets = [0, 1], sizes = [1024, 1], strides = [1, 1]} : vector<1024x2xf32> to vector<1024x1xf32>
    %c0_8 = arith.constant 0 : index
    %c0_9 = arith.constant 0 : index
    %27 = vector.load %arg4[%c0_8, %c0_9] : memref<1x32xf32, #tpu.memory_space<vmem>>, vector<1x32xf32>
    %28 = vector.broadcast %26 : vector<1024x1xf32> to vector<1024x32xf32>
    %29 = vector.broadcast %27 : vector<1x32xf32> to vector<1024x32xf32>
    %30 = arith.mulf %28, %29 : vector<1024x32xf32>
    %31 = arith.addf %25, %30 : vector<1024x32xf32>
    %c0_10 = arith.constant 0 : index
    %c0_11 = arith.constant 0 : index
    %32 = vector.load %arg5[%c0_10, %c0_11] : memref<1x32xf32, #tpu.memory_space<vmem>>, vector<1x32xf32>
    %33 = vector.broadcast %32 : vector<1x32xf32> to vector<1024x32xf32>
    %34 = arith.addf %31, %33 : vector<1024x32xf32>
    %cst = arith.constant 0.000000e+00 : f32
    %35 = vector.broadcast %cst : f32 to vector<1024x32xf32>
    %36 = arith.maximumf %34, %35 : vector<1024x32xf32>
    %c0_12 = arith.constant 0 : index
    %c0_13 = arith.constant 0 : index
    %37 = vector.load %arg6[%c0_12, %c0_13] : memref<32x32xf32, #tpu.memory_space<vmem>>, vector<32x32xf32>
    %cst_14 = arith.constant dense<0.000000e+00> : vector<1024x32xf32>
    %38 = tpu.matmul %36, %37, %cst_14 {dimension_numbers = #tpu.dot_dimension_numbers<[1], [0], [0], [1], [0, 0, 1, 1], [], []>} : vector<1024x32xf32>, vector<32x32xf32>, vector<1024x32xf32> -> vector<1024x32xf32>
    %c0_15 = arith.constant 0 : index
    %c0_16 = arith.constant 0 : index
    %39 = vector.load %arg7[%c0_15, %c0_16] : memref<1x32xf32, #tpu.memory_space<vmem>>, vector<1x32xf32>
    %40 = vector.broadcast %39 : vector<1x32xf32> to vector<1024x32xf32>
    %41 = arith.addf %38, %40 : vector<1024x32xf32>
    %c0_17 = arith.constant 0 : index
    %c0_18 = arith.constant 0 : index
    %42 = vector.load %arg8[%c0_17, %c0_18] : memref<128x64xf32, #tpu.memory_space<vmem>>, vector<128x64xf32>
    %cst_19 = arith.constant dense<0.000000e+00> : vector<1024x64xf32>
    %43 = tpu.matmul %14, %42, %cst_19 {dimension_numbers = #tpu.dot_dimension_numbers<[1], [0], [0], [1], [0, 0, 1, 1], [], []>} : vector<1024x128xf32>, vector<128x64xf32>, vector<1024x64xf32> -> vector<1024x64xf32>
    %c0_20 = arith.constant 0 : index
    %c0_21 = arith.constant 0 : index
    %44 = vector.load %arg9[%c0_20, %c0_21] : memref<32x64xf32, #tpu.memory_space<vmem>>, vector<32x64xf32>
    %cst_22 = arith.constant dense<0.000000e+00> : vector<1024x64xf32>
    %45 = tpu.matmul %41, %44, %cst_22 {dimension_numbers = #tpu.dot_dimension_numbers<[1], [0], [0], [1], [0, 0, 1, 1], [], []>} : vector<1024x32xf32>, vector<32x64xf32>, vector<1024x64xf32> -> vector<1024x64xf32>
    %46 = arith.addf %43, %45 : vector<1024x64xf32>
    %c0_23 = arith.constant 0 : index
    %c0_24 = arith.constant 0 : index
    %47 = vector.load %arg10[%c0_23, %c0_24] : memref<1x64xf32, #tpu.memory_space<vmem>>, vector<1x64xf32>
    %48 = vector.broadcast %47 : vector<1x64xf32> to vector<1024x64xf32>
    %49 = arith.addf %46, %48 : vector<1024x64xf32>
    %50 = math.tanh %49 : vector<1024x64xf32>
    %c0_25 = arith.constant 0 : index
    %c0_26 = arith.constant 0 : index
    %51 = vector.load %arg11[%c0_25, %c0_26] : memref<1x64xf32, #tpu.memory_space<vmem>>, vector<1x64xf32>
    %cst_27 = arith.constant dense<0.000000e+00> : vector<1x1024xf32>
    %52 = tpu.matmul %51, %50, %cst_27 {dimension_numbers = #tpu.dot_dimension_numbers<[1], [1], [0], [0], [0, 0, 1, 0], [], []>} : vector<1x64xf32>, vector<1024x64xf32>, vector<1x1024xf32> -> vector<1x1024xf32>
    %c0_28 = arith.constant 0 : index
    %c0_29 = arith.constant 0 : index
    %53 = memref.load %arg12[%c0_28, %c0_29] : memref<1x1xf32, #tpu.memory_space<smem>>
    %54 = vector.broadcast %53 : f32 to vector<1x1024xf32>
    %55 = arith.addf %52, %54 : vector<1x1024xf32>
    %c1024_i32_30 = arith.constant 1024 : i32
    %56 = arith.muli %arg0, %c1024_i32_30 : i32
    %57 = tpu.iota {dimensions = array<i32: 1>} : vector<1x1024xi32>
    %58 = vector.broadcast %56 : i32 to vector<1x1024xi32>
    %59 = arith.addi %58, %57 : vector<1x1024xi32>
    %c2000_i32_31 = arith.constant 2000 : i32
    %60 = vector.broadcast %c2000_i32_31 : i32 to vector<1x1024xi32>
    %61 = arith.cmpi slt, %59, %60 : vector<1x1024xi32>
    %cst_32 = arith.constant 0xFF800000 : f32
    %62 = vector.broadcast %cst_32 : f32 to vector<1x1024xf32>
    %63 = arith.select %61, %55, %62 : vector<1x1024xi1>, vector<1x1024xf32>
    %c1024_i32_33 = arith.constant 1024 : i32
    %64 = arith.muli %arg0, %c1024_i32_33 : i32
    %65 = tpu.assume_multiple %64, 1024 : i32
    %c0_34 = arith.constant 0 : index
    %66 = arith.index_cast %65 : i32 to index
    %67 = vector.load %arg20[%c0_34, %66] : memref<1x2048xf32, #tpu.memory_space<vmem>>, vector<1x1024xf32>
    tpu.vector_store %arg20[%c0_34, %66], %63 {strides = array<i32>} : memref<1x2048xf32, #tpu.memory_space<vmem>>, vector<1x1024xf32>,
    %c0_35 = arith.constant 0 : index
    %c0_36 = arith.constant 0 : index
    %68 = vector.load %arg22[%c0_35, %c0_36] : memref<1x1xf32, #tpu.memory_space<vmem>>, vector<1x1xf32>
    %cst_37 = arith.constant dense<0xFF800000> : vector<1xf32>
    %69 = vector.multi_reduction <maximumf>, %63, %cst_37 [1] : vector<1x1024xf32> to vector<1xf32>
    %70 = vector.shape_cast %69 : vector<1xf32> to vector<1x1xf32>
    %71 = arith.maximumf %68, %70 : vector<1x1xf32>
    %72 = arith.subf %68, %71 : vector<1x1xf32>
    %73 = math.exp %72 : vector<1x1xf32>
    %74 = vector.broadcast %71 : vector<1x1xf32> to vector<1x1024xf32>
    %75 = arith.subf %63, %74 : vector<1x1024xf32>
    %76 = math.exp %75 : vector<1x1024xf32>
    %cst_38 = arith.constant 0.000000e+00 : f32
    %77 = vector.broadcast %cst_38 : f32 to vector<1x1024xf32>
    %78 = arith.select %61, %76, %77 : vector<1x1024xi1>, vector<1x1024xf32>
    %c0_39 = arith.constant 0 : index
    %c0_40 = arith.constant 0 : index
    %79 = vector.load %arg23[%c0_39, %c0_40] : memref<1x1xf32, #tpu.memory_space<vmem>>, vector<1x1xf32>
    %80 = arith.mulf %73, %79 : vector<1x1xf32>
    %cst_41 = arith.constant dense<0.000000e+00> : vector<1xf32>
    %81 = vector.multi_reduction <add>, %78, %cst_41 [1] : vector<1x1024xf32> to vector<1xf32>
    %82 = vector.shape_cast %81 : vector<1xf32> to vector<1x1xf32>
    %83 = arith.addf %80, %82 : vector<1x1xf32>
    %c0_42 = arith.constant 0 : index
    %c0_43 = arith.constant 0 : index
    %84 = vector.load %arg23[%c0_42, %c0_43] : memref<1x1xf32, #tpu.memory_space<vmem>>, vector<1x1xf32>
    tpu.vector_store %arg23[%c0_42, %c0_43], %83 {strides = array<i32>} : memref<1x1xf32, #tpu.memory_space<vmem>>, vector<1x1xf32>,
    %c0_44 = arith.constant 0 : index
    %c0_45 = arith.constant 0 : index
    %85 = vector.load %arg24[%c0_44, %c0_45] : memref<1x128xf32, #tpu.memory_space<vmem>>, vector<1x128xf32>
    %86 = vector.broadcast %73 : vector<1x1xf32> to vector<1x128xf32>
    %87 = arith.mulf %86, %85 : vector<1x128xf32>
    %cst_46 = arith.constant dense<0.000000e+00> : vector<1x128xf32>
    %88 = tpu.matmul %78, %14, %cst_46 {dimension_numbers = #tpu.dot_dimension_numbers<[1], [0], [0], [1], [0, 0, 1, 1], [], []>} : vector<1x1024xf32>, vector<1024x128xf32>, vector<1x128xf32> -> vector<1x128xf32>
    %89 = arith.addf %87, %88 : vector<1x128xf32>
    %c0_47 = arith.constant 0 : index
    %c0_48 = arith.constant 0 : index
    %90 = vector.load %arg24[%c0_47, %c0_48] : memref<1x128xf32, #tpu.memory_space<vmem>>, vector<1x128xf32>
    tpu.vector_store %arg24[%c0_47, %c0_48], %89 {strides = array<i32>} : memref<1x128xf32, #tpu.memory_space<vmem>>, vector<1x128xf32>,
    %c0_49 = arith.constant 0 : index
    %c0_50 = arith.constant 0 : index
    %91 = vector.load %arg25[%c0_49, %c0_50] : memref<1x32xf32, #tpu.memory_space<vmem>>, vector<1x32xf32>
    %92 = vector.broadcast %73 : vector<1x1xf32> to vector<1x32xf32>
    %93 = arith.mulf %92, %91 : vector<1x32xf32>
    %cst_51 = arith.constant dense<0.000000e+00> : vector<1x32xf32>
    %94 = tpu.matmul %78, %41, %cst_51 {dimension_numbers = #tpu.dot_dimension_numbers<[1], [0], [0], [1], [0, 0, 1, 1], [], []>} : vector<1x1024xf32>, vector<1024x32xf32>, vector<1x32xf32> -> vector<1x32xf32>
    %95 = arith.addf %93, %94 : vector<1x32xf32>
    %c0_52 = arith.constant 0 : index
    %c0_53 = arith.constant 0 : index
    %96 = vector.load %arg25[%c0_52, %c0_53] : memref<1x32xf32, #tpu.memory_space<vmem>>, vector<1x32xf32>
    tpu.vector_store %arg25[%c0_52, %c0_53], %95 {strides = array<i32>} : memref<1x32xf32, #tpu.memory_space<vmem>>, vector<1x32xf32>,
    %c0_54 = arith.constant 0 : index
    %c0_55 = arith.constant 0 : index
    %97 = vector.load %arg22[%c0_54, %c0_55] : memref<1x1xf32, #tpu.memory_space<vmem>>, vector<1x1xf32>
    tpu.vector_store %arg22[%c0_54, %c0_55], %71 {strides = array<i32>} : memref<1x1xf32, #tpu.memory_space<vmem>>, vector<1x1xf32>,
    %c1_i32 = arith.constant 1 : i32
    %98 = arith.cmpi eq, %arg0, %c1_i32 : i32
    %99 = arith.extui %98 : i1 to i32
    %c0_i32_56 = arith.constant 0 : i32
    %100 = arith.cmpi ne, %99, %c0_i32_56 : i32
    scf.if %100 {
      %c0_57 = arith.constant 0 : index
      %c0_58 = arith.constant 0 : index
      %101 = vector.load %arg23[%c0_57, %c0_58] : memref<1x1xf32, #tpu.memory_space<vmem>>, vector<1x1xf32>
      %cst_59 = arith.constant 1.000000e+00 : f32
      %102 = vector.broadcast %cst_59 : f32 to vector<1x1xf32>
      %103 = arith.divf %102, %101 : vector<1x1xf32>
      %c0_60 = arith.constant 0 : index
      %c0_61 = arith.constant 0 : index
      %104 = vector.load %arg24[%c0_60, %c0_61] : memref<1x128xf32, #tpu.memory_space<vmem>>, vector<1x128xf32>
      %105 = vector.broadcast %103 : vector<1x1xf32> to vector<1x128xf32>
      %106 = arith.mulf %104, %105 : vector<1x128xf32>
      %c0_62 = arith.constant 0 : index
      %c0_63 = arith.constant 0 : index
      %107 = vector.load %arg25[%c0_62, %c0_63] : memref<1x32xf32, #tpu.memory_space<vmem>>, vector<1x32xf32>
      %108 = vector.broadcast %103 : vector<1x1xf32> to vector<1x32xf32>
      %109 = arith.mulf %107, %108 : vector<1x32xf32>
      %c0_64 = arith.constant 0 : index
      %c0_65 = arith.constant 0 : index
      %110 = vector.load %arg18[%c0_64, %c0_65] : memref<1x128xf32, #tpu.memory_space<vmem>>, vector<1x128xf32>
      tpu.vector_store %arg18[%c0_64, %c0_65], %106 {strides = array<i32>} : memref<1x128xf32, #tpu.memory_space<vmem>>, vector<1x128xf32>,
      %c0_66 = arith.constant 0 : index
      %c0_67 = arith.constant 0 : index
      %111 = vector.load %arg19[%c0_66, %c0_67] : memref<1x32xf32, #tpu.memory_space<vmem>>, vector<1x32xf32>
      tpu.vector_store %arg19[%c0_66, %c0_67], %109 {strides = array<i32>} : memref<1x32xf32, #tpu.memory_space<vmem>>, vector<1x32xf32>,
      %c0_68 = arith.constant 0 : index
      %c0_69 = arith.constant 0 : index
      %112 = vector.load %arg20[%c0_68, %c0_69] : memref<1x2048xf32, #tpu.memory_space<vmem>>, vector<1x2048xf32>
      %c0_70 = arith.constant 0 : index
      %c0_71 = arith.constant 0 : index
      %113 = vector.load %arg22[%c0_70, %c0_71] : memref<1x1xf32, #tpu.memory_space<vmem>>, vector<1x1xf32>
      %114 = vector.broadcast %113 : vector<1x1xf32> to vector<1x2048xf32>
      %115 = arith.subf %112, %114 : vector<1x2048xf32>
      %116 = math.exp %115 : vector<1x2048xf32>
      %117 = vector.broadcast %103 : vector<1x1xf32> to vector<1x2048xf32>
      %118 = arith.mulf %116, %117 : vector<1x2048xf32>
      %c0_72 = arith.constant 0 : index
      %c0_73 = arith.constant 0 : index
      %119 = vector.load %arg20[%c0_72, %c0_73] : memref<1x2048xf32, #tpu.memory_space<vmem>>, vector<1x2048xf32>
      tpu.vector_store %arg20[%c0_72, %c0_73], %118 {strides = array<i32>} : memref<1x2048xf32, #tpu.memory_space<vmem>>, vector<1x2048xf32>,
      %c0_74 = arith.constant 0 : index
      %c0_75 = arith.constant 0 : index
      %120 = vector.load %arg13[%c0_74, %c0_75] : memref<128x64xf32, #tpu.memory_space<vmem>>, vector<128x64xf32>
      %cst_76 = arith.constant dense<0.000000e+00> : vector<1x64xf32>
      %121 = tpu.matmul %106, %120, %cst_76 {dimension_numbers = #tpu.dot_dimension_numbers<[1], [0], [0], [1], [0, 0, 1, 1], [], []>} : vector<1x128xf32>, vector<128x64xf32>, vector<1x64xf32> -> vector<1x64xf32>
      %c0_77 = arith.constant 0 : index
      %c0_78 = arith.constant 0 : index
      %122 = vector.load %arg14[%c0_77, %c0_78] : memref<32x64xf32, #tpu.memory_space<vmem>>, vector<32x64xf32>
      %cst_79 = arith.constant dense<0.000000e+00> : vector<1x64xf32>
      %123 = tpu.matmul %109, %122, %cst_79 {dimension_numbers = #tpu.dot_dimension_numbers<[1], [0], [0], [1], [0, 0, 1, 1], [], []>} : vector<1x32xf32>, vector<32x64xf32>, vector<1x64xf32> -> vector<1x64xf32>
      %124 = arith.addf %121, %123 : vector<1x64xf32>
      %c0_80 = arith.constant 0 : index
      %c0_81 = arith.constant 0 : index
      %125 = vector.load %arg15[%c0_80, %c0_81] : memref<1x64xf32, #tpu.memory_space<vmem>>, vector<1x64xf32>
      %126 = arith.addf %124, %125 : vector<1x64xf32>
      %cst_82 = arith.constant 0.000000e+00 : f32
      %127 = vector.broadcast %cst_82 : f32 to vector<1x64xf32>
      %128 = arith.maximumf %126, %127 : vector<1x64xf32>
      %c0_83 = arith.constant 0 : index
      %c0_84 = arith.constant 0 : index
      %129 = vector.load %arg16[%c0_83, %c0_84] : memref<1x64xf32, #tpu.memory_space<vmem>>, vector<1x64xf32>
      %130 = arith.mulf %128, %129 : vector<1x64xf32>
      %cst_85 = arith.constant dense<0.000000e+00> : vector<1xf32>
      %131 = vector.multi_reduction <add>, %130, %cst_85 [1] : vector<1x64xf32> to vector<1xf32>
      %132 = vector.shape_cast %131 : vector<1xf32> to vector<1x1xf32>
      %c0_86 = arith.constant 0 : index
      %c0_87 = arith.constant 0 : index
      %133 = memref.load %arg17[%c0_86, %c0_87] : memref<1x1xf32, #tpu.memory_space<smem>>
      %134 = vector.broadcast %133 : f32 to vector<1x1xf32>
      %135 = arith.addf %132, %134 : vector<1x1xf32>
      %136 = arith.negf %135 : vector<1x1xf32>
      %137 = math.exp %136 : vector<1x1xf32>
      %cst_88 = arith.constant 1.000000e+00 : f32
      %138 = vector.broadcast %cst_88 : f32 to vector<1x1xf32>
      %139 = arith.addf %138, %137 : vector<1x1xf32>
      %140 = arith.divf %138, %139 : vector<1x1xf32>
      %c0_89 = arith.constant 0 : index
      %c0_90 = arith.constant 0 : index
      %141 = vector.load %arg21[%c0_89, %c0_90] : memref<1x1xf32, #tpu.memory_space<vmem>>, vector<1x1xf32>
      tpu.vector_store %arg21[%c0_89, %c0_90], %140 {strides = array<i32>} : memref<1x1xf32, #tpu.memory_space<vmem>>, vector<1x1xf32>,
    } else {
    }
    return
  }
  func.func @transform_0(%arg0: i32) -> (i32, i32) {
    %c0_i32 = arith.constant 0 : i32
    %c0_i32_0 = arith.constant 0 : i32
    return %arg0, %c0_i32 : i32, i32
  }
  func.func @transform_1(%arg0: i32) -> (i32, i32) {
    %c0_i32 = arith.constant 0 : i32
    %c0_i32_0 = arith.constant 0 : i32
    return %arg0, %c0_i32 : i32, i32
  }
  func.func @transform_2(%arg0: i32) -> (i32, i32) {
    %c0_i32 = arith.constant 0 : i32
    %c0_i32_0 = arith.constant 0 : i32
    %c0_i32_1 = arith.constant 0 : i32
    return %c0_i32, %c0_i32_0 : i32, i32
  }
  func.func @transform_3(%arg0: i32) -> (i32, i32) {
    %c0_i32 = arith.constant 0 : i32
    %c0_i32_0 = arith.constant 0 : i32
    %c0_i32_1 = arith.constant 0 : i32
    return %c0_i32, %c0_i32_0 : i32, i32
  }
  func.func @transform_4(%arg0: i32) -> (i32, i32) {
    %c0_i32 = arith.constant 0 : i32
    %c0_i32_0 = arith.constant 0 : i32
    %c0_i32_1 = arith.constant 0 : i32
    return %c0_i32, %c0_i32_0 : i32, i32
  }
  func.func @transform_5(%arg0: i32) -> (i32, i32) {
    %c0_i32 = arith.constant 0 : i32
    %c0_i32_0 = arith.constant 0 : i32
    %c0_i32_1 = arith.constant 0 : i32
    return %c0_i32, %c0_i32_0 : i32, i32
  }
  func.func @transform_6(%arg0: i32) -> (i32, i32) {
    %c0_i32 = arith.constant 0 : i32
    %c0_i32_0 = arith.constant 0 : i32
    %c0_i32_1 = arith.constant 0 : i32
    return %c0_i32, %c0_i32_0 : i32, i32
  }
  func.func @transform_7(%arg0: i32) -> (i32, i32) {
    %c0_i32 = arith.constant 0 : i32
    %c0_i32_0 = arith.constant 0 : i32
    %c0_i32_1 = arith.constant 0 : i32
    return %c0_i32, %c0_i32_0 : i32, i32
  }
  func.func @transform_8(%arg0: i32) -> (i32, i32) {
    %c0_i32 = arith.constant 0 : i32
    %c0_i32_0 = arith.constant 0 : i32
    %c0_i32_1 = arith.constant 0 : i32
    return %c0_i32, %c0_i32_0 : i32, i32
  }
  func.func @transform_9(%arg0: i32) -> (i32, i32) {
    %c0_i32 = arith.constant 0 : i32
    %c0_i32_0 = arith.constant 0 : i32
    %c0_i32_1 = arith.constant 0 : i32
    return %c0_i32, %c0_i32_0 : i32, i32
  }
  func.func @transform_10(%arg0: i32) -> (i32, i32) {
    %c0_i32 = arith.constant 0 : i32
    %c0_i32_0 = arith.constant 0 : i32
    %c0_i32_1 = arith.constant 0 : i32
    return %c0_i32, %c0_i32_0 : i32, i32
  }
  func.func @transform_11(%arg0: i32) -> (i32, i32) {
    %c0_i32 = arith.constant 0 : i32
    %c0_i32_0 = arith.constant 0 : i32
    %c0_i32_1 = arith.constant 0 : i32
    return %c0_i32, %c0_i32_0 : i32, i32
  }
  func.func @transform_12(%arg0: i32) -> (i32, i32) {
    %c0_i32 = arith.constant 0 : i32
    %c0_i32_0 = arith.constant 0 : i32
    %c0_i32_1 = arith.constant 0 : i32
    return %c0_i32, %c0_i32_0 : i32, i32
  }
  func.func @transform_13(%arg0: i32) -> (i32, i32) {
    %c0_i32 = arith.constant 0 : i32
    %c0_i32_0 = arith.constant 0 : i32
    %c0_i32_1 = arith.constant 0 : i32
    return %c0_i32, %c0_i32_0 : i32, i32
  }
  func.func @transform_14(%arg0: i32) -> (i32, i32) {
    %c0_i32 = arith.constant 0 : i32
    %c0_i32_0 = arith.constant 0 : i32
    %c0_i32_1 = arith.constant 0 : i32
    return %c0_i32, %c0_i32_0 : i32, i32
  }
  func.func @transform_15(%arg0: i32) -> (i32, i32) {
    %c0_i32 = arith.constant 0 : i32
    %c0_i32_0 = arith.constant 0 : i32
    %c0_i32_1 = arith.constant 0 : i32
    return %c0_i32, %c0_i32_0 : i32, i32
  }
  func.func @transform_16(%arg0: i32) -> (i32, i32) {
    %c0_i32 = arith.constant 0 : i32
    %c0_i32_0 = arith.constant 0 : i32
    %c0_i32_1 = arith.constant 0 : i32
    return %c0_i32, %c0_i32_0 : i32, i32
  }
  func.func @transform_17(%arg0: i32) -> (i32, i32) {
    %c0_i32 = arith.constant 0 : i32
    %c0_i32_0 = arith.constant 0 : i32
    %c0_i32_1 = arith.constant 0 : i32
    return %c0_i32, %c0_i32_0 : i32, i32
  }
  func.func @transform_18(%arg0: i32) -> (i32, i32) {
    %c0_i32 = arith.constant 0 : i32
    %c0_i32_0 = arith.constant 0 : i32
    %c0_i32_1 = arith.constant 0 : i32
    return %c0_i32, %c0_i32_0 : i32, i32
  }
  func.func @transform_19(%arg0: i32) -> (i32, i32) {
    %c0_i32 = arith.constant 0 : i32
    %c0_i32_0 = arith.constant 0 : i32
    %c0_i32_1 = arith.constant 0 : i32
    return %c0_i32, %c0_i32_0 : i32, i32
  }
  func.func @transform_20(%arg0: i32) -> (i32, i32) {
    %c0_i32 = arith.constant 0 : i32
    %c0_i32_0 = arith.constant 0 : i32
    %c0_i32_1 = arith.constant 0 : i32
    return %c0_i32, %c0_i32_0 : i32, i32
  }
}

</mosaic_0001>

<bundles_post_ra>
// kernel: tpu_custom_call.1
= control target key start
LH: loop header
LB: loop body
LE: loop exit
PB: predicated region body
PF: predicated region fallthrough
CT: control target
= control target key end

     0   :  { %s17663_s0 = inlined_call_operand.vmem [shape: f32[2000,128], index: 0, kind: input, shape index: {}]   ;;  %s17664_s1 = inlined_call_operand.vmem [shape: f32[2000,2], index: 1, kind: input, shape index: {}]   ;;  %s17665_s2 = inlined_call_operand.vmem [shape: f32[1,32], index: 2, kind: input, shape index: {}]   ;;  %s17666_s3 = inlined_call_operand.vmem [shape: f32[1,32], index: 3, kind: input, shape index: {}]   ;;  %s17667_s4 = inlined_call_operand.vmem [shape: f32[1,32], index: 4, kind: input, shape index: {}]   ;;  %s17668_s5 = inlined_call_operand.vmem [shape: f32[32,32], index: 5, kind: input, shape index: {}]   ;;  %s17669_s6 = inlined_call_operand.vmem [shape: f32[1,32], index: 6, kind: input, shape index: {}]   ;;  %s17670_s7 = inlined_call_operand.vmem [shape: f32[128,64], index: 7, kind: input, shape index: {}]   ;;  %s17671_s8 = inlined_call_operand.vmem [shape: f32[32,64], index: 8, kind: input, shape index: {}]   ;;  %s17672_s9 = inlined_call_operand.vmem [shape: f32[1,64], index: 9, kind: input, shape index: {}]   ;;  %s17673_s10 = inlined_call_operand.vmem [shape: f32[1,64], index: 10, kind: input, shape index: {}]   ;;  %s17674_s11 = inlined_call_operand.<no memory space> [shape: f32[1,1], index: 11, kind: input, shape index: {}]   ;;  %s17675_s12 = inlined_call_operand.vmem [shape: f32[128,64], index: 12, kind: input, shape index: {}]   ;;  %s17676_s13 = inlined_call_operand.vmem [shape: f32[32,64], index: 13, kind: input, shape index: {}]   ;;  %s17677_s14 = inlined_call_operand.vmem [shape: f32[1,64], index: 14, kind: input, shape index: {}]   ;;  %s17678_s15 = inlined_call_operand.vmem [shape: f32[1,64], index: 15, kind: input, shape index: {}]   ;;  %s17679_s16 = inlined_call_operand.<no memory space> [shape: f32[1,1], index: 16, kind: input, shape index: {}]   ;;  %s17680_s17 = inlined_call_operand.hbm [shape: f32[1,128], index: 17, kind: output, shape index: {0}]   ;;  %s17681_s18 = inlined_call_operand.hbm [shape: f32[1,32], index: 18, kind: output, shape index: {1}]   ;;  %s17682_s19 = inlined_call_operand.hbm [shape: f32[1,2048], index: 19, kind: output, shape index: {2}]   ;;  %s17683_s20 = inlined_call_operand.hbm [shape: f32[1,1], index: 20, kind: output, shape index: {3}]  }
   0x1   :  { %18209 = sst [smem:[#allocation272_spill]] %s17663_s0 }
   0x2   :  { %18210 = sst [smem:[#allocation273_spill]] %s17664_s1 }
   0x3   :  { %18211 = sst [smem:[#allocation274_spill]] %s17665_s2 }
   0x4   :  { %18212 = sst [smem:[#allocation275_spill]] %s17666_s3 }
   0x5   :  { %18213 = sst [smem:[#allocation276_spill]] %s17667_s4 }
   0x6   :  { %26 = sst [smem:[#allocation6]] %s17674_s11 }
   0x7   :  { %27 = sst [smem:[#allocation7]] %s17679_s16 }
   0x8   :  { %28 = vsyncpa [#allocation9], 0 }
   0x9   :  { %29 = vsyncpa [#allocation11], 0 }
   0xa   :  { %30 = vsyncpa [#allocation14], 0  ;;  %s12251_s2 = smov 0  }
   0xb LB: > { %s12257_s25 = sadd.s32 4294967295, %s12125_s2   ;;  %p8620_p0 = scmp.ge.s32.totalorder %s12125_s2, 1  ;;  %s12125_s2 = sphi %s12251_s2, %s36_s2  }
   0xc   : > { %p582_p1 = scmp.lt.s32.totalorder %s12125_s2, 3 }
   0xe   : > { %p583_p2 = pnand %p8620_p0, %p582_p1 }
  0x10   : > { %586 = sbr.rel (%p583_p2) target bundleno = 2832 (0xb10), region = 88 }
  0x17   : > { %s8621_s11 = sshll.u32 %s12257_s25, 7  ;;  %s18214_s27 = sld [smem:[#allocation272_spill]] }
  0x18   : > { %p653_p3 = scmp.lt.s32.totalorder %s8621_s11, 249  ;;  %s18215_s30 = sld [smem:[#allocation273_spill]] }
  0x19   : > { %p8625_p4 = scmp.ne.s32.totalorder %s12257_s25, 0 }
  0x1a   : > { %s19160_s11 = smov (!%p653_p3, %s8621_s11), 249  ;;  %vm680_vm0 = vcmask (!%p8625_p4), 0   ;;  %vm684_vm1 = vcmask (!%p8625_p4), 253952   ;;  %v12127_v0 = vmov (!%p8625_p4), -inf   ;;  %v12128_v1 = vmov (!%p8625_p4), 0.0  }
  0x1b   : > { %s8622_s16 = sshll.u32 %s19160_s11, 3  ;;  %679 = sbr.rel (%p8625_p4) target bundleno = 34 (0x22), region = 92  ;;  %681 = vst.msk [vmem:[#allocation2] sm:$0x1] (!%p8625_p4), %vm680_vm0, %v12127_v0  ;;  %682 = vst.msk [vmem:[#allocation3] sm:$0x1] (!%p8625_p4), %vm680_vm0, %v12128_v1 }
  0x1c   : > { %683 = vst [vmem:[#allocation4] sm:$0x1] (!%p8625_p4), %v12128_v1  ;;  %685 = vst.msk [vmem:[#allocation5] sm:$0x1] (!%p8625_p4), %vm684_vm1, %v12128_v1 }
  0x1d   : > { %s12265_s28 = scalar_lea.vmem %s18214_s27, %s8622_s16 }
  0x1e   : > { %s12270_s0 = scalar_lea.vmem %s18215_s30, %s8622_s16 }
  0x22 PF: > { %s8626_s21 = sshll.u32 %s12257_s25, 10  ;;  %v17708_v2 = vlaneseq  ;;  %v17710_v3 = vmov 0   ;;  %v1585_v7 = vld [vmem:[%s12270_s0] sm:$0xff]  ;;  %v1586_v14 = vld [vmem:[%s12270_s0 + $0x8] sm:$0xff]  ;;  %v17713_v29 = vmov 1   ;;  %v1587_v30 = vld [vmem:[%s12270_s0 + $0x10] sm:$0xff] }
  0x23   : > { %11588 = vset.pattern.permute.xlu0 %v17710_v3  ;;  %v12277_v4 = vstv %s8626_s21  ;;  %11589 = vset.pattern.permute.xlu1 %v17710_v3  ;;  %v1705_v16 = vld [vmem:[%s12270_s0 + $0x3c0] sm:$0xff]  ;;  %v1686_v23 = vld [vmem:[%s12270_s0 + $0x328] sm:$0xff]  ;;  %v1707_v31 = vld [vmem:[%s12270_s0 + $0x3d0] sm:$0xff]  ;;  %s18267_s29 = sld [smem:[#allocation275_spill]]  ;;  %s18269_s22 = sld [smem:[#allocation274_spill]] }
  0x24   : > { %18216 = vst [vmem:[#allocation18_spill] sm:$0xff] %v12277_v4  ;;  %v12281_v5 = vshrl.u32 %v17708_v2, 7  ;;  %v1588_v36 = vld [vmem:[%s12270_s0 + $0x18] sm:$0xff]  ;;  %v1589_v46 = vld [vmem:[%s12270_s0 + $0x20] sm:$0xff]  ;;  %v1590_v54 = vld [vmem:[%s12270_s0 + $0x28] sm:$0xff]  ;;  %s18271_s11 = sld [smem:[#allocation276_spill]] }
  0x25   : > { %v1688_v37 = vld [vmem:[%s12270_s0 + $0x338] sm:$0xff]  ;;  %v1709_v47 = vld [vmem:[%s12270_s0 + $0x3e0] sm:$0xff]  ;;  %v1690_v55 = vld [vmem:[%s12270_s0 + $0x348] sm:$0xff]  ;;  %s6833_s24 = sld [smem:[#allocation6]]  ;;  %s7598_s16 = sshra.s32 %s8626_s21, 7 }
  0x26   : > { %18217 = vst [vmem:[#allocation19_spill] sm:$0xff] %v12281_v5  ;;  %v12285_v6 = vadd.s32 %v12277_v4, %v12281_v5  ;;  %v689_v8 = vadd.s32 8, %v12281_v5  ;;  %v808_v9 = vadd.s32 960, %v12281_v5  ;;  %v789_v10 = vadd.s32 808, %v12281_v5  ;;  %v1591_v61 = vld [vmem:[%s12270_s0 + $0x30] sm:$0xff]  ;;  %s7600_s3 = scalar_lea.vmem [#allocation12], %s7598_s16 }
  0x27   : > { %v690_v11 = vadd.s32 16, %v12281_v5  ;;  %v810_v12 = vadd.s32 976, %v12281_v5  ;;  %v691_v21 = vadd.s32 24, %v12281_v5  ;;  %v791_v22 = vadd.s32 824, %v12281_v5  ;;  %v1711_v62 = vld [vmem:[%s12270_s0 + $0x3f0] sm:$0xff]  ;;  %p9292_p5 = scmp.ne.s32.totalorder %s12257_s25, 1 }
  0x28   : > { %18218 = vst [vmem:[#allocation20_spill] sm:$0xff] %v12285_v6  ;;  %vm18158_vm2 = vcmp.lt.s32.totalorder %v12285_v6, 2000  ;;  %v12295_v13 = vadd.s32 %v12277_v4, %v689_v8  ;;  %v12299_v15 = vadd.s32 %v12277_v4, %v808_v9  ;;  %v12303_v17 = vadd.s32 %v12277_v4, %v789_v10  ;;  %v1592_v8 = vld [vmem:[%s12270_s0 + $0x38] sm:$0xff]  ;;  %s8483_s23 = sld [smem:[#allocation7]] (!%p9292_p5) }
  0x29   : > { %v12307_v18 = vsel %vm18158_vm2, %v1585_v7, 0.0  ;;  %v12323_v24 = vadd.s32 %v12277_v4, %v690_v11  ;;  %v12326_v25 = vadd.s32 %v12277_v4, %v810_v12  ;;  %v12334_v27 = vadd.s32 %v12277_v4, %v691_v21  ;;  %v1692_v9 = vld [vmem:[%s12270_s0 + $0x358] sm:$0xff] }
  0x2a   : > { %18219 = vst [vmem:[#allocation21_spill] sm:$0xff] %v12295_v13  ;;  %18220 = vst [vmem:[#allocation22_spill] sm:$0xff] %v12299_v15  ;;  %1844 = vperm.xlu0 %11588, %v12307_v18   ;;  %vm18166_vm3 = vcmp.lt.s32.totalorder %v12295_v13, 2000  ;;  %vm17690_vm4 = vcmp.lt.s32.totalorder %v12299_v15, 2000  ;;  %vm17694_vm5 = vcmp.lt.s32.totalorder %v12303_v17, 2000  ;;  %v12337_v28 = vadd.s32 %v12277_v4, %v791_v22  ;;  %v1706_v13 = vld [vmem:[%s12270_s0 + $0x3c8] sm:$0xff] }
  0x2b   : > { %18221 = vst [vmem:[#allocation23_spill] sm:$0xff] %v12303_v17  ;;  %v1714_v19 = vsel %vm18166_vm3, %v1586_v14, 0.0  ;;  %v12316_v20 = vsel %vm17690_vm4, %v1705_v16, 0.0  ;;  %18222 = vst [vmem:[#allocation24_spill] sm:$0xff] %v12323_v24  ;;  %v12331_v26 = vsel %vm17694_vm5, %v1686_v23, 0.0  ;;  %vm18162_vm6 = vcmp.lt.s32.totalorder %v12323_v24, 2000 }
  0x2c   : > { %1849 = vperm.xlu1 %11589, %v1714_v19   ;;  %18223 = vst [vmem:[#allocation25_spill] sm:$0xff] %v12326_v25  ;;  %18224 = vst [vmem:[#allocation26_spill] sm:$0xff] %v12334_v27  ;;  %vm17689_vm7 = vcmp.lt.s32.totalorder %v12326_v25, 2000  ;;  %v692_v32 = vadd.s32 32, %v12281_v5  ;;  %v812_v33 = vadd.s32 992, %v12281_v5  ;;  %v12349_v34 = vsel %vm18162_vm6, %v1587_v30, 0.0 }
  0x2d   : > { %18225 = vst [vmem:[#allocation27_spill] sm:$0xff] %v12337_v28  ;;  %v12353_v35 = vsel %vm17689_vm7, %v1707_v31, 0.0  ;;  %vm17934_vm8 = vcmp.lt.s32.totalorder %v12334_v27, 2000  ;;  %vm17693_vm9 = vcmp.lt.s32.totalorder %v12337_v28, 2000  ;;  %v693_v40 = vadd.s32 40, %v12281_v5  ;;  %v1593_v16 = vld [vmem:[%s12270_s0 + $0x40] sm:$0xff] }
  0x2e   : > { %2444 = vperm.xlu0 %11588, %v12316_v20   ;;  %v12360_v38 = vadd.s32 %v12277_v4, %v692_v32  ;;  %v12363_v39 = vadd.s32 %v12277_v4, %v812_v33  ;;  %v793_v41 = vadd.s32 840, %v12281_v5  ;;  %v12372_v42 = vsel %vm17934_vm8, %v1588_v36, 0.0  ;;  %v1594_v23 = vld [vmem:[%s12270_s0 + $0x48] sm:$0xff]  ;;  %v1595_v33 = vld [vmem:[%s12270_s0 + $0x50] sm:$0xff] }
  0x2f   : > { %v12376_v43 = vsel %vm17693_vm9, %v1688_v37, 0.0  ;;  %v694_v44 = vadd.s32 48, %v12281_v5  ;;  %v814_v45 = vadd.s32 1008, %v12281_v5  ;;  %v12385_v48 = vadd.s32 %v12277_v4, %v693_v40  ;;  %v3654_v40 = vld [vmem:[%s17668_s5] sm:$0xff] }
  0x30   : > { %11590 = vset.pattern.permute.xlu1 %v17713_v29  ;;  %18226 = vst [vmem:[#allocation28_spill] sm:$0xff] %v12360_v38  ;;  %18227 = vst [vmem:[#allocation29_spill] sm:$0xff] %v12363_v39  ;;  %vm17931_vm10 = vcmp.lt.s32.totalorder %v12360_v38, 2000  ;;  %vm17688_vm11 = vcmp.lt.s32.totalorder %v12363_v39, 2000  ;;  %v12388_v49 = vadd.s32 %v12277_v4, %v793_v41  ;;  %v695_v52 = vadd.s32 56, %v12281_v5  ;;  %v3655_v41 = vld [vmem:[%s17668_s5 + $0x8] sm:$0xff] }
  0x31   : > { %2622 = vperm.xlu1 %11590, %v1714_v19   ;;  %18228 = vst [vmem:[#allocation30_spill] sm:$0xff] %v12385_v48  ;;  %v12394_v50 = vsel %vm17931_vm10, %v1589_v46, 0.0  ;;  %v12398_v51 = vsel %vm17688_vm11, %v1709_v47, 0.0  ;;  %v795_v53 = vadd.s32 856, %v12281_v5  ;;  %vm17922_vm12 = vcmp.lt.s32.totalorder %v12385_v48, 2000  ;;  %v1596_v46 = vld [vmem:[%s12270_s0 + $0x58] sm:$0xff] }
  0x32   : > { %2349 = vperm.xlu0 %11588, %v12331_v26   ;;  %18229 = vst [vmem:[#allocation31_spill] sm:$0xff] %v12388_v49  ;;  %vm17692_vm13 = vcmp.lt.s32.totalorder %v12388_v49, 2000  ;;  %v12407_v56 = vadd.s32 %v12277_v4, %v694_v44  ;;  %v12410_v57 = vadd.s32 %v12277_v4, %v814_v45  ;;  %v12416_v58 = vsel %vm17922_vm12, %v1590_v54, 0.0  ;;  %v3656_v44 = vld [vmem:[%s17668_s5 + $0x10] sm:$0xff]  ;;  %v3657_v45 = vld [vmem:[%s17668_s5 + $0x18] sm:$0xff] }
  0x33   : > { %v12420_v59 = vsel %vm17692_vm13, %v1690_v55, 0.0  ;;  %v12423_v60 = vadd.s32 %v12277_v4, %v695_v52  ;;  %v12430_v63 = vadd.s32 %v12277_v4, %v795_v53  ;;  %v696_v0 = vadd.s32 64, %v12281_v5  ;;  %v1597_v55 = vld [vmem:[%s12270_s0 + $0x60] sm:$0xff]  ;;  %v1619_v49 = vld [vmem:[%s12270_s0 + $0x110] sm:$0xff] }
  0x34   : > { %18230 = vst [vmem:[#allocation32_spill] sm:$0xff] %v12407_v56  ;;  %18231 = vst [vmem:[#allocation33_spill] sm:$0xff] %v12410_v57  ;;  %vm17919_vm14 = vcmp.lt.s32.totalorder %v12407_v56, 2000  ;;  %vm17687_vm15 = vcmp.lt.s32.totalorder %v12410_v57, 2000  ;;  %v697_v11 = vadd.s32 72, %v12281_v5  ;;  %v698_v21 = vadd.s32 80, %v12281_v5 }
  0x35   : > { %11591 = vset.pattern.permute.xlu1 %v17710_v3  ;;  %18232 = vst [vmem:[#allocation34_spill] sm:$0xff] %v12423_v60  ;;  %18233 = vst [vmem:[#allocation35_spill] sm:$0xff] %v12430_v63  ;;  %v12437_v1 = vsel %vm17919_vm14, %v1591_v61, 0.0  ;;  %v12441_v7 = vsel %vm17687_vm15, %v1711_v62, 0.0  ;;  %vm17886_vm0 = vcmp.lt.s32.totalorder %v12423_v60, 2000  ;;  %vm17691_vm1 = vcmp.lt.s32.totalorder %v12430_v63, 2000 }
  0x36   : > { %1854 = vperm.xlu1 %11591, %v12349_v34   ;;  %2454 = vperm.xlu0 %11588, %v12353_v35   ;;  %v12448_v10 = vadd.s32 %v12277_v4, %v696_v0  ;;  %v12455_v12 = vsel %vm17886_vm0, %v1592_v8, 0.0  ;;  %v12459_v14 = vsel %vm17691_vm1, %v1692_v9, 0.0  ;;  %v12464_v19 = vadd.s32 %v12277_v4, %v697_v11  ;;  %v1598_v0 = vld [vmem:[%s12270_s0 + $0x68] sm:$0xff]  ;;  %v1599_v11 = vld [vmem:[%s12270_s0 + $0x70] sm:$0xff] }
  0x37   : > { %v12476_v30 = vadd.s32 %v12277_v4, %v698_v21  ;;  %v699_v31 = vadd.s32 88, %v12281_v5  ;;  %v700_v37 = vadd.s32 96, %v12281_v5  ;;  %v701_v47 = vadd.s32 104, %v12281_v5 }
  0x38   : > { %18234 = vst [vmem:[#allocation36_spill] sm:$0xff] %v12448_v10  ;;  %vm17883_vm15 = vcmp.lt.s32.totalorder %v12448_v10, 2000  ;;  %18235 = vst [vmem:[#allocation37_spill] sm:$0xff] %v12464_v19  ;;  %vm17880_vm11 = vcmp.lt.s32.totalorder %v12464_v19, 2000  ;;  %v10821_v52 = vpack.c.bf16 %v3655_v41, %v3654_v40  ;;  %v10825_v53 = vpack.c.bf16 %v3657_v45, %v3656_v44 }
  0x39   : > { %v12471_v22 = vsel %vm17883_vm15, %v1593_v16, 0.0  ;;  %18236 = vst [vmem:[#allocation38_spill] sm:$0xff] %v12476_v30  ;;  %v12484_v32 = vsel %vm17880_vm11, %v1594_v23, 0.0  ;;  %vm17877_vm7 = vcmp.lt.s32.totalorder %v12476_v30, 2000  ;;  %v12489_v36 = vadd.s32 %v12277_v4, %v699_v31 }
  0x3a   : > { %1859 = vperm.xlu1 %11591, %v12372_v42   ;;  %2359 = vperm.xlu0 %11588, %v12376_v43   ;;  %v12523_v61 = vadd.s32 %v12277_v4, %v701_v47  ;;  %v702_v62 = vadd.s32 112, %v12281_v5  ;;  %v703_v9 = vadd.s32 120, %v12281_v5  ;;  %v704_v21 = vadd.s32 128, %v12281_v5 }
  0x3b   : > { %18237 = vst [vmem:[#allocation39_spill] sm:$0xff] %v12489_v36  ;;  %vm17874_vm4 = vcmp.lt.s32.totalorder %v12489_v36, 2000  ;;  %10822 = vmatprep.subr.bf16.mxu0 %v10821_v52  ;;  %11411 = vmatprep.subr.bf16.mxu1 %v10821_v52  ;;  %v706_v41 = vadd.s32 144, %v12281_v5  ;;  %v718_v2 = vadd.s32 240, %v12281_v5  ;;  %v719_v3 = vadd.s32 248, %v12281_v5 }
  0x3c   : > { %v1724_v54 = vsel %vm17874_vm4, %v1596_v46, 0.0  ;;  %18239 = vst [vmem:[#allocation41_spill] sm:$0xff] %v12523_v61  ;;  %10824 = vmatpush3.bf16.msra.mxu0 %v10821_v52  ;;  %11413 = vmatpush3.bf16.msra.mxu1 %v10821_v52  ;;  %vm17695_vm13 = vcmp.lt.s32.totalorder %v12523_v61, 2000  ;;  %v12532_v8 = vadd.s32 %v12277_v4, %v702_v62  ;;  %v12541_v16 = vadd.s32 %v12277_v4, %v703_v9 }
  0x3d   : > { %10826 = vmatprep.subr.bf16.mxu0 %v10825_v53  ;;  %11412 = vmatprep.subr.bf16.mxu1 %v10825_v53  ;;  %v12550_v31 = vadd.s32 %v12277_v4, %v704_v21  ;;  %v12568_v45 = vadd.s32 %v12277_v4, %v706_v41  ;;  %v707_v46 = vadd.s32 152, %v12281_v5  ;;  %v710_v21 = vadd.s32 176, %v12281_v5 }
  0x3e   : > { %1864 = vperm.xlu1 %11591, %v12394_v50   ;;  %2464 = vperm.xlu0 %11588, %v12398_v51   ;;  %18240 = vst [vmem:[#allocation42_spill] sm:$0xff] %v12532_v8  ;;  %vm17696_vm9 = vcmp.lt.s32.totalorder %v12532_v8, 2000  ;;  %18241 = vst [vmem:[#allocation43_spill] sm:$0xff] %v12541_v16  ;;  %vm17697_vm5 = vcmp.lt.s32.totalorder %v12541_v16, 2000  ;;  %v721_v57 = vadd.s32 264, %v12281_v5  ;;  %v722_v39 = vadd.s32 272, %v12281_v5 }
  0x3f   : > { %v1727_v23 = vsel %vm17696_vm9, %v1599_v11, 0.0  ;;  %18242 = vst [vmem:[#allocation44_spill] sm:$0xff] %v12550_v31  ;;  %18244 = vst [vmem:[#allocation46_spill] sm:$0xff] %v12568_v45  ;;  %v12577_v52 = vadd.s32 %v12277_v4, %v707_v46  ;;  %v712_v46 = vadd.s32 192, %v12281_v5  ;;  %v723_v15 = vadd.s32 280, %v12281_v5 }
  0x40   : > { %10828 = vmatpush3.bf16.msra.mxu0 %v10825_v53  ;;  %11414 = vmatpush3.bf16.msra.mxu1 %v10825_v53  ;;  %v708_v53 = vadd.s32 160, %v12281_v5  ;;  %v801_v6 = vadd.s32 904, %v12281_v5 }
  0x41   : > { %18245 = vst [vmem:[#allocation47_spill] sm:$0xff] %v12577_v52  ;;  %v12729_v28 = vadd.s32 %v12277_v4, %v723_v15  ;;  %v725_v15 = vadd.s32 296, %v12281_v5 }
  0x42   : > { %1869 = vperm.xlu1 %11591, %v12416_v58   ;;  %2369 = vperm.xlu0 %11588, %v12420_v59   ;;  %v12586_v62 = vadd.s32 %v12277_v4, %v708_v53  ;;  %v12618_v53 = vadd.s32 %v12277_v4, %v712_v46 }
  0x43   : > { %18261 = vst [vmem:[#allocation63_spill] sm:$0xff] %v12729_v28 }
  0x44   : > { %18246 = vst [vmem:[#allocation48_spill] sm:$0xff] %v12586_v62  ;;  %18250 = vst [vmem:[#allocation52_spill] sm:$0xff] %v12618_v53 }
  0x46   : > { %1874 = vperm.xlu1 %11591, %v12437_v1   ;;  %2474 = vperm.xlu0 %11588, %v12441_v7  }
  0x4a   : > { %1879 = vperm.xlu1 %11591, %v12455_v12   ;;  %2379 = vperm.xlu0 %11588, %v12459_v14  }
  0x4e   : > { %1884 = vperm.xlu1 %11591, %v12471_v22   ;;  %11605 = vset.pattern.permute.xlu0 %v17713_v29  ;;  %v720_v29 = vadd.s32 256, %v12281_v5 }
  0x4f   : > { %2618 = vperm.xlu0 %11605, %v12307_v18   ;;  %v12499_v18 = vsel %vm17877_vm7, %v1595_v33, 0.0  ;;  %v705_v33 = vadd.s32 136, %v12281_v5 }
  0x51   : > { %v12559_v40 = vadd.s32 %v12277_v4, %v705_v33  ;;  %v12602_v33 = vadd.s32 %v12277_v4, %v710_v21  ;;  %v714_v21 = vadd.s32 208, %v12281_v5 }
  0x52   : > { %1889 = vperm.xlu1 %11591, %v12484_v32  }
  0x53   : > { %2626 = vperm.xlu0 %11605, %v12349_v34   ;;  %v12513_v34 = vadd.s32 %v12277_v4, %v700_v37  ;;  %18243 = vst [vmem:[#allocation45_spill] sm:$0xff] %v12559_v40  ;;  %vm17699_vm9 = vcmp.lt.s32.totalorder %v12559_v40, 2000  ;;  %18248 = vst [vmem:[#allocation50_spill] sm:$0xff] %v12602_v33 }
  0x55   : > { %18238 = vst [vmem:[#allocation40_spill] sm:$0xff] %v12513_v34  ;;  %vm17871_vm1 = vcmp.lt.s32.totalorder %v12513_v34, 2000 }
  0x56   : > { %1894 = vperm.xlu1 %11591, %v12499_v18  }
  0x57   : > { %2630 = vperm.xlu0 %11605, %v12372_v42   ;;  %v1725_v42 = vsel %vm17871_vm1, %v1597_v55, 0.0 }
  0x5a   : > { %1899 = vperm.xlu1 %11591, %v1724_v54  }
  0x5b   : > { %2634 = vperm.xlu0 %11605, %v12394_v50   ;;  %v1726_v50 = vsel %vm17695_vm13, %v1598_v0, 0.0  ;;  %vm17698_vm13 = vcmp.lt.s32.totalorder %v12550_v31, 2000  ;;  %v709_v0 = vadd.s32 168, %v12281_v5 }
  0x5d   : > { %v12594_v11 = vadd.s32 %v12277_v4, %v709_v0 }
  0x5e   : > { %1904 = vperm.xlu1 %11591, %v1725_v42  }
  0x5f   : > { %2638 = vperm.xlu0 %11605, %v12416_v58   ;;  %v1600_v58 = vld [vmem:[%s12270_s0 + $0x78] sm:$0xff]  ;;  %18247 = vst [vmem:[#allocation49_spill] sm:$0xff] %v12594_v11 }
  0x60   : > { %v1728_v37 = vsel %vm17697_vm5, %v1600_v58, 0.0  ;;  %vm17700_vm5 = vcmp.lt.s32.totalorder %v12568_v45, 2000 }
  0x62   : > { %1909 = vperm.xlu1 %11591, %v1726_v50  }
  0x63   : > { %2642 = vperm.xlu0 %11605, %v12437_v1   ;;  %v1601_v1 = vld [vmem:[%s12270_s0 + $0x80] sm:$0xff] }
  0x64   : > { %v1729_v44 = vsel %vm17698_vm13, %v1601_v1, 0.0  ;;  %vm17701_vm13 = vcmp.lt.s32.totalorder %v12577_v52, 2000  ;;  %v711_v1 = vadd.s32 184, %v12281_v5  ;;  %v1626_v52 = vld [vmem:[%s12270_s0 + $0x148] sm:$0xff] }
  0x66   : > { %1914 = vperm.xlu1 %11591, %v1727_v23  }
  0x67   : > { %2646 = vperm.xlu0 %11605, %v12455_v12   ;;  %v1602_v12 = vld [vmem:[%s12270_s0 + $0x88] sm:$0xff] }
  0x68   : > { %v1730_v47 = vsel %vm17699_vm9, %v1602_v12, 0.0  ;;  %vm17702_vm9 = vcmp.lt.s32.totalorder %v12586_v62, 2000  ;;  %v12610_v12 = vadd.s32 %v12277_v4, %v711_v1  ;;  %v12634_v1 = vadd.s32 %v12277_v4, %v714_v21 }
  0x6a   : > { %1919 = vperm.xlu1 %11591, %v1728_v37   ;;  %18249 = vst [vmem:[#allocation51_spill] sm:$0xff] %v12610_v12  ;;  %18252 = vst [vmem:[#allocation54_spill] sm:$0xff] %v12634_v1 }
  0x6b   : > { %2650 = vperm.xlu0 %11605, %v12471_v22   ;;  %v1603_v22 = vld [vmem:[%s12270_s0 + $0x90] sm:$0xff] }
  0x6c   : > { %v1731_v55 = vsel %vm17700_vm5, %v1603_v22, 0.0  ;;  %vm17703_vm5 = vcmp.lt.s32.totalorder %v12594_v11, 2000  ;;  %v12832_v11 = vld [vmem:[%s18269_s22] ss:$0 sm:$0xff] }
  0x6e   : > { %1924 = vperm.xlu1 %11591, %v1729_v44  }
  0x6f   : > { %2654 = vperm.xlu0 %11605, %v12484_v32   ;;  %v1604_v32 = vld [vmem:[%s12270_s0 + $0x98] sm:$0xff] }
  0x70   : > { %v1732_v9 = vsel %vm17701_vm13, %v1604_v32, 0.0  ;;  %vm17704_vm13 = vcmp.lt.s32.totalorder %v12602_v33, 2000  ;;  %v713_v32 = vadd.s32 200, %v12281_v5  ;;  %v730_v33 = vadd.s32 336, %v12281_v5 }
  0x72   : > { %1929 = vperm.xlu1 %11591, %v1730_v47   ;;  %v12850_v45 = vadd.s32 %v12277_v4, %v730_v33 }
  0x73   : > { %2658 = vperm.xlu0 %11605, %v12499_v18   ;;  %v1605_v18 = vld [vmem:[%s12270_s0 + $0xa0] sm:$0xff] }
  0x74   : > { %v1733_v58 = vsel %vm17702_vm9, %v1605_v18, 0.0  ;;  %vm17705_vm9 = vcmp.lt.s32.totalorder %v12610_v12, 2000  ;;  %v12626_v18 = vadd.s32 %v12277_v4, %v713_v32  ;;  %v716_v32 = vadd.s32 224, %v12281_v5  ;;  %18270 = vst [vmem:[#allocation70_spill] sm:$0xff] %v12850_v45 }
  0x76   : > { %1934 = vperm.xlu1 %11591, %v1731_v55   ;;  %18251 = vst [vmem:[#allocation53_spill] sm:$0xff] %v12626_v18  ;;  %v12650_v21 = vadd.s32 %v12277_v4, %v716_v32 }
  0x77   : > { %2662 = vperm.xlu0 %11605, %v1724_v54   ;;  %v1606_v54 = vld [vmem:[%s12270_s0 + $0xa8] sm:$0xff] }
  0x78   : > { %v1734_v41 = vsel %vm17703_vm5, %v1606_v54, 0.0  ;;  %vm17706_vm5 = vcmp.lt.s32.totalorder %v12618_v53, 2000  ;;  %18254 = vst [vmem:[#allocation56_spill] sm:$0xff] %v12650_v21 }
  0x7a   : > { %1939 = vperm.xlu1 %11591, %v1732_v9  }
  0x7b   : > { %2666 = vperm.xlu0 %11605, %v1725_v42   ;;  %v1607_v42 = vld [vmem:[%s12270_s0 + $0xb0] sm:$0xff] }
  0x7c   : > { %v1735_v22 = vsel %vm17704_vm13, %v1607_v42, 0.0  ;;  %vm17707_vm13 = vcmp.lt.s32.totalorder %v12626_v18, 2000  ;;  %v715_v42 = vadd.s32 216, %v12281_v5 }
  0x7e   : > { %1944 = vperm.xlu1 %11591, %v1733_v58  }
  0x7f   : > { %2670 = vperm.xlu0 %11605, %v1726_v50   ;;  %v1608_v50 = vld [vmem:[%s12270_s0 + $0xb8] sm:$0xff] }
  0x80   : > { %v1736_v0 = vsel %vm17705_vm9, %v1608_v50, 0.0  ;;  %vm17709_vm9 = vcmp.lt.s32.totalorder %v12634_v1, 2000  ;;  %v12642_v50 = vadd.s32 %v12277_v4, %v715_v42 }
  0x82   : > { %1949 = vperm.xlu1 %11591, %v1734_v41   ;;  %18253 = vst [vmem:[#allocation55_spill] sm:$0xff] %v12642_v50 }
  0x83   : > { %2674 = vperm.xlu0 %11605, %v1727_v23   ;;  %v1609_v23 = vld [vmem:[%s12270_s0 + $0xc0] sm:$0xff] }
  0x84   : > { %v1737_v54 = vsel %vm17706_vm5, %v1609_v23, 0.0  ;;  %vm17715_vm5 = vcmp.lt.s32.totalorder %v12642_v50, 2000 }
  0x86   : > { %1954 = vperm.xlu1 %11591, %v1735_v22  }
  0x87   : > { %2678 = vperm.xlu0 %11605, %v1728_v37   ;;  %v1610_v37 = vld [vmem:[%s12270_s0 + $0xc8] sm:$0xff] }
  0x88   : > { %v1738_v46 = vsel %vm17707_vm13, %v1610_v37, 0.0  ;;  %v717_v37 = vadd.s32 232, %v12281_v5  ;;  %vm17712_vm13 = vcmp.lt.s32.totalorder %v12650_v21, 2000 }
  0x8a   : > { %1959 = vperm.xlu1 %11591, %v1736_v0  }
  0x8b   : > { %2682 = vperm.xlu0 %11605, %v1729_v44   ;;  %v1611_v44 = vld [vmem:[%s12270_s0 + $0xd0] sm:$0xff] }
  0x8c   : > { %v1739_v23 = vsel %vm17709_vm9, %v1611_v44, 0.0  ;;  %v12658_v44 = vadd.s32 %v12277_v4, %v717_v37 }
  0x8e   : > { %1964 = vperm.xlu1 %11591, %v1737_v54   ;;  %18255 = vst [vmem:[#allocation57_spill] sm:$0xff] %v12658_v44  ;;  %vm17718_vm9 = vcmp.lt.s32.totalorder %v12658_v44, 2000 }
  0x8f   : > { %2686 = vperm.xlu0 %11605, %v1730_v47   ;;  %v1612_v47 = vld [vmem:[%s12270_s0 + $0xd8] sm:$0xff] }
  0x90   : > { %v1740_v42 = vsel %vm17715_vm5, %v1612_v47, 0.0  ;;  %v12668_v47 = vadd.s32 %v12277_v4, %v718_v2 }
  0x92   : > { %1969 = vperm.xlu1 %11591, %v1738_v46   ;;  %18256 = vst [vmem:[#allocation58_spill] sm:$0xff] %v12668_v47 }
  0x93   : > { %2690 = vperm.xlu0 %11605, %v1731_v55   ;;  %v1613_v55 = vld [vmem:[%s12270_s0 + $0xe0] sm:$0xff] }
  0x94   : > { %v12663_v32 = vsel %vm17712_vm13, %v1613_v55, 0.0  ;;  %vm17800_vm13 = vcmp.lt.s32.totalorder %v12668_v47, 2000  ;;  %v12679_v55 = vadd.s32 %v12277_v4, %v719_v3 }
  0x96   : > { %1974 = vperm.xlu1 %11591, %v1739_v23   ;;  %18257 = vst [vmem:[#allocation59_spill] sm:$0xff] %v12679_v55  ;;  %vm17723_vm5 = vcmp.lt.s32.totalorder %v12679_v55, 2000 }
  0x97   : > { %2694 = vperm.xlu0 %11605, %v1732_v9   ;;  %v1614_v9 = vld [vmem:[%s12270_s0 + $0xe8] sm:$0xff] }
  0x98   : > { %v12674_v37 = vsel %vm17718_vm9, %v1614_v9, 0.0  ;;  %v12690_v9 = vadd.s32 %v12277_v4, %v720_v29 }
  0x9a   : > { %1979 = vperm.xlu1 %11591, %v1740_v42   ;;  %18258 = vst [vmem:[#allocation60_spill] sm:$0xff] %v12690_v9  ;;  %vm17728_vm9 = vcmp.lt.s32.totalorder %v12690_v9, 2000 }
  0x9b   : > { %2698 = vperm.xlu0 %11605, %v1733_v58   ;;  %v1615_v58 = vld [vmem:[%s12270_s0 + $0xf0] sm:$0xff] }
  0x9c   : > { %v12685_v2 = vsel %vm17800_vm13, %v1615_v58, 0.0  ;;  %v12701_v58 = vadd.s32 %v12277_v4, %v721_v57  ;;  %v12716_v57 = vadd.s32 %v12277_v4, %v722_v39  ;;  %v724_v39 = vadd.s32 288, %v12281_v5 }
  0x9e   : > { %1984 = vperm.xlu1 %11591, %v12663_v32   ;;  %18259 = vst [vmem:[#allocation61_spill] sm:$0xff] %v12701_v58  ;;  %18260 = vst [vmem:[#allocation62_spill] sm:$0xff] %v12716_v57 }
  0x9f   : > { %2702 = vperm.xlu0 %11605, %v1734_v41   ;;  %v1616_v41 = vld [vmem:[%s12270_s0 + $0xf8] sm:$0xff] }
  0xa0   : > { %v12696_v3 = vsel %vm17723_vm5, %v1616_v41, 0.0  ;;  %vm17735_vm5 = vcmp.lt.s32.totalorder %v12701_v58, 2000  ;;  %v1618_v41 = vld [vmem:[%s12270_s0 + $0x108] sm:$0xff]  ;;  %v12742_v58 = vadd.s32 %v12277_v4, %v724_v39  ;;  %v12757_v39 = vadd.s32 %v12277_v4, %v725_v15 }
  0xa2   : > { %1989 = vperm.xlu1 %11591, %v12674_v37   ;;  %18262 = vst [vmem:[#allocation64_spill] sm:$0xff] %v12742_v58  ;;  %18263 = vst [vmem:[#allocation65_spill] sm:$0xff] %v12757_v39 }
  0xa3   : > { %2706 = vperm.xlu0 %11605, %v1735_v22   ;;  %v1617_v22 = vld [vmem:[%s12270_s0 + $0x100] sm:$0xff] }
  0xa6   : > { %1994 = vperm.xlu1 %11591, %v12685_v2  }
  0xa7   : > { %2710 = vperm.xlu0 %11605, %v1736_v0   ;;  %v12711_v0 = vsel %vm17728_vm9, %v1617_v22, 0.0  ;;  %vm17742_vm9 = vcmp.lt.s32.totalorder %v12716_v57, 2000  ;;  %v726_v57 = vadd.s32 304, %v12281_v5 }
  0xa9   : > { %v12704_v29 = vpop.permute.xlu0 %1844  ;;  %v12773_v15 = vadd.s32 %v12277_v4, %v726_v57 }
  0xaa   : > { %1999 = vperm.xlu1 %11591, %v12696_v3   ;;  %v2488_v40 = vmul.f32 %v12832_v11, %v12704_v29  ;;  %v1627_v29 = vld [vmem:[%s12270_s0 + $0x150] sm:$0xff] }
  0xab   : > { %v12707_v25 = vpop.permute.xlu1 %1849  ;;  %2714 = vperm.xlu0 %11605, %v1737_v54   ;;  %v12724_v54 = vsel %vm17735_vm5, %v1618_v41, 0.0  ;;  %vm17749_vm5 = vcmp.lt.s32.totalorder %v12729_v28, 2000  ;;  %v1620_v41 = vld [vmem:[%s12270_s0 + $0x118] sm:$0xff]  ;;  %18264 = vst [vmem:[#allocation66_spill] sm:$0xff] %v12773_v15  ;;  %v727_v28 = vadd.s32 312, %v12281_v5 }
  0xad   : > { %v12719_v63 = vpop.permute.xlu0 %2444  ;;  %v12789_v57 = vadd.s32 %v12277_v4, %v727_v28 }
  0xae   : > { %2004 = vperm.xlu1 %11591, %v12711_v0  }
  0xaf   : > { %2718 = vperm.xlu0 %11605, %v1738_v46   ;;  %v12737_v46 = vsel %vm17742_vm9, %v1619_v49, 0.0  ;;  %v12752_v49 = vsel %vm17749_vm5, %v1620_v41, 0.0  ;;  %vm17756_vm9 = vcmp.lt.s32.totalorder %v12742_v58, 2000  ;;  %vm17763_vm5 = vcmp.lt.s32.totalorder %v12757_v39, 2000  ;;  %v1622_v41 = vld [vmem:[%s12270_s0 + $0x128] sm:$0xff]  ;;  %18265 = vst [vmem:[#allocation67_spill] sm:$0xff] %v12789_v57 }
  0xb0   : > { %v2623_v22 = vpop.permute.xlu1 %2622  ;;  %v728_v58 = vadd.s32 320, %v12281_v5  ;;  %v729_v39 = vadd.s32 328, %v12281_v5 }
  0xb1   : > { %v12732_v17 = vpop.permute.xlu0 %2349 }
  0xb2   : > { %2009 = vperm.xlu1 %11591, %v12724_v54   ;;  %v12805_v28 = vadd.s32 %v12277_v4, %v728_v58 }
  0xb3   : > { %2722 = vperm.xlu0 %11605, %v1739_v23   ;;  %v1621_v23 = vld [vmem:[%s12270_s0 + $0x120] sm:$0xff] }
  0xb4   : > { %18266 = vst [vmem:[#allocation68_spill] sm:$0xff] %v12805_v28 }
  0xb5   : > { %v12745_v9 = vpop.permute.xlu1 %1854  ;;  %v12747_v55 = vpop.permute.xlu0 %2454 }
  0xb6   : > { %2014 = vperm.xlu1 %11591, %v12737_v46  }
  0xb7   : > { %2726 = vperm.xlu0 %11605, %v1740_v42   ;;  %v12768_v42 = vsel %vm17756_vm9, %v1621_v23, 0.0  ;;  %vm17770_vm9 = vcmp.lt.s32.totalorder %v12773_v15, 2000  ;;  %v1623_v23 = vld [vmem:[%s12270_s0 + $0x130] sm:$0xff]  ;;  %v12826_v15 = vadd.s32 %v12277_v4, %v729_v39 }
  0xb9   : > { %v12760_v47 = vpop.permute.xlu1 %1859  ;;  %v12762_v44 = vpop.permute.xlu0 %2359  ;;  %18268 = vst [vmem:[#allocation69_spill] sm:$0xff] %v12826_v15 }
  0xba   : > { %2019 = vperm.xlu1 %11591, %v12752_v49  }
  0xbb   : > { %2730 = vperm.xlu0 %11605, %v12663_v32   ;;  %v12784_v32 = vsel %vm17763_vm5, %v1622_v41, 0.0  ;;  %vm17781_vm5 = vcmp.lt.s32.totalorder %v12789_v57, 2000  ;;  %v1624_v41 = vld [vmem:[%s12270_s0 + $0x138] sm:$0xff]  ;;  %v2489_v57 = vmul.f32 %v12832_v11, %v12707_v25  ;;  %v12861_v25 = vld [vmem:[%s18271_s11] ss:$0 sm:$0xff] }
  0xbc   : > { %v12821_v58 = vsel %vm17781_vm5, %v1624_v41, 0.0  ;;  %vm17799_vm5 = vcmp.lt.s32.totalorder %v12826_v15, 2000 }
  0xbd   : > { %v12776_v21 = vpop.permute.xlu1 %1864  ;;  %v12778_v50 = vpop.permute.xlu0 %2464  ;;  %v12867_v33 = vsel %vm17799_vm5, %v1626_v52, 0.0  ;;  %v2490_v52 = vmul.f32 %v12832_v11, %v12745_v9  ;;  %vm18149_vm5 = vcmask 261120   ;;  %v733_v9 = vadd.s32 360, %v12281_v5 }
  0xbe   : > { %2024 = vperm.xlu1 %11591, %v12768_v42  }
  0xbf   : > { %2734 = vperm.xlu0 %11605, %v12674_v37   ;;  %v12800_v37 = vsel %vm17770_vm9, %v1623_v23, 0.0  ;;  %vm17792_vm9 = vcmp.lt.s32.totalorder %v12805_v28, 2000  ;;  %v1625_v23 = vld [vmem:[%s12270_s0 + $0x140] sm:$0xff] }
  0xc0   : > { %v12843_v39 = vsel %vm17792_vm9, %v1625_v23, 0.0  ;;  %vm17809_vm9 = vcmp.lt.s32.totalorder %v12850_v45, 2000 }
  0xc1   : > { %v12792_v1 = vpop.permute.xlu1 %1869  ;;  %v12794_v18 = vpop.permute.xlu0 %2369 }
  0xc2   : > { %2029 = vperm.xlu1 %11591, %v12784_v32  }
  0xc3   : > { %2738 = vperm.xlu0 %11605, %v12685_v2   ;;  %v12816_v2 = vld [vmem:[%s18267_s29] ss:$0 sm:$0xff] }
  0xc4   : > { %v3136_v41 = vmul.f32 %v12816_v2, %v2623_v22  ;;  %v731_v22 = vadd.s32 344, %v12281_v5 }
  0xc5   : > { %v12808_v53 = vpop.permute.xlu1 %1874  ;;  %v12810_v12 = vpop.permute.xlu0 %2474 }
  0xc6   : > { %2034 = vperm.xlu1 %11591, %v12800_v37   ;;  %v3264_v28 = vadd.f32 %v3136_v41, %v2489_v57  ;;  %v12872_v57 = vadd.s32 %v12277_v4, %v731_v22  ;;  %v732_v41 = vadd.s32 352, %v12281_v5  ;;  %v12885_v22 = vsel %vm17809_vm9, %v1627_v29, 0.0 }
  0xc7   : > { %2742 = vperm.xlu0 %11605, %v12696_v3  }
  0xc8   : > { %18272 = vst [vmem:[#allocation71_spill] sm:$0xff] %v12872_v57  ;;  %vm17810_vm13 = vcmp.lt.s32.totalorder %v12872_v57, 2000 }
  0xc9   : > { %v12834_v62 = vpop.permute.xlu1 %1879  ;;  %v12836_v3 = vpop.permute.xlu0 %2379 }
  0xca   : > { %2039 = vperm.xlu1 %11591, %v12821_v58  }
  0xcb   : > { %2746 = vperm.xlu0 %11605, %v12711_v0  }
  0xcd   : > { %v12855_v0 = vpop.permute.xlu1 %1884 }
  0xce   : > { %2044 = vperm.xlu1 %11591, %v12843_v39   ;;  %v2619_v23 = vpop.permute.xlu0 %2618 }
  0xcf   : > { %v3135_v31 = vmul.f32 %v12816_v2, %v2619_v23  ;;  %2750 = vperm.xlu0 %11605, %v12724_v54   ;;  %v3399_v23 = vadd.f32 %v12861_v25, %v3264_v28  ;;  %v12891_v28 = vadd.s32 %v12277_v4, %v732_v41  ;;  %v1629_v41 = vld [vmem:[%s12270_s0 + $0x160] sm:$0xff] }
  0xd1   : > { %v3263_v16 = vadd.f32 %v3135_v31, %v2488_v40  ;;  %v12875_v8 = vpop.permute.xlu1 %1889  ;;  %v1628_v40 = vld [vmem:[%s12270_s0 + $0x158] sm:$0xff]  ;;  %18273 = vst [vmem:[#allocation72_spill] sm:$0xff] %v12891_v28  ;;  %v3527_v34 = vmax.f32 %v3399_v23, 0.0  ;;  %vm17811_vm9 = vcmp.lt.s32.totalorder %v12891_v28, 2000 }
  0xd2   : > { %2049 = vperm.xlu1 %11591, %v12867_v33   ;;  %v2627_v54 = vpop.permute.xlu0 %2626 }
  0xd3   : > { %v3137_v15 = vmul.f32 %v12816_v2, %v2627_v54  ;;  %2754 = vperm.xlu0 %11605, %v12737_v46   ;;  %v3398_v31 = vadd.f32 %v12861_v25, %v3263_v16  ;;  %v2491_v16 = vmul.f32 %v12832_v11, %v12760_v47  ;;  %v12911_v47 = vadd.s32 %v12277_v4, %v733_v9 }
  0xd5   : > { %v3265_v61 = vadd.f32 %v3137_v15, %v2490_v52  ;;  %v12894_v54 = vpop.permute.xlu1 %1894  ;;  %v3526_v46 = vmax.f32 %v3398_v31, 0.0  ;;  %v12905_v15 = vsel %vm17810_vm13, %v1628_v40, 0.0  ;;  %18274 = vst [vmem:[#allocation73_spill] sm:$0xff] %v12911_v47  ;;  %v2492_v40 = vmul.f32 %v12832_v11, %v12776_v21 }
  0xd6   : > { %2054 = vperm.xlu1 %11591, %v12885_v22   ;;  %v2631_v29 = vpop.permute.xlu0 %2630  ;;  %vm17814_vm13 = vcmp.lt.s32.totalorder %v12911_v47, 2000  ;;  %v735_v21 = vadd.s32 376, %v12281_v5 }
  0xd7   : > { %v3400_v45 = vadd.f32 %v12861_v25, %v3265_v61  ;;  %v3138_v36 = vmul.f32 %v12816_v2, %v2631_v29  ;;  %2758 = vperm.xlu0 %11605, %v12752_v49   ;;  %10159 = vmatprep.mubr.msk.f32.mxu0 %vm18149_vm5, %v3526_v46  ;;  %v734_v61 = vadd.s32 368, %v12281_v5 }
  0xd8   : > { %10160 = vmatmul.mubr.msk.f32.vlgmr.msra.gmra.mrb[0].mxu0 %vm18149_vm5, %v3527_v34 }
  0xd9   : > { %v3528_v23 = vmax.f32 %v3400_v45, 0.0  ;;  %v3266_v52 = vadd.f32 %v3138_v36, %v2491_v16  ;;  %v12914_v49 = vpop.permute.xlu1 %1899  ;;  %v12925_v45 = vsel %vm17811_vm9, %v1629_v41, 0.0  ;;  %v1630_v36 = vld [vmem:[%s12270_s0 + $0x168] sm:$0xff]  ;;  %v12930_v9 = vadd.s32 %v12277_v4, %v734_v61 }
  0xda   : > { %2059 = vperm.xlu1 %11591, %v12905_v15   ;;  %v2635_v31 = vpop.permute.xlu0 %2634  ;;  %v2493_v41 = vmul.f32 %v12832_v11, %v12792_v1  ;;  %v12944_v61 = vsel %vm17814_vm13, %v1630_v36, 0.0  ;;  %v736_v1 = vadd.s32 384, %v12281_v5  ;;  %v2494_v36 = vmul.f32 %v12832_v11, %v12808_v53 }
  0xdb   : > { %v3401_v34 = vadd.f32 %v12861_v25, %v3266_v52  ;;  %v3139_v46 = vmul.f32 %v12816_v2, %v2635_v31  ;;  %2762 = vperm.xlu0 %11605, %v12768_v42   ;;  %10162 = vmatprep.mubr.msk.f32.mxu0 %vm18149_vm5, %v3528_v23  ;;  %18275 = vst [vmem:[#allocation74_spill] sm:$0xff] %v12930_v9  ;;  %vm17817_vm9 = vcmp.lt.s32.totalorder %v12930_v9, 2000  ;;  %v737_v53 = vadd.s32 392, %v12281_v5 }
  0xdd   : > { %v3529_v29 = vmax.f32 %v3401_v34, 0.0  ;;  %v3267_v16 = vadd.f32 %v3139_v46, %v2492_v40  ;;  %v12933_v52 = vpop.permute.xlu1 %1904  ;;  %v1631_v40 = vld [vmem:[%s12270_s0 + $0x170] sm:$0xff]  ;;  %v12949_v34 = vadd.s32 %v12277_v4, %v735_v21 }
  0xde   : > { %2064 = vperm.xlu1 %11591, %v12925_v45   ;;  %v2639_v42 = vpop.permute.xlu0 %2638  ;;  %v12963_v21 = vsel %vm17817_vm9, %v1631_v40, 0.0  ;;  %v2495_v40 = vmul.f32 %v12832_v11, %v12834_v62  ;;  %v738_v62 = vadd.s32 400, %v12281_v5 }
  0xdf   : > { %v3402_v23 = vadd.f32 %v12861_v25, %v3267_v16  ;;  %v3140_v31 = vmul.f32 %v12816_v2, %v2639_v42  ;;  %2766 = vperm.xlu0 %11605, %v12784_v32   ;;  %10163 = vmatmul.mubr.msk.f32.gmra.mrb[2].mxu0 %vm18149_vm5, %v3529_v29  ;;  %18276 = vst [vmem:[#allocation75_spill] sm:$0xff] %v12949_v34  ;;  %vm17820_vm13 = vcmp.lt.s32.totalorder %v12949_v34, 2000 }
  0xe1   : > { %v3530_v46 = vmax.f32 %v3402_v23, 0.0  ;;  %v3268_v16 = vadd.f32 %v3140_v31, %v2493_v41  ;;  %v12952_v42 = vpop.permute.xlu1 %1909  ;;  %v1632_v41 = vld [vmem:[%s12270_s0 + $0x178] sm:$0xff]  ;;  %v12968_v23 = vadd.s32 %v12277_v4, %v736_v1 }
  0xe2   : > { %2069 = vperm.xlu1 %11591, %v12944_v61   ;;  %v2643_v32 = vpop.permute.xlu0 %2642  ;;  %v12982_v1 = vsel %vm17820_vm13, %v1632_v41, 0.0  ;;  %v2496_v41 = vmul.f32 %v12832_v11, %v12855_v0  ;;  %v739_v0 = vadd.s32 408, %v12281_v5 }
  0xe3   : > { %v3403_v29 = vadd.f32 %v12861_v25, %v3268_v16  ;;  %v3141_v47 = vmul.f32 %v12816_v2, %v2643_v32  ;;  %2770 = vperm.xlu0 %11605, %v12800_v37   ;;  %10165 = vmatprep.mubr.msk.f32.mxu0 %vm18149_vm5, %v3530_v46  ;;  %18277 = vst [vmem:[#allocation76_spill] sm:$0xff] %v12968_v23  ;;  %vm17823_vm9 = vcmp.lt.s32.totalorder %v12968_v23, 2000 }
  0xe5   : > { %v3531_v31 = vmax.f32 %v3403_v29, 0.0  ;;  %v3269_v16 = vadd.f32 %v3141_v47, %v2494_v36  ;;  %v12971_v32 = vpop.permute.xlu1 %1914  ;;  %v1633_v47 = vld [vmem:[%s12270_s0 + $0x180] sm:$0xff]  ;;  %v12987_v36 = vadd.s32 %v12277_v4, %v737_v53 }
  0xe6   : > { %2074 = vperm.xlu1 %11591, %v12963_v21   ;;  %v2647_v37 = vpop.permute.xlu0 %2646  ;;  %v13001_v53 = vsel %vm17823_vm9, %v1633_v47, 0.0  ;;  %v2497_v47 = vmul.f32 %v12832_v11, %v12875_v8  ;;  %v740_v8 = vadd.s32 416, %v12281_v5 }
  0xe7   : > { %v3404_v46 = vadd.f32 %v12861_v25, %v3269_v16  ;;  %v3142_v9 = vmul.f32 %v12816_v2, %v2647_v37  ;;  %2774 = vperm.xlu0 %11605, %v12821_v58   ;;  %10166 = vmatmul.mubr.msk.f32.gmra.mrb[4].mxu0 %vm18149_vm5, %v3531_v31  ;;  %18278 = vst [vmem:[#allocation77_spill] sm:$0xff] %v12987_v36  ;;  %vm17826_vm13 = vcmp.lt.s32.totalorder %v12987_v36, 2000 }
  0xe9   : > { %v3532_v29 = vmax.f32 %v3404_v46, 0.0  ;;  %v3270_v16 = vadd.f32 %v3142_v9, %v2495_v40  ;;  %v12990_v37 = vpop.permute.xlu1 %1919  ;;  %v1634_v9 = vld [vmem:[%s12270_s0 + $0x188] sm:$0xff]  ;;  %v13006_v40 = vadd.s32 %v12277_v4, %v738_v62 }
  0xea   : > { %2079 = vperm.xlu1 %11591, %v12982_v1   ;;  %v2651_v58 = vpop.permute.xlu0 %2650  ;;  %v13020_v62 = vsel %vm17826_vm13, %v1634_v9, 0.0  ;;  %v2498_v9 = vmul.f32 %v12832_v11, %v12894_v54  ;;  %v741_v54 = vadd.s32 424, %v12281_v5 }
  0xeb   : > { %v3405_v31 = vadd.f32 %v12861_v25, %v3270_v16  ;;  %v3143_v34 = vmul.f32 %v12816_v2, %v2651_v58  ;;  %2778 = vperm.xlu0 %11605, %v12843_v39   ;;  %10168 = vmatprep.mubr.msk.f32.mxu0 %vm18149_vm5, %v3532_v29  ;;  %18279 = vst [vmem:[#allocation78_spill] sm:$0xff] %v13006_v40  ;;  %vm17829_vm9 = vcmp.lt.s32.totalorder %v13006_v40, 2000 }
  0xed   : > { %v3533_v46 = vmax.f32 %v3405_v31, 0.0  ;;  %v3271_v16 = vadd.f32 %v3143_v34, %v2496_v41  ;;  %v13009_v58 = vpop.permute.xlu1 %1924  ;;  %v1635_v34 = vld [vmem:[%s12270_s0 + $0x190] sm:$0xff]  ;;  %v13025_v41 = vadd.s32 %v12277_v4, %v739_v0 }
  0xee   : > { %2084 = vperm.xlu1 %11591, %v13001_v53   ;;  %v2655_v39 = vpop.permute.xlu0 %2654  ;;  %v13039_v0 = vsel %vm17829_vm9, %v1635_v34, 0.0  ;;  %v2499_v34 = vmul.f32 %v12832_v11, %v12914_v49  ;;  %v742_v49 = vadd.s32 432, %v12281_v5 }
  0xef   : > { %v3406_v29 = vadd.f32 %v12861_v25, %v3271_v16  ;;  %v3144_v23 = vmul.f32 %v12816_v2, %v2655_v39  ;;  %2782 = vperm.xlu0 %11605, %v12867_v33   ;;  %10169 = vmatmul.mubr.msk.f32.gmra.mrb[6].mxu0 %vm18149_vm5, %v3533_v46  ;;  %18280 = vst [vmem:[#allocation79_spill] sm:$0xff] %v13025_v41  ;;  %vm17832_vm13 = vcmp.lt.s32.totalorder %v13025_v41, 2000 }
  0xf1   : > { %v3534_v31 = vmax.f32 %v3406_v29, 0.0  ;;  %v3272_v16 = vadd.f32 %v3144_v23, %v2497_v47  ;;  %v13028_v39 = vpop.permute.xlu1 %1929  ;;  %v1636_v23 = vld [vmem:[%s12270_s0 + $0x198] sm:$0xff]  ;;  %v13044_v47 = vadd.s32 %v12277_v4, %v740_v8 }
  0xf2   : > { %2089 = vperm.xlu1 %11591, %v13020_v62   ;;  %v2659_v33 = vpop.permute.xlu0 %2658  ;;  %v13058_v8 = vsel %vm17832_vm13, %v1636_v23, 0.0  ;;  %v2500_v23 = vmul.f32 %v12832_v11, %v12933_v52  ;;  %v743_v52 = vadd.s32 440, %v12281_v5 }
  0xf3   : > { %v3407_v46 = vadd.f32 %v12861_v25, %v3272_v16  ;;  %v3145_v36 = vmul.f32 %v12816_v2, %v2659_v33  ;;  %2786 = vperm.xlu0 %11605, %v12885_v22   ;;  %10171 = vmatprep.mubr.msk.f32.mxu0 %vm18149_vm5, %v3534_v31  ;;  %18281 = vst [vmem:[#allocation80_spill] sm:$0xff] %v13044_v47  ;;  %vm17835_vm9 = vcmp.lt.s32.totalorder %v13044_v47, 2000 }
  0xf5   : > { %v3535_v29 = vmax.f32 %v3407_v46, 0.0  ;;  %v3273_v16 = vadd.f32 %v3145_v36, %v2498_v9  ;;  %v13047_v33 = vpop.permute.xlu1 %1934  ;;  %v1637_v36 = vld [vmem:[%s12270_s0 + $0x1a0] sm:$0xff]  ;;  %v13063_v9 = vadd.s32 %v12277_v4, %v741_v54 }
  0xf6   : > { %2094 = vperm.xlu1 %11591, %v13039_v0   ;;  %v2663_v22 = vpop.permute.xlu0 %2662  ;;  %v13077_v54 = vsel %vm17835_vm9, %v1637_v36, 0.0  ;;  %v2501_v36 = vmul.f32 %v12832_v11, %v12952_v42  ;;  %v744_v42 = vadd.s32 448, %v12281_v5 }
  0xf7   : > { %v3408_v31 = vadd.f32 %v12861_v25, %v3273_v16  ;;  %v3146_v40 = vmul.f32 %v12816_v2, %v2663_v22  ;;  %2790 = vperm.xlu0 %11605, %v12905_v15   ;;  %10172 = vmatmul.mubr.msk.f32.gmra.mrb[8].mxu0 %vm18149_vm5, %v3535_v29  ;;  %18282 = vst [vmem:[#allocation81_spill] sm:$0xff] %v13063_v9  ;;  %vm17838_vm13 = vcmp.lt.s32.totalorder %v13063_v9, 2000 }
  0xf9   : > { %v3536_v46 = vmax.f32 %v3408_v31, 0.0  ;;  %v3274_v16 = vadd.f32 %v3146_v40, %v2499_v34  ;;  %v13066_v22 = vpop.permute.xlu1 %1939  ;;  %v1638_v40 = vld [vmem:[%s12270_s0 + $0x1a8] sm:$0xff]  ;;  %v13082_v34 = vadd.s32 %v12277_v4, %v742_v49 }
  0xfa   : > { %2099 = vperm.xlu1 %11591, %v13058_v8   ;;  %v2667_v15 = vpop.permute.xlu0 %2666  ;;  %v13096_v49 = vsel %vm17838_vm13, %v1638_v40, 0.0  ;;  %v2502_v40 = vmul.f32 %v12832_v11, %v12971_v32  ;;  %v745_v32 = vadd.s32 456, %v12281_v5 }
  0xfb   : > { %v3409_v29 = vadd.f32 %v12861_v25, %v3274_v16  ;;  %v3147_v41 = vmul.f32 %v12816_v2, %v2667_v15  ;;  %2794 = vperm.xlu0 %11605, %v12925_v45   ;;  %10174 = vmatprep.mubr.msk.f32.mxu0 %vm18149_vm5, %v3536_v46  ;;  %18283 = vst [vmem:[#allocation82_spill] sm:$0xff] %v13082_v34  ;;  %vm17841_vm9 = vcmp.lt.s32.totalorder %v13082_v34, 2000 }
  0xfd   : > { %v3537_v31 = vmax.f32 %v3409_v29, 0.0  ;;  %v3275_v16 = vadd.f32 %v3147_v41, %v2500_v23  ;;  %v13085_v15 = vpop.permute.xlu1 %1944  ;;  %v1639_v41 = vld [vmem:[%s12270_s0 + $0x1b0] sm:$0xff]  ;;  %v13101_v23 = vadd.s32 %v12277_v4, %v743_v52 }
  0xfe   : > { %2104 = vperm.xlu1 %11591, %v13077_v54   ;;  %v2671_v45 = vpop.permute.xlu0 %2670  ;;  %v13115_v52 = vsel %vm17841_vm9, %v1639_v41, 0.0  ;;  %v2503_v41 = vmul.f32 %v12832_v11, %v12990_v37  ;;  %v746_v37 = vadd.s32 464, %v12281_v5 }
  0xff   : > { %v3410_v46 = vadd.f32 %v12861_v25, %v3275_v16  ;;  %v3148_v47 = vmul.f32 %v12816_v2, %v2671_v45  ;;  %2798 = vperm.xlu0 %11605, %v12944_v61   ;;  %10175 = vmatmul.mubr.msk.f32.gmra.mrb[10].mxu0 %vm18149_vm5, %v3537_v31  ;;  %18284 = vst [vmem:[#allocation83_spill] sm:$0xff] %v13101_v23  ;;  %vm17844_vm13 = vcmp.lt.s32.totalorder %v13101_v23, 2000 }
 0x101   : > { %v3538_v29 = vmax.f32 %v3410_v46, 0.0  ;;  %v3276_v16 = vadd.f32 %v3148_v47, %v2501_v36  ;;  %v13104_v45 = vpop.permute.xlu1 %1949  ;;  %v1640_v47 = vld [vmem:[%s12270_s0 + $0x1b8] sm:$0xff]  ;;  %v13120_v36 = vadd.s32 %v12277_v4, %v744_v42 }
 0x102   : > { %2109 = vperm.xlu1 %11591, %v13096_v49   ;;  %v2675_v61 = vpop.permute.xlu0 %2674  ;;  %v13134_v42 = vsel %vm17844_vm13, %v1640_v47, 0.0  ;;  %v2504_v47 = vmul.f32 %v12832_v11, %v13009_v58  ;;  %v747_v58 = vadd.s32 472, %v12281_v5 }
 0x103   : > { %v3411_v31 = vadd.f32 %v12861_v25, %v3276_v16  ;;  %v3149_v9 = vmul.f32 %v12816_v2, %v2675_v61  ;;  %2802 = vperm.xlu0 %11605, %v12963_v21   ;;  %10177 = vmatprep.mubr.msk.f32.mxu0 %vm18149_vm5, %v3538_v29  ;;  %18285 = vst [vmem:[#allocation84_spill] sm:$0xff] %v13120_v36  ;;  %vm17847_vm9 = vcmp.lt.s32.totalorder %v13120_v36, 2000 }
 0x105   : > { %v3539_v46 = vmax.f32 %v3411_v31, 0.0  ;;  %v3277_v16 = vadd.f32 %v3149_v9, %v2502_v40  ;;  %v13123_v61 = vpop.permute.xlu1 %1954  ;;  %v1641_v9 = vld [vmem:[%s12270_s0 + $0x1c0] sm:$0xff]  ;;  %v13139_v40 = vadd.s32 %v12277_v4, %v745_v32 }
 0x106   : > { %2114 = vperm.xlu1 %11591, %v13115_v52   ;;  %v2679_v21 = vpop.permute.xlu0 %2678  ;;  %v13153_v32 = vsel %vm17847_vm9, %v1641_v9, 0.0  ;;  %v2505_v9 = vmul.f32 %v12832_v11, %v13028_v39  ;;  %v748_v39 = vadd.s32 480, %v12281_v5 }
 0x107   : > { %v3412_v29 = vadd.f32 %v12861_v25, %v3277_v16  ;;  %v3150_v34 = vmul.f32 %v12816_v2, %v2679_v21  ;;  %2806 = vperm.xlu0 %11605, %v12982_v1   ;;  %10178 = vmatmul.mubr.msk.f32.gmra.mrb[12].mxu0 %vm18149_vm5, %v3539_v46  ;;  %18286 = vst [vmem:[#allocation85_spill] sm:$0xff] %v13139_v40  ;;  %vm17850_vm13 = vcmp.lt.s32.totalorder %v13139_v40, 2000 }
 0x109   : > { %v3540_v31 = vmax.f32 %v3412_v29, 0.0  ;;  %v3278_v16 = vadd.f32 %v3150_v34, %v2503_v41  ;;  %v13142_v21 = vpop.permute.xlu1 %1959  ;;  %v1642_v34 = vld [vmem:[%s12270_s0 + $0x1c8] sm:$0xff]  ;;  %v13158_v41 = vadd.s32 %v12277_v4, %v746_v37 }
 0x10a   : > { %2119 = vperm.xlu1 %11591, %v13134_v42   ;;  %v2683_v1 = vpop.permute.xlu0 %2682  ;;  %v13172_v37 = vsel %vm17850_vm13, %v1642_v34, 0.0  ;;  %v2506_v34 = vmul.f32 %v12832_v11, %v13047_v33  ;;  %v749_v33 = vadd.s32 488, %v12281_v5 }
 0x10b   : > { %v3413_v46 = vadd.f32 %v12861_v25, %v3278_v16  ;;  %v3151_v23 = vmul.f32 %v12816_v2, %v2683_v1  ;;  %2810 = vperm.xlu0 %11605, %v13001_v53   ;;  %10180 = vmatprep.mubr.msk.f32.mxu0 %vm18149_vm5, %v3540_v31  ;;  %18287 = vst [vmem:[#allocation86_spill] sm:$0xff] %v13158_v41  ;;  %vm17853_vm9 = vcmp.lt.s32.totalorder %v13158_v41, 2000 }
 0x10d   : > { %v3541_v29 = vmax.f32 %v3413_v46, 0.0  ;;  %v3279_v16 = vadd.f32 %v3151_v23, %v2504_v47  ;;  %v13161_v1 = vpop.permute.xlu1 %1964  ;;  %v1643_v23 = vld [vmem:[%s12270_s0 + $0x1d0] sm:$0xff]  ;;  %v13177_v47 = vadd.s32 %v12277_v4, %v747_v58 }
 0x10e   : > { %2124 = vperm.xlu1 %11591, %v13153_v32   ;;  %v2687_v53 = vpop.permute.xlu0 %2686  ;;  %v13191_v58 = vsel %vm17853_vm9, %v1643_v23, 0.0  ;;  %v2507_v23 = vmul.f32 %v12832_v11, %v13066_v22  ;;  %v750_v22 = vadd.s32 496, %v12281_v5 }
 0x10f   : > { %v3414_v31 = vadd.f32 %v12861_v25, %v3279_v16  ;;  %v3152_v36 = vmul.f32 %v12816_v2, %v2687_v53  ;;  %2814 = vperm.xlu0 %11605, %v13020_v62   ;;  %10181 = vmatmul.mubr.msk.f32.gmra.mrb[14].mxu0 %vm18149_vm5, %v3541_v29  ;;  %18288 = vst [vmem:[#allocation87_spill] sm:$0xff] %v13177_v47  ;;  %vm17856_vm13 = vcmp.lt.s32.totalorder %v13177_v47, 2000 }
 0x111   : > { %v3542_v46 = vmax.f32 %v3414_v31, 0.0  ;;  %v3280_v16 = vadd.f32 %v3152_v36, %v2505_v9  ;;  %v13180_v53 = vpop.permute.xlu1 %1969  ;;  %v1644_v36 = vld [vmem:[%s12270_s0 + $0x1d8] sm:$0xff]  ;;  %v13196_v9 = vadd.s32 %v12277_v4, %v748_v39 }
 0x112   : > { %2129 = vperm.xlu1 %11591, %v13172_v37   ;;  %v2691_v62 = vpop.permute.xlu0 %2690  ;;  %v13210_v39 = vsel %vm17856_vm13, %v1644_v36, 0.0  ;;  %v2508_v36 = vmul.f32 %v12832_v11, %v13085_v15  ;;  %v751_v15 = vadd.s32 504, %v12281_v5 }
 0x113   : > { %v3415_v29 = vadd.f32 %v12861_v25, %v3280_v16  ;;  %v3153_v40 = vmul.f32 %v12816_v2, %v2691_v62  ;;  %2818 = vperm.xlu0 %11605, %v13039_v0   ;;  %10183 = vmatprep.mubr.msk.f32.mxu0 %vm18149_vm5, %v3542_v46  ;;  %18289 = vst [vmem:[#allocation88_spill] sm:$0xff] %v13196_v9  ;;  %vm17859_vm9 = vcmp.lt.s32.totalorder %v13196_v9, 2000 }
 0x115   : > { %v3543_v31 = vmax.f32 %v3415_v29, 0.0  ;;  %v3281_v16 = vadd.f32 %v3153_v40, %v2506_v34  ;;  %v13199_v62 = vpop.permute.xlu1 %1974  ;;  %v1645_v40 = vld [vmem:[%s12270_s0 + $0x1e0] sm:$0xff]  ;;  %v13215_v34 = vadd.s32 %v12277_v4, %v749_v33 }
 0x116   : > { %2134 = vperm.xlu1 %11591, %v13191_v58   ;;  %v2695_v0 = vpop.permute.xlu0 %2694  ;;  %v13229_v33 = vsel %vm17859_vm9, %v1645_v40, 0.0  ;;  %v2509_v40 = vmul.f32 %v12832_v11, %v13104_v45  ;;  %v752_v45 = vadd.s32 512, %v12281_v5 }
 0x117   : > { %v3416_v46 = vadd.f32 %v12861_v25, %v3281_v16  ;;  %v3154_v41 = vmul.f32 %v12816_v2, %v2695_v0  ;;  %2822 = vperm.xlu0 %11605, %v13058_v8   ;;  %10184 = vmatmul.mubr.msk.f32.gmra.mrb[16].mxu0 %vm18149_vm5, %v3543_v31  ;;  %18290 = vst [vmem:[#allocation89_spill] sm:$0xff] %v13215_v34  ;;  %vm17862_vm13 = vcmp.lt.s32.totalorder %v13215_v34, 2000 }
 0x119   : > { %v3544_v29 = vmax.f32 %v3416_v46, 0.0  ;;  %v3282_v16 = vadd.f32 %v3154_v41, %v2507_v23  ;;  %v13218_v0 = vpop.permute.xlu1 %1979  ;;  %v1646_v41 = vld [vmem:[%s12270_s0 + $0x1e8] sm:$0xff]  ;;  %v13234_v23 = vadd.s32 %v12277_v4, %v750_v22 }
 0x11a   : > { %2139 = vperm.xlu1 %11591, %v13210_v39   ;;  %v2699_v8 = vpop.permute.xlu0 %2698  ;;  %v13248_v22 = vsel %vm17862_vm13, %v1646_v41, 0.0  ;;  %v2510_v41 = vmul.f32 %v12832_v11, %v13123_v61  ;;  %v753_v61 = vadd.s32 520, %v12281_v5 }
 0x11b   : > { %v3417_v31 = vadd.f32 %v12861_v25, %v3282_v16  ;;  %v3155_v47 = vmul.f32 %v12816_v2, %v2699_v8  ;;  %2826 = vperm.xlu0 %11605, %v13077_v54   ;;  %10186 = vmatprep.mubr.msk.f32.mxu0 %vm18149_vm5, %v3544_v29  ;;  %18291 = vst [vmem:[#allocation90_spill] sm:$0xff] %v13234_v23  ;;  %vm17865_vm9 = vcmp.lt.s32.totalorder %v13234_v23, 2000 }
 0x11d   : > { %v3545_v46 = vmax.f32 %v3417_v31, 0.0  ;;  %v3283_v16 = vadd.f32 %v3155_v47, %v2508_v36  ;;  %v13237_v8 = vpop.permute.xlu1 %1984  ;;  %v1647_v47 = vld [vmem:[%s12270_s0 + $0x1f0] sm:$0xff]  ;;  %v13253_v36 = vadd.s32 %v12277_v4, %v751_v15 }
 0x11e   : > { %2144 = vperm.xlu1 %11591, %v13229_v33   ;;  %v2703_v54 = vpop.permute.xlu0 %2702  ;;  %v13267_v15 = vsel %vm17865_vm9, %v1647_v47, 0.0  ;;  %v2511_v47 = vmul.f32 %v12832_v11, %v13142_v21  ;;  %v754_v21 = vadd.s32 528, %v12281_v5 }
 0x11f   : > { %v3418_v29 = vadd.f32 %v12861_v25, %v3283_v16  ;;  %v3156_v9 = vmul.f32 %v12816_v2, %v2703_v54  ;;  %2830 = vperm.xlu0 %11605, %v13096_v49   ;;  %10187 = vmatmul.mubr.msk.f32.gmra.mrb[18].mxu0 %vm18149_vm5, %v3545_v46  ;;  %18292 = vst [vmem:[#allocation91_spill] sm:$0xff] %v13253_v36  ;;  %vm17868_vm13 = vcmp.lt.s32.totalorder %v13253_v36, 2000 }
 0x121   : > { %v3546_v31 = vmax.f32 %v3418_v29, 0.0  ;;  %v3284_v16 = vadd.f32 %v3156_v9, %v2509_v40  ;;  %v13256_v54 = vpop.permute.xlu1 %1989  ;;  %v1648_v9 = vld [vmem:[%s12270_s0 + $0x1f8] sm:$0xff]  ;;  %v13272_v40 = vadd.s32 %v12277_v4, %v752_v45 }
 0x122   : > { %2149 = vperm.xlu1 %11591, %v13248_v22   ;;  %v2707_v49 = vpop.permute.xlu0 %2706  ;;  %v13286_v45 = vsel %vm17868_vm13, %v1648_v9, 0.0  ;;  %v2512_v9 = vmul.f32 %v12832_v11, %v13161_v1  ;;  %v755_v1 = vadd.s32 536, %v12281_v5 }
 0x123   : > { %v3419_v46 = vadd.f32 %v12861_v25, %v3284_v16  ;;  %v3157_v34 = vmul.f32 %v12816_v2, %v2707_v49  ;;  %2834 = vperm.xlu0 %11605, %v13115_v52   ;;  %10189 = vmatprep.mubr.msk.f32.mxu0 %vm18149_vm5, %v3546_v31  ;;  %18293 = vst [vmem:[#allocation92_spill] sm:$0xff] %v13272_v40  ;;  %vm1009_vm9 = vcmp.lt.s32.totalorder %v13272_v40, 2000 }
 0x125   : > { %v3547_v29 = vmax.f32 %v3419_v46, 0.0  ;;  %v3285_v16 = vadd.f32 %v3157_v34, %v2510_v41  ;;  %v13275_v49 = vpop.permute.xlu1 %1994  ;;  %v1649_v34 = vld [vmem:[%s12270_s0 + $0x200] sm:$0xff]  ;;  %v13291_v41 = vadd.s32 %v12277_v4, %v753_v61 }
 0x126   : > { %2154 = vperm.xlu1 %11591, %v13267_v15   ;;  %v2711_v52 = vpop.permute.xlu0 %2710  ;;  %v13305_v61 = vsel %vm1009_vm9, %v1649_v34, 0.0  ;;  %v2513_v34 = vmul.f32 %v12832_v11, %v13180_v53  ;;  %v756_v53 = vadd.s32 544, %v12281_v5 }
 0x127   : > { %v3420_v31 = vadd.f32 %v12861_v25, %v3285_v16  ;;  %v3158_v23 = vmul.f32 %v12816_v2, %v2711_v52  ;;  %2838 = vperm.xlu0 %11605, %v13134_v42   ;;  %10190 = vmatmul.mubr.msk.f32.gmra.mrb[20].mxu0 %vm18149_vm5, %v3547_v29  ;;  %18294 = vst [vmem:[#allocation93_spill] sm:$0xff] %v13291_v41  ;;  %vm1010_vm13 = vcmp.lt.s32.totalorder %v13291_v41, 2000 }
 0x129   : > { %v3548_v46 = vmax.f32 %v3420_v31, 0.0  ;;  %v3286_v16 = vadd.f32 %v3158_v23, %v2511_v47  ;;  %v13294_v52 = vpop.permute.xlu1 %1999  ;;  %v1650_v23 = vld [vmem:[%s12270_s0 + $0x208] sm:$0xff]  ;;  %v13310_v47 = vadd.s32 %v12277_v4, %v754_v21 }
 0x12a   : > { %2159 = vperm.xlu1 %11591, %v13286_v45   ;;  %v2715_v42 = vpop.permute.xlu0 %2714  ;;  %v13324_v21 = vsel %vm1010_vm13, %v1650_v23, 0.0  ;;  %v2514_v23 = vmul.f32 %v12832_v11, %v13199_v62  ;;  %v757_v62 = vadd.s32 552, %v12281_v5 }
 0x12b   : > { %v3421_v29 = vadd.f32 %v12861_v25, %v3286_v16  ;;  %v3159_v36 = vmul.f32 %v12816_v2, %v2715_v42  ;;  %2842 = vperm.xlu0 %11605, %v13153_v32   ;;  %10192 = vmatprep.mubr.msk.f32.mxu0 %vm18149_vm5, %v3548_v46  ;;  %18295 = vst [vmem:[#allocation94_spill] sm:$0xff] %v13310_v47  ;;  %vm1011_vm1 = vcmp.lt.s32.totalorder %v13310_v47, 2000 }
 0x12d   : > { %v3549_v31 = vmax.f32 %v3421_v29, 0.0  ;;  %v3287_v16 = vadd.f32 %v3159_v36, %v2512_v9  ;;  %v13313_v42 = vpop.permute.xlu1 %2004  ;;  %v1651_v36 = vld [vmem:[%s12270_s0 + $0x210] sm:$0xff]  ;;  %v13329_v9 = vadd.s32 %v12277_v4, %v755_v1 }
 0x12e   : > { %2164 = vperm.xlu1 %11591, %v13305_v61   ;;  %v2719_v32 = vpop.permute.xlu0 %2718  ;;  %v13343_v1 = vsel %vm1011_vm1, %v1651_v36, 0.0  ;;  %v2515_v36 = vmul.f32 %v12832_v11, %v13218_v0  ;;  %v758_v0 = vadd.s32 560, %v12281_v5 }
 0x12f   : > { %v3422_v46 = vadd.f32 %v12861_v25, %v3287_v16  ;;  %v3160_v28 = vmul.f32 %v12816_v2, %v2719_v32  ;;  %2846 = vperm.xlu0 %11605, %v13172_v37   ;;  %10193 = vmatmul.mubr.msk.f32.gmra.mrb[22].mxu0 %vm18149_vm5, %v3549_v31  ;;  %18296 = vst [vmem:[#allocation95_spill] sm:$0xff] %v13329_v9  ;;  %vm1012_vm4 = vcmp.lt.s32.totalorder %v13329_v9, 2000 }
 0x131   : > { %v3550_v29 = vmax.f32 %v3422_v46, 0.0  ;;  %v3288_v16 = vadd.f32 %v3160_v28, %v2513_v34  ;;  %v13332_v32 = vpop.permute.xlu1 %2009  ;;  %v1652_v28 = vld [vmem:[%s12270_s0 + $0x218] sm:$0xff]  ;;  %v13348_v34 = vadd.s32 %v12277_v4, %v756_v53 }
 0x132   : > { %2169 = vperm.xlu1 %11591, %v13324_v21   ;;  %v2723_v37 = vpop.permute.xlu0 %2722  ;;  %v13362_v53 = vsel %vm1012_vm4, %v1652_v28, 0.0  ;;  %v2516_v28 = vmul.f32 %v12832_v11, %v13237_v8  ;;  %v759_v8 = vadd.s32 568, %v12281_v5 }
 0x133   : > { %v3423_v31 = vadd.f32 %v12861_v25, %v3288_v16  ;;  %v3161_v57 = vmul.f32 %v12816_v2, %v2723_v37  ;;  %2850 = vperm.xlu0 %11605, %v13191_v58   ;;  %10195 = vmatprep.mubr.msk.f32.mxu0 %vm18149_vm5, %v3550_v29  ;;  %18297 = vst [vmem:[#allocation96_spill] sm:$0xff] %v13348_v34  ;;  %vm17928_vm7 = vcmp.lt.s32.totalorder %v13348_v34, 2000 }
 0x135   : > { %v3551_v46 = vmax.f32 %v3423_v31, 0.0  ;;  %v3289_v16 = vadd.f32 %v3161_v57, %v2514_v23  ;;  %v13351_v37 = vpop.permute.xlu1 %2014  ;;  %v1653_v57 = vld [vmem:[%s12270_s0 + $0x220] sm:$0xff]  ;;  %v13367_v23 = vadd.s32 %v12277_v4, %v757_v62 }
 0x136   : > { %2174 = vperm.xlu1 %11591, %v13343_v1   ;;  %v2727_v58 = vpop.permute.xlu0 %2726  ;;  %v13381_v62 = vsel %vm17928_vm7, %v1653_v57, 0.0  ;;  %v2517_v57 = vmul.f32 %v12832_v11, %v13256_v54  ;;  %v760_v54 = vadd.s32 576, %v12281_v5 }
 0x137   : > { %v3424_v29 = vadd.f32 %v12861_v25, %v3289_v16  ;;  %v3162_v30 = vmul.f32 %v12816_v2, %v2727_v58  ;;  %2854 = vperm.xlu0 %11605, %v13210_v39   ;;  %10196 = vmatmul.mubr.msk.f32.gmra.mrb[24].mxu0 %vm18149_vm5, %v3551_v46  ;;  %18298 = vst [vmem:[#allocation97_spill] sm:$0xff] %v13367_v23  ;;  %vm17925_vm11 = vcmp.lt.s32.totalorder %v13367_v23, 2000 }
 0x139   : > { %v3552_v31 = vmax.f32 %v3424_v29, 0.0  ;;  %v3290_v16 = vadd.f32 %v3162_v30, %v2515_v36  ;;  %v13370_v58 = vpop.permute.xlu1 %2019  ;;  %v1654_v30 = vld [vmem:[%s12270_s0 + $0x228] sm:$0xff]  ;;  %v13386_v36 = vadd.s32 %v12277_v4, %v758_v0 }
 0x13a   : > { %2179 = vperm.xlu1 %11591, %v13362_v53   ;;  %v2731_v39 = vpop.permute.xlu0 %2730  ;;  %v13400_v0 = vsel %vm17925_vm11, %v1654_v30, 0.0  ;;  %v2518_v30 = vmul.f32 %v12832_v11, %v13275_v49  ;;  %v761_v49 = vadd.s32 584, %v12281_v5 }
 0x13b   : > { %v3425_v46 = vadd.f32 %v12861_v25, %v3290_v16  ;;  %v3163_v19 = vmul.f32 %v12816_v2, %v2731_v39  ;;  %2858 = vperm.xlu0 %11605, %v13229_v33   ;;  %10198 = vmatprep.mubr.msk.f32.mxu0 %vm18149_vm5, %v3552_v31  ;;  %18299 = vst [vmem:[#allocation98_spill] sm:$0xff] %v13386_v36  ;;  %vm17889_vm15 = vcmp.lt.s32.totalorder %v13386_v36, 2000 }
 0x13d   : > { %v3553_v29 = vmax.f32 %v3425_v46, 0.0  ;;  %v3291_v16 = vadd.f32 %v3163_v19, %v2516_v28  ;;  %v13389_v39 = vpop.permute.xlu1 %2024  ;;  %v1655_v19 = vld [vmem:[%s12270_s0 + $0x230] sm:$0xff]  ;;  %v13405_v28 = vadd.s32 %v12277_v4, %v759_v8 }
 0x13e   : > { %2184 = vperm.xlu1 %11591, %v13381_v62   ;;  %v2735_v33 = vpop.permute.xlu0 %2734  ;;  %v13419_v8 = vsel %vm17889_vm15, %v1655_v19, 0.0  ;;  %v2519_v19 = vmul.f32 %v12832_v11, %v13294_v52  ;;  %v762_v52 = vadd.s32 592, %v12281_v5 }
 0x13f   : > { %v3426_v31 = vadd.f32 %v12861_v25, %v3291_v16  ;;  %v3164_v10 = vmul.f32 %v12816_v2, %v2735_v33  ;;  %2862 = vperm.xlu0 %11605, %v13248_v22   ;;  %10199 = vmatmul.mubr.msk.f32.gmra.mrb[26].mxu0 %vm18149_vm5, %v3553_v29  ;;  %18300 = vst [vmem:[#allocation99_spill] sm:$0xff] %v13405_v28  ;;  %vm17892_vm0 = vcmp.lt.s32.totalorder %v13405_v28, 2000 }
 0x141   : > { %v3554_v46 = vmax.f32 %v3426_v31, 0.0  ;;  %v3292_v16 = vadd.f32 %v3164_v10, %v2517_v57  ;;  %v13408_v33 = vpop.permute.xlu1 %2029  ;;  %v1656_v10 = vld [vmem:[%s12270_s0 + $0x238] sm:$0xff]  ;;  %v13424_v57 = vadd.s32 %v12277_v4, %v760_v54 }
 0x142   : > { %2189 = vperm.xlu1 %11591, %v13400_v0   ;;  %v2739_v22 = vpop.permute.xlu0 %2738  ;;  %v13438_v54 = vsel %vm17892_vm0, %v1656_v10, 0.0  ;;  %v2520_v10 = vmul.f32 %v12832_v11, %v13313_v42  ;;  %v763_v42 = vadd.s32 600, %v12281_v5 }
 0x143   : > { %v3427_v29 = vadd.f32 %v12861_v25, %v3292_v16  ;;  %v3165_v60 = vmul.f32 %v12816_v2, %v2739_v22  ;;  %2866 = vperm.xlu0 %11605, %v13267_v15   ;;  %10201 = vmatprep.mubr.msk.f32.mxu0 %vm18149_vm5, %v3554_v46  ;;  %18301 = vst [vmem:[#allocation100_spill] sm:$0xff] %v13424_v57  ;;  %vm17895_vm15 = vcmp.lt.s32.totalorder %v13424_v57, 2000 }
 0x145   : > { %v3555_v31 = vmax.f32 %v3427_v29, 0.0  ;;  %v3293_v16 = vadd.f32 %v3165_v60, %v2518_v30  ;;  %v13427_v22 = vpop.permute.xlu1 %2034  ;;  %v1657_v60 = vld [vmem:[%s12270_s0 + $0x240] sm:$0xff]  ;;  %v13443_v30 = vadd.s32 %v12277_v4, %v761_v49 }
 0x146   : > { %2194 = vperm.xlu1 %11591, %v13419_v8   ;;  %v2743_v15 = vpop.permute.xlu0 %2742  ;;  %v13457_v49 = vsel %vm17895_vm15, %v1657_v60, 0.0  ;;  %v2521_v60 = vmul.f32 %v12832_v11, %v13332_v32  ;;  %v764_v11 = vadd.s32 608, %v12281_v5 }
 0x147   : > { %v3428_v46 = vadd.f32 %v12861_v25, %v3293_v16  ;;  %v3166_v36 = vmul.f32 %v12816_v2, %v2743_v15  ;;  %2870 = vperm.xlu0 %11605, %v13286_v45   ;;  %10202 = vmatmul.mubr.msk.f32.gmra.mrb[28].mxu0 %vm18149_vm5, %v3555_v31  ;;  %18302 = vst [vmem:[#allocation101_spill] sm:$0xff] %v13443_v30  ;;  %vm17896_vm0 = vcmp.lt.s32.totalorder %v13443_v30, 2000 }
 0x149   : > { %v3556_v29 = vmax.f32 %v3428_v46, 0.0  ;;  %v3294_v16 = vadd.f32 %v3166_v36, %v2519_v19  ;;  %v13446_v15 = vpop.permute.xlu1 %2039  ;;  %v1658_v36 = vld [vmem:[%s12270_s0 + $0x248] sm:$0xff]  ;;  %v13462_v19 = vadd.s32 %v12277_v4, %v762_v52 }
 0x14a   : > { %2199 = vperm.xlu1 %11591, %v13438_v54   ;;  %v2747_v45 = vpop.permute.xlu0 %2746  ;;  %v13476_v52 = vsel %vm17896_vm0, %v1658_v36, 0.0  ;;  %v13490_v36 = vld [vmem:[%s18269_s22] ss:$0 sm:$0xff] }
 0x14b   : > { %v3429_v31 = vadd.f32 %v12861_v25, %v3294_v16  ;;  %v3167_v28 = vmul.f32 %v12816_v2, %v2747_v45  ;;  %2874 = vperm.xlu0 %11605, %v13305_v61   ;;  %10204 = vmatprep.mubr.msk.f32.mxu0 %vm18149_vm5, %v3556_v29  ;;  %18303 = vst [vmem:[#allocation102_spill] sm:$0xff] %v13462_v19  ;;  %vm17901_vm15 = vcmp.lt.s32.totalorder %v13462_v19, 2000 }
 0x14d   : > { %v3557_v46 = vmax.f32 %v3429_v31, 0.0  ;;  %v3295_v16 = vadd.f32 %v3167_v28, %v2520_v10  ;;  %v13465_v45 = vpop.permute.xlu1 %2044  ;;  %v1659_v28 = vld [vmem:[%s12270_s0 + $0x250] sm:$0xff]  ;;  %v13481_v10 = vadd.s32 %v12277_v4, %v763_v42 }
 0x14e   : > { %2204 = vperm.xlu1 %11591, %v13457_v49   ;;  %v2751_v61 = vpop.permute.xlu0 %2750 }
 0x14f   : > { %v3430_v29 = vadd.f32 %v12861_v25, %v3295_v16  ;;  %v3168_v57 = vmul.f32 %v12816_v2, %v2751_v61  ;;  %2878 = vperm.xlu0 %11605, %v13324_v21   ;;  %10205 = vmatmul.mubr.msk.f32.gmra.mrb[30].mxu0 %vm18149_vm5, %v3557_v46  ;;  %18304 = vst [vmem:[#allocation103_spill] sm:$0xff] %v13481_v10  ;;  %v13498_v16 = vld [vmem:[%s18267_s29] ss:$0 sm:$0xff]  ;;  %v13505_v61 = vsel %vm17901_vm15, %v1659_v28, 0.0  ;;  %vm17902_vm0 = vcmp.lt.s32.totalorder %v13481_v10, 2000 }
 0x150   : > { %v2522_v46 = vmul.f32 %v13490_v36, %v13351_v37  ;;  %v1660_v37 = vld [vmem:[%s12270_s0 + $0x258] sm:$0xff]  ;;  %v2523_v28 = vmul.f32 %v13490_v36, %v13370_v58  ;;  %v766_v58 = vadd.s32 624, %v12281_v5 }
 0x151   : > { %v3558_v32 = vmax.f32 %v3430_v29, 0.0  ;;  %v3296_v31 = vadd.f32 %v3168_v57, %v2521_v60  ;;  %v13484_v2 = vpop.permute.xlu1 %2049  ;;  %v13510_v60 = vadd.s32 %v12277_v4, %v764_v11  ;;  %v765_v29 = vadd.s32 616, %v12281_v5 }
 0x152   : > { %2209 = vperm.xlu1 %11591, %v13476_v52   ;;  %v2755_v21 = vpop.permute.xlu0 %2754  ;;  %v13524_v11 = vsel %vm17902_vm0, %v1660_v37, 0.0  ;;  %v2524_v37 = vmul.f32 %v13490_v36, %v13389_v39  ;;  %v1662_v39 = vld [vmem:[%s12270_s0 + $0x268] sm:$0xff] }
 0x153   : > { %v3431_v42 = vadd.f32 %v12861_v25, %v3296_v31  ;;  %v3169_v57 = vmul.f32 %v13498_v16, %v2755_v21  ;;  %2882 = vperm.xlu0 %11605, %v13343_v1   ;;  %10207 = vmatprep.mubr.msk.f32.mxu0 %vm18149_vm5, %v3558_v32  ;;  %18305 = vst [vmem:[#allocation104_spill] sm:$0xff] %v13510_v60  ;;  %vm17907_vm15 = vcmp.lt.s32.totalorder %v13510_v60, 2000 }
 0x155   : > { %v3559_v31 = vmax.f32 %v3431_v42, 0.0  ;;  %v3297_v30 = vadd.f32 %v3169_v57, %v2522_v46  ;;  %v13513_v21 = vpop.permute.xlu1 %2054  ;;  %v1661_v46 = vld [vmem:[%s12270_s0 + $0x260] sm:$0xff]  ;;  %v13529_v42 = vadd.s32 %v12277_v4, %v765_v29 }
 0x156   : > { %2214 = vperm.xlu1 %11591, %v13505_v61   ;;  %v2759_v1 = vpop.permute.xlu0 %2758 }
 0x157   : > { %v3432_v32 = vadd.f32 %v12861_v25, %v3297_v30  ;;  %v3170_v19 = vmul.f32 %v13498_v16, %v2759_v1  ;;  %2886 = vperm.xlu0 %11605, %v13362_v53   ;;  %10208 = vmatmul.mubr.msk.f32.gmra.mrb[32].mxu0 %vm18149_vm5, %v3559_v31  ;;  %18306 = vst [vmem:[#allocation105_spill] sm:$0xff] %v13529_v42  ;;  %v13540_v31 = vld [vmem:[%s18271_s11] ss:$0 sm:$0xff]  ;;  %vm17910_vm0 = vcmp.lt.s32.totalorder %v13529_v42, 2000 }
 0x159   : > { %v3560_v25 = vmax.f32 %v3432_v32, 0.0  ;;  %v3298_v30 = vadd.f32 %v3170_v19, %v2523_v28  ;;  %v13532_v57 = vpop.permute.xlu1 %2059  ;;  %v13548_v19 = vsel %vm17907_vm15, %v1661_v46, 0.0  ;;  %v13553_v28 = vadd.s32 %v12277_v4, %v766_v58 }
 0x15a   : > { %2219 = vperm.xlu1 %11591, %v13524_v11   ;;  %v2763_v53 = vpop.permute.xlu0 %2762  ;;  %v767_v32 = vadd.s32 632, %v12281_v5  ;;  %v2525_v46 = vmul.f32 %v13490_v36, %v13408_v33  ;;  %v13567_v58 = vsel %vm17910_vm0, %v1662_v39, 0.0  ;;  %v768_v33 = vadd.s32 640, %v12281_v5 }
 0x15b   : > { %v3433_v29 = vadd.f32 %v13540_v31, %v3298_v30  ;;  %v3171_v1 = vmul.f32 %v13498_v16, %v2763_v53  ;;  %2890 = vperm.xlu0 %11605, %v13381_v62   ;;  %10210 = vmatprep.mubr.msk.f32.mxu0 %vm18149_vm5, %v3560_v25  ;;  %18307 = vst [vmem:[#allocation106_spill] sm:$0xff] %v13553_v28  ;;  %vm17913_vm15 = vcmp.lt.s32.totalorder %v13553_v28, 2000 }
 0x15c   : > { %v2526_v39 = vmul.f32 %v13490_v36, %v13427_v22  ;;  %v769_v22 = vadd.s32 648, %v12281_v5 }
 0x15d   : > { %v3561_v30 = vmax.f32 %v3433_v29, 0.0  ;;  %v3299_v10 = vadd.f32 %v3171_v1, %v2524_v37  ;;  %v13556_v53 = vpop.permute.xlu1 %2064  ;;  %v1663_v37 = vld [vmem:[%s12270_s0 + $0x270] sm:$0xff]  ;;  %v13572_v29 = vadd.s32 %v12277_v4, %v767_v32 }
 0x15e   : > { %2224 = vperm.xlu1 %11591, %v13548_v19   ;;  %v2767_v62 = vpop.permute.xlu0 %2766  ;;  %v13586_v32 = vsel %vm17913_vm15, %v1663_v37, 0.0  ;;  %v2527_v37 = vmul.f32 %v13490_v36, %v13446_v15  ;;  %v770_v15 = vadd.s32 656, %v12281_v5 }
 0x15f   : > { %v3434_v25 = vadd.f32 %v13540_v31, %v3299_v10  ;;  %v3172_v60 = vmul.f32 %v13498_v16, %v2767_v62  ;;  %2894 = vperm.xlu0 %11605, %v13400_v0   ;;  %10211 = vmatmul.mubr.msk.f32.gmra.mrb[34].mxu0 %vm18149_vm5, %v3561_v30  ;;  %18308 = vst [vmem:[#allocation107_spill] sm:$0xff] %v13572_v29  ;;  %vm17916_vm0 = vcmp.lt.s32.totalorder %v13572_v29, 2000 }
 0x161   : > { %v3562_v10 = vmax.f32 %v3434_v25, 0.0  ;;  %v3300_v1 = vadd.f32 %v3172_v60, %v2525_v46  ;;  %v13575_v62 = vpop.permute.xlu1 %2069  ;;  %v1664_v60 = vld [vmem:[%s12270_s0 + $0x278] sm:$0xff]  ;;  %v13591_v46 = vadd.s32 %v12277_v4, %v768_v33 }
 0x162   : > { %2229 = vperm.xlu1 %11591, %v13567_v58   ;;  %v2771_v0 = vpop.permute.xlu0 %2770  ;;  %v13605_v33 = vsel %vm17916_vm0, %v1664_v60, 0.0  ;;  %v2528_v60 = vmul.f32 %v13490_v36, %v13465_v45  ;;  %v771_v45 = vadd.s32 664, %v12281_v5 }
 0x163   : > { %v3435_v30 = vadd.f32 %v13540_v31, %v3300_v1  ;;  %v3173_v42 = vmul.f32 %v13498_v16, %v2771_v0  ;;  %2898 = vperm.xlu0 %11605, %v13419_v8   ;;  %10213 = vmatprep.mubr.msk.f32.mxu0 %vm18149_vm5, %v3562_v10  ;;  %18309 = vst [vmem:[#allocation108_spill] sm:$0xff] %v13591_v46  ;;  %vm1025_vm15 = vcmp.lt.s32.totalorder %v13591_v46, 2000 }
 0x164   : > { %v14266_v46 = vadd.s32 %v12277_v4, %v801_v6 }
 0x165   : > { %v3563_v25 = vmax.f32 %v3435_v30, 0.0  ;;  %v3301_v1 = vadd.f32 %v3173_v42, %v2526_v39  ;;  %v13594_v0 = vpop.permute.xlu1 %2074  ;;  %v1665_v42 = vld [vmem:[%s12270_s0 + $0x280] sm:$0xff]  ;;  %v13610_v39 = vadd.s32 %v12277_v4, %v769_v22 }
 0x166   : > { %2234 = vperm.xlu1 %11591, %v13586_v32   ;;  %v2775_v8 = vpop.permute.xlu0 %2774  ;;  %v13624_v22 = vsel %vm1025_vm15, %v1665_v42, 0.0  ;;  %v2529_v42 = vmul.f32 %v13490_v36, %v13484_v2  ;;  %v772_v2 = vadd.s32 672, %v12281_v5  ;;  %18347 = vst [vmem:[#allocation144_spill] sm:$0xff] %v14266_v46 }
 0x167   : > { %v3436_v10 = vadd.f32 %v13540_v31, %v3301_v1  ;;  %v3174_v28 = vmul.f32 %v13498_v16, %v2775_v8  ;;  %2902 = vperm.xlu0 %11605, %v13438_v54   ;;  %10214 = vmatmul.mubr.msk.f32.gmra.mrb[36].mxu0 %vm18149_vm5, %v3563_v25  ;;  %18310 = vst [vmem:[#allocation109_spill] sm:$0xff] %v13610_v39  ;;  %vm1026_vm0 = vcmp.lt.s32.totalorder %v13610_v39, 2000 }
 0x169   : > { %v3564_v30 = vmax.f32 %v3436_v10, 0.0  ;;  %v3302_v1 = vadd.f32 %v3174_v28, %v2527_v37  ;;  %v13613_v8 = vpop.permute.xlu1 %2079  ;;  %v1666_v28 = vld [vmem:[%s12270_s0 + $0x288] sm:$0xff]  ;;  %v13629_v37 = vadd.s32 %v12277_v4, %v770_v15 }
 0x16a   : > { %2239 = vperm.xlu1 %11591, %v13605_v33   ;;  %v2779_v54 = vpop.permute.xlu0 %2778  ;;  %v13643_v15 = vsel %vm1026_vm0, %v1666_v28, 0.0  ;;  %v2530_v28 = vmul.f32 %v13490_v36, %v13513_v21  ;;  %v773_v21 = vadd.s32 680, %v12281_v5 }
 0x16b   : > { %v3437_v25 = vadd.f32 %v13540_v31, %v3302_v1  ;;  %v3175_v29 = vmul.f32 %v13498_v16, %v2779_v54  ;;  %2906 = vperm.xlu0 %11605, %v13457_v49   ;;  %10216 = vmatprep.mubr.msk.f32.mxu0 %vm18149_vm5, %v3564_v30  ;;  %18311 = vst [vmem:[#allocation110_spill] sm:$0xff] %v13629_v37  ;;  %vm1027_vm14 = vcmp.lt.s32.totalorder %v13629_v37, 2000 }
 0x16d   : > { %v3565_v10 = vmax.f32 %v3437_v25, 0.0  ;;  %v3303_v1 = vadd.f32 %v3175_v29, %v2528_v60  ;;  %v13632_v54 = vpop.permute.xlu1 %2084  ;;  %v1667_v29 = vld [vmem:[%s12270_s0 + $0x290] sm:$0xff]  ;;  %v13648_v60 = vadd.s32 %v12277_v4, %v771_v45 }
 0x16e   : > { %2244 = vperm.xlu1 %11591, %v13624_v22   ;;  %v2783_v49 = vpop.permute.xlu0 %2782  ;;  %v13662_v45 = vsel %vm1027_vm14, %v1667_v29, 0.0  ;;  %v2531_v29 = vmul.f32 %v13490_v36, %v13532_v57  ;;  %v774_v57 = vadd.s32 688, %v12281_v5 }
 0x16f   : > { %v3438_v30 = vadd.f32 %v13540_v31, %v3303_v1  ;;  %v3176_v56 = vmul.f32 %v13498_v16, %v2783_v49  ;;  %2910 = vperm.xlu0 %11605, %v13476_v52   ;;  %10217 = vmatmul.mubr.msk.f32.gmra.mrb[38].mxu0 %vm18149_vm5, %v3565_v10  ;;  %18312 = vst [vmem:[#allocation111_spill] sm:$0xff] %v13648_v60  ;;  %vm1028_vm12 = vcmp.lt.s32.totalorder %v13648_v60, 2000 }
 0x171   : > { %v3566_v25 = vmax.f32 %v3438_v30, 0.0  ;;  %v3304_v1 = vadd.f32 %v3176_v56, %v2529_v42  ;;  %v13651_v49 = vpop.permute.xlu1 %2089  ;;  %v1668_v56 = vld [vmem:[%s12270_s0 + $0x298] sm:$0xff]  ;;  %v13667_v42 = vadd.s32 %v12277_v4, %v772_v2 }
 0x172   : > { %2249 = vperm.xlu1 %11591, %v13643_v15   ;;  %v2787_v52 = vpop.permute.xlu0 %2786  ;;  %v13681_v2 = vsel %vm1028_vm12, %v1668_v56, 0.0  ;;  %v2532_v56 = vmul.f32 %v13490_v36, %v13556_v53  ;;  %v775_v53 = vadd.s32 696, %v12281_v5 }
 0x173   : > { %v3439_v10 = vadd.f32 %v13540_v31, %v3304_v1  ;;  %v3177_v48 = vmul.f32 %v13498_v16, %v2787_v52  ;;  %2914 = vperm.xlu0 %11605, %v13505_v61   ;;  %10219 = vmatprep.mubr.msk.f32.mxu0 %vm18149_vm5, %v3566_v25  ;;  %18313 = vst [vmem:[#allocation112_spill] sm:$0xff] %v13667_v42  ;;  %vm18201_vm11 = vcmp.lt.s32.totalorder %v13667_v42, 2000 }
 0x175   : > { %v3567_v30 = vmax.f32 %v3439_v10, 0.0  ;;  %v3305_v1 = vadd.f32 %v3177_v48, %v2530_v28  ;;  %v13670_v52 = vpop.permute.xlu1 %2094  ;;  %v1669_v48 = vld [vmem:[%s12270_s0 + $0x2a0] sm:$0xff]  ;;  %v13686_v28 = vadd.s32 %v12277_v4, %v773_v21 }
 0x176   : > { %2254 = vperm.xlu1 %11591, %v13662_v45   ;;  %v2791_v61 = vpop.permute.xlu0 %2790  ;;  %v13700_v21 = vsel %vm18201_vm11, %v1669_v48, 0.0  ;;  %v2533_v48 = vmul.f32 %v13490_v36, %v13575_v62  ;;  %v776_v62 = vadd.s32 704, %v12281_v5 }
 0x177   : > { %v3440_v25 = vadd.f32 %v13540_v31, %v3305_v1  ;;  %v3178_v23 = vmul.f32 %v13498_v16, %v2791_v61  ;;  %2918 = vperm.xlu0 %11605, %v13524_v11   ;;  %10220 = vmatmul.mubr.msk.f32.gmra.mrb[40].mxu0 %vm18149_vm5, %v3567_v30  ;;  %18314 = vst [vmem:[#allocation113_spill] sm:$0xff] %v13686_v28  ;;  %vm18003_vm7 = vcmp.lt.s32.totalorder %v13686_v28, 2000 }
 0x179   : > { %v3568_v10 = vmax.f32 %v3440_v25, 0.0  ;;  %v3306_v1 = vadd.f32 %v3178_v23, %v2531_v29  ;;  %v13689_v61 = vpop.permute.xlu1 %2099  ;;  %v1670_v23 = vld [vmem:[%s12270_s0 + $0x2a8] sm:$0xff]  ;;  %v13705_v29 = vadd.s32 %v12277_v4, %v774_v57 }
 0x17a   : > { %2259 = vperm.xlu1 %11591, %v13681_v2   ;;  %v2795_v11 = vpop.permute.xlu0 %2794  ;;  %v13719_v57 = vsel %vm18003_vm7, %v1670_v23, 0.0  ;;  %v2534_v23 = vmul.f32 %v13490_v36, %v13594_v0  ;;  %v777_v0 = vadd.s32 712, %v12281_v5 }
 0x17b   : > { %v3441_v30 = vadd.f32 %v13540_v31, %v3306_v1  ;;  %v3179_v34 = vmul.f32 %v13498_v16, %v2795_v11  ;;  %2922 = vperm.xlu0 %11605, %v13548_v19   ;;  %10222 = vmatprep.mubr.msk.f32.mxu0 %vm18149_vm5, %v3568_v10  ;;  %18315 = vst [vmem:[#allocation114_spill] sm:$0xff] %v13705_v29  ;;  %vm17937_vm10 = vcmp.lt.s32.totalorder %v13705_v29, 2000 }
 0x17d   : > { %v3569_v25 = vmax.f32 %v3441_v30, 0.0  ;;  %v3307_v1 = vadd.f32 %v3179_v34, %v2532_v56  ;;  %v13708_v11 = vpop.permute.xlu1 %2104  ;;  %v1671_v34 = vld [vmem:[%s12270_s0 + $0x2b0] sm:$0xff]  ;;  %v13724_v56 = vadd.s32 %v12277_v4, %v775_v53 }
 0x17e   : > { %2264 = vperm.xlu1 %11591, %v13700_v21   ;;  %v2799_v19 = vpop.permute.xlu0 %2798  ;;  %v13738_v53 = vsel %vm17937_vm10, %v1671_v34, 0.0  ;;  %v2535_v34 = vmul.f32 %v13490_v36, %v13613_v8  ;;  %v778_v8 = vadd.s32 720, %v12281_v5 }
 0x17f   : > { %v3442_v10 = vadd.f32 %v13540_v31, %v3307_v1  ;;  %v3180_v38 = vmul.f32 %v13498_v16, %v2799_v19  ;;  %2926 = vperm.xlu0 %11605, %v13567_v58   ;;  %10223 = vmatmul.mubr.msk.f32.gmra.mrb[42].mxu0 %vm18149_vm5, %v3569_v25  ;;  %18316 = vst [vmem:[#allocation115_spill] sm:$0xff] %v13724_v56  ;;  %vm17940_vm8 = vcmp.lt.s32.totalorder %v13724_v56, 2000 }
 0x181   : > { %v3570_v30 = vmax.f32 %v3442_v10, 0.0  ;;  %v3308_v1 = vadd.f32 %v3180_v38, %v2533_v48  ;;  %v13727_v19 = vpop.permute.xlu1 %2109  ;;  %v1672_v38 = vld [vmem:[%s12270_s0 + $0x2b8] sm:$0xff]  ;;  %v13743_v48 = vadd.s32 %v12277_v4, %v776_v62 }
 0x182   : > { %2269 = vperm.xlu1 %11591, %v13719_v57   ;;  %v2803_v58 = vpop.permute.xlu0 %2802  ;;  %v13757_v62 = vsel %vm17940_vm8, %v1672_v38, 0.0  ;;  %v2536_v38 = vmul.f32 %v13490_v36, %v13632_v54  ;;  %v779_v54 = vadd.s32 728, %v12281_v5 }
 0x183   : > { %v3443_v25 = vadd.f32 %v13540_v31, %v3308_v1  ;;  %v3181_v27 = vmul.f32 %v13498_v16, %v2803_v58  ;;  %2930 = vperm.xlu0 %11605, %v13586_v32   ;;  %10225 = vmatprep.mubr.msk.f32.mxu0 %vm18149_vm5, %v3570_v30  ;;  %18317 = vst [vmem:[#allocation116_spill] sm:$0xff] %v13743_v48  ;;  %vm17943_vm10 = vcmp.lt.s32.totalorder %v13743_v48, 2000 }
 0x185   : > { %v3571_v10 = vmax.f32 %v3443_v25, 0.0  ;;  %v3309_v1 = vadd.f32 %v3181_v27, %v2534_v23  ;;  %v13746_v58 = vpop.permute.xlu1 %2114  ;;  %v1673_v27 = vld [vmem:[%s12270_s0 + $0x2c0] sm:$0xff]  ;;  %v13762_v23 = vadd.s32 %v12277_v4, %v777_v0 }
 0x186   : > { %2274 = vperm.xlu1 %11591, %v13738_v53   ;;  %v2807_v32 = vpop.permute.xlu0 %2806  ;;  %v13776_v0 = vsel %vm17943_vm10, %v1673_v27, 0.0  ;;  %v2537_v27 = vmul.f32 %v13490_v36, %v13651_v49  ;;  %v780_v49 = vadd.s32 736, %v12281_v5 }
 0x187   : > { %v3444_v30 = vadd.f32 %v13540_v31, %v3309_v1  ;;  %v3182_v29 = vmul.f32 %v13498_v16, %v2807_v32  ;;  %2934 = vperm.xlu0 %11605, %v13605_v33   ;;  %10226 = vmatmul.mubr.msk.f32.gmra.mrb[44].mxu0 %vm18149_vm5, %v3571_v10  ;;  %18318 = vst [vmem:[#allocation117_spill] sm:$0xff] %v13762_v23  ;;  %vm17946_vm8 = vcmp.lt.s32.totalorder %v13762_v23, 2000 }
 0x189   : > { %v3572_v25 = vmax.f32 %v3444_v30, 0.0  ;;  %v3310_v1 = vadd.f32 %v3182_v29, %v2535_v34  ;;  %v13765_v32 = vpop.permute.xlu1 %2119  ;;  %v1674_v29 = vld [vmem:[%s12270_s0 + $0x2c8] sm:$0xff]  ;;  %v13781_v34 = vadd.s32 %v12277_v4, %v778_v8 }
 0x18a   : > { %2279 = vperm.xlu1 %11591, %v13757_v62   ;;  %v2811_v33 = vpop.permute.xlu0 %2810  ;;  %v13795_v8 = vsel %vm17946_vm8, %v1674_v29, 0.0  ;;  %v2538_v29 = vmul.f32 %v13490_v36, %v13670_v52  ;;  %v781_v52 = vadd.s32 744, %v12281_v5 }
 0x18b   : > { %v3445_v10 = vadd.f32 %v13540_v31, %v3310_v1  ;;  %v3183_v56 = vmul.f32 %v13498_v16, %v2811_v33  ;;  %2938 = vperm.xlu0 %11605, %v13624_v22   ;;  %10228 = vmatprep.mubr.msk.f32.mxu0 %vm18149_vm5, %v3572_v25  ;;  %18319 = vst [vmem:[#allocation118_spill] sm:$0xff] %v13781_v34  ;;  %vm17949_vm10 = vcmp.lt.s32.totalorder %v13781_v34, 2000 }
 0x18d   : > { %v3573_v30 = vmax.f32 %v3445_v10, 0.0  ;;  %v3311_v1 = vadd.f32 %v3183_v56, %v2536_v38  ;;  %v13784_v33 = vpop.permute.xlu1 %2124  ;;  %v1675_v56 = vld [vmem:[%s12270_s0 + $0x2d0] sm:$0xff]  ;;  %v13800_v38 = vadd.s32 %v12277_v4, %v779_v54 }
 0x18e   : > { %2284 = vperm.xlu1 %11591, %v13776_v0   ;;  %v2815_v22 = vpop.permute.xlu0 %2814  ;;  %v13814_v54 = vsel %vm17949_vm10, %v1675_v56, 0.0  ;;  %v2539_v56 = vmul.f32 %v13490_v36, %v13689_v61  ;;  %v782_v61 = vadd.s32 752, %v12281_v5 }
 0x18f   : > { %v3446_v25 = vadd.f32 %v13540_v31, %v3311_v1  ;;  %v3184_v48 = vmul.f32 %v13498_v16, %v2815_v22  ;;  %2942 = vperm.xlu0 %11605, %v13643_v15   ;;  %10229 = vmatmul.mubr.msk.f32.gmra.mrb[46].mxu0 %vm18149_vm5, %v3573_v30  ;;  %18320 = vst [vmem:[#allocation119_spill] sm:$0xff] %v13800_v38  ;;  %vm17952_vm8 = vcmp.lt.s32.totalorder %v13800_v38, 2000 }
 0x191   : > { %v3574_v10 = vmax.f32 %v3446_v25, 0.0  ;;  %v3312_v1 = vadd.f32 %v3184_v48, %v2537_v27  ;;  %v13803_v22 = vpop.permute.xlu1 %2129  ;;  %v1676_v48 = vld [vmem:[%s12270_s0 + $0x2d8] sm:$0xff]  ;;  %v13819_v27 = vadd.s32 %v12277_v4, %v780_v49 }
 0x192   : > { %2289 = vperm.xlu1 %11591, %v13795_v8   ;;  %v2819_v15 = vpop.permute.xlu0 %2818  ;;  %v13833_v49 = vsel %vm17952_vm8, %v1676_v48, 0.0  ;;  %v2540_v48 = vmul.f32 %v13490_v36, %v13708_v11  ;;  %v783_v11 = vadd.s32 760, %v12281_v5 }
 0x193   : > { %v3447_v30 = vadd.f32 %v13540_v31, %v3312_v1  ;;  %v3185_v23 = vmul.f32 %v13498_v16, %v2819_v15  ;;  %2946 = vperm.xlu0 %11605, %v13662_v45   ;;  %10231 = vmatprep.mubr.msk.f32.mxu0 %vm18149_vm5, %v3574_v10  ;;  %18321 = vst [vmem:[#allocation120_spill] sm:$0xff] %v13819_v27  ;;  %vm17955_vm10 = vcmp.lt.s32.totalorder %v13819_v27, 2000 }
 0x195   : > { %v3575_v25 = vmax.f32 %v3447_v30, 0.0  ;;  %v3313_v1 = vadd.f32 %v3185_v23, %v2538_v29  ;;  %v13822_v15 = vpop.permute.xlu1 %2134  ;;  %v1677_v23 = vld [vmem:[%s12270_s0 + $0x2e0] sm:$0xff]  ;;  %v13838_v29 = vadd.s32 %v12277_v4, %v781_v52 }
 0x196   : > { %2294 = vperm.xlu1 %11591, %v13814_v54   ;;  %v2823_v45 = vpop.permute.xlu0 %2822  ;;  %v13852_v52 = vsel %vm17955_vm10, %v1677_v23, 0.0  ;;  %v2541_v23 = vmul.f32 %v13490_v36, %v13727_v19  ;;  %v784_v19 = vadd.s32 768, %v12281_v5 }
 0x197   : > { %v3448_v10 = vadd.f32 %v13540_v31, %v3313_v1  ;;  %v3186_v34 = vmul.f32 %v13498_v16, %v2823_v45  ;;  %2950 = vperm.xlu0 %11605, %v13681_v2   ;;  %10232 = vmatmul.mubr.msk.f32.gmra.mrb[48].mxu0 %vm18149_vm5, %v3575_v25  ;;  %18322 = vst [vmem:[#allocation121_spill] sm:$0xff] %v13838_v29  ;;  %vm17958_vm8 = vcmp.lt.s32.totalorder %v13838_v29, 2000 }
 0x199   : > { %v3576_v30 = vmax.f32 %v3448_v10, 0.0  ;;  %v3314_v1 = vadd.f32 %v3186_v34, %v2539_v56  ;;  %v13841_v45 = vpop.permute.xlu1 %2139  ;;  %v1678_v34 = vld [vmem:[%s12270_s0 + $0x2e8] sm:$0xff]  ;;  %v13857_v56 = vadd.s32 %v12277_v4, %v782_v61 }
 0x19a   : > { %2299 = vperm.xlu1 %11591, %v13833_v49   ;;  %v2827_v2 = vpop.permute.xlu0 %2826  ;;  %v13871_v61 = vsel %vm17958_vm8, %v1678_v34, 0.0  ;;  %v2542_v34 = vmul.f32 %v13490_v36, %v13746_v58  ;;  %v785_v58 = vadd.s32 776, %v12281_v5 }
 0x19b   : > { %v3449_v25 = vadd.f32 %v13540_v31, %v3314_v1  ;;  %v3187_v38 = vmul.f32 %v13498_v16, %v2827_v2  ;;  %2954 = vperm.xlu0 %11605, %v13700_v21   ;;  %10234 = vmatprep.mubr.msk.f32.mxu0 %vm18149_vm5, %v3576_v30  ;;  %18323 = vst [vmem:[#allocation122_spill] sm:$0xff] %v13857_v56  ;;  %vm17961_vm10 = vcmp.lt.s32.totalorder %v13857_v56, 2000 }
 0x19d   : > { %v3577_v10 = vmax.f32 %v3449_v25, 0.0  ;;  %v3315_v1 = vadd.f32 %v3187_v38, %v2540_v48  ;;  %v13860_v2 = vpop.permute.xlu1 %2144  ;;  %v1679_v38 = vld [vmem:[%s12270_s0 + $0x2f0] sm:$0xff]  ;;  %v13876_v48 = vadd.s32 %v12277_v4, %v783_v11 }
 0x19e   : > { %2304 = vperm.xlu1 %11591, %v13852_v52   ;;  %v2831_v21 = vpop.permute.xlu0 %2830  ;;  %v13890_v11 = vsel %vm17961_vm10, %v1679_v38, 0.0  ;;  %v2543_v38 = vmul.f32 %v13490_v36, %v13765_v32  ;;  %v786_v32 = vadd.s32 784, %v12281_v5 }
 0x19f   : > { %v3450_v30 = vadd.f32 %v13540_v31, %v3315_v1  ;;  %v3188_v27 = vmul.f32 %v13498_v16, %v2831_v21  ;;  %2958 = vperm.xlu0 %11605, %v13719_v57   ;;  %10235 = vmatmul.mubr.msk.f32.gmra.mrb[50].mxu0 %vm18149_vm5, %v3577_v10  ;;  %18324 = vst [vmem:[#allocation123_spill] sm:$0xff] %v13876_v48  ;;  %vm17966_vm8 = vcmp.lt.s32.totalorder %v13876_v48, 2000 }
 0x1a1   : > { %v3578_v25 = vmax.f32 %v3450_v30, 0.0  ;;  %v3316_v1 = vadd.f32 %v3188_v27, %v2541_v23  ;;  %v13879_v21 = vpop.permute.xlu1 %2149  ;;  %v1680_v27 = vld [vmem:[%s12270_s0 + $0x2f8] sm:$0xff]  ;;  %v13895_v23 = vadd.s32 %v12277_v4, %v784_v19 }
 0x1a2   : > { %2309 = vperm.xlu1 %11591, %v13871_v61   ;;  %v2835_v57 = vpop.permute.xlu0 %2834  ;;  %v13909_v19 = vsel %vm17966_vm8, %v1680_v27, 0.0  ;;  %v2544_v27 = vmul.f32 %v13490_v36, %v13784_v33  ;;  %v1682_v33 = vld [vmem:[%s12270_s0 + $0x308] sm:$0xff] }
 0x1a3   : > { %v3451_v10 = vadd.f32 %v13540_v31, %v3316_v1  ;;  %v3189_v29 = vmul.f32 %v13498_v16, %v2835_v57  ;;  %2962 = vperm.xlu0 %11605, %v13738_v53   ;;  %10237 = vmatprep.mubr.msk.f32.mxu0 %vm18149_vm5, %v3578_v25  ;;  %18325 = vst [vmem:[#allocation124_spill] sm:$0xff] %v13895_v23  ;;  %vm17971_vm10 = vcmp.lt.s32.totalorder %v13895_v23, 2000 }
 0x1a5   : > { %v3579_v30 = vmax.f32 %v3451_v10, 0.0  ;;  %v3317_v1 = vadd.f32 %v3189_v29, %v2542_v34  ;;  %v13898_v57 = vpop.permute.xlu1 %2154  ;;  %v1681_v29 = vld [vmem:[%s12270_s0 + $0x300] sm:$0xff]  ;;  %v13914_v34 = vadd.s32 %v12277_v4, %v785_v58 }
 0x1a6   : > { %2314 = vperm.xlu1 %11591, %v13890_v11   ;;  %v2839_v53 = vpop.permute.xlu0 %2838 }
 0x1a7   : > { %v3452_v25 = vadd.f32 %v13540_v31, %v3317_v1  ;;  %v3190_v56 = vmul.f32 %v13498_v16, %v2839_v53  ;;  %2966 = vperm.xlu0 %11605, %v13757_v62   ;;  %10238 = vmatmul.mubr.msk.f32.gmra.mrb[52].mxu0 %vm18149_vm5, %v3579_v30  ;;  %18326 = vst [vmem:[#allocation125_spill] sm:$0xff] %v13914_v34  ;;  %vm17976_vm8 = vcmp.lt.s32.totalorder %v13914_v34, 2000 }
 0x1a9   : > { %v3580_v10 = vmax.f32 %v3452_v25, 0.0  ;;  %v3318_v1 = vadd.f32 %v3190_v56, %v2543_v38  ;;  %v13917_v53 = vpop.permute.xlu1 %2159  ;;  %v13930_v56 = vsel %vm17971_vm10, %v1681_v29, 0.0  ;;  %v13937_v38 = vadd.s32 %v12277_v4, %v786_v32 }
 0x1aa   : > { %2319 = vperm.xlu1 %11591, %v13909_v19   ;;  %v2843_v62 = vpop.permute.xlu0 %2842  ;;  %v787_v25 = vadd.s32 792, %v12281_v5  ;;  %v2545_v29 = vmul.f32 %v13490_v36, %v13803_v22  ;;  %v13951_v32 = vsel %vm17976_vm8, %v1682_v33, 0.0  ;;  %v788_v22 = vadd.s32 800, %v12281_v5 }
 0x1ab   : > { %v3453_v30 = vadd.f32 %v13540_v31, %v3318_v1  ;;  %v3191_v48 = vmul.f32 %v13498_v16, %v2843_v62  ;;  %v13924_v28 = vpop.f32.mrb[0].mxu0  ;;  %2970 = vperm.xlu0 %11605, %v13776_v0   ;;  %10240 = vmatprep.mubr.msk.f32.mxu0 %vm18149_vm5, %v3580_v10  ;;  %18327 = vst [vmem:[#allocation126_spill] sm:$0xff] %v13937_v38  ;;  %vm17979_vm10 = vcmp.lt.s32.totalorder %v13937_v38, 2000 }
 0x1ac   : > { %v13932_v58 = vpop.f32.mrb[1].mxu0  ;;  %v2546_v33 = vmul.f32 %v13490_v36, %v13822_v15  ;;  %v13979_v15 = vadd.s32 %v12277_v4, %v788_v22  ;;  %v1685_v22 = vld [vmem:[%s12270_s0 + $0x320] sm:$0xff] }
 0x1ad   : > { %v3581_v1 = vmax.f32 %v3453_v30, 0.0  ;;  %v3319_v62 = vadd.f32 %v3191_v48, %v2544_v27  ;;  %v13940_v0 = vpop.permute.xlu1 %2164  ;;  %v1683_v48 = vld [vmem:[%s12270_s0 + $0x310] sm:$0xff]  ;;  %v13956_v27 = vadd.s32 %v12277_v4, %v787_v25 }
 0x1ae   : > { %2324 = vperm.xlu1 %11591, %v13930_v56   ;;  %v2847_v10 = vpop.permute.xlu0 %2846  ;;  %18329 = vst [vmem:[#allocation128_spill] sm:$0xff] %v13979_v15 }
 0x1af   : > { %v3454_v23 = vadd.f32 %v13540_v31, %v3319_v62  ;;  %v3192_v42 = vmul.f32 %v13498_v16, %v2847_v10  ;;  %2974 = vperm.xlu0 %11605, %v13795_v8   ;;  %10241 = vmatmul.mubr.msk.f32.gmra.mrb[54].mxu0 %vm18149_vm5, %v3581_v1  ;;  %18328 = vst [vmem:[#allocation127_spill] sm:$0xff] %v13956_v27  ;;  %vm17998_vm8 = vcmp.lt.s32.totalorder %v13956_v27, 2000 }
 0x1b1   : > { %v3582_v30 = vmax.f32 %v3454_v23, 0.0  ;;  %v3320_v62 = vadd.f32 %v3192_v42, %v2545_v29  ;;  %v13959_v10 = vpop.permute.xlu1 %2169  ;;  %v13974_v42 = vsel %vm17979_vm10, %v1683_v48, 0.0  ;;  %v1684_v23 = vld [vmem:[%s12270_s0 + $0x318] sm:$0xff]  ;;  %vm17988_vm10 = vcmp.lt.s32.totalorder %v13979_v15, 2000 }
 0x1b2   : > { %2329 = vperm.xlu1 %11591, %v13951_v32   ;;  %v13962_v8 = vpop.f32.mrb[2].mxu0  ;;  %v2851_v1 = vpop.permute.xlu0 %2850 }
 0x1b3   : > { %v3455_v34 = vadd.f32 %v13540_v31, %v3320_v62  ;;  %v3193_v25 = vmul.f32 %v13498_v16, %v2851_v1  ;;  %v13968_v9 = vpop.f32.mrb[3].mxu0  ;;  %2978 = vperm.xlu0 %11605, %v13814_v54   ;;  %10243 = vmatprep.mubr.msk.f32.mxu0 %vm18149_vm5, %v3582_v30  ;;  %v2547_v30 = vmul.f32 %v13490_v36, %v13841_v45 }
 0x1b5   : > { %v3583_v29 = vmax.f32 %v3455_v34, 0.0  ;;  %v3321_v62 = vadd.f32 %v3193_v25, %v2546_v33  ;;  %v13981_v1 = vpop.permute.xlu1 %2174  ;;  %v13992_v34 = vsel %vm17998_vm8, %v1684_v23, 0.0 }
 0x1b6   : > { %2334 = vperm.xlu1 %11591, %v13974_v42   ;;  %v2855_v54 = vpop.permute.xlu0 %2854 }
 0x1b7   : > { %v3456_v48 = vadd.f32 %v13540_v31, %v3321_v62  ;;  %v3194_v38 = vmul.f32 %v13498_v16, %v2855_v54  ;;  %2982 = vperm.xlu0 %11605, %v13833_v49   ;;  %10244 = vmatmul.mubr.msk.f32.gmra.mrb[56].mxu0 %vm18149_vm5, %v3583_v29  ;;  %v2548_v49 = vmul.f32 %v13490_v36, %v13860_v2  ;;  %v809_v2 = vadd.s32 968, %v12281_v5 }
 0x1b9   : > { %v3584_v33 = vmax.f32 %v3456_v48, 0.0  ;;  %v3322_v25 = vadd.f32 %v3194_v38, %v2547_v30  ;;  %v13996_v47 = vpop.permute.xlu1 %2179  ;;  %v1813_v38 = vsel %vm17988_vm10, %v1685_v22, 0.0 }
 0x1ba   : > { %2339 = vperm.xlu1 %11591, %v13992_v34   ;;  %v13999_v45 = vpop.f32.mrb[4].mxu0  ;;  %v2859_v62 = vpop.permute.xlu0 %2858 }
 0x1bb   : > { %v3457_v29 = vadd.f32 %v13540_v31, %v3322_v25  ;;  %v3195_v23 = vmul.f32 %v13498_v16, %v2859_v62  ;;  %v14005_v54 = vpop.f32.mrb[5].mxu0  ;;  %2986 = vperm.xlu0 %11605, %v13852_v52   ;;  %10246 = vmatprep.mubr.msk.f32.mxu0 %vm18149_vm5, %v3584_v33  ;;  %v2549_v25 = vmul.f32 %v13490_v36, %v13879_v21 }
 0x1bc   : > { %v14026_v21 = vadd.s32 %v12277_v4, %v809_v2 }
 0x1bd   : > { %v3585_v30 = vmax.f32 %v3457_v29, 0.0  ;;  %v3323_v48 = vadd.f32 %v3195_v23, %v2548_v49  ;;  %v14011_v27 = vpop.permute.xlu1 %2184  ;;  %v18330_v29 = vmov 1  }
 0x1be   : > { %2344 = vperm.xlu1 %11591, %v1813_v38   ;;  %v2863_v24 = vpop.permute.xlu0 %2862  ;;  %18331 = vst [vmem:[#allocation129_spill] sm:$0xff] %v14026_v21  ;;  %vm17993_vm10 = vcmp.lt.s32.totalorder %v14026_v21, 2000 }
 0x1bf   : > { %v3458_v62 = vadd.f32 %v13540_v31, %v3323_v48  ;;  %v3196_v52 = vmul.f32 %v13498_v16, %v2863_v24  ;;  %2990 = vperm.xlu0 %11605, %v13871_v61   ;;  %10247 = vmatmul.mubr.msk.f32.gmra.mrb[58].mxu0 %vm18149_vm5, %v3585_v30  ;;  %v2550_v24 = vmul.f32 %v13490_v36, %v13898_v57 }
 0x1c0   : > { %v2551_v57 = vmul.f32 %v13490_v36, %v13917_v53 }
 0x1c1   : > { %v3586_v22 = vmax.f32 %v3458_v62, 0.0  ;;  %v3324_v33 = vadd.f32 %v3196_v52, %v2549_v25  ;;  %v14020_v49 = vpop.permute.xlu1 %2189 }
 0x1c2   : > { %11592 = vset.pattern.permute.xlu1 %v18330_v29  ;;  %v14023_v23 = vpop.f32.mrb[6].mxu0  ;;  %v2867_v15 = vpop.permute.xlu0 %2866 }
 0x1c3   : > { %v3459_v61 = vadd.f32 %v13540_v31, %v3324_v33  ;;  %v3197_v30 = vmul.f32 %v13498_v16, %v2867_v15  ;;  %3018 = vperm.xlu1 %11592, %v1813_v38   ;;  %v14032_v48 = vpop.f32.mrb[7].mxu0  ;;  %2994 = vperm.xlu0 %11605, %v13890_v11   ;;  %v790_v11 = vadd.s32 816, %v12281_v5 }
 0x1c4   : > { %10249 = vmatprep.mubr.msk.f32.mxu0 %vm18149_vm5, %v3586_v22 }
 0x1c5   : > { %v3587_v25 = vmax.f32 %v3459_v61, 0.0  ;;  %v3325_v62 = vadd.f32 %v3197_v30, %v2550_v24  ;;  %v14036_v52 = vpop.permute.xlu1 %2194  ;;  %v1834_v61 = vsel %vm17993_vm10, %v1706_v13, 0.0  ;;  %v14064_v13 = vadd.s32 %v12277_v4, %v790_v11 }
 0x1c6   : > { %v2871_v2 = vpop.permute.xlu0 %2870 }
 0x1c7   : > { %v3460_v15 = vadd.f32 %v13540_v31, %v3325_v62  ;;  %v3198_v38 = vmul.f32 %v13498_v16, %v2871_v2  ;;  %3098 = vperm.xlu1 %11592, %v12316_v20   ;;  %2998 = vperm.xlu0 %11605, %v13909_v19   ;;  %v2552_v62 = vmul.f32 %v13490_v36, %v13940_v0  ;;  %vm17996_vm10 = vcmp.lt.s32.totalorder %v14064_v13, 2000 }
 0x1c8   : > { %10250 = vmatmul.mubr.msk.f32.gmra.mrb[60].mxu0 %vm18149_vm5, %v3587_v25  ;;  %v18332_v25 = vmov 0   ;;  %18333 = vst [vmem:[#allocation130_spill] sm:$0xff] %v14064_v13 }
 0x1c9   : > { %v3588_v22 = vmax.f32 %v3460_v15, 0.0  ;;  %v3326_v33 = vadd.f32 %v3198_v38, %v2551_v57  ;;  %v14048_v24 = vpop.permute.xlu1 %2199 }
 0x1ca   : > { %v14052_v53 = vpop.f32.mrb[8].mxu0  ;;  %v2875_v30 = vpop.permute.xlu0 %2874 }
 0x1cb   : > { %v3461_v20 = vadd.f32 %v13540_v31, %v3326_v33  ;;  %v3199_v19 = vmul.f32 %v13498_v16, %v2875_v30  ;;  %11593 = vset.pattern.permute.xlu1 %v18332_v25  ;;  %v14059_v2 = vpop.f32.mrb[9].mxu0  ;;  %3002 = vperm.xlu0 %11605, %v13930_v56   ;;  %v2553_v33 = vmul.f32 %v13490_v36, %v13959_v10  ;;  %v1687_v56 = vld [vmem:[%s12270_s0 + $0x330] sm:$0xff] }
 0x1cc   : > { %10252 = vmatprep.mubr.msk.f32.mxu0 %vm18149_vm5, %v3588_v22  ;;  %2449 = vperm.xlu1 %11593, %v1834_v61  }
 0x1cd   : > { %v3589_v57 = vmax.f32 %v3461_v20, 0.0  ;;  %v3327_v15 = vadd.f32 %v3199_v19, %v2552_v62  ;;  %v14066_v0 = vpop.permute.xlu1 %2204  ;;  %v2554_v19 = vmul.f32 %v13490_v36, %v13981_v1 }
 0x1ce   : > { %v2879_v38 = vpop.permute.xlu0 %2878 }
 0x1cf   : > { %v3462_v30 = vadd.f32 %v13540_v31, %v3327_v15  ;;  %v3200_v21 = vmul.f32 %v13498_v16, %v2879_v38  ;;  %3006 = vperm.xlu0 %11605, %v13951_v32   ;;  %10253 = vmatmul.mubr.msk.f32.gmra.mrb[62].mxu0 %vm18149_vm5, %v3589_v57 }
 0x1d0   : > { %11594 = vset.pattern.permute.xlu1 %v18330_v29 }
 0x1d1   : > { %v3590_v11 = vmax.f32 %v3462_v30, 0.0  ;;  %v3328_v22 = vadd.f32 %v3200_v21, %v2553_v33  ;;  %3102 = vperm.xlu1 %11594, %v1834_v61   ;;  %v14077_v62 = vpop.permute.xlu1 %2209  ;;  %v1815_v21 = vsel %vm17996_vm10, %v1687_v56, 0.0  ;;  %v811_v30 = vadd.s32 984, %v12281_v5 }
 0x1d2   : > { %v14079_v20 = vpop.f32.mrb[10].mxu0  ;;  %v2883_v10 = vpop.permute.xlu0 %2882 }
 0x1d3   : > { %v3463_v32 = vadd.f32 %v13540_v31, %v3328_v22  ;;  %v3201_v57 = vmul.f32 %v13498_v16, %v2883_v10  ;;  %v14085_v15 = vpop.f32.mrb[11].mxu0  ;;  %3010 = vperm.xlu0 %11605, %v13974_v42   ;;  %10255 = vmatprep.mubr.msk.f32.mxu0 %vm18149_vm5, %v3590_v11  ;;  %v2555_v22 = vmul.f32 %v13490_v36, %v13996_v47 }
 0x1d4   : > { %v14107_v47 = vadd.s32 %v12277_v4, %v811_v30 }
 0x1d5   : > { %v3591_v61 = vmax.f32 %v3463_v32, 0.0  ;;  %v3329_v38 = vadd.f32 %v3201_v57, %v2554_v19  ;;  %11595 = vset.pattern.permute.xlu1 %v18332_v25  ;;  %v14092_v33 = vpop.permute.xlu1 %2214 }
 0x1d6   : > { %2354 = vperm.xlu1 %11595, %v1815_v21   ;;  %v2887_v1 = vpop.permute.xlu0 %2886  ;;  %18334 = vst [vmem:[#allocation131_spill] sm:$0xff] %v14107_v47  ;;  %vm17997_vm10 = vcmp.lt.s32.totalorder %v14107_v47, 2000 }
 0x1d7   : > { %v3464_v42 = vadd.f32 %v13540_v31, %v3329_v38  ;;  %v3202_v11 = vmul.f32 %v13498_v16, %v2887_v1  ;;  %3014 = vperm.xlu0 %11605, %v13992_v34   ;;  %10256 = vmatmul.mubr.msk.f32.gmra.mrb[64].mxu0 %vm18149_vm5, %v3591_v61  ;;  %v2556_v38 = vmul.f32 %v13490_v36, %v14011_v27  ;;  %v1708_v27 = vld [vmem:[%s12270_s0 + $0x3d8] sm:$0xff] }
 0x1d9   : > { %v3592_v56 = vmax.f32 %v3464_v42, 0.0  ;;  %v3330_v10 = vadd.f32 %v3202_v11, %v2555_v22  ;;  %v14101_v19 = vpop.permute.xlu1 %2219  ;;  %v796_v22 = vadd.s32 864, %v12281_v5 }
 0x1da   : > { %11596 = vset.pattern.permute.xlu1 %v18330_v29  ;;  %v14104_v32 = vpop.f32.mrb[12].mxu0  ;;  %v2891_v57 = vpop.permute.xlu0 %2890 }
 0x1db   : > { %v3465_v34 = vadd.f32 %v13540_v31, %v3330_v10  ;;  %v3203_v61 = vmul.f32 %v13498_v16, %v2891_v57  ;;  %3026 = vperm.xlu1 %11596, %v1815_v21   ;;  %v14113_v1 = vpop.f32.mrb[13].mxu0  ;;  %3022 = vperm.xlu0 %11605, %v12331_v26   ;;  %v2557_v10 = vmul.f32 %v13490_v36, %v14020_v49  ;;  %v1836_v36 = vsel %vm17997_vm10, %v1708_v27, 0.0 }
 0x1dc   : > { %10258 = vmatprep.mubr.msk.f32.mxu0 %vm18149_vm5, %v3592_v56  ;;  %v14130_v26 = vadd.s32 %v12277_v4, %v796_v22  ;;  %v792_v56 = vadd.s32 832, %v12281_v5 }
 0x1dd   : > { %v3593_v42 = vmax.f32 %v3465_v34, 0.0  ;;  %v3331_v11 = vadd.f32 %v3203_v61, %v2556_v38  ;;  %v14118_v30 = vpop.permute.xlu1 %2224 }
 0x1de   : > { %v2895_v13 = vpop.permute.xlu0 %2894  ;;  %18335 = vst [vmem:[#allocation132_spill] sm:$0xff] %v14130_v26  ;;  %vm18010_vm10 = vcmp.lt.s32.totalorder %v14130_v26, 2000 }
 0x1df   : > { %v3466_v21 = vadd.f32 %v13540_v31, %v3331_v11  ;;  %v3204_v57 = vmul.f32 %v13498_v16, %v2895_v13  ;;  %3106 = vperm.xlu1 %11596, %v12353_v35   ;;  %3030 = vperm.xlu0 %11605, %v12376_v43   ;;  %v797_v16 = vadd.s32 872, %v12281_v5  ;;  %v14143_v43 = vld [vmem:[%s18269_s22] ss:$0 sm:$0xff] }
 0x1e0   : > { %10259 = vmatmul.mubr.msk.f32.gmra.mrb[66].mxu0 %vm18149_vm5, %v3593_v42  ;;  %v2558_v13 = vmul.f32 %v14143_v43, %v14036_v52  ;;  %v14151_v42 = vld [vmem:[%s18267_s29] ss:$0 sm:$0xff]  ;;  %v2560_v26 = vmul.f32 %v14143_v43, %v14066_v0 }
 0x1e1   : > { %v3594_v38 = vmax.f32 %v3466_v21, 0.0  ;;  %v3332_v34 = vadd.f32 %v3204_v57, %v2557_v10  ;;  %v14133_v61 = vpop.permute.xlu1 %2229  ;;  %v1693_v57 = vld [vmem:[%s12270_s0 + $0x360] sm:$0xff] }
 0x1e2   : > { %v14138_v49 = vpop.f32.mrb[14].mxu0  ;;  %v2899_v35 = vpop.permute.xlu0 %2898 }
 0x1e3   : > { %18336 = vst [vmem:[#allocation133_spill] sm:$0xff] %v14138_v49  ;;  %v3467_v22 = vadd.f32 %v13540_v31, %v3332_v34  ;;  %v3205_v11 = vmul.f32 %v14151_v42, %v2899_v35  ;;  %11597 = vset.pattern.permute.xlu1 %v18332_v25  ;;  %v14155_v27 = vpop.f32.mrb[15].mxu0  ;;  %3038 = vperm.xlu0 %11605, %v12420_v59   ;;  %v798_v35 = vadd.s32 880, %v12281_v5  ;;  %v1702_v49 = vld [vmem:[%s12270_s0 + $0x3a8] sm:$0xff] }
 0x1e4   : > { %10261 = vmatprep.mubr.msk.f32.mxu0 %vm18149_vm5, %v3594_v38  ;;  %2459 = vperm.xlu1 %11597, %v1836_v36   ;;  %v14161_v31 = vadd.s32 %v12277_v4, %v792_v56  ;;  %v14167_v34 = vadd.s32 %v12277_v4, %v797_v16  ;;  %v2559_v38 = vmul.f32 %v14143_v43, %v14048_v24  ;;  %v14175_v56 = vld [vmem:[%s18271_s11] ss:$0 sm:$0xff]  ;;  %v14184_v16 = vsel %vm18010_vm10, %v1693_v57, 0.0 }
 0x1e5   : > { %v3595_v52 = vmax.f32 %v3467_v22, 0.0  ;;  %v3333_v10 = vadd.f32 %v3205_v11, %v2558_v13  ;;  %v14163_v21 = vpop.permute.xlu1 %2234  ;;  %v1689_v24 = vld [vmem:[%s12270_s0 + $0x340] sm:$0xff]  ;;  %v799_v11 = vadd.s32 888, %v12281_v5 }
 0x1e6   : > { %18337 = vst [vmem:[#allocation134_spill] sm:$0xff] %v14161_v31  ;;  %18338 = vst [vmem:[#allocation135_spill] sm:$0xff] %v14167_v34  ;;  %v2903_v59 = vpop.permute.xlu0 %2902  ;;  %vm18025_vm8 = vcmp.lt.s32.totalorder %v14161_v31, 2000  ;;  %vm18013_vm7 = vcmp.lt.s32.totalorder %v14167_v34, 2000 }
 0x1e7   : > { %v3468_v13 = vadd.f32 %v14175_v56, %v3333_v10  ;;  %v3206_v22 = vmul.f32 %v14151_v42, %v2903_v59  ;;  %3046 = vperm.xlu0 %11605, %v12459_v14   ;;  %10262 = vmatmul.mubr.msk.f32.gmra.mrb[68].mxu0 %vm18149_vm5, %v3595_v52  ;;  %v1694_v14 = vld [vmem:[%s12270_s0 + $0x368] sm:$0xff]  ;;  %v14194_v52 = vadd.s32 %v12277_v4, %v798_v35  ;;  %v1817_v35 = vsel %vm18025_vm8, %v1689_v24, 0.0 }
 0x1e8   : > { %11598 = vset.pattern.permute.xlu1 %v18330_v29  ;;  %v813_v24 = vadd.s32 1000, %v12281_v5 }
 0x1e9   : > { %v3596_v47 = vmax.f32 %v3468_v13, 0.0  ;;  %v3334_v60 = vadd.f32 %v3206_v22, %v2559_v38  ;;  %3110 = vperm.xlu1 %11598, %v1836_v36   ;;  %v14189_v10 = vpop.permute.xlu1 %2239  ;;  %18339 = vst [vmem:[#allocation136_spill] sm:$0xff] %v14194_v52  ;;  %v14210_v13 = vsel %vm18013_vm7, %v1694_v14, 0.0  ;;  %v14213_v22 = vadd.s32 %v12277_v4, %v799_v11 }
 0x1ea   : > { %v14196_v59 = vpop.f32.mrb[16].mxu0  ;;  %v2907_v57 = vpop.permute.xlu0 %2906  ;;  %vm18020_vm10 = vcmp.lt.s32.totalorder %v14194_v52, 2000  ;;  %v2561_v11 = vmul.f32 %v14143_v43, %v14077_v62  ;;  %v802_v52 = vadd.s32 912, %v12281_v5 }
 0x1eb   : > { %18340 = vst [vmem:[#allocation137_spill] sm:$0xff] %v14196_v59  ;;  %v3469_v37 = vadd.f32 %v14175_v56, %v3334_v60  ;;  %v3207_v38 = vmul.f32 %v14151_v42, %v2907_v57  ;;  %v14202_v36 = vpop.f32.mrb[17].mxu0  ;;  %3050 = vperm.xlu0 %11605, %v14184_v16   ;;  %10264 = vmatprep.mubr.msk.f32.mxu0 %vm18149_vm5, %v3596_v47  ;;  %18342 = vst [vmem:[#allocation139_spill] sm:$0xff] %v14213_v22  ;;  %v800_v60 = vadd.s32 896, %v12281_v5  ;;  %v1695_v47 = vld [vmem:[%s12270_s0 + $0x370] sm:$0xff] }
 0x1ec   : > { %18341 = vst [vmem:[#allocation138_spill] sm:$0xff] %v14202_v36  ;;  %vm18030_vm7 = vcmp.lt.s32.totalorder %v14213_v22, 2000 }
 0x1ed   : > { %v3597_v0 = vmax.f32 %v3469_v37, 0.0  ;;  %v3335_v57 = vadd.f32 %v3207_v38, %v2560_v26  ;;  %11599 = vset.pattern.permute.xlu1 %v18332_v25  ;;  %v14217_v41 = vpop.permute.xlu1 %2244  ;;  %v14230_v26 = vsel %vm18020_vm10, %v1695_v47, 0.0  ;;  %v14234_v38 = vadd.s32 %v12277_v4, %v800_v60 }
 0x1ee   : > { %2364 = vperm.xlu1 %11599, %v1817_v35   ;;  %v2911_v14 = vpop.permute.xlu0 %2910  ;;  %v2562_v60 = vmul.f32 %v14143_v43, %v14092_v33 }
 0x1ef   : > { %v3470_v34 = vadd.f32 %v14175_v56, %v3335_v57  ;;  %v3208_v37 = vmul.f32 %v14151_v42, %v2911_v14  ;;  %3054 = vperm.xlu0 %11605, %v14210_v13   ;;  %10265 = vmatmul.mubr.msk.f32.gmra.mrb[70].mxu0 %vm18149_vm5, %v3597_v0  ;;  %18343 = vst [vmem:[#allocation140_spill] sm:$0xff] %v14234_v38  ;;  %v1696_v57 = vld [vmem:[%s12270_s0 + $0x378] sm:$0xff]  ;;  %vm18039_vm10 = vcmp.lt.s32.totalorder %v14234_v38, 2000 }
 0x1f0   : > { %v14240_v14 = vadd.s32 %v12277_v4, %v813_v24  ;;  %v14256_v24 = vsel %vm18030_vm7, %v1696_v57, 0.0  ;;  %v2563_v57 = vmul.f32 %v14143_v43, %v14101_v19  ;;  %vm18038_vm7 = vcmp.lt.s32.totalorder %v14266_v46, 2000 }
 0x1f1   : > { %v3598_v31 = vmax.f32 %v3470_v34, 0.0  ;;  %v3336_v40 = vadd.f32 %v3208_v37, %v2561_v11  ;;  %v14236_v62 = vpop.permute.xlu1 %2249 }
 0x1f2   : > { %18344 = vst [vmem:[#allocation141_spill] sm:$0xff] %v14240_v14  ;;  %11600 = vset.pattern.permute.xlu1 %v18330_v29  ;;  %v14244_v0 = vpop.f32.mrb[18].mxu0  ;;  %v2915_v47 = vpop.permute.xlu0 %2914  ;;  %vm18035_vm8 = vcmp.lt.s32.totalorder %v14240_v14, 2000 }
 0x1f3   : > { %18345 = vst [vmem:[#allocation142_spill] sm:$0xff] %v14244_v0  ;;  %v3471_v34 = vadd.f32 %v14175_v56, %v3336_v40  ;;  %v3209_v11 = vmul.f32 %v14151_v42, %v2915_v47  ;;  %3034 = vperm.xlu1 %11600, %v1817_v35   ;;  %v14250_v37 = vpop.f32.mrb[19].mxu0  ;;  %3058 = vperm.xlu0 %11605, %v14230_v26   ;;  %v1697_v47 = vld [vmem:[%s12270_s0 + $0x380] sm:$0xff]  ;;  %v1710_v35 = vld [vmem:[%s12270_s0 + $0x3e8] sm:$0xff] }
 0x1f4   : > { %18346 = vst [vmem:[#allocation143_spill] sm:$0xff] %v14250_v37  ;;  %10267 = vmatprep.mubr.msk.f32.mxu0 %vm18149_vm5, %v3598_v31  ;;  %v1838_v6 = vsel %vm18035_vm8, %v1710_v35, 0.0  ;;  %v2564_v35 = vmul.f32 %v14143_v43, %v14118_v30 }
 0x1f5   : > { %v3599_v33 = vmax.f32 %v3471_v34, 0.0  ;;  %v3337_v39 = vadd.f32 %v3209_v11, %v2562_v60  ;;  %v14260_v40 = vpop.permute.xlu1 %2254  ;;  %v14277_v60 = vsel %vm18039_vm10, %v1697_v47, 0.0  ;;  %v14282_v34 = vadd.s32 %v12277_v4, %v802_v52 }
 0x1f6   : > { %v2919_v31 = vpop.permute.xlu0 %2918 }
 0x1f7   : > { %v3472_v22 = vadd.f32 %v14175_v56, %v3337_v39  ;;  %v3210_v0 = vmul.f32 %v14151_v42, %v2919_v31  ;;  %3114 = vperm.xlu1 %11600, %v12398_v51   ;;  %3062 = vperm.xlu0 %11605, %v14256_v24   ;;  %18348 = vst [vmem:[#allocation145_spill] sm:$0xff] %v14282_v34  ;;  %v794_v39 = vadd.s32 848, %v12281_v5  ;;  %v1698_v51 = vld [vmem:[%s12270_s0 + $0x388] sm:$0xff]  ;;  %vm18042_vm8 = vcmp.lt.s32.totalorder %v14282_v34, 2000 }
 0x1f8   : > { %10268 = vmatmul.mubr.msk.f32.gmra.mrb[72].mxu0 %vm18149_vm5, %v3599_v33  ;;  %v803_v33 = vadd.s32 920, %v12281_v5  ;;  %v2566_v34 = vmul.f32 %v14143_v43, %v14163_v21 }
 0x1f9   : > { %v3600_v19 = vmax.f32 %v3472_v22, 0.0  ;;  %v3338_v11 = vadd.f32 %v3210_v0, %v2563_v57  ;;  %v14285_v31 = vpop.permute.xlu1 %2259  ;;  %v14303_v0 = vsel %vm18038_vm7, %v1698_v51, 0.0  ;;  %v14307_v30 = vadd.s32 %v12277_v4, %v794_v39 }
 0x1fa   : > { %v14290_v38 = vpop.f32.mrb[20].mxu0  ;;  %v2923_v47 = vpop.permute.xlu0 %2922  ;;  %v2565_v51 = vmul.f32 %v14143_v43, %v14133_v61 }
 0x1fb   : > { %18349 = vst [vmem:[#allocation146_spill] sm:$0xff] %v14290_v38  ;;  %v3473_v52 = vadd.f32 %v14175_v56, %v3338_v11  ;;  %v3211_v14 = vmul.f32 %v14151_v42, %v2923_v47  ;;  %11601 = vset.pattern.permute.xlu1 %v18332_v25  ;;  %v14297_v22 = vpop.f32.mrb[21].mxu0  ;;  %3066 = vperm.xlu0 %11605, %v14277_v60   ;;  %18351 = vst [vmem:[#allocation148_spill] sm:$0xff] %v14307_v30  ;;  %v1699_v38 = vld [vmem:[%s12270_s0 + $0x390] sm:$0xff]  ;;  %vm18053_vm7 = vcmp.lt.s32.totalorder %v14307_v30, 2000 }
 0x1fc   : > { %18350 = vst [vmem:[#allocation147_spill] sm:$0xff] %v14297_v22  ;;  %10270 = vmatprep.mubr.msk.f32.mxu0 %vm18149_vm5, %v3600_v19  ;;  %2469 = vperm.xlu1 %11601, %v1838_v6   ;;  %v14313_v22 = vadd.s32 %v12277_v4, %v803_v33  ;;  %v804_v19 = vadd.s32 928, %v12281_v5  ;;  %v1691_v33 = vld [vmem:[%s12270_s0 + $0x350] sm:$0xff]  ;;  %v806_v30 = vadd.s32 944, %v12281_v5 }
 0x1fd   : > { %v3601_v57 = vmax.f32 %v3473_v52, 0.0  ;;  %v3339_v11 = vadd.f32 %v3211_v14, %v2564_v35  ;;  %v14309_v47 = vpop.permute.xlu1 %2264  ;;  %v14325_v14 = vsel %vm18042_vm8, %v1699_v38, 0.0  ;;  %v805_v35 = vadd.s32 936, %v12281_v5 }
 0x1fe   : > { %18352 = vst [vmem:[#allocation149_spill] sm:$0xff] %v14313_v22  ;;  %v2927_v37 = vpop.permute.xlu0 %2926  ;;  %vm18045_vm10 = vcmp.lt.s32.totalorder %v14313_v22, 2000 }
 0x1ff   : > { %v3474_v46 = vadd.f32 %v14175_v56, %v3339_v11  ;;  %v3212_v39 = vmul.f32 %v14151_v42, %v2927_v37  ;;  %3070 = vperm.xlu0 %11605, %v14303_v0   ;;  %10271 = vmatmul.mubr.msk.f32.gmra.mrb[74].mxu0 %vm18149_vm5, %v3601_v57  ;;  %v1700_v37 = vld [vmem:[%s12270_s0 + $0x398] sm:$0xff]  ;;  %v14335_v57 = vadd.s32 %v12277_v4, %v804_v19  ;;  %v1819_v19 = vsel %vm18053_vm7, %v1691_v33, 0.0 }
 0x200   : > { %11602 = vset.pattern.permute.xlu1 %v18330_v29 }
 0x201   : > { %v3602_v61 = vmax.f32 %v3474_v46, 0.0  ;;  %v3340_v52 = vadd.f32 %v3212_v39, %v2565_v51  ;;  %3118 = vperm.xlu1 %11602, %v1838_v6   ;;  %v14330_v11 = vpop.permute.xlu1 %2269  ;;  %18353 = vst [vmem:[#allocation150_spill] sm:$0xff] %v14335_v57  ;;  %v14351_v51 = vsel %vm18045_vm10, %v1700_v37, 0.0  ;;  %v14354_v39 = vadd.s32 %v12277_v4, %v805_v35 }
 0x202   : > { %v14337_v59 = vpop.f32.mrb[22].mxu0  ;;  %v2931_v38 = vpop.permute.xlu0 %2930  ;;  %vm18052_vm8 = vcmp.lt.s32.totalorder %v14335_v57, 2000  ;;  %v815_v37 = vadd.s32 1016, %v12281_v5  ;;  %v2567_v35 = vmul.f32 %v14143_v43, %v14189_v10  ;;  %v14378_v10 = vadd.s32 %v12277_v4, %v806_v30 }
 0x203   : > { %18354 = vst [vmem:[#allocation151_spill] sm:$0xff] %v14337_v59  ;;  %v3475_v36 = vadd.f32 %v14175_v56, %v3340_v52  ;;  %v3213_v46 = vmul.f32 %v14151_v42, %v2931_v38  ;;  %v14343_v6 = vpop.f32.mrb[23].mxu0  ;;  %3074 = vperm.xlu0 %11605, %v14325_v14   ;;  %10273 = vmatprep.mubr.msk.f32.mxu0 %vm18149_vm5, %v3602_v61  ;;  %18356 = vst [vmem:[#allocation153_spill] sm:$0xff] %v14354_v39  ;;  %v1701_v61 = vld [vmem:[%s12270_s0 + $0x3a0] sm:$0xff]  ;;  %vm18056_vm10 = vcmp.lt.s32.totalorder %v14354_v39, 2000 }
 0x204   : > { %18355 = vst [vmem:[#allocation152_spill] sm:$0xff] %v14343_v6  ;;  %18357 = vst [vmem:[#allocation154_spill] sm:$0xff] %v14378_v10 }
 0x205   : > { %v3603_v21 = vmax.f32 %v3475_v36, 0.0  ;;  %v3341_v52 = vadd.f32 %v3213_v46, %v2566_v34  ;;  %11603 = vset.pattern.permute.xlu1 %v18332_v25  ;;  %v14357_v38 = vpop.permute.xlu1 %2274  ;;  %v14371_v46 = vsel %vm18052_vm8, %v1701_v61, 0.0  ;;  %v14385_v61 = vadd.s32 %v12277_v4, %v815_v37 }
 0x206   : > { %2374 = vperm.xlu1 %11603, %v1819_v19   ;;  %v2935_v33 = vpop.permute.xlu0 %2934  ;;  %vm18172_vm8 = vcmp.lt.s32.totalorder %v14378_v10, 2000 }
 0x207   : > { %v3476_v36 = vadd.f32 %v14175_v56, %v3341_v52  ;;  %v3214_v34 = vmul.f32 %v14151_v42, %v2935_v33  ;;  %3078 = vperm.xlu0 %11605, %v14351_v51   ;;  %10274 = vmatmul.mubr.msk.f32.gmra.mrb[76].mxu0 %vm18149_vm5, %v3603_v21  ;;  %v807_v52 = vadd.s32 952, %v12281_v5  ;;  %18359 = vst [vmem:[#allocation156_spill] sm:$0xff] %v14385_v61  ;;  %v14397_v5 = vsel %vm18056_vm10, %v1702_v49, 0.0 }
 0x208   : > { %vm18114_vm7 = vcmp.lt.s32.totalorder %v14385_v61, 2000 }
 0x209   : > { %v3604_v22 = vmax.f32 %v3476_v36, 0.0  ;;  %v3342_v59 = vadd.f32 %v3214_v34, %v2567_v35  ;;  %v14374_v6 = vpop.permute.xlu1 %2279  ;;  %v2568_v35 = vmul.f32 %v14143_v43, %v14217_v41  ;;  %v1703_v41 = vld [vmem:[%s12270_s0 + $0x3b0] sm:$0xff] }
 0x20a   : > { %11604 = vset.pattern.permute.xlu1 %v18330_v29  ;;  %v14382_v21 = vpop.f32.mrb[24].mxu0  ;;  %v2939_v33 = vpop.permute.xlu0 %2938 }
 0x20b   : > { %18358 = vst [vmem:[#allocation155_spill] sm:$0xff] %v14382_v21  ;;  %v3477_v36 = vadd.f32 %v14175_v56, %v3342_v59  ;;  %v3215_v30 = vmul.f32 %v14151_v42, %v2939_v33  ;;  %3042 = vperm.xlu1 %11604, %v1819_v19   ;;  %v14391_v34 = vpop.f32.mrb[25].mxu0  ;;  %3082 = vperm.xlu0 %11605, %v14371_v46   ;;  %v1712_v33 = vld [vmem:[%s12270_s0 + $0x3f8] sm:$0xff] }
 0x20c   : > { %10276 = vmatprep.mubr.msk.f32.mxu0 %vm18149_vm5, %v3604_v22  ;;  %v14404_v59 = vadd.s32 %v12277_v4, %v807_v52  ;;  %v2569_v22 = vmul.f32 %v14143_v43, %v14236_v62  ;;  %v14417_v52 = vsel %vm18172_vm8, %v1703_v41, 0.0  ;;  %v1840_v62 = vsel %vm18114_vm7, %v1712_v33, 0.0  ;;  %vm11158_vm7 = vmpackc.low %vm1026_vm0, %vm1025_vm15 }
 0x20d   : > { %v3605_v37 = vmax.f32 %v3477_v36, 0.0  ;;  %v3343_v57 = vadd.f32 %v3215_v30, %v2568_v35  ;;  %v14399_v21 = vpop.permute.xlu1 %2284 }
 0x20e   : > { %18360 = vst [vmem:[#allocation157_spill] sm:$0xff] %v14404_v59  ;;  %v2943_v19 = vpop.permute.xlu0 %2942  ;;  %vm18170_vm10 = vcmp.lt.s32.totalorder %v14404_v59, 2000 }
 0x20f   : > { %v3478_v49 = vadd.f32 %v14175_v56, %v3343_v57  ;;  %v3216_v35 = vmul.f32 %v14151_v42, %v2943_v19  ;;  %3122 = vperm.xlu1 %11604, %v12441_v7   ;;  %3086 = vperm.xlu0 %11605, %v14397_v5   ;;  %v1704_v57 = vld [vmem:[%s12270_s0 + $0x3b8] sm:$0xff] }
 0x210   : > { %10277 = vmatmul.mubr.msk.f32.gmra.mrb[78].mxu0 %vm18149_vm5, %v3605_v37  ;;  %v2570_v37 = vmul.f32 %v14143_v43, %v14260_v40  ;;  %v14438_v33 = vsel %vm18170_vm10, %v1704_v57, 0.0 }
 0x211   : > { %v3606_v36 = vmax.f32 %v3478_v49, 0.0  ;;  %v3344_v30 = vadd.f32 %v3216_v35, %v2569_v22  ;;  %v14419_v4 = vpop.permute.xlu1 %2289 }
 0x212   : > { %v14425_v19 = vpop.f32.mrb[26].mxu0  ;;  %v2947_v7 = vpop.permute.xlu0 %2946 }
 0x213   : > { %v3479_v10 = vadd.f32 %v14175_v56, %v3344_v30  ;;  %v3217_v41 = vmul.f32 %v14151_v42, %v2947_v7  ;;  %11606 = vset.pattern.permute.xlu1 %v18332_v25  ;;  %v14432_v22 = vpop.f32.mrb[27].mxu0  ;;  %3090 = vperm.xlu0 %11605, %v14417_v52   ;;  %v2571_v7 = vmul.f32 %v14143_v43, %v14285_v31 }
 0x214   : > { %10279 = vmatprep.mubr.msk.f32.mxu0 %vm18149_vm5, %v3606_v36  ;;  %2479 = vperm.xlu1 %11606, %v1840_v62   ;;  %v2572_v31 = vmul.f32 %v14143_v43, %v14309_v47 }
 0x215   : > { %v3607_v49 = vmax.f32 %v3479_v10, 0.0  ;;  %v3345_v35 = vadd.f32 %v3217_v41, %v2570_v37  ;;  %v14440_v40 = vpop.permute.xlu1 %2294 }
 0x216   : > { %v2951_v30 = vpop.permute.xlu0 %2950 }
 0x217   : > { %v3480_v61 = vadd.f32 %v14175_v56, %v3345_v35  ;;  %v3218_v39 = vmul.f32 %v14151_v42, %v2951_v30  ;;  %3094 = vperm.xlu0 %11605, %v14438_v33   ;;  %10280 = vmatmul.mubr.msk.f32.gmra.mrb[80].mxu0 %vm18149_vm5, %v3607_v49 }
 0x218   : > { %11607 = vset.pattern.permute.xlu1 %v18330_v29  ;;  %v4771_v29 = vld [vmem:[%s17671_s8] sm:$0xff] }
 0x219   : > { %v3608_v36 = vmax.f32 %v3480_v61, 0.0  ;;  %v3346_v57 = vadd.f32 %v3218_v39, %v2571_v7  ;;  %3126 = vperm.xlu1 %11607, %v1840_v62   ;;  %v14449_v10 = vpop.permute.xlu1 %2299  ;;  %v4772_v39 = vld [vmem:[%s17671_s8 + $0x8] sm:$0xff] }
 0x21a   : > { %v14451_v37 = vpop.f32.mrb[28].mxu0  ;;  %v2955_v41 = vpop.permute.xlu0 %2954  ;;  %v14467_v61 = vpack.c.bf16 %v4772_v39, %v4771_v29  ;;  %v2574_v29 = vmul.f32 %v14143_v43, %v14357_v38 }
 0x21b   : > { %v3481_v35 = vadd.f32 %v14175_v56, %v3346_v57  ;;  %v3219_v30 = vmul.f32 %v14151_v42, %v2955_v41  ;;  %v14457_v59 = vpop.f32.mrb[29].mxu0  ;;  %10282 = vmatprep.mubr.msk.f32.mxu0 %vm18149_vm5, %v3608_v36  ;;  %11609 = vset.pattern.permute.xlu0 %v18332_v25  ;;  %v2573_v36 = vmul.f32 %v14143_v43, %v14330_v11 }
 0x21c   : > { %10830 = vmatprep.subr.bf16.mxu1 %v14467_v61 }
 0x21d   : > { %v3609_v47 = vmax.f32 %v3481_v35, 0.0  ;;  %v3347_v62 = vadd.f32 %v3219_v30, %v2572_v31  ;;  %11608 = vset.pattern.permute.xlu1 %v18332_v25  ;;  %v14470_v49 = vpop.permute.xlu1 %2304 }
 0x21e   : > { %2384 = vperm.xlu1 %11608, %v14184_v16   ;;  %v2959_v7 = vpop.permute.xlu0 %2958 }
 0x21f   : > { %v3482_v57 = vadd.f32 %v14175_v56, %v3347_v62  ;;  %v3220_v41 = vmul.f32 %v14151_v42, %v2959_v7  ;;  %10283 = vmatmul.mubr.msk.f32.gmra.mrb[82].mxu0 %vm18149_vm5, %v3609_v47 }
 0x221   : > { %v3610_v35 = vmax.f32 %v3482_v57, 0.0  ;;  %v3348_v31 = vadd.f32 %v3220_v41, %v2573_v36  ;;  %v14479_v30 = vpop.permute.xlu1 %2309  ;;  %v2575_v57 = vmul.f32 %v14143_v43, %v14374_v6 }
 0x222   : > { %2389 = vperm.xlu1 %11608, %v14210_v13   ;;  %v14482_v25 = vpop.f32.mrb[30].mxu0  ;;  %v2963_v16 = vpop.permute.xlu0 %2962 }
 0x223   : > { %18361 = vst [vmem:[#allocation158_spill] sm:$0xff] %v14482_v25  ;;  %v3483_v11 = vadd.f32 %v14175_v56, %v3348_v31  ;;  %v3221_v39 = vmul.f32 %v14151_v42, %v2963_v16  ;;  %v14488_v62 = vpop.f32.mrb[31].mxu0  ;;  %10285 = vmatprep.mubr.msk.f32.mxu0 %vm18149_vm5, %v3610_v35 }
 0x225   : > { %v3611_v47 = vmax.f32 %v3483_v11, 0.0  ;;  %v3349_v7 = vadd.f32 %v3221_v39, %v2574_v29  ;;  %v14491_v36 = vpop.permute.xlu1 %2314 }
 0x226   : > { %2394 = vperm.xlu1 %11608, %v14230_v26   ;;  %v2967_v13 = vpop.permute.xlu0 %2966  ;;  %v2576_v26 = vmul.f32 %v14143_v43, %v14399_v21 }
 0x227   : > { %v3484_v38 = vadd.f32 %v14175_v56, %v3349_v7  ;;  %v3222_v41 = vmul.f32 %v14151_v42, %v2967_v13  ;;  %10286 = vmatmul.mubr.msk.f32.gmra.mrb[84].mxu0 %vm18149_vm5, %v3611_v47 }
 0x229   : > { %v3612_v31 = vmax.f32 %v3484_v38, 0.0  ;;  %v3350_v16 = vadd.f32 %v3222_v41, %v2575_v57  ;;  %v14499_v25 = vpop.permute.xlu1 %2319  ;;  %v2577_v57 = vmul.f32 %v14143_v43, %v14419_v4 }
 0x22a   : > { %2399 = vperm.xlu1 %11608, %v14256_v24   ;;  %v14502_v35 = vpop.f32.mrb[32].mxu0  ;;  %v2971_v29 = vpop.permute.xlu0 %2970 }
 0x22b   : > { %v3485_v6 = vadd.f32 %v14175_v56, %v3350_v16  ;;  %v3223_v11 = vmul.f32 %v14151_v42, %v2971_v29  ;;  %v14508_v39 = vpop.f32.mrb[33].mxu0  ;;  %10288 = vmatprep.mubr.msk.f32.mxu0 %vm18149_vm5, %v3612_v31 }
 0x22d   : > { %v3613_v47 = vmax.f32 %v3485_v6, 0.0  ;;  %v3351_v7 = vadd.f32 %v3223_v11, %v2576_v26  ;;  %v14511_v13 = vpop.permute.xlu1 %2324 }
 0x22e   : > { %2404 = vperm.xlu1 %11608, %v14277_v60   ;;  %v2975_v24 = vpop.permute.xlu0 %2974  ;;  %v2578_v60 = vmul.f32 %v14143_v43, %v14440_v40 }
 0x22f   : > { %v3486_v21 = vadd.f32 %v14175_v56, %v3351_v7  ;;  %v3224_v38 = vmul.f32 %v14151_v42, %v2975_v24  ;;  %10289 = vmatmul.mubr.msk.f32.gmra.mrb[86].mxu0 %vm18149_vm5, %v3613_v47 }
 0x231   : > { %v3614_v41 = vmax.f32 %v3486_v21, 0.0  ;;  %v3352_v16 = vadd.f32 %v3224_v38, %v2577_v57  ;;  %v14519_v29 = vpop.permute.xlu1 %2329  ;;  %v2579_v57 = vmul.f32 %v14143_v43, %v14449_v10 }
 0x232   : > { %2409 = vperm.xlu1 %11608, %v14303_v0   ;;  %v14522_v31 = vpop.f32.mrb[34].mxu0  ;;  %v2979_v26 = vpop.permute.xlu0 %2978 }
 0x233   : > { %v3487_v4 = vadd.f32 %v14175_v56, %v3352_v16  ;;  %v3225_v6 = vmul.f32 %v14151_v42, %v2979_v26  ;;  %v14528_v11 = vpop.f32.mrb[35].mxu0  ;;  %10291 = vmatprep.mubr.msk.f32.mxu0 %vm18149_vm5, %v3614_v41 }
 0x235   : > { %v3615_v47 = vmax.f32 %v3487_v4, 0.0  ;;  %v3353_v7 = vadd.f32 %v3225_v6, %v2578_v60  ;;  %v14531_v24 = vpop.permute.xlu1 %2334 }
 0x236   : > { %2414 = vperm.xlu1 %11608, %v14325_v14   ;;  %v2983_v0 = vpop.permute.xlu0 %2982  ;;  %v2580_v14 = vmul.f32 %v14143_v43, %v14470_v49 }
 0x237   : > { %v3488_v40 = vadd.f32 %v14175_v56, %v3353_v7  ;;  %v3226_v21 = vmul.f32 %v14151_v42, %v2983_v0  ;;  %10292 = vmatmul.mubr.msk.f32.gmra.mrb[88].mxu0 %vm18149_vm5, %v3615_v47 }
 0x239   : > { %v3616_v38 = vmax.f32 %v3488_v40, 0.0  ;;  %v3354_v16 = vadd.f32 %v3226_v21, %v2579_v57  ;;  %v14539_v26 = vpop.permute.xlu1 %2339  ;;  %v2581_v57 = vmul.f32 %v14143_v43, %v14479_v30  ;;  %v2582_v30 = vmul.f32 %v14143_v43, %v14491_v36 }
 0x23a   : > { %2419 = vperm.xlu1 %11608, %v14351_v51   ;;  %v14542_v41 = vpop.f32.mrb[36].mxu0  ;;  %v2987_v60 = vpop.permute.xlu0 %2986 }
 0x23b   : > { %v3489_v10 = vadd.f32 %v14175_v56, %v3354_v16  ;;  %v3227_v4 = vmul.f32 %v14151_v42, %v2987_v60  ;;  %v14548_v6 = vpop.f32.mrb[37].mxu0  ;;  %10294 = vmatprep.mubr.msk.f32.mxu0 %vm18149_vm5, %v3616_v38 }
 0x23d   : > { %v3617_v47 = vmax.f32 %v3489_v10, 0.0  ;;  %v3355_v7 = vadd.f32 %v3227_v4, %v2580_v14  ;;  %v14551_v0 = vpop.permute.xlu1 %2344 }
 0x23e   : > { %2424 = vperm.xlu1 %11608, %v14371_v46   ;;  %v2991_v51 = vpop.permute.xlu0 %2990 }
 0x23f   : > { %v3490_v49 = vadd.f32 %v14175_v56, %v3355_v7  ;;  %v3228_v40 = vmul.f32 %v14151_v42, %v2991_v51  ;;  %10295 = vmatmul.mubr.msk.f32.gmra.mrb[90].mxu0 %vm18149_vm5, %v3617_v47  ;;  %v2608_v51 = vmul.f32 %v14143_v43, %v12719_v63 }
 0x241   : > { %v3618_v21 = vmax.f32 %v3490_v49, 0.0  ;;  %v3356_v16 = vadd.f32 %v3228_v40, %v2581_v57  ;;  %v2583_v40 = vmul.f32 %v14143_v43, %v14499_v25 }
 0x242   : > { %2429 = vperm.xlu1 %11608, %v14397_v5   ;;  %v3019_v38 = vpop.permute.xlu1 %3018  ;;  %v14560_v60 = vpop.f32.mrb[38].mxu0 }
 0x243   : > { %v3491_v14 = vadd.f32 %v14175_v56, %v3356_v16  ;;  %v2995_v46 = vpop.permute.xlu0 %2994  ;;  %v14563_v10 = vpop.f32.mrb[39].mxu0  ;;  %10297 = vmatprep.mubr.msk.f32.mxu0 %vm18149_vm5, %v3618_v21 }
 0x244   : > { %v3229_v4 = vmul.f32 %v14151_v42, %v2995_v46 }
 0x245   : > { %v3619_v47 = vmax.f32 %v3491_v14, 0.0 }
 0x246   : > { %v3357_v7 = vadd.f32 %v3229_v4, %v2582_v30  ;;  %2434 = vperm.xlu1 %11608, %v14417_v52   ;;  %v3099_v5 = vpop.permute.xlu1 %3098 }
 0x247   : > { %v3255_v57 = vmul.f32 %v14151_v42, %v3099_v5  ;;  %v2999_v49 = vpop.permute.xlu0 %2998  ;;  %10298 = vmatmul.mubr.msk.f32.gmra.mrb[92].mxu0 %vm18149_vm5, %v3619_v47  ;;  %v2584_v47 = vmul.f32 %v14143_v43, %v14511_v13 }
 0x248   : > { %v3492_v36 = vadd.f32 %v14175_v56, %v3357_v7  ;;  %v3230_v21 = vmul.f32 %v14151_v42, %v2999_v49 }
 0x249   : > { %v3383_v16 = vadd.f32 %v3255_v57, %v2608_v51 }
 0x24a   : > { %v3620_v14 = vmax.f32 %v3492_v36, 0.0  ;;  %v3358_v46 = vadd.f32 %v3230_v21, %v2583_v40  ;;  %2439 = vperm.xlu1 %11608, %v14438_v33   ;;  %v14579_v52 = vpop.f32.mrb[40].mxu0  ;;  %v2585_v40 = vmul.f32 %v14143_v43, %v14519_v29 }
 0x24b   : > { %v3003_v63 = vpop.permute.xlu0 %3002  ;;  %v2450_v30 = vpop.permute.xlu1 %2449  ;;  %v3518_v4 = vadd.f32 %v14175_v56, %v3383_v16 }
 0x24c   : > { %v3493_v25 = vadd.f32 %v14175_v56, %v3358_v46  ;;  %v3231_v7 = vmul.f32 %v14151_v42, %v3003_v63  ;;  %v14586_v5 = vpop.f32.mrb[41].mxu0  ;;  %10300 = vmatprep.mubr.msk.f32.mxu0 %vm18149_vm5, %v3620_v14  ;;  %v2609_v16 = vmul.f32 %v14143_v43, %v2450_v30  ;;  %v4773_v30 = vld [vmem:[%s17671_s8 + $0x10] sm:$0xff] }
 0x24d   : > { %v3646_v51 = vmax.f32 %v3518_v4, 0.0 }
 0x24e   : > { %v3621_v57 = vmax.f32 %v3493_v25, 0.0  ;;  %v3359_v33 = vadd.f32 %v3231_v7, %v2584_v47  ;;  %v3235_v47 = vmul.f32 %v14151_v42, %v3019_v38  ;;  %v4774_v38 = vld [vmem:[%s17671_s8 + $0x18] sm:$0xff] }
 0x24f   : > { %v3007_v49 = vpop.permute.xlu0 %3006  ;;  %10339 = vmatprep.mubr.msk.f32.mxu1 %vm18149_vm5, %v3646_v51  ;;  %v2586_v51 = vmul.f32 %v14143_v43, %v14531_v24 }
 0x250   : > { %v3494_v36 = vadd.f32 %v14175_v56, %v3359_v33  ;;  %v3232_v13 = vmul.f32 %v14151_v42, %v3007_v49  ;;  %10301 = vmatmul.mubr.msk.f32.gmra.mrb[94].mxu0 %vm18149_vm5, %v3621_v57  ;;  %v3103_v21 = vpop.permute.xlu1 %3102  ;;  %v2588_v49 = vmul.f32 %v14143_v43, %v14551_v0 }
 0x251   : > { %v3256_v14 = vmul.f32 %v14151_v42, %v3103_v21 }
 0x252   : > { %v3622_v46 = vmax.f32 %v3494_v36, 0.0  ;;  %v3360_v63 = vadd.f32 %v3232_v13, %v2585_v40  ;;  %v14597_v4 = vpop.f32.mrb[42].mxu0  ;;  %v3363_v21 = vadd.f32 %v3235_v47, %v2588_v49 }
 0x253   : > { %18362 = vst [vmem:[#allocation159_spill] sm:$0xff] %v14597_v4  ;;  %v3384_v25 = vadd.f32 %v3256_v14, %v2609_v16  ;;  %v3011_v7 = vpop.permute.xlu0 %3010  ;;  %v14600_v29 = vpop.f32.mrb[43].mxu0 }
 0x254   : > { %18363 = vst [vmem:[#allocation160_spill] sm:$0xff] %v14600_v29  ;;  %v3495_v57 = vadd.f32 %v14175_v56, %v3360_v63  ;;  %v3233_v33 = vmul.f32 %v14151_v42, %v3011_v7  ;;  %10303 = vmatprep.mubr.msk.f32.mxu0 %vm18149_vm5, %v3622_v46  ;;  %v10833_v46 = vpack.c.bf16 %v4774_v38, %v4773_v30 }
 0x255   : > { %v3519_v40 = vadd.f32 %v14175_v56, %v3384_v25  ;;  %v2355_v24 = vpop.permute.xlu1 %2354  ;;  %v2587_v63 = vmul.f32 %v14143_v43, %v14539_v26  ;;  %v3498_v47 = vadd.f32 %v14175_v56, %v3363_v21  ;;  %v2589_v38 = vmul.f32 %v14143_v43, %v12732_v17 }
 0x256   : > { %v3623_v36 = vmax.f32 %v3495_v57, 0.0  ;;  %v3361_v13 = vadd.f32 %v3233_v33, %v2586_v51  ;;  %v2590_v51 = vmul.f32 %v14143_v43, %v2355_v24 }
 0x257   : > { %v3647_v16 = vmax.f32 %v3519_v40, 0.0  ;;  %v3015_v14 = vpop.permute.xlu0 %3014  ;;  %v3626_v24 = vmax.f32 %v3498_v47, 0.0 }
 0x258   : > { %v3496_v7 = vadd.f32 %v14175_v56, %v3361_v13  ;;  %v3234_v4 = vmul.f32 %v14151_v42, %v3015_v14  ;;  %10304 = vmatmul.mubr.msk.f32.gmra.mrb[96].mxu0 %vm18149_vm5, %v3623_v36  ;;  %v2591_v14 = vmul.f32 %v14143_v43, %v12762_v44 }
 0x259   : > { %10340 = vmatmul.mubr.msk.f32.vlgmr.msra.gmra.mrb[0].mxu1 %vm18149_vm5, %v3647_v16 }
 0x25a   : > { %v3624_v0 = vmax.f32 %v3496_v7, 0.0  ;;  %v3362_v25 = vadd.f32 %v3234_v4, %v2587_v63  ;;  %v3027_v29 = vpop.permute.xlu1 %3026  ;;  %v14622_v57 = vpop.f32.mrb[44].mxu0  ;;  %10832 = vmatpush3.bf16.msra.mxu1 %v14467_v61 }
 0x25b   : > { %v3237_v26 = vmul.f32 %v14151_v42, %v3027_v29  ;;  %v3023_v33 = vpop.permute.xlu0 %3022  ;;  %v14628_v30 = vpop.f32.mrb[45].mxu0  ;;  %10834 = vmatprep.subr.bf16.mxu1 %v10833_v46  ;;  %v2610_v29 = vmul.f32 %v14143_v43, %v12747_v55 }
 0x25c   : > { %v3497_v4 = vadd.f32 %v14175_v56, %v3362_v25  ;;  %v3236_v49 = vmul.f32 %v14151_v42, %v3023_v33  ;;  %10306 = vmatprep.mubr.msk.f32.mxu0 %vm18149_vm5, %v3624_v0 }
 0x25d   : > { %v3365_v61 = vadd.f32 %v3237_v26, %v2590_v51 }
 0x25e   : > { %v3625_v40 = vmax.f32 %v3497_v4, 0.0  ;;  %v3364_v36 = vadd.f32 %v3236_v49, %v2589_v38  ;;  %v3107_v13 = vpop.permute.xlu1 %3106  ;;  %10836 = vmatpush3.bf16.msra.mxu1 %v10833_v46 }
 0x25f   : > { %v3500_v21 = vadd.f32 %v14175_v56, %v3365_v61  ;;  %v3257_v16 = vmul.f32 %v14151_v42, %v3107_v13  ;;  %v3031_v17 = vpop.permute.xlu0 %3030 }
 0x260   : > { %v3499_v63 = vadd.f32 %v14175_v56, %v3364_v36  ;;  %v3238_v7 = vmul.f32 %v14151_v42, %v3031_v17  ;;  %10307 = vmatmul.mubr.msk.f32.gmra.mrb[98].mxu0 %vm18149_vm5, %v3625_v40 }
 0x261   : > { %v3628_v0 = vmax.f32 %v3500_v21, 0.0  ;;  %v3385_v46 = vadd.f32 %v3257_v16, %v2610_v29  ;;  %10309 = vmatprep.mubr.msk.f32.mxu0 %vm18149_vm5, %v3626_v24 }
 0x262   : > { %v3627_v55 = vmax.f32 %v3499_v63, 0.0  ;;  %v3366_v25 = vadd.f32 %v3238_v7, %v2591_v14  ;;  %v14645_v47 = vpop.f32.mrb[46].mxu0  ;;  %v2593_v63 = vmul.f32 %v14143_v43, %v12794_v18 }
 0x263   : > { %v3520_v51 = vadd.f32 %v14175_v56, %v3385_v46  ;;  %v2460_v26 = vpop.permute.xlu1 %2459  ;;  %v14649_v44 = vpop.f32.mrb[47].mxu0 }
 0x264   : > { %v3501_v33 = vadd.f32 %v14175_v56, %v3366_v25  ;;  %10310 = vmatmul.mubr.msk.f32.gmra.mrb[100].mxu0 %vm18149_vm5, %v3627_v55  ;;  %v2611_v61 = vmul.f32 %v14143_v43, %v2460_v26  ;;  %v3039_v13 = vpop.permute.xlu0 %3038 }
 0x265   : > { %v3648_v38 = vmax.f32 %v3520_v51, 0.0  ;;  %10312 = vmatprep.mubr.msk.f32.mxu0 %vm18149_vm5, %v3628_v0  ;;  %v3240_v17 = vmul.f32 %v14151_v42, %v3039_v13 }
 0x266   : > { %v3629_v4 = vmax.f32 %v3501_v33, 0.0 }
 0x267   : > { %10342 = vmatprep.mubr.msk.f32.mxu1 %vm18149_vm5, %v3648_v38  ;;  %v3368_v7 = vadd.f32 %v3240_v17, %v2593_v63 }
 0x268   : > { %10313 = vmatmul.mubr.msk.f32.gmra.mrb[102].mxu0 %vm18149_vm5, %v3629_v4  ;;  %v3111_v49 = vpop.permute.xlu1 %3110  ;;  %v2612_v4 = vmul.f32 %v14143_v43, %v12778_v50  ;;  %v3047_v50 = vpop.permute.xlu0 %3046 }
 0x269   : > { %v3258_v40 = vmul.f32 %v14151_v42, %v3111_v49  ;;  %v3503_v33 = vadd.f32 %v14175_v56, %v3368_v7 }
 0x26a   : > { %v14657_v36 = vpop.f32.mrb[48].mxu0 }
 0x26b   : > { %v3386_v29 = vadd.f32 %v3258_v40, %v2611_v61  ;;  %v14659_v24 = vpop.f32.mrb[49].mxu0  ;;  %v3631_v13 = vmax.f32 %v3503_v33, 0.0 }
 0x26c   : > { %v3051_v33 = vpop.permute.xlu0 %3050 }
 0x26d   : > { %v3521_v21 = vadd.f32 %v14175_v56, %v3386_v29  ;;  %v2365_v16 = vpop.permute.xlu1 %2364 }
 0x26e   : > { %v2592_v55 = vmul.f32 %v14143_v43, %v2365_v16 }
 0x26f   : > { %v3649_v14 = vmax.f32 %v3521_v21, 0.0 }
 0x271   : > { %10343 = vmatmul.mubr.msk.f32.gmra.mrb[2].mxu1 %vm18149_vm5, %v3649_v14 }
 0x272   : > { %v3035_v0 = vpop.permute.xlu1 %3034  ;;  %v14666_v46 = vpop.f32.mrb[50].mxu0 }
 0x273   : > { %v3239_v25 = vmul.f32 %v14151_v42, %v3035_v0  ;;  %v14670_v51 = vpop.f32.mrb[51].mxu0 }
 0x275   : > { %v3367_v26 = vadd.f32 %v3239_v25, %v2592_v55 }
 0x276   : > { %v3115_v38 = vpop.permute.xlu1 %3114 }
 0x277   : > { %v3502_v18 = vadd.f32 %v14175_v56, %v3367_v26  ;;  %v3259_v49 = vmul.f32 %v14151_v42, %v3115_v38 }
 0x279   : > { %v3630_v61 = vmax.f32 %v3502_v18, 0.0  ;;  %v3387_v40 = vadd.f32 %v3259_v49, %v2612_v4  ;;  %v3242_v18 = vmul.f32 %v14151_v42, %v3047_v50 }
 0x27a   : > { %v14677_v29 = vpop.f32.mrb[52].mxu0 }
 0x27b   : > { %v3522_v21 = vadd.f32 %v14175_v56, %v3387_v40  ;;  %v2470_v16 = vpop.permute.xlu1 %2469  ;;  %10315 = vmatprep.mubr.msk.f32.mxu0 %vm18149_vm5, %v3630_v61  ;;  %v14681_v17 = vpop.f32.mrb[53].mxu0  ;;  %v2595_v61 = vmul.f32 %v14143_v43, %v12836_v3  ;;  %v14706_v3 = vld [vmem:[%s18269_s22] ss:$0 sm:$0xff] }
 0x27c   : > { %10316 = vmatmul.mubr.msk.f32.gmra.mrb[104].mxu0 %vm18149_vm5, %v3631_v13  ;;  %v2613_v7 = vmul.f32 %v14143_v43, %v2470_v16  ;;  %v3055_v16 = vpop.permute.xlu0 %3054 }
 0x27d   : > { %v3650_v14 = vmax.f32 %v3522_v21, 0.0  ;;  %v3370_v40 = vadd.f32 %v3242_v18, %v2595_v61 }
 0x27f   : > { %10345 = vmatprep.mubr.msk.f32.mxu1 %vm18149_vm5, %v3650_v14  ;;  %v3505_v50 = vadd.f32 %v14175_v56, %v3370_v40 }
 0x280   : > { %v3119_v63 = vpop.permute.xlu1 %3118 }
 0x281   : > { %v3260_v0 = vmul.f32 %v14151_v42, %v3119_v63  ;;  %v3633_v40 = vmax.f32 %v3505_v50, 0.0 }
 0x282   : > { %v14687_v55 = vpop.f32.mrb[54].mxu0 }
 0x283   : > { %v3388_v25 = vadd.f32 %v3260_v0, %v2613_v7  ;;  %v14689_v26 = vpop.f32.mrb[55].mxu0 }
 0x285   : > { %v3523_v38 = vadd.f32 %v14175_v56, %v3388_v25  ;;  %v2375_v4 = vpop.permute.xlu1 %2374 }
 0x286   : > { %v2594_v14 = vmul.f32 %v14143_v43, %v2375_v4  ;;  %v14714_v43 = vld [vmem:[%s18267_s29] ss:$0 sm:$0xff]  ;;  %v3059_v4 = vpop.permute.xlu0 %3058 }
 0x287   : > { %v3651_v49 = vmax.f32 %v3523_v38, 0.0  ;;  %v2614_v38 = vmul.f32 %v14706_v3, %v12810_v12 }
 0x289   : > { %10346 = vmatmul.mubr.msk.f32.gmra.mrb[4].mxu1 %vm18149_vm5, %v3651_v49 }
 0x28a   : > { %v3043_v13 = vpop.permute.xlu1 %3042  ;;  %v14696_v21 = vpop.f32.mrb[56].mxu0 }
 0x28b   : > { %18364 = vst [vmem:[#allocation161_spill] sm:$0xff] %v14696_v21  ;;  %v3241_v63 = vmul.f32 %v14151_v42, %v3043_v13  ;;  %v14700_v7 = vpop.f32.mrb[57].mxu0  ;;  %v3063_v21 = vpop.permute.xlu0 %3062 }
 0x28c   : > { %18365 = vst [vmem:[#allocation162_spill] sm:$0xff] %v14700_v7 }
 0x28d   : > { %v3369_v0 = vadd.f32 %v3241_v63, %v2594_v14 }
 0x28e   : > { %v3123_v25 = vpop.permute.xlu1 %3122 }
 0x28f   : > { %v3504_v18 = vadd.f32 %v14175_v56, %v3369_v0  ;;  %v3261_v42 = vmul.f32 %v14714_v43, %v3123_v25 }
 0x291   : > { %v3632_v49 = vmax.f32 %v3504_v18, 0.0  ;;  %v3389_v61 = vadd.f32 %v3261_v42, %v2614_v38 }
 0x292   : > { %v14717_v13 = vpop.f32.mrb[58].mxu0 }
 0x293   : > { %18366 = vst [vmem:[#allocation163_spill] sm:$0xff] %v14717_v13  ;;  %v3524_v14 = vadd.f32 %v14175_v56, %v3389_v61  ;;  %v2480_v63 = vpop.permute.xlu1 %2479  ;;  %10318 = vmatprep.mubr.msk.f32.mxu0 %vm18149_vm5, %v3632_v49  ;;  %v14721_v12 = vpop.f32.mrb[59].mxu0  ;;  %v14734_v49 = vld [vmem:[%s17669_s6] ss:$0 sm:$0xff]  ;;  %v3244_v13 = vmul.f32 %v14714_v43, %v3055_v16 }
 0x294   : > { %18367 = vst [vmem:[#allocation164_spill] sm:$0xff] %v14721_v12  ;;  %10319 = vmatmul.mubr.msk.f32.gmra.mrb[106].mxu0 %vm18149_vm5, %v3633_v40  ;;  %v2615_v18 = vmul.f32 %v14706_v3, %v2480_v63  ;;  %v3067_v61 = vpop.permute.xlu0 %3066  ;;  %v14739_v40 = vld [vmem:[%s18271_s11] ss:$0 sm:$0xff] }
 0x295   : > { %v3652_v0 = vmax.f32 %v3524_v14, 0.0 }
 0x297   : > { %10348 = vmatprep.mubr.msk.f32.mxu1 %vm18149_vm5, %v3652_v0  ;;  %v3243_v0 = vmul.f32 %v14714_v43, %v3051_v33  ;;  %v14758_v33 = vadd.f32 %v13924_v28, %v14734_v49 }
 0x298   : > { %v3127_v25 = vpop.permute.xlu1 %3126 }
 0x299   : > { %v3262_v50 = vmul.f32 %v14714_v43, %v3127_v25  ;;  %18371 = vst [vmem:[#allocation168_spill] sm:$0xff] %v14758_v33 }
 0x29b   : > { %v3390_v38 = vadd.f32 %v3262_v50, %v2615_v18  ;;  %v14727_v42 = vpop.f32.mrb[60].mxu0  ;;  %v14746_v50 = vadd.f32 %v14734_v49, %v13932_v58  ;;  %v3071_v58 = vpop.permute.xlu0 %3070 }
 0x29c   : > { %18368 = vst [vmem:[#allocation165_spill] sm:$0xff] %v14727_v42  ;;  %v14729_v56 = vpop.f32.mrb[61].mxu0 }
 0x29d   : > { %18369 = vst [vmem:[#allocation166_spill] sm:$0xff] %v14729_v56  ;;  %v3525_v14 = vadd.f32 %v14739_v40, %v3390_v38  ;;  %v2385_v63 = vpop.permute.xlu1 %2384  ;;  %18370 = vst [vmem:[#allocation167_spill] sm:$0xff] %v14746_v50 }
 0x29e   : > { %v2596_v25 = vmul.f32 %v14706_v3, %v2385_v63  ;;  %v14764_v63 = vadd.f32 %v14734_v49, %v13968_v9  ;;  %v14776_v9 = vadd.f32 %v13962_v8, %v14734_v49  ;;  %v14794_v8 = vadd.f32 %v13999_v45, %v14734_v49 }
 0x29f   : > { %v3653_v18 = vmax.f32 %v3525_v14, 0.0  ;;  %v14812_v45 = vadd.f32 %v14023_v23, %v14734_v49  ;;  %v14828_v23 = vadd.f32 %v14052_v53, %v14734_v49 }
 0x2a0   : > { %v3371_v42 = vadd.f32 %v3243_v0, %v2596_v25  ;;  %18372 = vst [vmem:[#allocation169_spill] sm:$0xff] %v14764_v63  ;;  %18373 = vst [vmem:[#allocation170_spill] sm:$0xff] %v14776_v9 }
 0x2a1   : > { %v2390_v56 = vpop.permute.xlu1 %2389  ;;  %10349 = vmatmul.mubr.msk.f32.gmra.mrb[6].mxu1 %vm18149_vm5, %v3653_v18  ;;  %18375 = vst [vmem:[#allocation172_spill] sm:$0xff] %v14794_v8  ;;  %18377 = vst [vmem:[#allocation174_spill] sm:$0xff] %v14812_v45 }
 0x2a2   : > { %v3506_v12 = vadd.f32 %v14739_v40, %v3371_v42  ;;  %v2597_v38 = vmul.f32 %v14706_v3, %v2390_v56  ;;  %v14752_v7 = vpop.f32.mrb[62].mxu0  ;;  %10359 = vmatprep.mubr.msk.f32.mxu1 %vm18149_vm5, %v14746_v50  ;;  %v3245_v56 = vmul.f32 %v14714_v43, %v3059_v4  ;;  %v3075_v4 = vpop.permute.xlu0 %3074  ;;  %18379 = vst [vmem:[#allocation176_spill] sm:$0xff] %v14828_v23  ;;  %v18569_v50 = vld [vmem:[#allocation37_spill] sm:$0xff] }
 0x2a3   : > { %v14760_v14 = vpop.f32.mrb[63].mxu0 }
 0x2a4   : > { %v3634_v16 = vmax.f32 %v3506_v12, 0.0  ;;  %v3372_v42 = vadd.f32 %v3244_v13, %v2597_v38  ;;  %v14780_v13 = vadd.f32 %v14734_v49, %v14005_v54 }
 0x2a5   : > { %v2395_v0 = vpop.permute.xlu1 %2394  ;;  %10360 = vmatmul.mubr.msk.f32.vlgmr.msra.gmra.mrb[8].mxu1 %vm18149_vm5, %v14758_v33  ;;  %v15845_v33 = vld [vmem:[%s12265_s28 + $0x2e0] sm:$0xff] }
 0x2a6   : > { %v3507_v25 = vadd.f32 %v14739_v40, %v3372_v42  ;;  %v2598_v28 = vmul.f32 %v14706_v3, %v2395_v0  ;;  %10321 = vmatprep.mubr.msk.f32.mxu0 %vm18149_vm5, %v3634_v16  ;;  %10362 = vmatprep.mubr.msk.f32.mxu1 %vm18149_vm5, %v14764_v63  ;;  %18374 = vst [vmem:[#allocation171_spill] sm:$0xff] %v14780_v13  ;;  %18567 = vst [vmem:[#allocation110_spill] sm:$0xff] %v15845_v33 }
 0x2a7   : > { %v3246_v16 = vmul.f32 %v14714_v43, %v3063_v21  ;;  %v14800_v21 = vadd.f32 %v14734_v49, %v14032_v48  ;;  %v3079_v48 = vpop.permute.xlu0 %3078 }
 0x2a8   : > { %v3635_v12 = vmax.f32 %v3507_v25, 0.0  ;;  %v3373_v18 = vadd.f32 %v3245_v56, %v2598_v28 }
 0x2a9   : > { %v2400_v38 = vpop.permute.xlu1 %2399  ;;  %10363 = vmatmul.mubr.msk.f32.gmra.mrb[10].mxu1 %vm18149_vm5, %v14776_v9  ;;  %18376 = vst [vmem:[#allocation173_spill] sm:$0xff] %v14800_v21  ;;  %v1083_v9 = vld [vmem:[%s12265_s28 + $0x50] sm:$0xff] }
 0x2aa   : > { %v3508_v42 = vadd.f32 %v14739_v40, %v3373_v18  ;;  %v2599_v0 = vmul.f32 %v14706_v3, %v2400_v38  ;;  %v14787_v63 = vpop.f32.mrb[64].mxu0  ;;  %10322 = vmatmul.mubr.msk.f32.gmra.mrb[108].mxu0 %vm18149_vm5, %v3635_v12  ;;  %10365 = vmatprep.mubr.msk.f32.mxu1 %vm18149_vm5, %v14780_v13  ;;  %v3247_v12 = vmul.f32 %v14714_v43, %v3067_v61 }
 0x2ab   : > { %v14796_v54 = vpop.f32.mrb[65].mxu0 }
 0x2ac   : > { %v3636_v56 = vmax.f32 %v3508_v42, 0.0  ;;  %v3374_v25 = vadd.f32 %v3246_v16, %v2599_v0  ;;  %v14816_v16 = vadd.f32 %v14734_v49, %v14059_v2 }
 0x2ad   : > { %v2405_v28 = vpop.permute.xlu1 %2404  ;;  %10366 = vmatmul.mubr.msk.f32.gmra.mrb[12].mxu1 %vm18149_vm5, %v14794_v8  ;;  %v1082_v8 = vld [vmem:[%s12265_s28 + $0x48] sm:$0xff] }
 0x2ae   : > { %v3509_v18 = vadd.f32 %v14739_v40, %v3374_v25  ;;  %v2600_v38 = vmul.f32 %v14706_v3, %v2405_v28  ;;  %10324 = vmatprep.mubr.msk.f32.mxu0 %vm18149_vm5, %v3636_v56  ;;  %10368 = vmatprep.mubr.msk.f32.mxu1 %vm18149_vm5, %v14800_v21  ;;  %18378 = vst [vmem:[#allocation175_spill] sm:$0xff] %v14816_v16 }
 0x2af   : > { %v3248_v56 = vmul.f32 %v14714_v43, %v3071_v58 }
 0x2b0   : > { %v3637_v42 = vmax.f32 %v3509_v18, 0.0  ;;  %v3375_v61 = vadd.f32 %v3247_v12, %v2600_v38  ;;  %v14834_v12 = vadd.f32 %v14734_v49, %v14085_v15  ;;  %v14848_v15 = vadd.f32 %v14079_v20, %v14734_v49 }
 0x2b1   : > { %v2410_v0 = vpop.permute.xlu1 %2409  ;;  %10369 = vmatmul.mubr.msk.f32.gmra.mrb[14].mxu1 %vm18149_vm5, %v14812_v45  ;;  %v14866_v20 = vadd.f32 %v14104_v32, %v14734_v49 }
 0x2b2   : > { %v3510_v25 = vadd.f32 %v14739_v40, %v3375_v61  ;;  %v2601_v28 = vmul.f32 %v14706_v3, %v2410_v0  ;;  %10325 = vmatmul.mubr.msk.f32.gmra.mrb[110].mxu0 %vm18149_vm5, %v3637_v42  ;;  %10371 = vmatprep.mubr.msk.f32.mxu1 %vm18149_vm5, %v14816_v16  ;;  %18380 = vst [vmem:[#allocation177_spill] sm:$0xff] %v14834_v12  ;;  %v3083_v61 = vpop.permute.xlu0 %3082  ;;  %18381 = vst [vmem:[#allocation178_spill] sm:$0xff] %v14848_v15 }
 0x2b3   : > { %v14830_v2 = vpop.f32.mrb[66].mxu0  ;;  %v3249_v42 = vmul.f32 %v14714_v43, %v3075_v4  ;;  %18383 = vst [vmem:[#allocation180_spill] sm:$0xff] %v14866_v20 }
 0x2b4   : > { %v3638_v58 = vmax.f32 %v3510_v25, 0.0  ;;  %v3376_v18 = vadd.f32 %v3248_v56, %v2601_v28  ;;  %v14836_v38 = vpop.f32.mrb[67].mxu0  ;;  %v14852_v56 = vadd.f32 %v14734_v49, %v14113_v1 }
 0x2b5   : > { %v2415_v0 = vpop.permute.xlu1 %2414  ;;  %10372 = vmatmul.mubr.msk.f32.gmra.mrb[16].mxu1 %vm18149_vm5, %v14828_v23 }
 0x2b6   : > { %v3511_v53 = vadd.f32 %v14739_v40, %v3376_v18  ;;  %v2602_v16 = vmul.f32 %v14706_v3, %v2415_v0  ;;  %10327 = vmatprep.mubr.msk.f32.mxu0 %vm18149_vm5, %v3638_v58  ;;  %10374 = vmatprep.mubr.msk.f32.mxu1 %vm18149_vm5, %v14834_v12  ;;  %18382 = vst [vmem:[#allocation179_spill] sm:$0xff] %v14852_v56  ;;  %v3087_v1 = vpop.permute.xlu0 %3086 }
 0x2b7   : > { %v3250_v18 = vmul.f32 %v14714_v43, %v3079_v48  ;;  %v14872_v48 = vadd.f32 %v14734_v49, %v14155_v27  ;;  %v18385_v27 = vld [vmem:[#allocation133_spill] sm:$0xff] }
 0x2b8   : > { %v3639_v25 = vmax.f32 %v3511_v53, 0.0  ;;  %v3377_v28 = vadd.f32 %v3249_v42, %v2602_v16 }
 0x2b9   : > { %v2420_v4 = vpop.permute.xlu1 %2419  ;;  %10375 = vmatmul.mubr.msk.f32.gmra.mrb[18].mxu1 %vm18149_vm5, %v14848_v15  ;;  %18384 = vst [vmem:[#allocation181_spill] sm:$0xff] %v14872_v48 }
 0x2ba   : > { %v3512_v58 = vadd.f32 %v14739_v40, %v3377_v28  ;;  %v2603_v0 = vmul.f32 %v14706_v3, %v2420_v4  ;;  %v14859_v12 = vpop.f32.mrb[68].mxu0  ;;  %10328 = vmatmul.mubr.msk.f32.gmra.mrb[112].mxu0 %vm18149_vm5, %v3639_v25  ;;  %10377 = vmatprep.mubr.msk.f32.mxu1 %vm18149_vm5, %v14852_v56  ;;  %v3251_v25 = vmul.f32 %v14714_v43, %v3083_v61  ;;  %v3091_v61 = vpop.permute.xlu0 %3090 }
 0x2bb   : > { %v14868_v16 = vpop.f32.mrb[69].mxu0  ;;  %v14884_v56 = vadd.f32 %v18385_v27, %v14734_v49  ;;  %v18389_v27 = vld [vmem:[#allocation143_spill] sm:$0xff] }
 0x2bc   : > { %v3640_v42 = vmax.f32 %v3512_v58, 0.0  ;;  %v3378_v53 = vadd.f32 %v3250_v18, %v2603_v0  ;;  %v18387_v18 = vld [vmem:[#allocation138_spill] sm:$0xff] }
 0x2bd   : > { %v2425_v28 = vpop.permute.xlu1 %2424  ;;  %10378 = vmatmul.mubr.msk.f32.gmra.mrb[20].mxu1 %vm18149_vm5, %v14866_v20  ;;  %18386 = vst [vmem:[#allocation133_spill] sm:$0xff] %v14884_v56  ;;  %v14888_v58 = vadd.f32 %v14734_v49, %v18387_v18 }
 0x2be   : > { %v3513_v4 = vadd.f32 %v14739_v40, %v3378_v53  ;;  %v2604_v32 = vmul.f32 %v14706_v3, %v2425_v28  ;;  %10330 = vmatprep.mubr.msk.f32.mxu0 %vm18149_vm5, %v3640_v42  ;;  %10380 = vmatprep.mubr.msk.f32.mxu1 %vm18149_vm5, %v14872_v48  ;;  %v3252_v42 = vmul.f32 %v14714_v43, %v3087_v1 }
 0x2bf   : > { %v14908_v1 = vadd.f32 %v14734_v49, %v18389_v27 }
 0x2c0   : > { %v3641_v0 = vmax.f32 %v3513_v4, 0.0  ;;  %v3379_v20 = vadd.f32 %v3251_v25, %v2604_v32  ;;  %v18388_v25 = vld [vmem:[#allocation137_spill] sm:$0xff] }
 0x2c1   : > { %v2430_v15 = vpop.permute.xlu1 %2429  ;;  %10381 = vmatmul.mubr.msk.f32.gmra.mrb[22].mxu1 %vm18149_vm5, %v14884_v56  ;;  %v14902_v4 = vadd.f32 %v18388_v25, %v14734_v49  ;;  %18390 = vst [vmem:[#allocation138_spill] sm:$0xff] %v14908_v1  ;;  %v18391_v25 = vld [vmem:[#allocation142_spill] sm:$0xff] }
 0x2c2   : > { %v3514_v53 = vadd.f32 %v14739_v40, %v3379_v20  ;;  %v2605_v28 = vmul.f32 %v14706_v3, %v2430_v15  ;;  %v14895_v48 = vpop.f32.mrb[70].mxu0  ;;  %10331 = vmatmul.mubr.msk.f32.gmra.mrb[114].mxu0 %vm18149_vm5, %v3641_v0  ;;  %10383 = vmatprep.mubr.msk.f32.mxu1 %vm18149_vm5, %v14888_v58  ;;  %v3253_v0 = vmul.f32 %v14714_v43, %v3091_v61 }
 0x2c3   : > { %v14904_v32 = vpop.f32.mrb[71].mxu0  ;;  %v14920_v27 = vadd.f32 %v18391_v25, %v14734_v49  ;;  %v18395_v25 = vld [vmem:[#allocation146_spill] sm:$0xff] }
 0x2c4   : > { %v3642_v20 = vmax.f32 %v3514_v53, 0.0  ;;  %v3380_v18 = vadd.f32 %v3252_v42, %v2605_v28  ;;  %v3095_v42 = vpop.permute.xlu0 %3094  ;;  %v18393_v53 = vld [vmem:[#allocation147_spill] sm:$0xff] }
 0x2c5   : > { %v2435_v15 = vpop.permute.xlu1 %2434  ;;  %10384 = vmatmul.mubr.msk.f32.gmra.mrb[24].mxu1 %vm18149_vm5, %v14902_v4  ;;  %18392 = vst [vmem:[#allocation137_spill] sm:$0xff] %v14920_v27  ;;  %v14924_v28 = vadd.f32 %v14734_v49, %v18393_v53  ;;  %v14936_v53 = vadd.f32 %v18395_v25, %v14734_v49 }
 0x2c6   : > { %v3515_v56 = vadd.f32 %v14739_v40, %v3380_v18  ;;  %v2606_v23 = vmul.f32 %v14706_v3, %v2435_v15  ;;  %10333 = vmatprep.mubr.msk.f32.mxu0 %vm18149_vm5, %v3642_v20  ;;  %10386 = vmatprep.mubr.msk.f32.mxu1 %vm18149_vm5, %v14908_v1  ;;  %v3254_v20 = vmul.f32 %v14714_v43, %v3095_v42  ;;  %v18565_v1 = vld [vmem:[#allocation119_spill] sm:$0xff] }
 0x2c7   : > { %18394 = vst [vmem:[#allocation143_spill] sm:$0xff] %v14924_v28  ;;  %18396 = vst [vmem:[#allocation142_spill] sm:$0xff] %v14936_v53 }
 0x2c8   : > { %v3643_v45 = vmax.f32 %v3515_v56, 0.0  ;;  %v3381_v61 = vadd.f32 %v3253_v0, %v2606_v23  ;;  %v18397_v56 = vld [vmem:[#allocation152_spill] sm:$0xff] }
 0x2c9   : > { %v2440_v21 = vpop.permute.xlu1 %2439  ;;  %10387 = vmatmul.mubr.msk.f32.gmra.mrb[26].mxu1 %vm18149_vm5, %v14920_v27  ;;  %v14942_v0 = vadd.f32 %v14734_v49, %v18397_v56  ;;  %v18563_v27 = vld [vmem:[#allocation118_spill] sm:$0xff] }
 0x2ca   : > { %v3516_v18 = vadd.f32 %v14739_v40, %v3381_v61  ;;  %v2607_v15 = vmul.f32 %v14706_v3, %v2440_v21  ;;  %10334 = vmatmul.mubr.msk.f32.gmra.mrb[116].mxu0 %vm18149_vm5, %v3643_v45  ;;  %10389 = vmatprep.mubr.msk.f32.mxu1 %vm18149_vm5, %v14924_v28  ;;  %v18399_v21 = vld [vmem:[#allocation151_spill] sm:$0xff]  ;;  %v18561_v28 = vld [vmem:[#allocation101_spill] sm:$0xff] }
 0x2cb   : > { %v14938_v23 = vpop.f32.mrb[72].mxu0  ;;  %18398 = vst [vmem:[#allocation147_spill] sm:$0xff] %v14942_v0  ;;  %v14954_v45 = vadd.f32 %v18399_v21, %v14734_v49 }
 0x2cc   : > { %v3644_v43 = vmax.f32 %v3516_v18, 0.0  ;;  %v3382_v42 = vadd.f32 %v3254_v20, %v2607_v15  ;;  %v14944_v61 = vpop.f32.mrb[73].mxu0  ;;  %v14958_v18 = vadd.f32 %v14734_v49, %v14391_v34  ;;  %v14975_v34 = vadd.f32 %v14734_v49, %v14432_v22 }
 0x2cd   : > { %10390 = vmatmul.mubr.msk.f32.gmra.mrb[28].mxu1 %vm18149_vm5, %v14936_v53  ;;  %18400 = vst [vmem:[#allocation146_spill] sm:$0xff] %v14954_v45  ;;  %v14997_v22 = vadd.f32 %v14451_v37, %v14734_v49  ;;  %v15015_v37 = vadd.f32 %v14734_v49, %v14508_v39  ;;  %v15039_v39 = vadd.f32 %v14522_v31, %v14734_v49  ;;  %v18559_v53 = vld [vmem:[#allocation100_spill] sm:$0xff] }
 0x2ce   : > { %v3517_v3 = vadd.f32 %v14739_v40, %v3382_v42  ;;  %10336 = vmatprep.mubr.msk.f32.mxu0 %vm18149_vm5, %v3644_v43  ;;  %10392 = vmatprep.mubr.msk.f32.mxu1 %vm18149_vm5, %v14942_v0  ;;  %18401 = vst [vmem:[#allocation152_spill] sm:$0xff] %v14958_v18  ;;  %v18402_v40 = vld [vmem:[#allocation155_spill] sm:$0xff]  ;;  %v14983_v43 = vadd.f32 %v14425_v19, %v14734_v49  ;;  %v18557_v0 = vld [vmem:[#allocation36_spill] sm:$0xff] }
 0x2cf   : > { %v14969_v25 = vadd.f32 %v18402_v40, %v14734_v49  ;;  %18404 = vst [vmem:[#allocation155_spill] sm:$0xff] %v14975_v34  ;;  %v14987_v42 = vadd.f32 %v14734_v49, %v14457_v59  ;;  %18407 = vst [vmem:[#allocation184_spill] sm:$0xff] %v14997_v22  ;;  %v15003_v19 = vadd.f32 %v14734_v49, %v14488_v62  ;;  %v18409_v59 = vld [vmem:[#allocation158_spill] sm:$0xff] }
 0x2d0   : > { %v3645_v20 = vmax.f32 %v3517_v3, 0.0  ;;  %18405 = vst [vmem:[#allocation182_spill] sm:$0xff] %v14983_v43  ;;  %18411 = vst [vmem:[#allocation186_spill] sm:$0xff] %v15015_v37  ;;  %v15023_v62 = vadd.f32 %v14502_v35, %v14734_v49  ;;  %v15043_v35 = vadd.f32 %v14734_v49, %v14548_v6  ;;  %v15059_v31 = vadd.f32 %v14734_v49, %v14563_v10  ;;  %v4755_v6 = vld [vmem:[%s17670_s7] sm:$0xff] }
 0x2d1   : > { %10393 = vmatmul.mubr.msk.f32.gmra.mrb[30].mxu1 %vm18149_vm5, %v14954_v45  ;;  %18403 = vst [vmem:[#allocation151_spill] sm:$0xff] %v14969_v25  ;;  %18406 = vst [vmem:[#allocation183_spill] sm:$0xff] %v14987_v42  ;;  %v15077_v10 = vadd.f32 %v14734_v49, %v14586_v5  ;;  %v18555_v45 = vld [vmem:[#allocation34_spill] sm:$0xff] }
 0x2d2   : > { %v14962_v15 = vpop.f32.mrb[74].mxu0  ;;  %10337 = vmatmul.mubr.msk.f32.gmra.mrb[118].mxu0 %vm18149_vm5, %v3645_v20  ;;  %10395 = vmatprep.mubr.msk.f32.mxu1 %vm18149_vm5, %v14958_v18  ;;  %18408 = vst [vmem:[#allocation185_spill] sm:$0xff] %v15003_v19  ;;  %v15011_v20 = vadd.f32 %v18409_v59, %v14734_v49  ;;  %18412 = vst [vmem:[#allocation187_spill] sm:$0xff] %v15023_v62  ;;  %v15029_v59 = vadd.f32 %v14734_v49, %v14528_v11  ;;  %v15815_v18 = vld [vmem:[%s12265_s28 + $0x2d0] sm:$0xff] }
 0x2d3   : > { %v14971_v56 = vpop.f32.mrb[75].mxu0  ;;  %18414 = vst [vmem:[#allocation189_spill] sm:$0xff] %v15039_v39  ;;  %18415 = vst [vmem:[#allocation190_spill] sm:$0xff] %v15043_v35 }
 0x2d4   : > { %18410 = vst [vmem:[#allocation158_spill] sm:$0xff] %v15011_v20  ;;  %18413 = vst [vmem:[#allocation188_spill] sm:$0xff] %v15029_v59 }
 0x2d5   : > { %10396 = vmatmul.mubr.msk.f32.gmra.mrb[32].mxu1 %vm18149_vm5, %v14969_v25  ;;  %18417 = vst [vmem:[#allocation192_spill] sm:$0xff] %v15059_v31  ;;  %18419 = vst [vmem:[#allocation194_spill] sm:$0xff] %v15077_v10  ;;  %v18551_v25 = vld [vmem:[#allocation117_spill] sm:$0xff] }
 0x2d6   : > { %10398 = vmatprep.mubr.msk.f32.mxu1 %vm18149_vm5, %v14975_v34  ;;  %v18549_v34 = vld [vmem:[#allocation116_spill] sm:$0xff]  ;;  %18553 = vst [vmem:[#allocation92_spill] sm:$0xff] %v15815_v18 }
 0x2d9   : > { %10399 = vmatmul.mubr.msk.f32.gmra.mrb[34].mxu1 %vm18149_vm5, %v14983_v43  ;;  %v1081_v43 = vld [vmem:[%s12265_s28 + $0x40] sm:$0xff] }
 0x2da   : > { %v14991_v3 = vpop.f32.mrb[76].mxu0  ;;  %10401 = vmatprep.mubr.msk.f32.mxu1 %vm18149_vm5, %v14987_v42  ;;  %v18547_v42 = vld [vmem:[#allocation99_spill] sm:$0xff] }
 0x2db   : > { %v14999_v21 = vpop.f32.mrb[77].mxu0 }
 0x2dd   : > { %10402 = vmatmul.mubr.msk.f32.gmra.mrb[36].mxu1 %vm18149_vm5, %v14997_v22  ;;  %v18545_v22 = vld [vmem:[#allocation98_spill] sm:$0xff] }
 0x2de   : > { %10404 = vmatprep.mubr.msk.f32.mxu1 %vm18149_vm5, %v15003_v19 }
 0x2e1   : > { %10405 = vmatmul.mubr.msk.f32.gmra.mrb[38].mxu1 %vm18149_vm5, %v15011_v20 }
 0x2e2   : > { %10407 = vmatprep.mubr.msk.f32.mxu1 %vm18149_vm5, %v15015_v37 }
 0x2e3   : > { %v15025_v40 = vpop.f32.mrb[78].mxu0 }
 0x2e4   : > { %v15031_v19 = vpop.f32.mrb[79].mxu0 }
 0x2e5   : > { %10408 = vmatmul.mubr.msk.f32.gmra.mrb[40].mxu1 %vm18149_vm5, %v15023_v62  ;;  %v15053_v62 = vadd.f32 %v14542_v41, %v14734_v49 }
 0x2e6   : > { %10410 = vmatprep.mubr.msk.f32.mxu1 %vm18149_vm5, %v15029_v59 }
 0x2e7   : > { %18416 = vst [vmem:[#allocation191_spill] sm:$0xff] %v15053_v62 }
 0x2e9   : > { %10411 = vmatmul.mubr.msk.f32.gmra.mrb[42].mxu1 %vm18149_vm5, %v15039_v39  ;;  %v15073_v39 = vadd.f32 %v14560_v60, %v14734_v49 }
 0x2ea   : > { %v15047_v11 = vpop.f32.mrb[80].mxu0  ;;  %10413 = vmatprep.mubr.msk.f32.mxu1 %vm18149_vm5, %v15043_v35  ;;  %v4756_v35 = vld [vmem:[%s17670_s7 + $0x8] sm:$0xff] }
 0x2eb   : > { %v15055_v59 = vpop.f32.mrb[81].mxu0  ;;  %v10837_v41 = vpack.c.bf16 %v4756_v35, %v4755_v6  ;;  %18418 = vst [vmem:[#allocation193_spill] sm:$0xff] %v15073_v39  ;;  %v15087_v35 = vadd.f32 %v14579_v52, %v14734_v49  ;;  %v18421_v6 = vld [vmem:[#allocation160_spill] sm:$0xff]  ;;  %v15105_v52 = vadd.f32 %v14734_v49, %v14628_v30  ;;  %v15129_v30 = vadd.f32 %v14645_v47, %v14734_v49 }
 0x2ec   : > { %v15093_v5 = vadd.f32 %v14734_v49, %v18421_v6  ;;  %v15115_v6 = vadd.f32 %v14622_v57, %v14734_v49  ;;  %v15133_v57 = vadd.f32 %v14734_v49, %v14659_v24  ;;  %v15149_v47 = vadd.f32 %v14734_v49, %v14670_v51 }
 0x2ed   : > { %10414 = vmatmul.mubr.msk.f32.gmra.mrb[44].mxu1 %vm18149_vm5, %v15053_v62  ;;  %10838 = vmatprep.subr.bf16.mxu1 %v10837_v41  ;;  %18420 = vst [vmem:[#allocation195_spill] sm:$0xff] %v15087_v35  ;;  %18425 = vst [vmem:[#allocation196_spill] sm:$0xff] %v15105_v52  ;;  %v15157_v24 = vadd.f32 %v14666_v46, %v14734_v49  ;;  %v15171_v51 = vadd.f32 %v14677_v29, %v14734_v49  ;;  %v4758_v29 = vld [vmem:[%s17670_s7 + $0x18] sm:$0xff] }
 0x2ee   : > { %10416 = vmatprep.mubr.msk.f32.mxu1 %vm18149_vm5, %v15059_v31  ;;  %10840 = vmatpush3.bf16.msra.mxu1 %v10837_v41  ;;  %18422 = vst [vmem:[#allocation160_spill] sm:$0xff] %v15093_v5  ;;  %18426 = vst [vmem:[#allocation197_spill] sm:$0xff] %v15115_v6  ;;  %v15177_v46 = vadd.f32 %v14734_v49, %v14689_v26 }
 0x2ef   : > { %18428 = vst [vmem:[#allocation199_spill] sm:$0xff] %v15129_v30  ;;  %18429 = vst [vmem:[#allocation200_spill] sm:$0xff] %v15133_v57 }
 0x2f0   : > { %18431 = vst [vmem:[#allocation202_spill] sm:$0xff] %v15149_v47  ;;  %18432 = vst [vmem:[#allocation203_spill] sm:$0xff] %v15157_v24 }
 0x2f1   : > { %10417 = vmatmul.mubr.msk.f32.gmra.mrb[46].mxu1 %vm18149_vm5, %v15073_v39  ;;  %v18423_v39 = vld [vmem:[#allocation159_spill] sm:$0xff]  ;;  %18434 = vst [vmem:[#allocation205_spill] sm:$0xff] %v15171_v51  ;;  %18435 = vst [vmem:[#allocation206_spill] sm:$0xff] %v15177_v46 }
 0x2f2   : > { %v15081_v62 = vpop.f32.mrb[82].mxu0  ;;  %10419 = vmatprep.mubr.msk.f32.mxu1 %vm18149_vm5, %v15077_v10  ;;  %v15101_v10 = vadd.f32 %v18423_v39, %v14734_v49  ;;  %v15121_v39 = vadd.f32 %v14734_v49, %v14649_v44  ;;  %v15143_v44 = vadd.f32 %v14657_v36, %v14734_v49  ;;  %v15161_v36 = vadd.f32 %v14734_v49, %v14681_v17  ;;  %v4757_v17 = vld [vmem:[%s17670_s7 + $0x10] sm:$0xff] }
 0x2f3   : > { %v15089_v60 = vpop.f32.mrb[83].mxu0  ;;  %v10841_v26 = vpack.c.bf16 %v4758_v29, %v4757_v17  ;;  %v18441_v17 = vld [vmem:[#allocation164_spill] sm:$0xff]  ;;  %v18443_v29 = vld [vmem:[#allocation163_spill] sm:$0xff] }
 0x2f4   : > { %18424 = vst [vmem:[#allocation159_spill] sm:$0xff] %v15101_v10  ;;  %18427 = vst [vmem:[#allocation198_spill] sm:$0xff] %v15121_v39 }
 0x2f5   : > { %10420 = vmatmul.mubr.msk.f32.gmra.mrb[48].mxu1 %vm18149_vm5, %v15087_v35  ;;  %18430 = vst [vmem:[#allocation201_spill] sm:$0xff] %v15143_v44  ;;  %18433 = vst [vmem:[#allocation204_spill] sm:$0xff] %v15161_v36  ;;  %v18437_v35 = vld [vmem:[#allocation162_spill] sm:$0xff]  ;;  %10842 = vmatprep.subr.bf16.mxu1 %v10841_v26 }
 0x2f6   : > { %10422 = vmatprep.mubr.msk.f32.mxu1 %vm18149_vm5, %v15093_v5  ;;  %v15195_v31 = vadd.f32 %v14734_v49, %v18437_v35  ;;  %10844 = vmatpush3.bf16.msra.mxu1 %v10841_v26  ;;  %v15211_v35 = vadd.f32 %v14734_v49, %v18441_v17  ;;  %v18445_v26 = vld [vmem:[#allocation166_spill] sm:$0xff]  ;;  %v18447_v17 = vld [vmem:[#allocation165_spill] sm:$0xff] }
 0x2f8   : > { %18438 = vst [vmem:[#allocation162_spill] sm:$0xff] %v15195_v31  ;;  %18442 = vst [vmem:[#allocation164_spill] sm:$0xff] %v15211_v35 }
 0x2f9   : > { %10423 = vmatmul.mubr.msk.f32.gmra.mrb[50].mxu1 %vm18149_vm5, %v15101_v10  ;;  %v15191_v10 = vadd.f32 %v14687_v55, %v14734_v49 }
 0x2fa   : > { %v15109_v41 = vpop.f32.mrb[84].mxu0  ;;  %10425 = vmatprep.mubr.msk.f32.mxu1 %vm18149_vm5, %v15105_v52 }
 0x2fb   : > { %v15117_v5 = vpop.f32.mrb[85].mxu0  ;;  %18436 = vst [vmem:[#allocation207_spill] sm:$0xff] %v15191_v10 }
 0x2fd   : > { %10426 = vmatmul.mubr.msk.f32.gmra.mrb[52].mxu1 %vm18149_vm5, %v15115_v6 }
 0x2fe   : > { %10428 = vmatprep.mubr.msk.f32.mxu1 %vm18149_vm5, %v15121_v39 }
 0x301   : > { %10429 = vmatmul.mubr.msk.f32.gmra.mrb[54].mxu1 %vm18149_vm5, %v15129_v30 }
 0x302   : > { %v15137_v52 = vpop.f32.mrb[86].mxu0  ;;  %10431 = vmatprep.mubr.msk.f32.mxu1 %vm18149_vm5, %v15133_v57 }
 0x303   : > { %v15145_v39 = vpop.f32.mrb[87].mxu0 }
 0x305   : > { %10432 = vmatmul.mubr.msk.f32.gmra.mrb[56].mxu1 %vm18149_vm5, %v15143_v44 }
 0x306   : > { %10434 = vmatprep.mubr.msk.f32.mxu1 %vm18149_vm5, %v15149_v47 }
 0x309   : > { %10435 = vmatmul.mubr.msk.f32.gmra.mrb[58].mxu1 %vm18149_vm5, %v15157_v24  ;;  %v15238_v24 = vadd.f32 %v14734_v49, %v14760_v14  ;;  %v15255_v14 = vadd.f32 %v14734_v49, %v14796_v54  ;;  %v4760_v54 = vld [vmem:[%s17670_s7 + $0x28] sm:$0xff] }
 0x30a   : > { %v15165_v30 = vpop.f32.mrb[88].mxu0  ;;  %10437 = vmatprep.mubr.msk.f32.mxu1 %vm18149_vm5, %v15161_v36 }
 0x30b   : > { %v15173_v6 = vpop.f32.mrb[89].mxu0  ;;  %18450 = vst [vmem:[#allocation209_spill] sm:$0xff] %v15238_v24  ;;  %18453 = vst [vmem:[#allocation212_spill] sm:$0xff] %v15255_v14 }
 0x30d   : > { %10438 = vmatmul.mubr.msk.f32.gmra.mrb[60].mxu1 %vm18149_vm5, %v15171_v51  ;;  %v18439_v51 = vld [vmem:[#allocation161_spill] sm:$0xff] }
 0x30e   : > { %10440 = vmatprep.mubr.msk.f32.mxu1 %vm18149_vm5, %v15177_v46  ;;  %v15205_v36 = vadd.f32 %v18439_v51, %v14734_v49  ;;  %v15223_v51 = vadd.f32 %v14734_v49, %v18445_v26 }
 0x310   : > { %18440 = vst [vmem:[#allocation161_spill] sm:$0xff] %v15205_v36  ;;  %18446 = vst [vmem:[#allocation166_spill] sm:$0xff] %v15223_v51 }
 0x311   : > { %10441 = vmatmul.mubr.msk.f32.gmra.mrb[62].mxu1 %vm18149_vm5, %v15191_v10 }
 0x312   : > { %v15199_v46 = vpop.f32.mrb[90].mxu0  ;;  %10443 = vmatprep.mubr.msk.f32.mxu1 %vm18149_vm5, %v15195_v31  ;;  %v15219_v31 = vadd.f32 %v18443_v29, %v14734_v49 }
 0x313   : > { %v15207_v55 = vpop.f32.mrb[91].mxu0 }
 0x314   : > { %18444 = vst [vmem:[#allocation163_spill] sm:$0xff] %v15219_v31 }
 0x315   : > { %10444 = vmatmul.mubr.msk.f32.gmra.mrb[64].mxu1 %vm18149_vm5, %v15205_v36  ;;  %v15231_v36 = vadd.f32 %v18447_v17, %v14734_v49  ;;  %v15263_v17 = vadd.f32 %v14787_v63, %v14734_v49 }
 0x316   : > { %10446 = vmatprep.mubr.msk.f32.mxu1 %vm18149_vm5, %v15211_v35 }
 0x317   : > { %18448 = vst [vmem:[#allocation165_spill] sm:$0xff] %v15231_v36  ;;  %18454 = vst [vmem:[#allocation213_spill] sm:$0xff] %v15263_v17 }
 0x319   : > { %10447 = vmatmul.mubr.msk.f32.gmra.mrb[66].mxu1 %vm18149_vm5, %v15219_v31  ;;  %v15287_v31 = vadd.f32 %v14830_v2, %v14734_v49  ;;  %v15307_v2 = vadd.f32 %v14859_v12, %v14734_v49 }
 0x31a   : > { %v10299_v10 = vpop.f32.mrb[92].mxu0  ;;  %10449 = vmatprep.mubr.msk.f32.mxu1 %vm18149_vm5, %v15223_v51  ;;  %v15273_v51 = vadd.f32 %v14734_v49, %v14836_v38  ;;  %v4763_v38 = vld [vmem:[%s17670_s7 + $0x40] sm:$0xff] }
 0x31b   : > { %v15234_v35 = vadd.f32 %v10299_v10, %v14734_v49  ;;  %v4576_v29 = vpop.f32.mrb[93].mxu0  ;;  %v15251_v10 = vadd.f32 %v14752_v7, %v14734_v49  ;;  %v4759_v7 = vld [vmem:[%s17670_s7 + $0x20] sm:$0xff]  ;;  %18458 = vst [vmem:[#allocation217_spill] sm:$0xff] %v15287_v31  ;;  %18460 = vst [vmem:[#allocation219_spill] sm:$0xff] %v15307_v2 }
 0x31c   : > { %v15241_v26 = vadd.f32 %v14734_v49, %v4576_v29  ;;  %18455 = vst [vmem:[#allocation214_spill] sm:$0xff] %v15273_v51 }
 0x31d   : > { %18449 = vst [vmem:[#allocation208_spill] sm:$0xff] %v15234_v35  ;;  %10450 = vmatmul.mubr.msk.f32.gmra.mrb[68].mxu1 %vm18149_vm5, %v15231_v36  ;;  %18452 = vst [vmem:[#allocation211_spill] sm:$0xff] %v15251_v10  ;;  %v10845_v36 = vpack.c.bf16 %v4760_v54, %v4759_v7  ;;  %v15299_v7 = vadd.f32 %v14734_v49, %v14868_v16  ;;  %v4764_v16 = vld [vmem:[%s17670_s7 + $0x48] sm:$0xff] }
 0x31e   : > { %18451 = vst [vmem:[#allocation210_spill] sm:$0xff] %v15241_v26  ;;  %10452 = vmatprep.mubr.msk.f32.mxu1 %vm18149_vm5, %v15238_v24  ;;  %v10853_v37 = vpack.c.bf16 %v4764_v16, %v4763_v38  ;;  %v4766_v38 = vld [vmem:[%s17670_s7 + $0x58] sm:$0xff]  ;;  %v15347_v16 = vadd.f32 %v14734_v49, %v14944_v61  ;;  %v4768_v61 = vld [vmem:[%s17670_s7 + $0x68] sm:$0xff] }
 0x31f   : > { %10846 = vmatprep.subr.bf16.mxu1 %v10845_v36  ;;  %18459 = vst [vmem:[#allocation218_spill] sm:$0xff] %v15299_v7 }
 0x320   : > { %10848 = vmatpush3.bf16.msra.mxu1 %v10845_v36  ;;  %18465 = vst [vmem:[#allocation224_spill] sm:$0xff] %v15347_v16 }
 0x321   : > { %10453 = vmatmul.mubr.msk.f32.gmra.mrb[70].mxu1 %vm18149_vm5, %v15251_v10 }
 0x322   : > { %10455 = vmatprep.mubr.msk.f32.mxu1 %vm18149_vm5, %v15255_v14  ;;  %v18541_v14 = vld [vmem:[#allocation30_spill] sm:$0xff] }
 0x323   : > { %v10302_v29 = vpop.f32.mrb[94].mxu0 }
 0x324   : > { %v15276_v10 = vadd.f32 %v10302_v29, %v14734_v49  ;;  %v4586_v24 = vpop.f32.mrb[95].mxu0  ;;  %v4762_v29 = vld [vmem:[%s17670_s7 + $0x38] sm:$0xff] }
 0x325   : > { %v15279_v63 = vadd.f32 %v14734_v49, %v4586_v24  ;;  %10456 = vmatmul.mubr.msk.f32.gmra.mrb[72].mxu1 %vm18149_vm5, %v15263_v17  ;;  %v4761_v24 = vld [vmem:[%s17670_s7 + $0x30] sm:$0xff]  ;;  %v15785_v17 = vld [vmem:[%s12265_s28 + $0x2c0] sm:$0xff] }
 0x326   : > { %18456 = vst [vmem:[#allocation215_spill] sm:$0xff] %v15276_v10  ;;  %10458 = vmatprep.mubr.msk.f32.mxu1 %vm18149_vm5, %v15273_v51  ;;  %v10849_v54 = vpack.c.bf16 %v4762_v29, %v4761_v24  ;;  %v15317_v24 = vadd.f32 %v14734_v49, %v14904_v32  ;;  %v15335_v32 = vadd.f32 %v14895_v48, %v14734_v49  ;;  %v1079_v51 = vld [vmem:[%s12265_s28 + $0x30] sm:$0xff] }
 0x327   : > { %18457 = vst [vmem:[#allocation216_spill] sm:$0xff] %v15279_v63  ;;  %v15355_v48 = vadd.f32 %v14938_v23, %v14734_v49 }
 0x328   : > { %10850 = vmatprep.subr.bf16.mxu1 %v10849_v54  ;;  %18461 = vst [vmem:[#allocation220_spill] sm:$0xff] %v15317_v24  ;;  %18464 = vst [vmem:[#allocation223_spill] sm:$0xff] %v15335_v32 }
 0x329   : > { %10459 = vmatmul.mubr.msk.f32.gmra.mrb[74].mxu1 %vm18149_vm5, %v15287_v31  ;;  %18466 = vst [vmem:[#allocation225_spill] sm:$0xff] %v15355_v48  ;;  %v18535_v31 = vld [vmem:[#allocation97_spill] sm:$0xff] }
 0x32a   : > { %10461 = vmatprep.mubr.msk.f32.mxu1 %vm18149_vm5, %v15299_v7  ;;  %10852 = vmatpush3.bf16.msra.mxu1 %v10849_v54  ;;  %v1078_v7 = vld [vmem:[%s12265_s28 + $0x28] sm:$0xff] }
 0x32b   : > { %v10305_v36 = vpop.f32.mrb[96].mxu0  ;;  %10854 = vmatprep.subr.bf16.mxu1 %v10853_v37 }
 0x32c   : > { %v15320_v29 = vadd.f32 %v10305_v36, %v14734_v49  ;;  %v4596_v47 = vpop.f32.mrb[97].mxu0  ;;  %v15322_v12 = vpop.f32.mrb[0].mxu1  ;;  %v4767_v36 = vld [vmem:[%s17670_s7 + $0x60] sm:$0xff] }
 0x32d   : > { %v15325_v54 = vadd.f32 %v14734_v49, %v4596_v47  ;;  %v15327_v44 = vpop.f32.mrb[1].mxu1  ;;  %10462 = vmatmul.mubr.msk.f32.gmra.mrb[76].mxu1 %vm18149_vm5, %v15307_v2  ;;  %v4765_v47 = vld [vmem:[%s17670_s7 + $0x50] sm:$0xff]  ;;  %v10861_v23 = vpack.c.bf16 %v4768_v61, %v4767_v36  ;;  %v15391_v61 = vadd.f32 %v14734_v49, %v14999_v21  ;;  %v15443_v2 = vadd.f32 %v14734_v49, %v15055_v59 }
 0x32e   : > { %18462 = vst [vmem:[#allocation221_spill] sm:$0xff] %v15320_v29  ;;  %10464 = vmatprep.mubr.msk.f32.mxu1 %vm18149_vm5, %v15317_v24  ;;  %10856 = vmatpush3.bf16.msra.mxu1 %v10853_v37  ;;  %v10857_v57 = vpack.c.bf16 %v4766_v38, %v4765_v47  ;;  %v15365_v47 = vadd.f32 %v14734_v49, %v14971_v56  ;;  %v4769_v36 = vld [vmem:[%s17670_s7 + $0x70] sm:$0xff] }
 0x32f   : > { %18463 = vst [vmem:[#allocation222_spill] sm:$0xff] %v15325_v54  ;;  %18471 = vst [vmem:[#allocation230_spill] sm:$0xff] %v15391_v61  ;;  %v15467_v59 = vadd.f32 %v15081_v62, %v14734_v49  ;;  %v15491_v62 = vadd.f32 %v15137_v52, %v14734_v49  ;;  %v15509_v52 = vadd.f32 %v15165_v30, %v14734_v49 }
 0x330   : > { %10858 = vmatprep.subr.bf16.mxu1 %v10857_v57  ;;  %18467 = vst [vmem:[#allocation226_spill] sm:$0xff] %v15365_v47  ;;  %18481 = vst [vmem:[#allocation236_spill] sm:$0xff] %v15443_v2 }
 0x331   : > { %10465 = vmatmul.mubr.msk.f32.gmra.mrb[78].mxu1 %vm18149_vm5, %v15335_v32  ;;  %18484 = vst [vmem:[#allocation239_spill] sm:$0xff] %v15467_v59  ;;  %18488 = vst [vmem:[#allocation243_spill] sm:$0xff] %v15491_v62 }
 0x332   : > { %10467 = vmatprep.mubr.msk.f32.mxu1 %vm18149_vm5, %v15347_v16  ;;  %10860 = vmatpush3.bf16.msra.mxu1 %v10857_v57  ;;  %v15379_v57 = vadd.f32 %v14962_v15, %v14734_v49  ;;  %18492 = vst [vmem:[#allocation247_spill] sm:$0xff] %v15509_v52 }
 0x333   : > { %v10308_v37 = vpop.f32.mrb[98].mxu0  ;;  %10862 = vmatprep.subr.bf16.mxu1 %v10861_v23 }
 0x334   : > { %v15368_v38 = vadd.f32 %v10308_v37, %v14734_v49  ;;  %v4606_v16 = vpop.f32.mrb[99].mxu0  ;;  %18470 = vst [vmem:[#allocation229_spill] sm:$0xff] %v15379_v57 }
 0x335   : > { %v15371_v32 = vadd.f32 %v14734_v49, %v4606_v16  ;;  %10468 = vmatmul.mubr.msk.f32.gmra.mrb[80].mxu1 %vm18149_vm5, %v15355_v48  ;;  %v4770_v16 = vld [vmem:[%s17670_s7 + $0x78] sm:$0xff]  ;;  %v15405_v48 = vadd.f32 %v14991_v3, %v14734_v49 }
 0x336   : > { %18468 = vst [vmem:[#allocation227_spill] sm:$0xff] %v15368_v38  ;;  %10470 = vmatprep.mubr.msk.f32.mxu1 %vm18149_vm5, %v15365_v47  ;;  %10864 = vmatpush3.bf16.msra.mxu1 %v10861_v23  ;;  %v10865_v47 = vpack.c.bf16 %v4770_v16, %v4769_v36  ;;  %v15410_v36 = vld [vmem:[%s12265_s28 + $0x280] sm:$0xff] }
 0x337   : > { %18469 = vst [vmem:[#allocation228_spill] sm:$0xff] %v15371_v32  ;;  %v10311_v37 = vpop.f32.mrb[100].mxu0  ;;  %18474 = vst [vmem:[#allocation233_spill] sm:$0xff] %v15405_v48  ;;  %v16173_v16 = vld [vmem:[%s17673_s10] sm:$0x1] }
 0x338   : > { %v15394_v15 = vadd.f32 %v10311_v37, %v14734_v49  ;;  %v4616_v56 = vpop.f32.mrb[101].mxu0  ;;  %10866 = vmatprep.subr.bf16.mxu1 %v10865_v47 }
 0x339   : > { %v15397_v23 = vadd.f32 %v14734_v49, %v4616_v56  ;;  %10471 = vmatmul.mubr.msk.f32.gmra.mrb[82].mxu1 %vm18149_vm5, %v15379_v57  ;;  %v15413_v56 = vld [vmem:[%s12265_s28 + $0x288] sm:$0xff]  ;;  %v1171_v57 = vld [vmem:[%s12265_s28 + $0x310] sm:$0xff] }
 0x33a   : > { %18472 = vst [vmem:[#allocation231_spill] sm:$0xff] %v15394_v15  ;;  %10473 = vmatprep.mubr.msk.f32.mxu1 %vm18149_vm5, %v15391_v61  ;;  %10868 = vmatpush3.bf16.msra.mxu1 %v10865_v47  ;;  %v15421_v61 = vadd.f32 %v14734_v49, %v15031_v19  ;;  %v11157_v47 = vpack.c.bf16 %v15413_v56, %v15410_v36 }
 0x33b   : > { %18473 = vst [vmem:[#allocation232_spill] sm:$0xff] %v15397_v23  ;;  %v10314_v37 = vpop.f32.mrb[102].mxu0  ;;  %v15437_v19 = vadd.f32 %v15025_v40, %v14734_v49  ;;  %v15455_v40 = vadd.f32 %v14734_v49, %v15089_v60  ;;  %v15479_v60 = vadd.f32 %v15109_v41, %v14734_v49 }
 0x33c   : > { %18477 = vst [vmem:[#allocation108_spill] sm:$0xff] %v15421_v61  ;;  %v15424_v3 = vadd.f32 %v10314_v37, %v14734_v49  ;;  %v4626_v24 = vpop.f32.mrb[103].mxu0  ;;  %11159 = vmatprep.subr.msk.bf16.mxu1 %vm11158_vm7, %v11157_v47  ;;  %vm11161_vm7 = vmpackc.low %vm1010_vm13, %vm1009_vm9 }
 0x33d   : > { %v15429_v21 = vadd.f32 %v14734_v49, %v4626_v24  ;;  %10474 = vmatmul.mubr.msk.f32.gmra.mrb[84].mxu1 %vm18149_vm5, %v15405_v48  ;;  %18480 = vst [vmem:[#allocation235_spill] sm:$0xff] %v15437_v19  ;;  %v15451_v24 = vadd.f32 %v15047_v11, %v14734_v49  ;;  %18483 = vst [vmem:[#allocation238_spill] sm:$0xff] %v15455_v40  ;;  %v15471_v11 = vadd.f32 %v14734_v49, %v15117_v5 }
 0x33e   : > { %18478 = vst [vmem:[#allocation109_spill] sm:$0xff] %v15424_v3  ;;  %10476 = vmatprep.mubr.msk.f32.mxu1 %vm18149_vm5, %v15421_v61  ;;  %18486 = vst [vmem:[#allocation241_spill] sm:$0xff] %v15479_v60  ;;  %v15495_v61 = vadd.f32 %v14734_v49, %v15173_v6 }
 0x33f   : > { %18479 = vst [vmem:[#allocation234_spill] sm:$0xff] %v15429_v21  ;;  %18482 = vst [vmem:[#allocation237_spill] sm:$0xff] %v15451_v24 }
 0x340   : > { %18485 = vst [vmem:[#allocation240_spill] sm:$0xff] %v15471_v11  ;;  %18489 = vst [vmem:[#allocation244_spill] sm:$0xff] %v15495_v61 }
 0x341   : > { %10477 = vmatmul.mubr.msk.f32.gmra.mrb[86].mxu1 %vm18149_vm5, %v15437_v19  ;;  %v15483_v19 = vadd.f32 %v14734_v49, %v15145_v39 }
 0x342   : > { %10479 = vmatprep.mubr.msk.f32.mxu1 %vm18149_vm5, %v15443_v2  ;;  %v1080_v2 = vld [vmem:[%s12265_s28 + $0x38] sm:$0xff] }
 0x343   : > { %18487 = vst [vmem:[#allocation242_spill] sm:$0xff] %v15483_v19 }
 0x344   : > { %v15457_v47 = vpop.f32.mrb[2].mxu1 }
 0x345   : > { %v15459_v37 = vpop.f32.mrb[3].mxu1  ;;  %10480 = vmatmul.mubr.msk.f32.gmra.mrb[88].mxu1 %vm18149_vm5, %v15451_v24  ;;  %v18543_v24 = vld [vmem:[#allocation32_spill] sm:$0xff] }
 0x346   : > { %10482 = vmatprep.mubr.msk.f32.mxu1 %vm18149_vm5, %v15455_v40  ;;  %v18539_v40 = vld [vmem:[#allocation115_spill] sm:$0xff] }
 0x349   : > { %10483 = vmatmul.mubr.msk.f32.gmra.mrb[90].mxu1 %vm18149_vm5, %v15467_v59  ;;  %v18537_v59 = vld [vmem:[#allocation114_spill] sm:$0xff] }
 0x34a   : > { %10485 = vmatprep.mubr.msk.f32.mxu1 %vm18149_vm5, %v15471_v11  ;;  %v18533_v11 = vld [vmem:[#allocation96_spill] sm:$0xff] }
 0x34b   : > { %vm18534_vm10 = vcmp.lt.s32.totalorder %v18533_v11, 2000 }
 0x34d   : > { %10486 = vmatmul.mubr.msk.f32.gmra.mrb[92].mxu1 %vm18149_vm5, %v15479_v60 }
 0x34e   : > { %10488 = vmatprep.mubr.msk.f32.mxu1 %vm18149_vm5, %v15483_v19  ;;  %v18531_v19 = vld [vmem:[#allocation28_spill] sm:$0xff] }
 0x34f   : > { %v10317_v5 = vpop.f32.mrb[104].mxu0 }
 0x350   : > { %v15498_v41 = vadd.f32 %v10317_v5, %v14734_v49  ;;  %v4636_v39 = vpop.f32.mrb[105].mxu0  ;;  %v15515_v5 = vadd.f32 %v14734_v49, %v15207_v55 }
 0x351   : > { %v15501_v48 = vadd.f32 %v14734_v49, %v4636_v39  ;;  %10489 = vmatmul.mubr.msk.f32.gmra.mrb[94].mxu1 %vm18149_vm5, %v15491_v62  ;;  %v15523_v39 = vadd.f32 %v15199_v46, %v14734_v49  ;;  %v18529_v62 = vld [vmem:[#allocation26_spill] sm:$0xff] }
 0x352   : > { %18490 = vst [vmem:[#allocation245_spill] sm:$0xff] %v15498_v41  ;;  %10491 = vmatprep.mubr.msk.f32.mxu1 %vm18149_vm5, %v15495_v61  ;;  %18493 = vst [vmem:[#allocation248_spill] sm:$0xff] %v15515_v5  ;;  %v15755_v61 = vld [vmem:[%s12265_s28 + $0x2b0] sm:$0xff] }
 0x353   : > { %18491 = vst [vmem:[#allocation246_spill] sm:$0xff] %v15501_v48  ;;  %18494 = vst [vmem:[#allocation249_spill] sm:$0xff] %v15523_v39 }
 0x355   : > { %10492 = vmatmul.mubr.msk.f32.gmra.mrb[96].mxu1 %vm18149_vm5, %v15509_v52  ;;  %v18527_v52 = vld [vmem:[#allocation113_spill] sm:$0xff] }
 0x356   : > { %10494 = vmatprep.mubr.msk.f32.mxu1 %vm18149_vm5, %v15515_v5  ;;  %v18526_v5 = vld [vmem:[#allocation112_spill] sm:$0xff] }
 0x359   : > { %10495 = vmatmul.mubr.msk.f32.gmra.mrb[98].mxu1 %vm18149_vm5, %v15523_v39  ;;  %v1077_v39 = vld [vmem:[%s12265_s28 + $0x20] sm:$0xff] }
 0x35a   : > { %10497 = vmatprep.mubr.msk.f32.mxu1 %vm18149_vm5, %v15241_v26 }
 0x35c   : > { %v15529_v30 = vpop.f32.mrb[4].mxu1 }
 0x35d   : > { %v15531_v55 = vpop.f32.mrb[5].mxu1  ;;  %10498 = vmatmul.mubr.msk.f32.gmra.mrb[100].mxu1 %vm18149_vm5, %v15234_v35 }
 0x35e   : > { %10500 = vmatprep.mubr.msk.f32.mxu1 %vm18149_vm5, %v15279_v63  ;;  %v18737_v63 = vld [vmem:[#allocation124_spill] sm:$0xff] }
 0x361   : > { %10501 = vmatmul.mubr.msk.f32.gmra.mrb[102].mxu1 %vm18149_vm5, %v15276_v10  ;;  %v18732_v10 = vld [vmem:[#allocation122_spill] sm:$0xff] }
 0x362   : > { %10503 = vmatprep.mubr.msk.f32.mxu1 %vm18149_vm5, %v15325_v54 }
 0x365   : > { %10504 = vmatmul.mubr.msk.f32.gmra.mrb[104].mxu1 %vm18149_vm5, %v15320_v29  ;;  %v15875_v29 = vld [vmem:[%s12265_s28 + $0x2f0] sm:$0xff] }
 0x366   : > { %10506 = vmatprep.mubr.msk.f32.mxu1 %vm18149_vm5, %v15371_v32  ;;  %18581 = vst [vmem:[#allocation94_spill] sm:$0xff] %v15875_v29 }
 0x367   : > { %v10320_v46 = vpop.f32.mrb[106].mxu0 }
 0x368   : > { %v15546_v6 = vadd.f32 %v10320_v46, %v14734_v49  ;;  %v4646_v26 = vpop.f32.mrb[107].mxu0 }
 0x369   : > { %v15549_v35 = vadd.f32 %v14734_v49, %v4646_v26  ;;  %10507 = vmatmul.mubr.msk.f32.gmra.mrb[106].mxu1 %vm18149_vm5, %v15368_v38 }
 0x36a   : > { %18495 = vst [vmem:[#allocation250_spill] sm:$0xff] %v15546_v6  ;;  %10509 = vmatprep.mubr.msk.f32.mxu1 %vm18149_vm5, %v15397_v23 }
 0x36b   : > { %18496 = vst [vmem:[#allocation251_spill] sm:$0xff] %v15549_v35 }
 0x36d   : > { %10510 = vmatmul.mubr.msk.f32.gmra.mrb[108].mxu1 %vm18149_vm5, %v15394_v15 }
 0x36e   : > { %10512 = vmatprep.mubr.msk.f32.mxu1 %vm18149_vm5, %v15429_v21 }
 0x371   : > { %10513 = vmatmul.mubr.msk.f32.gmra.mrb[110].mxu1 %vm18149_vm5, %v15424_v3 }
 0x372   : > { %10515 = vmatprep.mubr.msk.f32.mxu1 %vm18149_vm5, %v15501_v48 }
 0x374   : > { %v10350_v26 = vpop.f32.mrb[6].mxu1 }
 0x375   : > { %v4746_v46 = vpop.f32.mrb[7].mxu1  ;;  %10516 = vmatmul.mubr.msk.f32.gmra.mrb[112].mxu1 %vm18149_vm5, %v15498_v41 }
 0x376   : > { %10518 = vmatprep.mubr.msk.f32.mxu1 %vm18149_vm5, %v15549_v35 }
 0x379   : > { %10519 = vmatmul.mubr.msk.f32.gmra.mrb[114].mxu1 %vm18149_vm5, %v15546_v6 }
 0x37d   : > { %v10323_v54 = vpop.f32.mrb[108].mxu0 }
 0x37e   : > { %v15572_v21 = vadd.f32 %v10323_v54, %v14734_v49  ;;  %v4656_v23 = vpop.f32.mrb[109].mxu0 }
 0x37f   : > { %v15575_v3 = vadd.f32 %v14734_v49, %v4656_v23 }
 0x380   : > { %18497 = vst [vmem:[#allocation252_spill] sm:$0xff] %v15572_v21 }
 0x381   : > { %18498 = vst [vmem:[#allocation253_spill] sm:$0xff] %v15575_v3  ;;  %10521 = vmatprep.mubr.msk.f32.mxu1 %vm18149_vm5, %v15575_v3 }
 0x382   : > { %10522 = vmatmul.mubr.msk.f32.gmra.mrb[116].mxu1 %vm18149_vm5, %v15572_v21 }
 0x385   : > { %v10326_v35 = vpop.f32.mrb[110].mxu0 }
 0x386   : > { %v15584_v6 = vadd.f32 %v10326_v35, %v14734_v49  ;;  %v4666_v41 = vpop.f32.mrb[111].mxu0 }
 0x387   : > { %v15587_v54 = vadd.f32 %v14734_v49, %v4666_v41 }
 0x388   : > { %18499 = vst [vmem:[#allocation254_spill] sm:$0xff] %v15584_v6 }
 0x389   : > { %18500 = vst [vmem:[#allocation255_spill] sm:$0xff] %v15587_v54  ;;  %10524 = vmatprep.mubr.msk.f32.mxu1 %vm18149_vm5, %v15587_v54 }
 0x38a   : > { %10525 = vmatmul.mubr.msk.f32.gmra.mrb[118].mxu1 %vm18149_vm5, %v15584_v6 }
 0x38d   : > { %v10329_v48 = vpop.f32.mrb[112].mxu0 }
 0x38e   : > { %v15596_v3 = vadd.f32 %v10329_v48, %v14734_v49  ;;  %v4676_v21 = vpop.f32.mrb[113].mxu0 }
 0x38f   : > { %v15599_v35 = vadd.f32 %v14734_v49, %v4676_v21 }
 0x390   : > { %18501 = vst [vmem:[#allocation256_spill] sm:$0xff] %v15596_v3 }
 0x391   : > { %18502 = vst [vmem:[#allocation257_spill] sm:$0xff] %v15599_v35  ;;  %10527 = vmatprep.mubr.msk.f32.mxu1 %vm18149_vm5, %v15599_v35  ;;  %v1076_v35 = vld [vmem:[%s12265_s28 + $0x18] sm:$0xff] }
 0x392   : > { %10528 = vmatmul.mubr.msk.f32.gmra.mrb[120].mxu1 %vm18149_vm5, %v15596_v3 }
 0x395   : > { %v10332_v23 = vpop.f32.mrb[114].mxu0 }
 0x396   : > { %v15608_v54 = vadd.f32 %v10332_v23, %v14734_v49  ;;  %v4686_v6 = vpop.f32.mrb[115].mxu0 }
 0x397   : > { %v15611_v48 = vadd.f32 %v14734_v49, %v4686_v6  ;;  %v15678_v6 = vadd.f32 %v14734_v49, %v4746_v46  ;;  %v15695_v46 = vld [vmem:[%s12265_s28 + $0x290] sm:$0xff] }
 0x398   : > { %18503 = vst [vmem:[#allocation258_spill] sm:$0xff] %v15608_v54 }
 0x399   : > { %18504 = vst [vmem:[#allocation259_spill] sm:$0xff] %v15611_v48  ;;  %10530 = vmatprep.mubr.msk.f32.mxu1 %vm18149_vm5, %v15611_v48  ;;  %18515 = vst [vmem:[#allocation270_spill] sm:$0xff] %v15678_v6 }
 0x39a   : > { %10531 = vmatmul.mubr.msk.f32.gmra.mrb[122].mxu1 %vm18149_vm5, %v15608_v54  ;;  %v15878_v54 = vld [vmem:[%s12265_s28 + $0x2f8] sm:$0xff] }
 0x39b   : > { %18582 = vst [vmem:[#allocation95_spill] sm:$0xff] %v15878_v54 }
 0x39d   : > { %v10335_v41 = vpop.f32.mrb[116].mxu0 }
 0x39e   : > { %v15620_v15 = vadd.f32 %v10335_v41, %v14734_v49  ;;  %v4696_v32 = vpop.f32.mrb[117].mxu0 }
 0x39f   : > { %v15623_v23 = vadd.f32 %v14734_v49, %v4696_v32  ;;  %v15639_v32 = vadd.f32 %v14734_v49, %v15327_v44  ;;  %v15655_v44 = vadd.f32 %v14734_v49, %v15459_v37  ;;  %v15675_v37 = vadd.f32 %v15529_v30, %v14734_v49  ;;  %v15692_v30 = vld [vmem:[%s12265_s28 + $0x208] sm:$0xff] }
 0x3a0   : > { %18505 = vst [vmem:[#allocation260_spill] sm:$0xff] %v15620_v15 }
 0x3a1   : > { %18506 = vst [vmem:[#allocation261_spill] sm:$0xff] %v15623_v23  ;;  %10533 = vmatprep.mubr.msk.f32.mxu1 %vm18149_vm5, %v15623_v23  ;;  %18509 = vst [vmem:[#allocation264_spill] sm:$0xff] %v15639_v32  ;;  %v15725_v23 = vld [vmem:[%s12265_s28 + $0x2a0] sm:$0xff] }
 0x3a2   : > { %10534 = vmatmul.mubr.msk.f32.gmra.mrb[124].mxu1 %vm18149_vm5, %v15620_v15  ;;  %18511 = vst [vmem:[#allocation266_spill] sm:$0xff] %v15655_v44  ;;  %18514 = vst [vmem:[#allocation269_spill] sm:$0xff] %v15675_v37  ;;  %v15728_v15 = vld [vmem:[%s12265_s28 + $0x2a8] sm:$0xff] }
 0x3a5   : > { %v10338_v21 = vpop.f32.mrb[118].mxu0 }
 0x3a6   : > { %v15632_v38 = vadd.f32 %v10338_v21, %v14734_v49  ;;  %v4706_v48 = vpop.f32.mrb[119].mxu0  ;;  %v15663_v21 = vadd.f32 %v15457_v47, %v14734_v49  ;;  %v15685_v47 = vadd.f32 %v10350_v26, %v14734_v49  ;;  %v18757_v26 = vld [vmem:[#allocation148_spill] sm:$0xff] }
 0x3a7   : > { %v15635_v41 = vadd.f32 %v14734_v49, %v4706_v48  ;;  %v15651_v48 = vadd.f32 %v15322_v12, %v14734_v49  ;;  %v15667_v12 = vadd.f32 %v14734_v49, %v15531_v55  ;;  %v1073_v55 = vld [vmem:[%s12265_s28] sm:$0xff] }
 0x3a8   : > { %18507 = vst [vmem:[#allocation262_spill] sm:$0xff] %v15632_v38  ;;  %18512 = vst [vmem:[#allocation267_spill] sm:$0xff] %v15663_v21 }
 0x3a9   : > { %18508 = vst [vmem:[#allocation263_spill] sm:$0xff] %v15635_v41  ;;  %10536 = vmatprep.mubr.msk.f32.mxu1 %vm18149_vm5, %v15635_v41  ;;  %18510 = vst [vmem:[#allocation265_spill] sm:$0xff] %v15651_v48  ;;  %v15718_v41 = vld [vmem:[%s12265_s28 + $0x218] sm:$0xff] }
 0x3aa   : > { %10537 = vmatmul.mubr.msk.f32.gmra.mrb[126].mxu1 %vm18149_vm5, %v15632_v38  ;;  %18513 = vst [vmem:[#allocation268_spill] sm:$0xff] %v15667_v12  ;;  %18516 = vst [vmem:[#allocation271_spill] sm:$0xff] %v15685_v47  ;;  %v1170_v38 = vld [vmem:[%s12265_s28 + $0x308] sm:$0xff] }
 0x3ab   : > { %10539 = vmatprep.mubr.msk.f32.mxu1 %vm18149_vm5, %v15639_v32 }
 0x3ae   : > { %10540 = vmatmul.mubr.msk.f32.gmra.mrb[128].mxu1 %vm18149_vm5, %v15651_v48  ;;  %v1075_v48 = vld [vmem:[%s12265_s28 + $0x10] sm:$0xff] }
 0x3af   : > { %10542 = vmatprep.mubr.msk.f32.mxu1 %vm18149_vm5, %v15655_v44  ;;  %v18751_v44 = vld [vmem:[#allocation27_spill] sm:$0xff] }
 0x3b2   : > { %10543 = vmatmul.mubr.msk.f32.gmra.mrb[130].mxu1 %vm18149_vm5, %v15663_v21  ;;  %v15698_v21 = vld [vmem:[%s12265_s28 + $0x298] sm:$0xff] }
 0x3b3   : > { %10545 = vmatprep.mubr.msk.f32.mxu1 %vm18149_vm5, %v15667_v12  ;;  %v15689_v12 = vld [vmem:[%s12265_s28 + $0x200] sm:$0xff]  ;;  %v11163_v32 = vpack.c.bf16 %v15698_v21, %v15695_v46 }
 0x3b4   : > { %v11160_v49 = vpack.c.bf16 %v15692_v30, %v15689_v12 }
 0x3b6   : > { %10546 = vmatmul.mubr.msk.f32.gmra.mrb[132].mxu1 %vm18149_vm5, %v15675_v37  ;;  %v1074_v37 = vld [vmem:[%s12265_s28 + $0x8] sm:$0xff] }
 0x3b7   : > { %10548 = vmatprep.mubr.msk.f32.mxu1 %vm18149_vm5, %v15678_v6  ;;  %v18585_v6 = vld [vmem:[#allocation40_spill] sm:$0xff] }
 0x3ba   : > { %10549 = vmatmul.mubr.msk.f32.gmra.mrb[134].mxu1 %vm18149_vm5, %v15685_v47  ;;  %v15715_v47 = vld [vmem:[%s12265_s28 + $0x210] sm:$0xff]  ;;  %vm11164_vm5 = vmpackc.low %vm1028_vm12, %vm1027_vm14 }
 0x3bb   : > { %10583 = vmatprep.mubr.msk.f32.mxu1 %vm18158_vm2, %v1073_v55  ;;  %v11166_v3 = vpack.c.bf16 %v15718_v41, %v15715_v47  ;;  %vm11167_vm2 = vmpackc.low %vm1012_vm4, %vm1011_vm1  ;;  %v1180_v55 = vld [vmem:[%s12265_s28 + $0x358] sm:$0xff] }
 0x3be   : > { %10584 = vmatmul.mubr.msk.f32.vlgmr.msra.gmra.mrb[8].mxu1 %vm18166_vm3, %v1074_v37  ;;  %v11169_v37 = vpack.c.bf16 %v15728_v15, %v15725_v23  ;;  %vm18532_vm3 = vcmp.lt.s32.totalorder %v18531_v19, 2000  ;;  %v18575_v19 = vld [vmem:[#allocation103_spill] sm:$0xff] }
 0x3bf   : > { %11162 = vmatpush3.bf16.msk.msra.mxu1 %vm11161_vm7, %v11160_v49  ;;  %10586 = vmatprep.mubr.msk.f32.mxu1 %vm18162_vm6, %v1075_v48  ;;  %v15745_v49 = vld [vmem:[%s12265_s28 + $0x220] sm:$0xff]  ;;  %v15748_v48 = vld [vmem:[%s12265_s28 + $0x228] sm:$0xff]  ;;  %vm18528_vm7 = vcmp.lt.s32.totalorder %v18527_v52, 2000 }
 0x3c0   : > { %11165 = vmatprep.subr.msk.bf16.mxu1 %vm11164_vm5, %v11163_v32  ;;  %vm11170_vm6 = vmpackc.low %vm18528_vm7, %vm18201_vm11  ;;  %v15758_v32 = vld [vmem:[%s12265_s28 + $0x2b8] sm:$0xff]  ;;  %vm18530_vm5 = vcmp.lt.s32.totalorder %v18529_v62, 2000  ;;  %v11172_v60 = vpack.c.bf16 %v15748_v48, %v15745_v49  ;;  %vm18536_vm7 = vcmp.lt.s32.totalorder %v18535_v31, 2000  ;;  %v1085_v62 = vld [vmem:[%s12265_s28 + $0x60] sm:$0xff] }
 0x3c1   : > { %vm11173_vm8 = vmpackc.low %vm18536_vm7, %vm18534_vm10  ;;  %vm18544_vm10 = vcmp.lt.s32.totalorder %v18543_v24, 2000  ;;  %vm18546_vm7 = vcmp.lt.s32.totalorder %v18545_v22, 2000 }
 0x3c2   : > { %10587 = vmatmul.mubr.msk.f32.gmra.mrb[10].mxu1 %vm18530_vm5, %v1076_v35  ;;  %v15775_v35 = vld [vmem:[%s12265_s28 + $0x230] sm:$0xff] }
 0x3c3   : > { %11168 = vmatpush3.bf16.msk.msra.mxu1 %vm11167_vm2, %v11166_v3  ;;  %10589 = vmatprep.mubr.msk.f32.mxu1 %vm18532_vm3, %v1077_v39  ;;  %v11175_v3 = vpack.c.bf16 %v15758_v32, %v15755_v61  ;;  %v15778_v39 = vld [vmem:[%s12265_s28 + $0x238] sm:$0xff]  ;;  %vm18538_vm2 = vcmp.lt.s32.totalorder %v18537_v59, 2000  ;;  %vm18540_vm3 = vcmp.lt.s32.totalorder %v18539_v40, 2000 }
 0x3c4   : > { %11171 = vmatprep.subr.msk.bf16.mxu1 %vm11170_vm6, %v11169_v37  ;;  %vm11176_vm5 = vmpackc.low %vm18540_vm3, %vm18538_vm2  ;;  %v15788_v37 = vld [vmem:[%s12265_s28 + $0x2c8] sm:$0xff]  ;;  %vm18542_vm6 = vcmp.lt.s32.totalorder %v18541_v14, 2000  ;;  %v11178_v20 = vpack.c.bf16 %v15778_v39, %v15775_v35  ;;  %vm18548_vm2 = vcmp.lt.s32.totalorder %v18547_v42, 2000  ;;  %v18573_v14 = vld [vmem:[#allocation102_spill] sm:$0xff] }
 0x3c5   : > { %vm11179_vm3 = vmpackc.low %vm18548_vm2, %vm18546_vm7  ;;  %vm18558_vm7 = vcmp.lt.s32.totalorder %v18557_v0, 2000  ;;  %vm18560_vm2 = vcmp.lt.s32.totalorder %v18559_v53, 2000  ;;  %v18571_v0 = vld [vmem:[#allocation38_spill] sm:$0xff] }
 0x3c6   : > { %10590 = vmatmul.mubr.msk.f32.gmra.mrb[12].mxu1 %vm18542_vm6, %v1078_v7  ;;  %v11181_v7 = vpack.c.bf16 %v15788_v37, %v15785_v17  ;;  %vm18552_vm6 = vcmp.lt.s32.totalorder %v18551_v25, 2000 }
 0x3c7   : > { %11174 = vmatpush3.bf16.msk.msra.mxu1 %vm11173_vm8, %v11172_v60  ;;  %10592 = vmatprep.mubr.msk.f32.mxu1 %vm18544_vm10, %v1079_v51  ;;  %v15805_v60 = vld [vmem:[%s12265_s28 + $0x240] sm:$0xff]  ;;  %v15808_v51 = vld [vmem:[%s12265_s28 + $0x248] sm:$0xff]  ;;  %vm18550_vm8 = vcmp.lt.s32.totalorder %v18549_v34, 2000 }
 0x3c8   : > { %11177 = vmatprep.subr.msk.bf16.mxu1 %vm11176_vm5, %v11175_v3  ;;  %vm11182_vm10 = vmpackc.low %vm18552_vm6, %vm18550_vm8  ;;  %v15818_v3 = vld [vmem:[%s12265_s28 + $0x2d8] sm:$0xff]  ;;  %vm18556_vm5 = vcmp.lt.s32.totalorder %v18555_v45, 2000  ;;  %v11184_v13 = vpack.c.bf16 %v15808_v51, %v15805_v60  ;;  %vm18562_vm8 = vcmp.lt.s32.totalorder %v18561_v28, 2000 }
 0x3c9   : > { %18554 = vst [vmem:[#allocation93_spill] sm:$0xff] %v15818_v3  ;;  %vm11185_vm6 = vmpackc.low %vm18562_vm8, %vm18560_vm2  ;;  %vm18572_vm2 = vcmp.lt.s32.totalorder %v18571_v0, 2000  ;;  %v1084_v45 = vld [vmem:[%s12265_s28 + $0x58] sm:$0xff]  ;;  %vm18574_vm8 = vcmp.lt.s32.totalorder %v18573_v14, 2000  ;;  %v18577_v0 = vld [vmem:[#allocation120_spill] sm:$0xff] }
 0x3ca   : > { %10593 = vmatmul.mubr.msk.f32.gmra.mrb[14].mxu1 %vm18556_vm5, %v1080_v2  ;;  %v15835_v2 = vld [vmem:[%s12265_s28 + $0x250] sm:$0xff]  ;;  %vm18566_vm5 = vcmp.lt.s32.totalorder %v18565_v1, 2000 }
 0x3cb   : > { %11180 = vmatpush3.bf16.msk.msra.mxu1 %vm11179_vm3, %v11178_v20  ;;  %10595 = vmatprep.mubr.msk.f32.mxu1 %vm18558_vm7, %v1081_v43  ;;  %v11187_v20 = vpack.c.bf16 %v15818_v3, %v15815_v18  ;;  %v15838_v43 = vld [vmem:[%s12265_s28 + $0x258] sm:$0xff]  ;;  %vm18564_vm3 = vcmp.lt.s32.totalorder %v18563_v27, 2000  ;;  %v1087_v1 = vld [vmem:[%s12265_s28 + $0x70] sm:$0xff] }
 0x3cc   : > { %11183 = vmatprep.subr.msk.bf16.mxu1 %vm11182_vm10, %v11181_v7  ;;  %vm11188_vm7 = vmpackc.low %vm18566_vm5, %vm18564_vm3  ;;  %v15848_v7 = vld [vmem:[%s12265_s28 + $0x2e8] sm:$0xff]  ;;  %vm18570_vm10 = vcmp.lt.s32.totalorder %v18569_v50, 2000  ;;  %v11190_v24 = vpack.c.bf16 %v15838_v43, %v15835_v2  ;;  %vm18576_vm3 = vcmp.lt.s32.totalorder %v18575_v19, 2000  ;;  %v18579_v50 = vld [vmem:[#allocation121_spill] sm:$0xff] }
 0x3cd   : > { %18568 = vst [vmem:[#allocation111_spill] sm:$0xff] %v15848_v7  ;;  %vm11191_vm5 = vmpackc.low %vm18576_vm3, %vm18574_vm8  ;;  %vm18586_vm8 = vcmp.lt.s32.totalorder %v18585_v6, 2000  ;;  %v18593_v6 = vld [vmem:[#allocation123_spill] sm:$0xff]  ;;  %v18595_v3 = vld [vmem:[#allocation41_spill] sm:$0xff] }
 0x3ce   : > { %10596 = vmatmul.mubr.msk.f32.gmra.mrb[16].mxu1 %vm18570_vm10, %v1082_v8  ;;  %v15865_v8 = vld [vmem:[%s12265_s28 + $0x260] sm:$0xff]  ;;  %vm18580_vm10 = vcmp.lt.s32.totalorder %v18579_v50, 2000  ;;  %v18589_v50 = vld [vmem:[#allocation105_spill] sm:$0xff]  ;;  %vm18596_vm11 = vcmp.lt.s32.totalorder %v18595_v3, 2000 }
 0x3cf   : > { %11186 = vmatpush3.bf16.msk.msra.mxu1 %vm11185_vm6, %v11184_v13  ;;  %10598 = vmatprep.mubr.msk.f32.mxu1 %vm18572_vm2, %v1083_v9  ;;  %v11193_v13 = vpack.c.bf16 %v15848_v7, %v15845_v33  ;;  %v15868_v9 = vld [vmem:[%s12265_s28 + $0x268] sm:$0xff]  ;;  %vm18578_vm6 = vcmp.lt.s32.totalorder %v18577_v0, 2000  ;;  %v18599_v27 = vld [vmem:[#allocation106_spill] sm:$0xff] }
 0x3d0   : > { %11189 = vmatprep.subr.msk.bf16.mxu1 %vm11188_vm7, %v11187_v20  ;;  %vm11194_vm2 = vmpackc.low %vm18580_vm10, %vm18578_vm6  ;;  %v18583_v20 = vld [vmem:[#allocation39_spill] sm:$0xff]  ;;  %v11196_v0 = vpack.c.bf16 %v15868_v9, %v15865_v8  ;;  %v18587_v33 = vld [vmem:[#allocation104_spill] sm:$0xff]  ;;  %vm18590_vm6 = vcmp.lt.s32.totalorder %v18589_v50, 2000 }
 0x3d1   : > { %vm18584_vm7 = vcmp.lt.s32.totalorder %v18583_v20, 2000  ;;  %v1086_v7 = vld [vmem:[%s12265_s28 + $0x68] sm:$0xff]  ;;  %vm18588_vm3 = vcmp.lt.s32.totalorder %v18587_v33, 2000  ;;  %v11199_v20 = vpack.c.bf16 %v15878_v54, %v15875_v29  ;;  %v1088_v54 = vld [vmem:[%s12265_s28 + $0x78] sm:$0xff]  ;;  %v1089_v3 = vld [vmem:[%s12265_s28 + $0x80] sm:$0xff] }
 0x3d2   : > { %10599 = vmatmul.mubr.msk.f32.gmra.mrb[18].mxu1 %vm18584_vm7, %v1084_v45  ;;  %vm11197_vm10 = vmpackc.low %vm18590_vm6, %vm18588_vm3  ;;  %v15895_v45 = vld [vmem:[%s12265_s28 + $0x270] sm:$0xff]  ;;  %vm18594_vm7 = vcmp.lt.s32.totalorder %v18593_v6, 2000  ;;  %vm18600_vm3 = vcmp.lt.s32.totalorder %v18599_v27, 2000  ;;  %v18609_v18 = vld [vmem:[#allocation46_spill] sm:$0xff] }
 0x3d3   : > { %11192 = vmatpush3.bf16.msk.msra.mxu1 %vm11191_vm5, %v11190_v24  ;;  %10601 = vmatprep.mubr.msk.f32.mxu1 %vm18586_vm8, %v1085_v62  ;;  %v15898_v24 = vld [vmem:[%s12265_s28 + $0x278] sm:$0xff] }
 0x3d4   : > { %11195 = vmatprep.subr.msk.bf16.mxu1 %vm11194_vm2, %v11193_v13  ;;  %v18591_v62 = vld [vmem:[#allocation122_spill] sm:$0xff]  ;;  %v11202_v29 = vpack.c.bf16 %v15898_v24, %v15895_v45  ;;  %v18607_v6 = vld [vmem:[#allocation45_spill] sm:$0xff] }
 0x3d5   : > { %vm18592_vm5 = vcmp.lt.s32.totalorder %v18591_v62, 2000  ;;  %v18597_v13 = vld [vmem:[#allocation42_spill] sm:$0xff]  ;;  %v18601_v62 = vld [vmem:[#allocation107_spill] sm:$0xff] }
 0x3d6   : > { %vm11200_vm8 = vmpackc.low %vm18594_vm7, %vm18592_vm5  ;;  %10602 = vmatmul.mubr.msk.f32.gmra.mrb[20].mxu1 %vm18596_vm11, %v1086_v7  ;;  %vm18598_vm2 = vcmp.lt.s32.totalorder %v18597_v13, 2000  ;;  %vm18602_vm6 = vcmp.lt.s32.totalorder %v18601_v62, 2000  ;;  %v18603_v7 = vld [vmem:[#allocation43_spill] sm:$0xff]  ;;  %v1091_v13 = vld [vmem:[%s12265_s28 + $0x90] sm:$0xff]  ;;  %vm18608_vm7 = vcmp.lt.s32.totalorder %v18607_v6, 2000 }
 0x3d7   : > { %11198 = vmatpush3.bf16.msk.msra.mxu1 %vm11197_vm10, %v11196_v0  ;;  %10604 = vmatprep.mubr.msk.f32.mxu1 %vm18598_vm2, %v1087_v1  ;;  %vm11203_vm5 = vmpackc.low %vm18602_vm6, %vm18600_vm3  ;;  %v11253_v0 = vpack.c.bf16 %v14902_v4, %v14888_v58  ;;  %vm18604_vm11 = vcmp.lt.s32.totalorder %v18603_v7, 2000  ;;  %v18605_v1 = vld [vmem:[#allocation44_spill] sm:$0xff]  ;;  %v1092_v58 = vld [vmem:[%s12265_s28 + $0x98] sm:$0xff] }
 0x3d8   : > { %11201 = vmatprep.subr.msk.bf16.mxu1 %vm11200_vm8, %v11199_v20  ;;  %vm18606_vm10 = vcmp.lt.s32.totalorder %v18605_v1, 2000  ;;  %v1090_v20 = vld [vmem:[%s12265_s28 + $0x88] sm:$0xff]  ;;  %vm18610_vm8 = vcmp.lt.s32.totalorder %v18609_v18, 2000  ;;  %v1093_v4 = vld [vmem:[%s12265_s28 + $0xa0] sm:$0xff]  ;;  %v18615_v7 = vld [vmem:[#allocation49_spill] sm:$0xff] }
 0x3d9   : > { %vm18616_vm6 = vcmp.lt.s32.totalorder %v18615_v7, 2000  ;;  %v1097_v18 = vld [vmem:[%s12265_s28 + $0xc0] sm:$0xff]  ;;  %v18693_v1 = vld [vmem:[#allocation88_spill] sm:$0xff] }
 0x3da   : > { %10605 = vmatmul.mubr.msk.f32.gmra.mrb[22].mxu1 %vm18604_vm11, %v1088_v54  ;;  %v18611_v54 = vld [vmem:[#allocation47_spill] sm:$0xff] }
 0x3db   : > { %11204 = vmatpush3.bf16.msk.msra.mxu1 %vm11203_vm5, %v11202_v29  ;;  %10607 = vmatprep.mubr.msk.f32.mxu1 %vm18606_vm10, %v1089_v3  ;;  %vm18612_vm2 = vcmp.lt.s32.totalorder %v18611_v54, 2000  ;;  %v18613_v29 = vld [vmem:[#allocation48_spill] sm:$0xff]  ;;  %v18619_v6 = vld [vmem:[#allocation51_spill] sm:$0xff]  ;;  %v18623_v54 = vld [vmem:[#allocation53_spill] sm:$0xff] }
 0x3dc   : > { %11254 = vmatprep.subr.bf16.mxu1 %v11253_v0  ;;  %vm18614_vm3 = vcmp.lt.s32.totalorder %v18613_v29, 2000  ;;  %v1094_v3 = vld [vmem:[%s12265_s28 + $0xa8] sm:$0xff]  ;;  %v1095_v0 = vld [vmem:[%s12265_s28 + $0xb0] sm:$0xff]  ;;  %vm18620_vm11 = vcmp.lt.s32.totalorder %v18619_v6, 2000 }
 0x3dd   : > { %v1099_v29 = vld [vmem:[%s12265_s28 + $0xd0] sm:$0xff]  ;;  %v18627_v7 = vld [vmem:[#allocation55_spill] sm:$0xff] }
 0x3de   : > { %10608 = vmatmul.mubr.msk.f32.gmra.mrb[24].mxu1 %vm18608_vm7, %v1090_v20  ;;  %v18617_v20 = vld [vmem:[#allocation50_spill] sm:$0xff]  ;;  %vm18624_vm7 = vcmp.lt.s32.totalorder %v18623_v54, 2000  ;;  %v18631_v6 = vld [vmem:[#allocation57_spill] sm:$0xff]  ;;  %v18635_v54 = vld [vmem:[#allocation59_spill] sm:$0xff] }
 0x3df   : > { %10610 = vmatprep.mubr.msk.f32.mxu1 %vm18610_vm8, %v1091_v13  ;;  %vm18618_vm5 = vcmp.lt.s32.totalorder %v18617_v20, 2000  ;;  %v1096_v13 = vld [vmem:[%s12265_s28 + $0xb8] sm:$0xff]  ;;  %v1101_v20 = vld [vmem:[%s12265_s28 + $0xe0] sm:$0xff] }
 0x3e2   : > { %10611 = vmatmul.mubr.msk.f32.gmra.mrb[26].mxu1 %vm18612_vm2, %v1092_v58  ;;  %v18621_v58 = vld [vmem:[#allocation52_spill] sm:$0xff]  ;;  %vm18628_vm2 = vcmp.lt.s32.totalorder %v18627_v7, 2000  ;;  %v18639_v7 = vld [vmem:[#allocation61_spill] sm:$0xff] }
 0x3e3   : > { %10613 = vmatprep.mubr.msk.f32.mxu1 %vm18614_vm3, %v1093_v4  ;;  %vm18622_vm10 = vcmp.lt.s32.totalorder %v18621_v58, 2000  ;;  %v1098_v4 = vld [vmem:[%s12265_s28 + $0xc8] sm:$0xff]  ;;  %v1103_v58 = vld [vmem:[%s12265_s28 + $0xf0] sm:$0xff] }
 0x3e6   : > { %10614 = vmatmul.mubr.msk.f32.gmra.mrb[28].mxu1 %vm18616_vm6, %v1094_v3  ;;  %v18625_v3 = vld [vmem:[#allocation54_spill] sm:$0xff]  ;;  %vm18632_vm6 = vcmp.lt.s32.totalorder %v18631_v6, 2000  ;;  %v18643_v6 = vld [vmem:[#allocation63_spill] sm:$0xff] }
 0x3e7   : > { %10616 = vmatprep.mubr.msk.f32.mxu1 %vm18618_vm5, %v1095_v0  ;;  %vm18626_vm8 = vcmp.lt.s32.totalorder %v18625_v3, 2000  ;;  %v1100_v0 = vld [vmem:[%s12265_s28 + $0xd8] sm:$0xff]  ;;  %v1105_v3 = vld [vmem:[%s12265_s28 + $0x100] sm:$0xff] }
 0x3ea   : > { %10617 = vmatmul.mubr.msk.f32.gmra.mrb[30].mxu1 %vm18620_vm11, %v1096_v13  ;;  %v18629_v13 = vld [vmem:[#allocation56_spill] sm:$0xff]  ;;  %vm18636_vm11 = vcmp.lt.s32.totalorder %v18635_v54, 2000  ;;  %v18647_v54 = vld [vmem:[#allocation65_spill] sm:$0xff] }
 0x3eb   : > { %10619 = vmatprep.mubr.msk.f32.mxu1 %vm18622_vm10, %v1097_v18  ;;  %vm18630_vm3 = vcmp.lt.s32.totalorder %v18629_v13, 2000  ;;  %v1102_v18 = vld [vmem:[%s12265_s28 + $0xe8] sm:$0xff]  ;;  %v1107_v13 = vld [vmem:[%s12265_s28 + $0x110] sm:$0xff] }
 0x3ee   : > { %10620 = vmatmul.mubr.msk.f32.gmra.mrb[32].mxu1 %vm18624_vm7, %v1098_v4  ;;  %v18633_v4 = vld [vmem:[#allocation58_spill] sm:$0xff]  ;;  %vm18640_vm7 = vcmp.lt.s32.totalorder %v18639_v7, 2000  ;;  %v18651_v7 = vld [vmem:[#allocation67_spill] sm:$0xff] }
 0x3ef   : > { %10622 = vmatprep.mubr.msk.f32.mxu1 %vm18626_vm8, %v1099_v29  ;;  %vm18634_vm5 = vcmp.lt.s32.totalorder %v18633_v4, 2000  ;;  %v1104_v29 = vld [vmem:[%s12265_s28 + $0xf8] sm:$0xff]  ;;  %v1109_v4 = vld [vmem:[%s12265_s28 + $0x120] sm:$0xff] }
 0x3f2   : > { %10623 = vmatmul.mubr.msk.f32.gmra.mrb[34].mxu1 %vm18628_vm2, %v1100_v0  ;;  %v18637_v0 = vld [vmem:[#allocation60_spill] sm:$0xff]  ;;  %vm18644_vm2 = vcmp.lt.s32.totalorder %v18643_v6, 2000  ;;  %v18655_v6 = vld [vmem:[#allocation69_spill] sm:$0xff] }
 0x3f3   : > { %10625 = vmatprep.mubr.msk.f32.mxu1 %vm18630_vm3, %v1101_v20  ;;  %vm18638_vm10 = vcmp.lt.s32.totalorder %v18637_v0, 2000  ;;  %v1106_v20 = vld [vmem:[%s12265_s28 + $0x108] sm:$0xff]  ;;  %v1111_v0 = vld [vmem:[%s12265_s28 + $0x130] sm:$0xff] }
 0x3f6   : > { %10626 = vmatmul.mubr.msk.f32.gmra.mrb[36].mxu1 %vm18632_vm6, %v1102_v18  ;;  %v18641_v18 = vld [vmem:[#allocation62_spill] sm:$0xff]  ;;  %vm18648_vm6 = vcmp.lt.s32.totalorder %v18647_v54, 2000  ;;  %v18659_v54 = vld [vmem:[#allocation71_spill] sm:$0xff] }
 0x3f7   : > { %10628 = vmatprep.mubr.msk.f32.mxu1 %vm18634_vm5, %v1103_v58  ;;  %vm18642_vm8 = vcmp.lt.s32.totalorder %v18641_v18, 2000  ;;  %v1108_v58 = vld [vmem:[%s12265_s28 + $0x118] sm:$0xff]  ;;  %v1113_v18 = vld [vmem:[%s12265_s28 + $0x140] sm:$0xff] }
 0x3fa   : > { %10629 = vmatmul.mubr.msk.f32.gmra.mrb[38].mxu1 %vm18636_vm11, %v1104_v29  ;;  %v18645_v29 = vld [vmem:[#allocation64_spill] sm:$0xff]  ;;  %vm18652_vm11 = vcmp.lt.s32.totalorder %v18651_v7, 2000  ;;  %v18663_v7 = vld [vmem:[#allocation73_spill] sm:$0xff] }
 0x3fb   : > { %10631 = vmatprep.mubr.msk.f32.mxu1 %vm18638_vm10, %v1105_v3  ;;  %vm18646_vm3 = vcmp.lt.s32.totalorder %v18645_v29, 2000  ;;  %v1110_v3 = vld [vmem:[%s12265_s28 + $0x128] sm:$0xff]  ;;  %v1115_v29 = vld [vmem:[%s12265_s28 + $0x150] sm:$0xff] }
 0x3fe   : > { %10632 = vmatmul.mubr.msk.f32.gmra.mrb[40].mxu1 %vm18640_vm7, %v1106_v20  ;;  %v18649_v20 = vld [vmem:[#allocation66_spill] sm:$0xff]  ;;  %vm18656_vm7 = vcmp.lt.s32.totalorder %v18655_v6, 2000  ;;  %v18667_v6 = vld [vmem:[#allocation75_spill] sm:$0xff] }
 0x3ff   : > { %10634 = vmatprep.mubr.msk.f32.mxu1 %vm18642_vm8, %v1107_v13  ;;  %vm18650_vm5 = vcmp.lt.s32.totalorder %v18649_v20, 2000  ;;  %v1112_v13 = vld [vmem:[%s12265_s28 + $0x138] sm:$0xff]  ;;  %v1117_v20 = vld [vmem:[%s12265_s28 + $0x160] sm:$0xff] }
 0x402   : > { %10635 = vmatmul.mubr.msk.f32.gmra.mrb[42].mxu1 %vm18644_vm2, %v1108_v58  ;;  %v18653_v58 = vld [vmem:[#allocation68_spill] sm:$0xff]  ;;  %vm18660_vm2 = vcmp.lt.s32.totalorder %v18659_v54, 2000  ;;  %v18671_v54 = vld [vmem:[#allocation77_spill] sm:$0xff] }
 0x403   : > { %10637 = vmatprep.mubr.msk.f32.mxu1 %vm18646_vm3, %v1109_v4  ;;  %vm18654_vm10 = vcmp.lt.s32.totalorder %v18653_v58, 2000  ;;  %v1114_v4 = vld [vmem:[%s12265_s28 + $0x148] sm:$0xff]  ;;  %v1119_v58 = vld [vmem:[%s12265_s28 + $0x170] sm:$0xff] }
 0x406   : > { %10638 = vmatmul.mubr.msk.f32.gmra.mrb[44].mxu1 %vm18648_vm6, %v1110_v3  ;;  %v18657_v3 = vld [vmem:[#allocation70_spill] sm:$0xff]  ;;  %vm18664_vm6 = vcmp.lt.s32.totalorder %v18663_v7, 2000  ;;  %v18675_v7 = vld [vmem:[#allocation79_spill] sm:$0xff] }
 0x407   : > { %10640 = vmatprep.mubr.msk.f32.mxu1 %vm18650_vm5, %v1111_v0  ;;  %vm18658_vm8 = vcmp.lt.s32.totalorder %v18657_v3, 2000  ;;  %v1116_v0 = vld [vmem:[%s12265_s28 + $0x158] sm:$0xff]  ;;  %v1121_v3 = vld [vmem:[%s12265_s28 + $0x180] sm:$0xff] }
 0x40a   : > { %10641 = vmatmul.mubr.msk.f32.gmra.mrb[46].mxu1 %vm18652_vm11, %v1112_v13  ;;  %v18661_v13 = vld [vmem:[#allocation72_spill] sm:$0xff]  ;;  %vm18668_vm11 = vcmp.lt.s32.totalorder %v18667_v6, 2000 }
 0x40b   : > { %10643 = vmatprep.mubr.msk.f32.mxu1 %vm18654_vm10, %v1113_v18  ;;  %vm18662_vm3 = vcmp.lt.s32.totalorder %v18661_v13, 2000  ;;  %v1118_v18 = vld [vmem:[%s12265_s28 + $0x168] sm:$0xff]  ;;  %v1123_v13 = vld [vmem:[%s12265_s28 + $0x190] sm:$0xff] }
 0x40c   : > { %v1127_v6 = vld [vmem:[%s12265_s28 + $0x1b0] sm:$0xff] }
 0x40e   : > { %10644 = vmatmul.mubr.msk.f32.gmra.mrb[48].mxu1 %vm18656_vm7, %v1114_v4  ;;  %v18665_v4 = vld [vmem:[#allocation74_spill] sm:$0xff]  ;;  %vm18672_vm7 = vcmp.lt.s32.totalorder %v18671_v54, 2000  ;;  %v18683_v54 = vld [vmem:[#allocation83_spill] sm:$0xff] }
 0x40f   : > { %10646 = vmatprep.mubr.msk.f32.mxu1 %vm18658_vm8, %v1115_v29  ;;  %vm18666_vm5 = vcmp.lt.s32.totalorder %v18665_v4, 2000  ;;  %v1120_v29 = vld [vmem:[%s12265_s28 + $0x178] sm:$0xff]  ;;  %v1125_v4 = vld [vmem:[%s12265_s28 + $0x1a0] sm:$0xff] }
 0x412   : > { %10647 = vmatmul.mubr.msk.f32.gmra.mrb[50].mxu1 %vm18660_vm2, %v1116_v0  ;;  %v18669_v0 = vld [vmem:[#allocation76_spill] sm:$0xff]  ;;  %vm18676_vm2 = vcmp.lt.s32.totalorder %v18675_v7, 2000  ;;  %v18687_v7 = vld [vmem:[#allocation85_spill] sm:$0xff] }
 0x413   : > { %10649 = vmatprep.mubr.msk.f32.mxu1 %vm18662_vm3, %v1117_v20  ;;  %vm18670_vm10 = vcmp.lt.s32.totalorder %v18669_v0, 2000  ;;  %v1122_v20 = vld [vmem:[%s12265_s28 + $0x188] sm:$0xff]  ;;  %v18679_v0 = vld [vmem:[#allocation81_spill] sm:$0xff] }
 0x416   : > { %10650 = vmatmul.mubr.msk.f32.gmra.mrb[52].mxu1 %vm18664_vm6, %v1118_v18  ;;  %v18673_v18 = vld [vmem:[#allocation78_spill] sm:$0xff]  ;;  %vm18680_vm6 = vcmp.lt.s32.totalorder %v18679_v0, 2000 }
 0x417   : > { %10652 = vmatprep.mubr.msk.f32.mxu1 %vm18666_vm5, %v1119_v58  ;;  %vm18674_vm8 = vcmp.lt.s32.totalorder %v18673_v18, 2000  ;;  %v1124_v58 = vld [vmem:[%s12265_s28 + $0x198] sm:$0xff]  ;;  %v1129_v18 = vld [vmem:[%s12265_s28 + $0x1c0] sm:$0xff] }
 0x418   : > { %v18689_v0 = vld [vmem:[#allocation86_spill] sm:$0xff] }
 0x41a   : > { %10653 = vmatmul.mubr.msk.f32.gmra.mrb[54].mxu1 %vm18668_vm11, %v1120_v29  ;;  %v18677_v29 = vld [vmem:[#allocation80_spill] sm:$0xff]  ;;  %vm18684_vm11 = vcmp.lt.s32.totalorder %v18683_v54, 2000 }
 0x41b   : > { %10655 = vmatprep.mubr.msk.f32.mxu1 %vm18670_vm10, %v1121_v3  ;;  %vm18678_vm3 = vcmp.lt.s32.totalorder %v18677_v29, 2000  ;;  %v1126_v3 = vld [vmem:[%s12265_s28 + $0x1a8] sm:$0xff]  ;;  %v1131_v29 = vld [vmem:[%s12265_s28 + $0x1d0] sm:$0xff] }
 0x41c   : > { %v1135_v54 = vld [vmem:[%s12265_s28 + $0x1f0] sm:$0xff] }
 0x41e   : > { %10656 = vmatmul.mubr.msk.f32.gmra.mrb[56].mxu1 %vm18672_vm7, %v1122_v20  ;;  %v18681_v20 = vld [vmem:[#allocation82_spill] sm:$0xff]  ;;  %vm18688_vm7 = vcmp.lt.s32.totalorder %v18687_v7, 2000  ;;  %v18699_v7 = vld [vmem:[#allocation91_spill] sm:$0xff] }
 0x41f   : > { %10658 = vmatprep.mubr.msk.f32.mxu1 %vm18674_vm8, %v1123_v13  ;;  %vm18682_vm5 = vcmp.lt.s32.totalorder %v18681_v20, 2000  ;;  %v1128_v13 = vld [vmem:[%s12265_s28 + $0x1b8] sm:$0xff]  ;;  %vm18690_vm8 = vcmp.lt.s32.totalorder %v18689_v0, 2000  ;;  %v1133_v20 = vld [vmem:[%s12265_s28 + $0x1e0] sm:$0xff] }
 0x422   : > { %10659 = vmatmul.mubr.msk.f32.gmra.mrb[58].mxu1 %vm18676_vm2, %v1124_v58  ;;  %v18685_v58 = vld [vmem:[#allocation84_spill] sm:$0xff] }
 0x423   : > { %10661 = vmatprep.mubr.msk.f32.mxu1 %vm18678_vm3, %v1125_v4  ;;  %vm18686_vm10 = vcmp.lt.s32.totalorder %v18685_v58, 2000  ;;  %v1130_v4 = vld [vmem:[%s12265_s28 + $0x1c8] sm:$0xff]  ;;  %vm18694_vm3 = vcmp.lt.s32.totalorder %v18693_v1, 2000  ;;  %v18695_v58 = vld [vmem:[#allocation89_spill] sm:$0xff] }
 0x426   : > { %10662 = vmatmul.mubr.msk.f32.gmra.mrb[60].mxu1 %vm18680_vm6, %v1126_v3  ;;  %v1132_v3 = vld [vmem:[%s12265_s28 + $0x1d8] sm:$0xff]  ;;  %vm18696_vm6 = vcmp.lt.s32.totalorder %v18695_v58, 2000 }
 0x427   : > { %10664 = vmatprep.mubr.msk.f32.mxu1 %vm18682_vm5, %v1127_v6  ;;  %v18691_v6 = vld [vmem:[#allocation87_spill] sm:$0xff] }
 0x428   : > { %vm18692_vm2 = vcmp.lt.s32.totalorder %v18691_v6, 2000 }
 0x42a   : > { %10665 = vmatmul.mubr.msk.f32.gmra.mrb[62].mxu1 %vm18684_vm11, %v1128_v13  ;;  %v1134_v13 = vld [vmem:[%s12265_s28 + $0x1e8] sm:$0xff]  ;;  %vm18700_vm11 = vcmp.lt.s32.totalorder %v18699_v7, 2000 }
 0x42b   : > { %10667 = vmatprep.mubr.msk.f32.mxu1 %vm18686_vm10, %v1129_v18  ;;  %v18697_v18 = vld [vmem:[#allocation90_spill] sm:$0xff]  ;;  %vm18701_vm10 = vcmp.lt.s32.totalorder %v18533_v11, 2000  ;;  %v1175_v11 = vld [vmem:[%s12265_s28 + $0x330] sm:$0xff] }
 0x42c   : > { %vm18698_vm5 = vcmp.lt.s32.totalorder %v18697_v18, 2000 }
 0x42e   : > { %10668 = vmatmul.mubr.msk.f32.gmra.mrb[64].mxu1 %vm18688_vm7, %v1130_v4  ;;  %v1136_v4 = vld [vmem:[%s12265_s28 + $0x1f8] sm:$0xff]  ;;  %vm18702_vm7 = vcmp.lt.s32.totalorder %v18535_v31, 2000 }
 0x42f   : > { %10670 = vmatprep.mubr.msk.f32.mxu1 %vm18690_vm8, %v1131_v29  ;;  %vm18707_vm8 = vcmp.lt.s32.totalorder %v18573_v14, 2000  ;;  %v18731_v31 = vld [vmem:[#allocation94_spill] sm:$0xff]  ;;  %v18734_v14 = vld [vmem:[#allocation95_spill] sm:$0xff] }
 0x430   : > { %v1185_v29 = vld [vmem:[%s12265_s28 + $0x380] sm:$0xff] }
 0x432   : > { %10671 = vmatmul.mubr.msk.f32.gmra.mrb[66].mxu1 %vm18692_vm2, %v1132_v3  ;;  %vm18708_vm2 = vcmp.lt.s32.totalorder %v18575_v19, 2000  ;;  %v18743_v19 = vld [vmem:[#allocation127_spill] sm:$0xff] }
 0x433   : > { %10673 = vmatprep.mubr.msk.f32.mxu1 %vm18694_vm3, %v1133_v20  ;;  %vm18709_vm3 = vcmp.lt.s32.totalorder %v18587_v33, 2000  ;;  %v18720_v33 = vld [vmem:[#allocation118_spill] sm:$0xff] }
 0x436   : > { %10674 = vmatmul.mubr.msk.f32.gmra.mrb[68].mxu1 %vm18696_vm6, %v1134_v13  ;;  %vm18710_vm6 = vcmp.lt.s32.totalorder %v18589_v50, 2000  ;;  %v18719_v50 = vld [vmem:[#allocation92_spill] sm:$0xff] }
 0x437   : > { %10676 = vmatprep.mubr.msk.f32.mxu1 %vm18698_vm5, %v1135_v54  ;;  %vm18711_vm5 = vcmp.lt.s32.totalorder %v18599_v27, 2000  ;;  %v18722_v27 = vld [vmem:[#allocation93_spill] sm:$0xff] }
 0x438   : > { %v1184_v54 = vld [vmem:[%s12265_s28 + $0x378] sm:$0xff] }
 0x43a   : > { %10677 = vmatmul.mubr.msk.f32.gmra.mrb[70].mxu1 %vm18700_vm11, %v1136_v4  ;;  %vm18712_vm11 = vcmp.lt.s32.totalorder %v18601_v62, 2000  ;;  %v18765_v62 = vld [vmem:[#allocation136_spill] sm:$0xff]  ;;  %v18767_v4 = vld [vmem:[#allocation139_spill] sm:$0xff] }
 0x43b   : > { %10679 = vmatprep.mubr.msk.f32.mxu1 %vm1009_vm9, %v15689_v12  ;;  %vm18703_vm9 = vcmp.lt.s32.totalorder %v18545_v22, 2000  ;;  %v18728_v22 = vld [vmem:[#allocation111_spill] sm:$0xff] }
 0x43c   : > { %v1178_v12 = vld [vmem:[%s12265_s28 + $0x348] sm:$0xff] }
 0x43e   : > { %10680 = vmatmul.mubr.msk.f32.gmra.mrb[72].mxu1 %vm1010_vm13, %v15692_v30  ;;  %vm18704_vm13 = vcmp.lt.s32.totalorder %v18547_v42, 2000  ;;  %v18726_v42 = vld [vmem:[#allocation120_spill] sm:$0xff]  ;;  %v18755_v30 = vld [vmem:[#allocation31_spill] sm:$0xff] }
 0x43f   : > { %10682 = vmatprep.mubr.msk.f32.mxu1 %vm1011_vm1, %v15715_v47  ;;  %vm18705_vm1 = vcmp.lt.s32.totalorder %v18559_v53, 2000  ;;  %v18725_v53 = vld [vmem:[#allocation110_spill] sm:$0xff]  ;;  %v1179_v47 = vld [vmem:[%s12265_s28 + $0x350] sm:$0xff] }
 0x442   : > { %10683 = vmatmul.mubr.msk.f32.gmra.mrb[74].mxu1 %vm1012_vm4, %v15718_v41  ;;  %vm18706_vm4 = vcmp.lt.s32.totalorder %v18561_v28, 2000  ;;  %v18723_v28 = vld [vmem:[#allocation119_spill] sm:$0xff] }
 0x443   : > { %10685 = vmatprep.mubr.msk.f32.mxu1 %vm18701_vm10, %v15745_v49  ;;  %vm18713_vm10 = vcmp.lt.s32.totalorder %v18526_v5, 2000  ;;  %v18749_v5 = vld [vmem:[#allocation130_spill] sm:$0xff] }
 0x444   : > { %v1177_v41 = vld [vmem:[%s12265_s28 + $0x340] sm:$0xff] }
 0x445   : > { %v1181_v49 = vld [vmem:[%s12265_s28 + $0x360] sm:$0xff] }
 0x446   : > { %10686 = vmatmul.mubr.msk.f32.gmra.mrb[76].mxu1 %vm18702_vm7, %v15748_v48  ;;  %vm18718_vm7 = vcmp.lt.s32.totalorder %v18551_v25, 2000  ;;  %v1169_v25 = vld [vmem:[%s12265_s28 + $0x300] sm:$0xff] }
 0x447   : > { %10688 = vmatprep.mubr.msk.f32.mxu1 %vm18703_vm9, %v15775_v35  ;;  %vm18721_vm9 = vcmp.lt.s32.totalorder %v18720_v33, 2000  ;;  %v18769_v33 = vld [vmem:[#allocation140_spill] sm:$0xff] }
 0x44a   : > { %10689 = vmatmul.mubr.msk.f32.gmra.mrb[78].mxu1 %vm18704_vm13, %v15778_v39  ;;  %vm18724_vm13 = vcmp.lt.s32.totalorder %v18723_v28, 2000  ;;  %v18759_v39 = vld [vmem:[#allocation35_spill] sm:$0xff]  ;;  %v1187_v28 = vld [vmem:[%s12265_s28 + $0x390] sm:$0xff] }
 0x44b   : > { %10691 = vmatprep.mubr.msk.f32.mxu1 %vm18705_vm1, %v15805_v60  ;;  %vm18727_vm1 = vcmp.lt.s32.totalorder %v18726_v42, 2000  ;;  %v18761_v60 = vld [vmem:[#allocation132_spill] sm:$0xff] }
 0x44e   : > { %10692 = vmatmul.mubr.msk.f32.gmra.mrb[80].mxu1 %vm18706_vm4, %v15808_v51  ;;  %v1182_v51 = vld [vmem:[%s12265_s28 + $0x368] sm:$0xff] }
 0x44f   : > { %10694 = vmatprep.mubr.msk.f32.mxu1 %vm18707_vm8, %v15835_v2  ;;  %vm18733_vm8 = vcmp.lt.s32.totalorder %v18732_v10, 2000  ;;  %v1183_v2 = vld [vmem:[%s12265_s28 + $0x370] sm:$0xff] }
 0x452   : > { %10695 = vmatmul.mubr.msk.f32.gmra.mrb[82].mxu1 %vm18708_vm2, %v15838_v43 }
 0x453   : > { %10697 = vmatprep.mubr.msk.f32.mxu1 %vm18709_vm3, %v15865_v8  ;;  %vm18738_vm3 = vcmp.lt.s32.totalorder %v18737_v63, 2000 }
 0x456   : > { %10698 = vmatmul.mubr.msk.f32.gmra.mrb[84].mxu1 %vm18710_vm6, %v15868_v9 }
 0x457   : > { %10700 = vmatprep.mubr.msk.f32.mxu1 %vm18711_vm5, %v15895_v45  ;;  %v18763_v45 = vld [vmem:[#allocation135_spill] sm:$0xff] }
 0x45a   : > { %10701 = vmatmul.mubr.msk.f32.gmra.mrb[86].mxu1 %vm18712_vm11, %v15898_v24  ;;  %vm6835_vm11 = vcmask 523264  }
 0x45b   : > { %10703 = vmatprep.mubr.msk.f32.mxu1 %vm1025_vm15, %v15410_v36  ;;  %vm18714_vm15 = vcmp.lt.s32.totalorder %v18527_v52, 2000  ;;  %v1172_v36 = vld [vmem:[%s12265_s28 + $0x318] sm:$0xff]  ;;  %9745 = vmatprep.mubr.msk.f32.mxu0 %vm6835_vm11, %v16173_v16  ;;  %v18747_v52 = vld [vmem:[#allocation23_spill] sm:$0xff] }
 0x45e   : > { %10704 = vmatmul.mubr.msk.f32.gmra.mrb[88].mxu1 %vm1026_vm0, %v15413_v56  ;;  %vm18715_vm0 = vcmp.lt.s32.totalorder %v18537_v59, 2000  ;;  %v1173_v56 = vld [vmem:[%s12265_s28 + $0x320] sm:$0xff]  ;;  %v1174_v59 = vld [vmem:[%s12265_s28 + $0x328] sm:$0xff] }
 0x45f   : > { %10706 = vmatprep.mubr.msk.f32.mxu1 %vm1027_vm14, %v15695_v46  ;;  %vm18716_vm14 = vcmp.lt.s32.totalorder %v18539_v40, 2000  ;;  %v18745_v40 = vld [vmem:[#allocation128_spill] sm:$0xff]  ;;  %v16200_v46 = vld [vmem:[%s17672_s9] ss:$0 sm:$0xff] }
 0x462   : > { %10707 = vmatmul.mubr.msk.f32.gmra.mrb[90].mxu1 %vm1028_vm12, %v15698_v21  ;;  %vm18717_vm12 = vcmp.lt.s32.totalorder %v18549_v34, 2000  ;;  %v18729_v34 = vld [vmem:[#allocation121_spill] sm:$0xff]  ;;  %v18753_v21 = vld [vmem:[#allocation134_spill] sm:$0xff] }
 0x463   : > { %10709 = vmatprep.mubr.msk.f32.mxu1 %vm18713_vm10, %v15725_v23  ;;  %vm18730_vm4 = vcmp.lt.s32.totalorder %v18729_v34, 2000  ;;  %vm18744_vm10 = vcmp.lt.s32.totalorder %v18743_v19, 2000  ;;  %v1176_v23 = vld [vmem:[%s12265_s28 + $0x338] sm:$0xff] }
 0x466   : > { %10710 = vmatmul.mubr.msk.f32.gmra.mrb[92].mxu1 %vm18714_vm15, %v15728_v15  ;;  %v18741_v15 = vld [vmem:[#allocation126_spill] sm:$0xff]  ;;  %vm18746_vm15 = vcmp.lt.s32.totalorder %v18745_v40, 2000 }
 0x467   : > { %10712 = vmatprep.mubr.msk.f32.mxu1 %vm18715_vm0, %v15755_v61  ;;  %v18739_v61 = vld [vmem:[#allocation125_spill] sm:$0xff]  ;;  %vm18742_vm5 = vcmp.lt.s32.totalorder %v18741_v15, 2000  ;;  %vm18748_vm0 = vcmp.lt.s32.totalorder %v18747_v52, 2000 }
 0x468   : > { %vm18740_vm6 = vcmp.lt.s32.totalorder %v18739_v61, 2000 }
 0x46a   : > { %10713 = vmatmul.mubr.msk.f32.gmra.mrb[94].mxu1 %vm18716_vm14, %v15758_v32  ;;  %vm18750_vm14 = vcmp.lt.s32.totalorder %v18749_v5, 2000 }
 0x46b   : > { %10715 = vmatprep.mubr.msk.f32.mxu1 %vm18717_vm12, %v15785_v17  ;;  %v18735_v17 = vld [vmem:[#allocation123_spill] sm:$0xff]  ;;  %vm18752_vm12 = vcmp.lt.s32.totalorder %v18751_v44, 2000 }
 0x46c   : > { %vm18736_vm2 = vcmp.lt.s32.totalorder %v18735_v17, 2000  ;;  %v1188_v17 = vld [vmem:[%s12265_s28 + $0x398] sm:$0xff] }
 0x46e   : > { %10716 = vmatmul.mubr.msk.f32.gmra.mrb[96].mxu1 %vm18718_vm7, %v15788_v37  ;;  %vm18754_vm7 = vcmp.lt.s32.totalorder %v18753_v21, 2000 }
 0x46f   : > { %10718 = vmatprep.mubr.msk.f32.mxu1 %vm18721_vm9, %v18719_v50  ;;  %vm18756_vm9 = vcmp.lt.s32.totalorder %v18755_v30, 2000 }
 0x472   : > { %10719 = vmatmul.mubr.msk.f32.gmra.mrb[98].mxu1 %vm18724_vm13, %v18722_v27  ;;  %vm18758_vm13 = vcmp.lt.s32.totalorder %v18757_v26, 2000  ;;  %v1186_v27 = vld [vmem:[%s12265_s28 + $0x388] sm:$0xff] }
 0x473   : > { %10721 = vmatprep.mubr.msk.f32.mxu1 %vm18727_vm1, %v18725_v53  ;;  %vm18760_vm1 = vcmp.lt.s32.totalorder %v18759_v39, 2000 }
 0x476   : > { %10722 = vmatmul.mubr.msk.f32.gmra.mrb[100].mxu1 %vm18730_vm4, %v18728_v22  ;;  %vm18762_vm4 = vcmp.lt.s32.totalorder %v18761_v60, 2000 }
 0x477   : > { %10724 = vmatprep.mubr.msk.f32.mxu1 %vm18733_vm8, %v18731_v31  ;;  %vm18764_vm8 = vcmp.lt.s32.totalorder %v18763_v45, 2000  ;;  %v18771_v31 = vld [vmem:[#allocation144_spill] sm:$0xff] }
 0x47a   : > { %10725 = vmatmul.mubr.msk.f32.gmra.mrb[102].mxu1 %vm18736_vm2, %v18734_v14  ;;  %vm18766_vm2 = vcmp.lt.s32.totalorder %v18765_v62, 2000  ;;  %v18773_v14 = vld [vmem:[#allocation145_spill] sm:$0xff] }
 0x47b   : > { %10727 = vmatprep.mubr.msk.f32.mxu1 %vm18738_vm3, %v1169_v25  ;;  %vm18768_vm3 = vcmp.lt.s32.totalorder %v18767_v4, 2000 }
 0x47e   : > { %10728 = vmatmul.mubr.msk.f32.gmra.mrb[104].mxu1 %vm18740_vm6, %v1170_v38  ;;  %vm18770_vm6 = vcmp.lt.s32.totalorder %v18769_v33, 2000  ;;  %v1189_v38 = vld [vmem:[%s12265_s28 + $0x3a0] sm:$0xff] }
 0x47f   : > { %10730 = vmatprep.mubr.msk.f32.mxu1 %vm18742_vm5, %v1171_v57  ;;  %vm18772_vm5 = vcmp.lt.s32.totalorder %v18771_v31, 2000 }
 0x482   : > { %10731 = vmatmul.mubr.msk.f32.gmra.mrb[106].mxu1 %vm18744_vm10, %v1172_v36  ;;  %vm18774_vm10 = vcmp.lt.s32.totalorder %v18773_v14, 2000 }
 0x483   : > { %10733 = vmatprep.mubr.msk.f32.mxu1 %vm18746_vm15, %v1173_v56 }
 0x486   : > { %10734 = vmatmul.mubr.msk.f32.gmra.mrb[108].mxu1 %vm18748_vm0, %v1174_v59 }
 0x487   : > { %10736 = vmatprep.mubr.msk.f32.mxu1 %vm18750_vm14, %v1175_v11 }
 0x48a   : > { %10737 = vmatmul.mubr.msk.f32.gmra.mrb[110].mxu1 %vm18752_vm12, %v1176_v23  ;;  %v18775_v23 = vld [vmem:[#allocation149_spill] sm:$0xff] }
 0x48b   : > { %10739 = vmatprep.mubr.msk.f32.mxu1 %vm18754_vm7, %v1177_v41  ;;  %vm18776_vm15 = vcmp.lt.s32.totalorder %v18775_v23, 2000 }
 0x48e   : > { %10740 = vmatmul.mubr.msk.f32.gmra.mrb[112].mxu1 %vm18756_vm9, %v1178_v12 }
 0x48f   : > { %10742 = vmatprep.mubr.msk.f32.mxu1 %vm18758_vm13, %v1179_v47  ;;  %v18777_v47 = vld [vmem:[#allocation150_spill] sm:$0xff] }
 0x490   : > { %vm18778_vm0 = vcmp.lt.s32.totalorder %v18777_v47, 2000 }
 0x491   : > { %v10585_v48 = vpop.f32.mrb[8].mxu1 }
 0x492   : > { %v6577_v32 = vadd.f32 %v10585_v48, %v16200_v46  ;;  %v5930_v35 = vpop.f32.mrb[9].mxu1  ;;  %10743 = vmatmul.mubr.msk.f32.gmra.mrb[114].mxu1 %vm18760_vm1, %v1180_v55  ;;  %v1190_v55 = vld [vmem:[%s12265_s28 + $0x3a8] sm:$0xff] }
 0x493   : > { %v6576_v37 = vadd.f32 %v16200_v46, %v5930_v35  ;;  %10745 = vmatprep.mubr.msk.f32.mxu1 %vm18762_vm4, %v1181_v49  ;;  %v1191_v49 = vld [vmem:[%s12265_s28 + $0x3b0] sm:$0xff] }
 0x494   : > { %11610 = vtanh.f32 %v6577_v32 }
 0x495   : > { %11612 = vtanh.f32 %v6576_v37  ;;  %v10588_v43 = vpop.f32.mrb[10].mxu1 }
 0x496   : > { %v6579_v8 = vadd.f32 %v10588_v43, %v16200_v46  ;;  %v5940_v9 = vpop.f32.mrb[11].mxu1  ;;  %10746 = vmatmul.mubr.msk.f32.gmra.mrb[116].mxu1 %vm18764_vm8, %v1182_v51 }
 0x497   : > { %v6578_v24 = vadd.f32 %v16200_v46, %v5940_v9  ;;  %10748 = vmatprep.mubr.msk.f32.mxu1 %vm18766_vm2, %v1183_v2  ;;  %v18779_v2 = vld [vmem:[#allocation153_spill] sm:$0xff]  ;;  %v18781_v9 = vld [vmem:[#allocation154_spill] sm:$0xff] }
 0x498   : > { %11614 = vtanh.f32 %v6579_v8  ;;  %vm18780_vm14 = vcmp.lt.s32.totalorder %v18779_v2, 2000  ;;  %vm18782_vm12 = vcmp.lt.s32.totalorder %v18781_v9, 2000 }
 0x499   : > { %11616 = vtanh.f32 %v6578_v24  ;;  %v10591_v20 = vpop.f32.mrb[12].mxu1  ;;  %v1192_v24 = vld [vmem:[%s12265_s28 + $0x3b8] sm:$0xff] }
 0x49a   : > { %v6581_v3 = vadd.f32 %v10591_v20, %v16200_v46  ;;  %v5950_v13 = vpop.f32.mrb[13].mxu1  ;;  %10749 = vmatmul.mubr.msk.f32.gmra.mrb[118].mxu1 %vm18768_vm3, %v1184_v54  ;;  %v1193_v54 = vld [vmem:[%s12265_s28 + $0x3c0] sm:$0xff] }
 0x49b   : > { %v6580_v50 = vadd.f32 %v16200_v46, %v5950_v13  ;;  %10751 = vmatprep.mubr.msk.f32.mxu1 %vm18770_vm6, %v1185_v29  ;;  %v18797_v29 = vld [vmem:[#allocation33_spill] sm:$0xff] }
 0x49c   : > { %11618 = vtanh.f32 %v6581_v3  ;;  %vm18798_vm3 = vcmp.lt.s32.totalorder %v18797_v29, 2000 }
 0x49d   : > { %11620 = vtanh.f32 %v6580_v50  ;;  %v10594_v53 = vpop.f32.mrb[14].mxu1 }
 0x49e   : > { %v16230_v42 = vpop.eup %11610  ;;  %v6583_v22 = vadd.f32 %v10594_v53, %v16200_v46  ;;  %v5960_v34 = vpop.f32.mrb[15].mxu1  ;;  %10752 = vmatmul.mubr.msk.f32.gmra.mrb[120].mxu1 %vm18772_vm5, %v1186_v27  ;;  %v18783_v27 = vld [vmem:[#allocation157_spill] sm:$0xff]  ;;  %vm16341_vm5 = vmpackc.low %vm6835_vm11, %vm6835_vm11 }
 0x49f   : > { %v16235_v10 = vpop.eup %11612  ;;  %v6582_v25 = vadd.f32 %v16200_v46, %v5960_v34  ;;  %10754 = vmatprep.mubr.msk.f32.mxu1 %vm18774_vm10, %v1187_v28  ;;  %vm18784_vm7 = vcmp.lt.s32.totalorder %v18783_v27, 2000  ;;  %v1194_v34 = vld [vmem:[%s12265_s28 + $0x3c8] sm:$0xff] }
 0x4a0   : > { %11622 = vtanh.f32 %v6583_v22  ;;  %v18785_v22 = vld [vmem:[#allocation22_spill] sm:$0xff]  ;;  %v18803_v45 = vpack.c.bf16 %v16230_v42, %v16235_v10 }
 0x4a1   : > { %11624 = vtanh.f32 %v6582_v25  ;;  %v10597_v36 = vpop.f32.mrb[16].mxu1  ;;  %vm18786_vm9 = vcmp.lt.s32.totalorder %v18785_v22, 2000  ;;  %v1195_v25 = vld [vmem:[%s12265_s28 + $0x3d0] sm:$0xff] }
 0x4a2   : > { %v16244_v56 = vpop.eup %11614  ;;  %v6585_v59 = vadd.f32 %v10597_v36, %v16200_v46  ;;  %v5970_v11 = vpop.f32.mrb[17].mxu1  ;;  %10755 = vmatmul.mubr.msk.f32.gmra.mrb[122].mxu1 %vm18776_vm15, %v1188_v17  ;;  %v18795_v17 = vld [vmem:[#allocation141_spill] sm:$0xff] }
 0x4a3   : > { %v16249_v41 = vpop.eup %11616  ;;  %v6584_v12 = vadd.f32 %v16200_v46, %v5970_v11  ;;  %10757 = vmatprep.mubr.msk.f32.mxu1 %vm18778_vm0, %v1189_v38  ;;  %vm18796_vm2 = vcmp.lt.s32.totalorder %v18795_v17, 2000 }
 0x4a4   : > { %11626 = vtanh.f32 %v6585_v59 }
 0x4a5   : > { %11628 = vtanh.f32 %v6584_v12  ;;  %v10600_v32 = vpop.f32.mrb[18].mxu1  ;;  %v18787_v12 = vld [vmem:[#allocation129_spill] sm:$0xff] }
 0x4a6   : > { %v16258_v35 = vpop.eup %11618  ;;  %v6587_v37 = vadd.f32 %v10600_v32, %v16200_v46  ;;  %v5980_v51 = vpop.f32.mrb[19].mxu1  ;;  %10758 = vmatmul.mubr.msk.f32.gmra.mrb[124].mxu1 %vm18780_vm14, %v1190_v55  ;;  %vm18788_vm13 = vcmp.lt.s32.totalorder %v18787_v12, 2000  ;;  %v18789_v32 = vld [vmem:[#allocation25_spill] sm:$0xff] }
 0x4a7   : > { %v16263_v43 = vpop.eup %11620  ;;  %v6586_v8 = vadd.f32 %v16200_v46, %v5980_v51  ;;  %10760 = vmatprep.mubr.msk.f32.mxu1 %vm18782_vm12, %v1191_v49  ;;  %vm18790_vm1 = vcmp.lt.s32.totalorder %v18789_v32, 2000  ;;  %v1197_v51 = vld [vmem:[%s12265_s28 + $0x3e0] sm:$0xff] }
 0x4a8   : > { %11630 = vtanh.f32 %v6587_v37  ;;  %v1196_v37 = vld [vmem:[%s12265_s28 + $0x3d8] sm:$0xff] }
 0x4a9   : > { %11632 = vtanh.f32 %v6586_v8  ;;  %v10603_v20 = vpop.f32.mrb[20].mxu1 }
 0x4aa   : > { %v16272_v3 = vpop.eup %11622  ;;  %v6589_v13 = vadd.f32 %v10603_v20, %v16200_v46  ;;  %v5990_v50 = vpop.f32.mrb[21].mxu1  ;;  %10761 = vmatmul.mubr.msk.f32.gmra.mrb[126].mxu1 %vm18784_vm7, %v1192_v24  ;;  %vm7603_vm7 = vcmask 1040384  }
 0x4ab   : > { %v16277_v28 = vpop.eup %11624  ;;  %v6588_v53 = vadd.f32 %v16200_v46, %v5990_v50  ;;  %10763 = vmatprep.mubr.msk.f32.mxu1 %vm18786_vm9, %v1193_v54  ;;  %v18791_v50 = vld [vmem:[#allocation131_spill] sm:$0xff] }
 0x4ac   : > { %11634 = vtanh.f32 %v6589_v13  ;;  %vm18792_vm4 = vcmp.lt.s32.totalorder %v18791_v50, 2000 }
 0x4ad   : > { %11636 = vtanh.f32 %v6588_v53  ;;  %v10606_v38 = vpop.f32.mrb[22].mxu1 }
 0x4ae   : > { %v16286_v36 = vpop.eup %11626  ;;  %v6591_v59 = vadd.f32 %v10606_v38, %v16200_v46  ;;  %v6000_v11 = vpop.f32.mrb[23].mxu1  ;;  %10764 = vmatmul.mubr.msk.f32.gmra.mrb[128].mxu1 %vm18788_vm13, %v1194_v34  ;;  %v1198_v38 = vld [vmem:[%s12265_s28 + $0x3e8] sm:$0xff] }
 0x4af   : > { %v16291_v55 = vpop.eup %11628  ;;  %v6590_v49 = vadd.f32 %v16200_v46, %v6000_v11  ;;  %10766 = vmatprep.mubr.msk.f32.mxu1 %vm18790_vm1, %v1195_v25  ;;  %v18793_v25 = vld [vmem:[#allocation29_spill] sm:$0xff] }
 0x4b0   : > { %11638 = vtanh.f32 %v6591_v59  ;;  %vm18794_vm8 = vcmp.lt.s32.totalorder %v18793_v25, 2000  ;;  %v1199_v59 = vld [vmem:[%s12265_s28 + $0x3f0] sm:$0xff] }
 0x4b1   : > { %11640 = vtanh.f32 %v6590_v49  ;;  %v10609_v24 = vpop.f32.mrb[24].mxu1 }
 0x4b2   : > { %v16300_v54 = vpop.eup %11630  ;;  %v6593_v20 = vadd.f32 %v10609_v24, %v16200_v46  ;;  %v6010_v13 = vpop.f32.mrb[25].mxu1  ;;  %10767 = vmatmul.mubr.msk.f32.gmra.mrb[130].mxu1 %vm18792_vm4, %v1196_v37 }
 0x4b3   : > { %v16305_v53 = vpop.eup %11632  ;;  %v6592_v34 = vadd.f32 %v16200_v46, %v6010_v13  ;;  %10769 = vmatprep.mubr.msk.f32.mxu1 %vm18794_vm8, %v1197_v51 }
 0x4b4   : > { %11642 = vtanh.f32 %v6593_v20  ;;  %v1200_v20 = vld [vmem:[%s12265_s28 + $0x3f8] sm:$0xff] }
 0x4b5   : > { %11644 = vtanh.f32 %v6592_v34  ;;  %v10612_v49 = vpop.f32.mrb[26].mxu1 }
 0x4b6   : > { %v16314_v24 = vpop.eup %11634  ;;  %v6595_v37 = vadd.f32 %v10612_v49, %v16200_v46  ;;  %v6020_v8 = vpop.f32.mrb[27].mxu1  ;;  %10770 = vmatmul.mubr.msk.f32.gmra.mrb[132].mxu1 %vm18796_vm2, %v1198_v38  ;;  %v18799_v38 = vld [vmem:[#allocation156_spill] sm:$0xff] }
 0x4b7   : > { %v16319_v13 = vpop.eup %11636  ;;  %v6594_v51 = vadd.f32 %v16200_v46, %v6020_v8  ;;  %10772 = vmatprep.mubr.msk.f32.mxu1 %vm18798_vm3, %v1199_v59  ;;  %vm18800_vm6 = vcmp.lt.s32.totalorder %v18799_v38, 2000 }
 0x4b8   : > { %11646 = vtanh.f32 %v6595_v37 }
 0x4b9   : > { %11648 = vtanh.f32 %v6594_v51  ;;  %v10615_v11 = vpop.f32.mrb[28].mxu1 }
 0x4ba   : > { %v16327_v48 = vpop.eup %11638  ;;  %v6597_v49 = vadd.f32 %v10615_v11, %v16200_v46  ;;  %v6030_v57 = vpop.f32.mrb[29].mxu1  ;;  %10773 = vmatmul.mubr.msk.f32.gmra.mrb[134].mxu1 %vm18800_vm6, %v1200_v20 }
 0x4bb   : > { %v16332_v4 = vpop.eup %11640  ;;  %v6596_v8 = vadd.f32 %v16200_v46, %v6030_v57 }
 0x4bc   : > { %11650 = vtanh.f32 %v6597_v49 }
 0x4bd   : > { %11652 = vtanh.f32 %v6596_v8  ;;  %v10618_v37 = vpop.f32.mrb[30].mxu1 }
 0x4be   : > { %v11643_v51 = vpop.eup %11642  ;;  %v6599_v34 = vadd.f32 %v10618_v37, %v16200_v46  ;;  %v6040_v62 = vpop.f32.mrb[31].mxu1 }
 0x4bf   : > { %v11645_v29 = vpop.eup %11644  ;;  %v6598_v11 = vadd.f32 %v16200_v46, %v6040_v62 }
 0x4c0   : > { %11654 = vtanh.f32 %v6599_v34  ;;  %v10869_v57 = vpack.c.bf16 %v11643_v51, %v11645_v29 }
 0x4c1   : > { %11656 = vtanh.f32 %v6598_v11  ;;  %v10621_v49 = vpop.f32.mrb[32].mxu1 }
 0x4c2   : > { %v11647_v59 = vpop.eup %11646  ;;  %v6601_v8 = vadd.f32 %v10621_v49, %v16200_v46  ;;  %v6050_v38 = vpop.f32.mrb[33].mxu1  ;;  %10871 = vmatprep.subr.msk.bf16.mxu0 %vm16341_vm5, %v10869_v57 }
 0x4c3   : > { %v11649_v37 = vpop.eup %11648  ;;  %v6600_v62 = vadd.f32 %v16200_v46, %v6050_v38  ;;  %10874 = vmatpush3.bf16.xpose.msk.msra.mxu0 %vm16341_vm5, %v18803_v45 }
 0x4c4   : > { %11658 = vtanh.f32 %v6601_v8  ;;  %v10875_v29 = vpack.c.bf16 %v11647_v59, %v11649_v37 }
 0x4c5   : > { %11660 = vtanh.f32 %v6600_v62  ;;  %v10624_v34 = vpop.f32.mrb[34].mxu1  ;;  %v18804_v62 = vpack.c.bf16 %v16244_v56, %v16249_v41 }
 0x4c6   : > { %v11651_v51 = vpop.eup %11650  ;;  %v6603_v11 = vadd.f32 %v10624_v34, %v16200_v46  ;;  %v6060_v49 = vpop.f32.mrb[35].mxu1  ;;  %10877 = vmatprep.subr.msk.bf16.mxu0 %vm16341_vm5, %v10875_v29 }
 0x4c7   : > { %v11653_v57 = vpop.eup %11652  ;;  %v6602_v38 = vadd.f32 %v16200_v46, %v6060_v49 }
 0x4c8   : > { %11662 = vtanh.f32 %v6603_v11  ;;  %v10881_v60 = vpack.c.bf16 %v11651_v51, %v11653_v57 }
 0x4c9   : > { %11664 = vtanh.f32 %v6602_v38  ;;  %v10627_v42 = vpop.f32.mrb[36].mxu1 }
 0x4ca   : > { %v11655_v10 = vpop.eup %11654  ;;  %v6605_v45 = vadd.f32 %v10627_v42, %v16200_v46  ;;  %v6070_v59 = vpop.f32.mrb[37].mxu1 }
 0x4cb   : > { %v11657_v8 = vpop.eup %11656  ;;  %v6604_v37 = vadd.f32 %v16200_v46, %v6070_v59  ;;  %10880 = vmatpush3.bf16.xpose.msk.msra.mxu0 %vm16341_vm5, %v18804_v62 }
 0x4cc   : > { %11666 = vtanh.f32 %v6605_v45  ;;  %10883 = vmatprep.subr.msk.bf16.mxu0 %vm16341_vm5, %v10881_v60  ;;  %v10887_v29 = vpack.c.bf16 %v11655_v10, %v11657_v8  ;;  %v18805_v10 = vpack.c.bf16 %v16258_v35, %v16263_v43 }
 0x4cd   : > { %11668 = vtanh.f32 %v6604_v37  ;;  %v10630_v34 = vpop.f32.mrb[38].mxu1 }
 0x4ce   : > { %v11659_v51 = vpop.eup %11658  ;;  %v6607_v11 = vadd.f32 %v10630_v34, %v16200_v46  ;;  %v6080_v49 = vpop.f32.mrb[39].mxu1 }
 0x4cf   : > { %v11661_v57 = vpop.eup %11660  ;;  %v6606_v38 = vadd.f32 %v16200_v46, %v6080_v49 }
 0x4d0   : > { %11670 = vtanh.f32 %v6607_v11  ;;  %v10893_v42 = vpack.c.bf16 %v11659_v51, %v11661_v57 }
 0x4d1   : > { %11672 = vtanh.f32 %v6606_v38  ;;  %v10633_v56 = vpop.f32.mrb[40].mxu1 }
 0x4d2   : > { %v11663_v41 = vpop.eup %11662  ;;  %v6609_v45 = vadd.f32 %v10633_v56, %v16200_v46  ;;  %v6090_v59 = vpop.f32.mrb[41].mxu1 }
 0x4d3   : > { %v11665_v62 = vpop.eup %11664  ;;  %v6608_v60 = vadd.f32 %v16200_v46, %v6090_v59  ;;  %10886 = vmatpush3.bf16.xpose.msk.msra.mxu0 %vm16341_vm5, %v18805_v10  ;;  %v18806_v59 = vpack.c.bf16 %v16272_v3, %v16277_v28 }
 0x4d4   : > { %11674 = vtanh.f32 %v6609_v45  ;;  %10889 = vmatprep.subr.msk.bf16.mxu0 %vm16341_vm5, %v10887_v29  ;;  %v10899_v8 = vpack.c.bf16 %v11663_v41, %v11665_v62 }
 0x4d5   : > { %11676 = vtanh.f32 %v6608_v60  ;;  %v10636_v37 = vpop.f32.mrb[42].mxu1 }
 0x4d6   : > { %v11667_v34 = vpop.eup %11666  ;;  %v6611_v51 = vadd.f32 %v10636_v37, %v16200_v46  ;;  %v6100_v11 = vpop.f32.mrb[43].mxu1 }
 0x4d7   : > { %v11669_v49 = vpop.eup %11668  ;;  %v6610_v57 = vadd.f32 %v16200_v46, %v6100_v11 }
 0x4d8   : > { %11678 = vtanh.f32 %v6611_v51  ;;  %v10905_v38 = vpack.c.bf16 %v11667_v34, %v11669_v49 }
 0x4d9   : > { %11680 = vtanh.f32 %v6610_v57  ;;  %v10639_v35 = vpop.f32.mrb[44].mxu1 }
 0x4da   : > { %v16380_v43 = vpop.eup %11670  ;;  %v6613_v56 = vadd.f32 %v10639_v35, %v16200_v46  ;;  %v6110_v45 = vpop.f32.mrb[45].mxu1 }
 0x4db   : > { %v16383_v29 = vpop.eup %11672  ;;  %v6612_v41 = vadd.f32 %v16200_v46, %v6110_v45  ;;  %10892 = vmatpush3.bf16.xpose.msk.msra.mxu0 %vm16341_vm5, %v18806_v59 }
 0x4dc   : > { %11682 = vtanh.f32 %v6613_v56  ;;  %10895 = vmatprep.subr.msk.bf16.mxu0 %vm16341_vm5, %v10893_v42  ;;  %v10911_v62 = vpack.c.bf16 %v16380_v43, %v16383_v29  ;;  %v18807_v56 = vpack.c.bf16 %v16286_v36, %v16291_v55  ;;  %v18810_v55 = vpack.c.bf16 %v16327_v48, %v16332_v4 }
 0x4dd   : > { %11684 = vtanh.f32 %v6612_v41  ;;  %v10642_v60 = vpop.f32.mrb[46].mxu1 }
 0x4de   : > { %v16395_v10 = vpop.eup %11674  ;;  %v6615_v37 = vadd.f32 %v10642_v60, %v16200_v46  ;;  %v6120_v34 = vpop.f32.mrb[47].mxu1 }
 0x4df   : > { %v16398_v51 = vpop.eup %11676  ;;  %v6614_v3 = vadd.f32 %v16200_v46, %v6120_v34 }
 0x4e0   : > { %11686 = vtanh.f32 %v6615_v37 }
 0x4e1   : > { %11688 = vtanh.f32 %v6614_v3  ;;  %v10645_v42 = vpop.f32.mrb[48].mxu1 }
 0x4e2   : > { %v16403_v11 = vpop.eup %11678  ;;  %v6617_v49 = vadd.f32 %v10645_v42, %v16200_v46  ;;  %v6130_v57 = vpop.f32.mrb[49].mxu1 }
 0x4e3   : > { %v16406_v35 = vpop.eup %11680  ;;  %v6616_v43 = vadd.f32 %v16200_v46, %v6130_v57  ;;  %10898 = vmatpush3.bf16.xpose.msk.msra.mxu0 %vm16341_vm5, %v18807_v56  ;;  %v18809_v56 = vpack.c.bf16 %v16314_v24, %v16319_v13 }
 0x4e4   : > { %11690 = vtanh.f32 %v6617_v49  ;;  %10901 = vmatprep.subr.msk.bf16.mxu0 %vm16341_vm5, %v10899_v8 }
 0x4e5   : > { %11692 = vtanh.f32 %v6616_v43  ;;  %v10648_v29 = vpop.f32.mrb[50].mxu1  ;;  %v18808_v43 = vpack.c.bf16 %v16300_v54, %v16305_v53 }
 0x4e6   : > { %v16418_v41 = vpop.eup %11682  ;;  %v6619_v59 = vadd.f32 %v10648_v29, %v16200_v46  ;;  %v6140_v60 = vpop.f32.mrb[51].mxu1 }
 0x4e7   : > { %v16421_v37 = vpop.eup %11684  ;;  %v6618_v36 = vadd.f32 %v16200_v46, %v6140_v60 }
 0x4e8   : > { %11694 = vtanh.f32 %v6619_v59 }
 0x4e9   : > { %11696 = vtanh.f32 %v6618_v36  ;;  %v10651_v8 = vpop.f32.mrb[52].mxu1 }
 0x4ea   : > { %v16426_v34 = vpop.eup %11686  ;;  %v6621_v3 = vadd.f32 %v10651_v8, %v16200_v46  ;;  %v6150_v42 = vpop.f32.mrb[53].mxu1 }
 0x4eb   : > { %v16429_v49 = vpop.eup %11688  ;;  %v6620_v57 = vadd.f32 %v16200_v46, %v6150_v42  ;;  %10904 = vmatpush3.bf16.xpose.msk.msra.mxu0 %vm16341_vm5, %v18808_v43 }
 0x4ec   : > { %11698 = vtanh.f32 %v6621_v3  ;;  %10907 = vmatprep.subr.msk.bf16.mxu0 %vm16341_vm5, %v10905_v38 }
 0x4ed   : > { %11700 = vtanh.f32 %v6620_v57  ;;  %v10654_v29 = vpop.f32.mrb[54].mxu1 }
 0x4ee   : > { %v16441_v59 = vpop.eup %11690  ;;  %v6623_v60 = vadd.f32 %v10654_v29, %v16200_v46  ;;  %v6160_v36 = vpop.f32.mrb[55].mxu1 }
 0x4ef   : > { %v16444_v8 = vpop.eup %11692  ;;  %v6622_v54 = vadd.f32 %v16200_v46, %v6160_v36 }
 0x4f0   : > { %11702 = vtanh.f32 %v6623_v60 }
 0x4f1   : > { %11704 = vtanh.f32 %v6622_v54  ;;  %v10657_v38 = vpop.f32.mrb[56].mxu1 }
 0x4f2   : > { %v16449_v3 = vpop.eup %11694  ;;  %v6625_v42 = vadd.f32 %v10657_v38, %v16200_v46  ;;  %v6170_v57 = vpop.f32.mrb[57].mxu1 }
 0x4f3   : > { %v16452_v43 = vpop.eup %11696  ;;  %v6624_v29 = vadd.f32 %v16200_v46, %v6170_v57  ;;  %10910 = vmatpush3.bf16.xpose.msk.msra.mxu0 %vm16341_vm5, %v18809_v56 }
 0x4f4   : > { %11706 = vtanh.f32 %v6625_v42  ;;  %10913 = vmatprep.subr.msk.bf16.mxu0 %vm16341_vm5, %v10911_v62 }
 0x4f5   : > { %11708 = vtanh.f32 %v6624_v29  ;;  %v10660_v36 = vpop.f32.mrb[58].mxu1 }
 0x4f6   : > { %v16464_v54 = vpop.eup %11698  ;;  %v6627_v38 = vadd.f32 %v10660_v36, %v16200_v46  ;;  %v6180_v57 = vpop.f32.mrb[59].mxu1 }
 0x4f7   : > { %v16467_v53 = vpop.eup %11700  ;;  %v6626_v24 = vadd.f32 %v16200_v46, %v6180_v57 }
 0x4f8   : > { %11710 = vtanh.f32 %v6627_v38 }
 0x4f9   : > { %11712 = vtanh.f32 %v6626_v24  ;;  %v10663_v62 = vpop.f32.mrb[60].mxu1 }
 0x4fa   : > { %v16472_v56 = vpop.eup %11702  ;;  %v6629_v42 = vadd.f32 %v10663_v62, %v16200_v46  ;;  %v6190_v29 = vpop.f32.mrb[61].mxu1 }
 0x4fb   : > { %v16475_v60 = vpop.eup %11704  ;;  %v6628_v36 = vadd.f32 %v16200_v46, %v6190_v29  ;;  %10916 = vmatpush3.bf16.xpose.msk.msra.mxu0 %vm16341_vm5, %v18810_v55 }
 0x4fc   : > { %11714 = vtanh.f32 %v6629_v42 }
 0x4fd   : > { %11716 = vtanh.f32 %v6628_v36  ;;  %v10666_v57 = vpop.f32.mrb[62].mxu1 }
 0x4fe   : > { %v11707_v24 = vpop.eup %11706  ;;  %v6631_v62 = vadd.f32 %v10666_v57, %v16200_v46  ;;  %v6200_v13 = vpop.f32.mrb[63].mxu1 }
 0x4ff   : > { %v11709_v45 = vpop.eup %11708  ;;  %v6630_v28 = vadd.f32 %v16200_v46, %v6200_v13  ;;  %v18811_v13 = vpack.c.bf16 %v16395_v10, %v16398_v51 }
 0x500   : > { %11718 = vtanh.f32 %v6631_v62  ;;  %v10917_v29 = vpack.c.bf16 %v11707_v24, %v11709_v45 }
 0x501   : > { %11720 = vtanh.f32 %v6630_v28  ;;  %v10669_v4 = vpop.f32.mrb[64].mxu1 }
 0x502   : > { %v11711_v48 = vpop.eup %11710  ;;  %v6633_v55 = vadd.f32 %v10669_v4, %v16200_v46  ;;  %v6210_v42 = vpop.f32.mrb[65].mxu1  ;;  %10919 = vmatprep.subr.msk.bf16.mxu0 %vm16341_vm5, %v10917_v29  ;;  %9746 = vmatmul.mubr.msk.f32.vlgmr.msra.gmra.mrb[120].mxu0 %vm6835_vm11, %v16173_v16 }
 0x503   : > { %v11713_v36 = vpop.eup %11712  ;;  %v6632_v57 = vadd.f32 %v16200_v46, %v6210_v42  ;;  %10922 = vmatpush3.bf16.xpose.msk.msra.mxu0 %vm16341_vm5, %v18811_v13  ;;  %9779 = vmatprep.mubr.msk.f32.mxu0 %vm6835_vm11, %v16173_v16 }
 0x504   : > { %11722 = vtanh.f32 %v6633_v55  ;;  %v10923_v28 = vpack.c.bf16 %v11711_v48, %v11713_v36 }
 0x505   : > { %11724 = vtanh.f32 %v6632_v57  ;;  %v10672_v45 = vpop.f32.mrb[66].mxu1 }
 0x506   : > { %v11715_v24 = vpop.eup %11714  ;;  %v6635_v62 = vadd.f32 %v10672_v45, %v16200_v46  ;;  %v6220_v29 = vpop.f32.mrb[67].mxu1  ;;  %10925 = vmatprep.subr.msk.bf16.mxu0 %vm16341_vm5, %v10923_v28  ;;  %v18812_v45 = vpack.c.bf16 %v16403_v11, %v16406_v35 }
 0x507   : > { %v11717_v4 = vpop.eup %11716  ;;  %v6634_v10 = vadd.f32 %v16200_v46, %v6220_v29 }
 0x508   : > { %11726 = vtanh.f32 %v6635_v62  ;;  %v10929_v51 = vpack.c.bf16 %v11715_v24, %v11717_v4 }
 0x509   : > { %11728 = vtanh.f32 %v6634_v10  ;;  %v10675_v42 = vpop.f32.mrb[68].mxu1 }
 0x50a   : > { %v11719_v13 = vpop.eup %11718  ;;  %v6637_v55 = vadd.f32 %v10675_v42, %v16200_v46  ;;  %v6230_v48 = vpop.f32.mrb[69].mxu1 }
 0x50b   : > { %v11721_v36 = vpop.eup %11720  ;;  %v6636_v57 = vadd.f32 %v16200_v46, %v6230_v48  ;;  %10928 = vmatpush3.bf16.xpose.msk.msra.mxu0 %vm16341_vm5, %v18812_v45 }
 0x50c   : > { %11730 = vtanh.f32 %v6637_v55  ;;  %10931 = vmatprep.subr.msk.bf16.mxu0 %vm16341_vm5, %v10929_v51  ;;  %v10935_v28 = vpack.c.bf16 %v11719_v13, %v11721_v36  ;;  %v18813_v13 = vpack.c.bf16 %v16418_v41, %v16421_v37 }
 0x50d   : > { %11732 = vtanh.f32 %v6636_v57  ;;  %v10678_v24 = vpop.f32.mrb[70].mxu1 }
 0x50e   : > { %v11723_v62 = vpop.eup %11722  ;;  %v6639_v29 = vadd.f32 %v10678_v24, %v16200_v46  ;;  %v6240_v4 = vpop.f32.mrb[71].mxu1 }
 0x50f   : > { %v11725_v10 = vpop.eup %11724  ;;  %v6638_v42 = vadd.f32 %v16200_v46, %v6240_v4 }
 0x510   : > { %11734 = vtanh.f32 %v6639_v29  ;;  %v10941_v48 = vpack.c.bf16 %v11723_v62, %v11725_v10 }
 0x511   : > { %11736 = vtanh.f32 %v6638_v42  ;;  %v10681_v11 = vpop.f32.mrb[72].mxu1 }
 0x512   : > { %v11727_v35 = vpop.eup %11726  ;;  %v6641_v55 = vadd.f32 %v10681_v11, %v16200_v46  ;;  %v6250_v45 = vpop.f32.mrb[73].mxu1 }
 0x513   : > { %v11729_v38 = vpop.eup %11728  ;;  %v6640_v51 = vadd.f32 %v16200_v46, %v6250_v45  ;;  %10934 = vmatpush3.bf16.xpose.msk.msra.mxu0 %vm16341_vm5, %v18813_v13 }
 0x514   : > { %11738 = vtanh.f32 %v6641_v55  ;;  %10937 = vmatprep.subr.msk.bf16.mxu0 %vm16341_vm5, %v10935_v28  ;;  %v10947_v36 = vpack.c.bf16 %v11727_v35, %v11729_v38  ;;  %v18814_v35 = vpack.c.bf16 %v16426_v34, %v16429_v49 }
 0x515   : > { %11740 = vtanh.f32 %v6640_v51  ;;  %v10684_v57 = vpop.f32.mrb[74].mxu1 }
 0x516   : > { %v11731_v24 = vpop.eup %11730  ;;  %v6643_v62 = vadd.f32 %v10684_v57, %v16200_v46  ;;  %v6260_v29 = vpop.f32.mrb[75].mxu1 }
 0x517   : > { %v11733_v4 = vpop.eup %11732  ;;  %v6642_v10 = vadd.f32 %v16200_v46, %v6260_v29 }
 0x518   : > { %11742 = vtanh.f32 %v6643_v62  ;;  %v10953_v42 = vpack.c.bf16 %v11731_v24, %v11733_v4 }
 0x519   : > { %11744 = vtanh.f32 %v6642_v10  ;;  %v10687_v41 = vpop.f32.mrb[76].mxu1 }
 0x51a   : > { %v16526_v37 = vpop.eup %11734  ;;  %v6645_v11 = vadd.f32 %v10687_v41, %v16200_v46  ;;  %v6270_v55 = vpop.f32.mrb[77].mxu1 }
 0x51b   : > { %v16529_v28 = vpop.eup %11736  ;;  %v6644_v38 = vadd.f32 %v16200_v46, %v6270_v55  ;;  %10940 = vmatpush3.bf16.xpose.msk.msra.mxu0 %vm16341_vm5, %v18814_v35 }
 0x51c   : > { %11746 = vtanh.f32 %v6645_v11  ;;  %10943 = vmatprep.subr.msk.bf16.mxu0 %vm16341_vm5, %v10941_v48  ;;  %v10959_v45 = vpack.c.bf16 %v16526_v37, %v16529_v28  ;;  %v18815_v11 = vpack.c.bf16 %v16441_v59, %v16444_v8  ;;  %v18818_v8 = vpack.c.bf16 %v16472_v56, %v16475_v60 }
 0x51d   : > { %11748 = vtanh.f32 %v6644_v38  ;;  %v10690_v51 = vpop.f32.mrb[78].mxu1 }
 0x51e   : > { %v16541_v13 = vpop.eup %11738  ;;  %v6647_v57 = vadd.f32 %v10690_v51, %v16200_v46  ;;  %v6280_v24 = vpop.f32.mrb[79].mxu1 }
 0x51f   : > { %v16544_v62 = vpop.eup %11740  ;;  %v6646_v34 = vadd.f32 %v16200_v46, %v6280_v24 }
 0x520   : > { %11750 = vtanh.f32 %v6647_v57 }
 0x521   : > { %11752 = vtanh.f32 %v6646_v34  ;;  %v10693_v48 = vpop.f32.mrb[80].mxu1 }
 0x522   : > { %v16549_v29 = vpop.eup %11742  ;;  %v6649_v4 = vadd.f32 %v10693_v48, %v16200_v46  ;;  %v6290_v10 = vpop.f32.mrb[81].mxu1 }
 0x523   : > { %v16552_v41 = vpop.eup %11744  ;;  %v6648_v37 = vadd.f32 %v16200_v46, %v6290_v10  ;;  %10946 = vmatpush3.bf16.xpose.msk.msra.mxu0 %vm16341_vm5, %v18815_v11  ;;  %v18817_v11 = vpack.c.bf16 %v16464_v54, %v16467_v53 }
 0x524   : > { %11754 = vtanh.f32 %v6649_v4  ;;  %10949 = vmatprep.subr.msk.bf16.mxu0 %vm16341_vm5, %v10947_v36 }
 0x525   : > { %11756 = vtanh.f32 %v6648_v37  ;;  %v10696_v28 = vpop.f32.mrb[82].mxu1  ;;  %v18816_v37 = vpack.c.bf16 %v16449_v3, %v16452_v43 }
 0x526   : > { %v16564_v38 = vpop.eup %11746  ;;  %v6651_v35 = vadd.f32 %v10696_v28, %v16200_v46  ;;  %v6300_v51 = vpop.f32.mrb[83].mxu1 }
 0x527   : > { %v16567_v57 = vpop.eup %11748  ;;  %v6650_v59 = vadd.f32 %v16200_v46, %v6300_v51 }
 0x528   : > { %11758 = vtanh.f32 %v6651_v35 }
 0x529   : > { %11760 = vtanh.f32 %v6650_v59  ;;  %v10699_v36 = vpop.f32.mrb[84].mxu1 }
 0x52a   : > { %v16572_v24 = vpop.eup %11750  ;;  %v6653_v34 = vadd.f32 %v10699_v36, %v16200_v46  ;;  %v6310_v48 = vpop.f32.mrb[85].mxu1 }
 0x52b   : > { %v16575_v4 = vpop.eup %11752  ;;  %v6652_v10 = vadd.f32 %v16200_v46, %v6310_v48  ;;  %10952 = vmatpush3.bf16.xpose.msk.msra.mxu0 %vm16341_vm5, %v18816_v37 }
 0x52c   : > { %11762 = vtanh.f32 %v6653_v34  ;;  %10955 = vmatprep.subr.msk.bf16.mxu0 %vm16341_vm5, %v10953_v42 }
 0x52d   : > { %11764 = vtanh.f32 %v6652_v10  ;;  %v10702_v28 = vpop.f32.mrb[86].mxu1 }
 0x52e   : > { %v16587_v35 = vpop.eup %11754  ;;  %v6655_v51 = vadd.f32 %v10702_v28, %v16200_v46  ;;  %v6320_v59 = vpop.f32.mrb[87].mxu1 }
 0x52f   : > { %v16590_v36 = vpop.eup %11756  ;;  %v6654_v3 = vadd.f32 %v16200_v46, %v6320_v59 }
 0x530   : > { %11766 = vtanh.f32 %v6655_v51 }
 0x531   : > { %11768 = vtanh.f32 %v6654_v3  ;;  %v10705_v42 = vpop.f32.mrb[88].mxu1 }
 0x532   : > { %v16595_v34 = vpop.eup %11758  ;;  %v6657_v48 = vadd.f32 %v10705_v42, %v16200_v46  ;;  %v6330_v10 = vpop.f32.mrb[89].mxu1 }
 0x533   : > { %v16598_v37 = vpop.eup %11760  ;;  %v6656_v28 = vadd.f32 %v16200_v46, %v6330_v10  ;;  %10958 = vmatpush3.bf16.xpose.msk.msra.mxu0 %vm16341_vm5, %v18817_v11 }
 0x534   : > { %11770 = vtanh.f32 %v6657_v48  ;;  %10961 = vmatprep.subr.msk.bf16.mxu0 %vm16341_vm5, %v10959_v45 }
 0x535   : > { %11772 = vtanh.f32 %v6656_v28  ;;  %v10708_v59 = vpop.f32.mrb[90].mxu1 }
 0x536   : > { %v16610_v3 = vpop.eup %11762  ;;  %v6659_v42 = vadd.f32 %v10708_v59, %v16200_v46  ;;  %v6340_v10 = vpop.f32.mrb[91].mxu1 }
 0x537   : > { %v16613_v43 = vpop.eup %11764  ;;  %v6658_v53 = vadd.f32 %v16200_v46, %v6340_v10 }
 0x538   : > { %11774 = vtanh.f32 %v6659_v42 }
 0x539   : > { %11776 = vtanh.f32 %v6658_v53  ;;  %v10711_v45 = vpop.f32.mrb[92].mxu1 }
 0x53a   : > { %v16618_v11 = vpop.eup %11766  ;;  %v6661_v48 = vadd.f32 %v10711_v45, %v16200_v46  ;;  %v6350_v28 = vpop.f32.mrb[93].mxu1 }
 0x53b   : > { %v16621_v51 = vpop.eup %11768  ;;  %v6660_v59 = vadd.f32 %v16200_v46, %v6350_v28  ;;  %10964 = vmatpush3.bf16.xpose.msk.msra.mxu0 %vm16341_vm5, %v18818_v8 }
 0x53c   : > { %11778 = vtanh.f32 %v6661_v48  ;;  %v11010_v42 = vpack.c.bf16 %v16618_v11, %v16621_v51 }
 0x53d   : > { %11780 = vtanh.f32 %v6660_v59  ;;  %v10714_v10 = vpop.f32.mrb[94].mxu1 }
 0x53e   : > { %v11771_v53 = vpop.eup %11770  ;;  %v6663_v45 = vadd.f32 %v10714_v10, %v16200_v46  ;;  %v6360_v54 = vpop.f32.mrb[95].mxu1 }
 0x53f   : > { %v11773_v55 = vpop.eup %11772  ;;  %v6662_v49 = vadd.f32 %v16200_v46, %v6360_v54  ;;  %v18819_v54 = vpack.c.bf16 %v16541_v13, %v16544_v62 }
 0x540   : > { %11782 = vtanh.f32 %v6663_v45  ;;  %v10965_v28 = vpack.c.bf16 %v11771_v53, %v11773_v55 }
 0x541   : > { %11784 = vtanh.f32 %v6662_v49  ;;  %v10717_v60 = vpop.f32.mrb[96].mxu1 }
 0x542   : > { %v11775_v56 = vpop.eup %11774  ;;  %v6665_v8 = vadd.f32 %v10717_v60, %v16200_v46  ;;  %v6370_v48 = vpop.f32.mrb[97].mxu1  ;;  %10967 = vmatprep.subr.msk.bf16.mxu0 %vm16341_vm5, %v10965_v28  ;;  %9780 = vmatmul.mubr.msk.f32.vlgmr.msra.gmra.mrb[122].mxu0 %vm6835_vm11, %v16173_v16 }
 0x543   : > { %v11777_v59 = vpop.eup %11776  ;;  %v6664_v10 = vadd.f32 %v16200_v46, %v6370_v48  ;;  %10970 = vmatpush3.bf16.xpose.msk.msra.mxu0 %vm16341_vm5, %v18819_v54  ;;  %9813 = vmatprep.mubr.msk.f32.mxu0 %vm6835_vm11, %v16173_v16 }
 0x544   : > { %11786 = vtanh.f32 %v6665_v8  ;;  %v10971_v49 = vpack.c.bf16 %v11775_v56, %v11777_v59 }
 0x545   : > { %11788 = vtanh.f32 %v6664_v10  ;;  %v10720_v55 = vpop.f32.mrb[98].mxu1  ;;  %v18820_v10 = vpack.c.bf16 %v16549_v29, %v16552_v41 }
 0x546   : > { %v11779_v53 = vpop.eup %11778  ;;  %v6667_v45 = vadd.f32 %v10720_v55, %v16200_v46  ;;  %v6380_v28 = vpop.f32.mrb[99].mxu1  ;;  %10973 = vmatprep.subr.msk.bf16.mxu0 %vm16341_vm5, %v10971_v49 }
 0x547   : > { %v11781_v60 = vpop.eup %11780  ;;  %v6666_v13 = vadd.f32 %v16200_v46, %v6380_v28 }
 0x548   : > { %11790 = vtanh.f32 %v6667_v45  ;;  %v10977_v62 = vpack.c.bf16 %v11779_v53, %v11781_v60 }
 0x549   : > { %11792 = vtanh.f32 %v6666_v13  ;;  %v10723_v48 = vpop.f32.mrb[100].mxu1 }
 0x54a   : > { %v11783_v54 = vpop.eup %11782  ;;  %v6669_v16 = vadd.f32 %v10723_v48, %v16200_v46  ;;  %v6390_v56 = vpop.f32.mrb[101].mxu1 }
 0x54b   : > { %v11785_v8 = vpop.eup %11784  ;;  %v6668_v59 = vadd.f32 %v16200_v46, %v6390_v56  ;;  %10976 = vmatpush3.bf16.xpose.msk.msra.mxu0 %vm16341_vm5, %v18820_v10 }
 0x54c   : > { %11794 = vtanh.f32 %v6669_v16  ;;  %10979 = vmatprep.subr.msk.bf16.mxu0 %vm16341_vm5, %v10977_v62  ;;  %v10983_v49 = vpack.c.bf16 %v11783_v54, %v11785_v8  ;;  %v16665_v62 = vld [vmem:[%s17672_s9] ss:$0 sm:$0xff]  ;;  %v18821_v8 = vpack.c.bf16 %v16564_v38, %v16567_v57 }
 0x54d   : > { %11796 = vtanh.f32 %v6668_v59  ;;  %v10726_v55 = vpop.f32.mrb[102].mxu1 }
 0x54e   : > { %v11787_v53 = vpop.eup %11786  ;;  %v6671_v45 = vadd.f32 %v10726_v55, %v16200_v46  ;;  %v6400_v28 = vpop.f32.mrb[103].mxu1 }
 0x54f   : > { %v11789_v60 = vpop.eup %11788  ;;  %v6670_v13 = vadd.f32 %v16200_v46, %v6400_v28 }
 0x550   : > { %11798 = vtanh.f32 %v6671_v45  ;;  %v10989_v48 = vpack.c.bf16 %v11787_v53, %v11789_v60 }
 0x551   : > { %11800 = vtanh.f32 %v6670_v13  ;;  %v10729_v29 = vpop.f32.mrb[104].mxu1 }
 0x552   : > { %v11791_v41 = vpop.eup %11790  ;;  %v6673_v16 = vadd.f32 %v10729_v29, %v16200_v46  ;;  %v6410_v56 = vpop.f32.mrb[105].mxu1 }
 0x553   : > { %v11793_v10 = vpop.eup %11792  ;;  %v6672_v54 = vadd.f32 %v16665_v62, %v6410_v56  ;;  %10982 = vmatpush3.bf16.xpose.msk.msra.mxu0 %vm16341_vm5, %v18821_v8  ;;  %v18822_v56 = vpack.c.bf16 %v16572_v24, %v16575_v4 }
 0x554   : > { %11802 = vtanh.f32 %v6673_v16  ;;  %10985 = vmatprep.subr.msk.bf16.mxu0 %vm16341_vm5, %v10983_v49  ;;  %v10995_v46 = vpack.c.bf16 %v11791_v41, %v11793_v10 }
 0x555   : > { %11804 = vtanh.f32 %v6672_v54  ;;  %v10732_v59 = vpop.f32.mrb[106].mxu1 }
 0x556   : > { %v11795_v55 = vpop.eup %11794  ;;  %v6675_v53 = vadd.f32 %v16665_v62, %v10732_v59  ;;  %v6420_v45 = vpop.f32.mrb[107].mxu1 }
 0x557   : > { %v11797_v28 = vpop.eup %11796  ;;  %v6674_v60 = vadd.f32 %v16665_v62, %v6420_v45 }
 0x558   : > { %11806 = vtanh.f32 %v6675_v53  ;;  %v11001_v13 = vpack.c.bf16 %v11795_v55, %v11797_v28 }
 0x559   : > { %11808 = vtanh.f32 %v6674_v60  ;;  %v10735_v38 = vpop.f32.mrb[108].mxu1 }
 0x55a   : > { %v16677_v57 = vpop.eup %11798  ;;  %v6677_v29 = vadd.f32 %v16665_v62, %v10735_v38  ;;  %v6430_v16 = vpop.f32.mrb[109].mxu1 }
 0x55b   : > { %v16680_v49 = vpop.eup %11800  ;;  %v6676_v41 = vadd.f32 %v16665_v62, %v6430_v16  ;;  %10988 = vmatpush3.bf16.xpose.msk.msra.mxu0 %vm16341_vm5, %v18822_v56 }
 0x55c   : > { %11810 = vtanh.f32 %v6677_v29  ;;  %10991 = vmatprep.subr.msk.bf16.mxu0 %vm16341_vm5, %v10989_v48  ;;  %v11007_v10 = vpack.c.bf16 %v16677_v57, %v16680_v49  ;;  %v18823_v29 = vpack.c.bf16 %v16587_v35, %v16590_v36 }
 0x55d   : > { %11812 = vtanh.f32 %v6676_v41  ;;  %v10738_v54 = vpop.f32.mrb[110].mxu1 }
 0x55e   : > { %v16692_v8 = vpop.eup %11802  ;;  %v6679_v59 = vadd.f32 %v16665_v62, %v10738_v54  ;;  %v6440_v55 = vpop.f32.mrb[111].mxu1 }
 0x55f   : > { %v16695_v53 = vpop.eup %11804  ;;  %v6678_v24 = vadd.f32 %v16665_v62, %v6440_v55 }
 0x560   : > { %11814 = vtanh.f32 %v6679_v59  ;;  %v11016_v4 = vpack.c.bf16 %v16692_v8, %v16695_v53 }
 0x561   : > { %11816 = vtanh.f32 %v6678_v24  ;;  %v10741_v48 = vpop.f32.mrb[112].mxu1 }
 0x562   : > { %v16700_v45 = vpop.eup %11806  ;;  %v6681_v28 = vadd.f32 %v16665_v62, %v10741_v48  ;;  %v6450_v60 = vpop.f32.mrb[113].mxu1 }
 0x563   : > { %v16703_v38 = vpop.eup %11808  ;;  %v6680_v57 = vadd.f32 %v16665_v62, %v6450_v60  ;;  %10994 = vmatpush3.bf16.xpose.msk.msra.mxu0 %vm16341_vm5, %v18823_v29  ;;  %v18825_v29 = vpack.c.bf16 %v16610_v3, %v16613_v43 }
 0x564   : > { %11818 = vtanh.f32 %v6681_v28  ;;  %10997 = vmatprep.subr.msk.bf16.mxu0 %vm16341_vm5, %v10995_v46 }
 0x565   : > { %11820 = vtanh.f32 %v6680_v57  ;;  %v10744_v49 = vpop.f32.mrb[114].mxu1  ;;  %v18824_v57 = vpack.c.bf16 %v16595_v34, %v16598_v37 }
 0x566   : > { %v16715_v41 = vpop.eup %11810  ;;  %v6683_v56 = vadd.f32 %v16665_v62, %v10744_v49  ;;  %v6460_v54 = vpop.f32.mrb[115].mxu1 }
 0x567   : > { %v16718_v59 = vpop.eup %11812  ;;  %v6682_v35 = vadd.f32 %v16665_v62, %v6460_v54 }
 0x568   : > { %11822 = vtanh.f32 %v6683_v56 }
 0x569   : > { %11824 = vtanh.f32 %v6682_v35  ;;  %v10747_v46 = vpop.f32.mrb[116].mxu1 }
 0x56a   : > { %v16723_v55 = vpop.eup %11814  ;;  %v6685_v24 = vadd.f32 %v16665_v62, %v10747_v46  ;;  %v6470_v48 = vpop.f32.mrb[117].mxu1 }
 0x56b   : > { %v16726_v28 = vpop.eup %11816  ;;  %v6684_v60 = vadd.f32 %v16665_v62, %v6470_v48  ;;  %11000 = vmatpush3.bf16.xpose.msk.msra.mxu0 %vm16341_vm5, %v18824_v57 }
 0x56c   : > { %11826 = vtanh.f32 %v6685_v24  ;;  %11003 = vmatprep.subr.msk.bf16.mxu0 %vm16341_vm5, %v11001_v13 }
 0x56d   : > { %11828 = vtanh.f32 %v6684_v60  ;;  %v10750_v49 = vpop.f32.mrb[118].mxu1 }
 0x56e   : > { %v16738_v56 = vpop.eup %11818  ;;  %v6687_v54 = vadd.f32 %v16665_v62, %v10750_v49  ;;  %v6480_v35 = vpop.f32.mrb[119].mxu1 }
 0x56f   : > { %v16741_v46 = vpop.eup %11820  ;;  %v6686_v34 = vadd.f32 %v16665_v62, %v6480_v35 }
 0x570   : > { %11830 = vtanh.f32 %v6687_v54 }
 0x571   : > { %11832 = vtanh.f32 %v6686_v34  ;;  %v10753_v13 = vpop.f32.mrb[120].mxu1 }
 0x572   : > { %v16746_v24 = vpop.eup %11822  ;;  %v6689_v48 = vadd.f32 %v16665_v62, %v10753_v13  ;;  %v6490_v60 = vpop.f32.mrb[121].mxu1 }
 0x573   : > { %v16749_v57 = vpop.eup %11824  ;;  %v6688_v49 = vadd.f32 %v16665_v62, %v6490_v60  ;;  %11006 = vmatpush3.bf16.xpose.msk.msra.mxu0 %vm16341_vm5, %v18825_v29 }
 0x574   : > { %11834 = vtanh.f32 %v6689_v48  ;;  %11009 = vmatprep.subr.msk.bf16.mxu0 %vm16341_vm5, %v11007_v10 }
 0x575   : > { %11836 = vtanh.f32 %v6688_v49  ;;  %v10756_v35 = vpop.f32.mrb[122].mxu1 }
 0x576   : > { %v16761_v34 = vpop.eup %11826  ;;  %v6691_v13 = vadd.f32 %v16665_v62, %v10756_v35  ;;  %v6500_v60 = vpop.f32.mrb[123].mxu1 }
 0x577   : > { %v16764_v37 = vpop.eup %11828  ;;  %v6690_v43 = vadd.f32 %v16665_v62, %v6500_v60 }
 0x578   : > { %11838 = vtanh.f32 %v6691_v13 }
 0x579   : > { %11840 = vtanh.f32 %v6690_v43  ;;  %v10759_v10 = vpop.f32.mrb[124].mxu1 }
 0x57a   : > { %v16769_v29 = vpop.eup %11830  ;;  %v6693_v48 = vadd.f32 %v16665_v62, %v10759_v10  ;;  %v6510_v49 = vpop.f32.mrb[125].mxu1 }
 0x57b   : > { %v16772_v54 = vpop.eup %11832  ;;  %v6692_v35 = vadd.f32 %v16665_v62, %v6510_v49  ;;  %11012 = vmatpush3.bf16.xpose.msk.msra.mxu0 %vm16341_vm5, %v11010_v42 }
 0x57c   : > { %11842 = vtanh.f32 %v6693_v48  ;;  %v11058_v13 = vpack.c.bf16 %v16769_v29, %v16772_v54  ;;  %v6834_v29 = vstv %s6833_s24 }
 0x57d   : > { %11844 = vtanh.f32 %v6692_v35  ;;  %v10762_v60 = vpop.f32.mrb[126].mxu1  ;;  %v11894_v35 = vld [vmem:[%s17673_s10] sm:$0x1] }
 0x57e   : > { %v11835_v43 = vpop.eup %11834  ;;  %v6695_v10 = vadd.f32 %v16665_v62, %v10762_v60  ;;  %v6520_v3 = vpop.f32.mrb[127].mxu1 }
 0x57f   : > { %v11837_v36 = vpop.eup %11836  ;;  %v6694_v16 = vadd.f32 %v16665_v62, %v6520_v3 }
 0x580   : > { %11846 = vtanh.f32 %v6695_v10  ;;  %v11013_v49 = vpack.c.bf16 %v11835_v43, %v11837_v36 }
 0x581   : > { %11848 = vtanh.f32 %v6694_v16  ;;  %v10765_v51 = vpop.f32.mrb[128].mxu1 }
 0x582   : > { %v11839_v11 = vpop.eup %11838  ;;  %v6697_v42 = vadd.f32 %v16665_v62, %v10765_v51  ;;  %v6530_v48 = vpop.f32.mrb[129].mxu1  ;;  %11015 = vmatprep.subr.msk.bf16.mxu0 %vm16341_vm5, %v11013_v49  ;;  %9814 = vmatmul.mubr.msk.f32.vlgmr.msra.gmra.mrb[124].mxu0 %vm6835_vm11, %v11894_v35 }
 0x583   : > { %v11841_v60 = vpop.eup %11840  ;;  %v6696_v3 = vadd.f32 %v16665_v62, %v6530_v48  ;;  %11018 = vmatpush3.bf16.xpose.msk.msra.mxu0 %vm16341_vm5, %v11016_v4  ;;  %9847 = vmatprep.mubr.msk.f32.mxu0 %vm6835_vm11, %v11894_v35 }
 0x584   : > { %11850 = vtanh.f32 %v6697_v42  ;;  %v11019_v16 = vpack.c.bf16 %v11839_v11, %v11841_v60 }
 0x585   : > { %11852 = vtanh.f32 %v6696_v3  ;;  %v10768_v36 = vpop.f32.mrb[130].mxu1 }
 0x586   : > { %v11843_v43 = vpop.eup %11842  ;;  %v6699_v10 = vadd.f32 %v16665_v62, %v10768_v36  ;;  %v6540_v49 = vpop.f32.mrb[131].mxu1  ;;  %11021 = vmatprep.subr.msk.bf16.mxu0 %vm16341_vm5, %v11019_v16  ;;  %v18826_v36 = vpack.c.bf16 %v16700_v45, %v16703_v38 }
 0x587   : > { %v11845_v51 = vpop.eup %11844  ;;  %v6698_v48 = vadd.f32 %v16665_v62, %v6540_v49 }
 0x588   : > { %11854 = vtanh.f32 %v6699_v10  ;;  %v11025_v8 = vpack.c.bf16 %v11843_v43, %v11845_v51 }
 0x589   : > { %11856 = vtanh.f32 %v6698_v48  ;;  %v10771_v53 = vpop.f32.mrb[132].mxu1 }
 0x58a   : > { %v11847_v4 = vpop.eup %11846  ;;  %v6701_v42 = vadd.f32 %v16665_v62, %v10771_v53  ;;  %v6550_v11 = vpop.f32.mrb[133].mxu1 }
 0x58b   : > { %v11849_v60 = vpop.eup %11848  ;;  %v6700_v3 = vadd.f32 %v16665_v62, %v6550_v11  ;;  %11024 = vmatpush3.bf16.xpose.msk.msra.mxu0 %vm16341_vm5, %v18826_v36 }
 0x58c   : > { %11858 = vtanh.f32 %v6701_v42  ;;  %11027 = vmatprep.subr.msk.bf16.mxu0 %vm16341_vm5, %v11025_v8  ;;  %v11031_v16 = vpack.c.bf16 %v11847_v4, %v11849_v60  ;;  %v18827_v42 = vpack.c.bf16 %v16715_v41, %v16718_v59  ;;  %v18829_v59 = vpack.c.bf16 %v16738_v56, %v16741_v46 }
 0x58d   : > { %11860 = vtanh.f32 %v6700_v3  ;;  %v10774_v43 = vpop.f32.mrb[134].mxu1 }
 0x58e   : > { %v11851_v10 = vpop.eup %11850  ;;  %v6703_v49 = vadd.f32 %v16665_v62, %v10774_v43  ;;  %v6560_v51 = vpop.f32.mrb[135].mxu1  ;;  %v18828_v43 = vpack.c.bf16 %v16723_v55, %v16726_v28  ;;  %v18831_v55 = vpack.c.bf16 %v16761_v34, %v16764_v37  ;;  %v18832_v34 = vlaneseq }
 0x58f   : > { %v11853_v48 = vpop.eup %11852  ;;  %v6702_v53 = vadd.f32 %v16665_v62, %v6560_v51 }
 0x590   : > { %11862 = vtanh.f32 %v6703_v49  ;;  %v11037_v11 = vpack.c.bf16 %v11851_v10, %v11853_v48  ;;  %v7508_v10 = vand.u32 127, %v18832_v34 }
 0x591   : > { %11864 = vtanh.f32 %v6702_v53  ;;  %v18833_v53 = vld [vmem:[#allocation18_spill] sm:$0xff] }
 0x592   : > { %v11855_v45 = vpop.eup %11854  ;;  %v7509_v49 = vadd.s32 128, %v7508_v10  ;;  %v7510_v51 = vadd.s32 256, %v7508_v10  ;;  %v7511_v48 = vadd.s32 384, %v7508_v10  ;;  %v7512_v54 = vadd.s32 512, %v7508_v10 }
 0x593   : > { %v11857_v38 = vpop.eup %11856  ;;  %11030 = vmatpush3.bf16.xpose.msk.msra.mxu0 %vm16341_vm5, %v18827_v42  ;;  %v7513_v20 = vadd.s32 640, %v7508_v10 }
 0x594   : > { %11033 = vmatprep.subr.msk.bf16.mxu0 %vm16341_vm5, %v11031_v16  ;;  %v11043_v8 = vpack.c.bf16 %v11855_v45, %v11857_v38  ;;  %v18830_v16 = vpack.c.bf16 %v16746_v24, %v16749_v57  ;;  %v16865_v45 = vadd.s32 %v7511_v48, %v18833_v53  ;;  %v12131_v38 = vmov 1966171168  }
 0x595   : > { %v7553_v42 = vunpack.c.l.s4 %v12131_v38 }
 0x596   : > { %v11859_v4 = vpop.eup %11858  ;;  %vm7527_vm0 = vcmp.lt.s32.totalorder %v16865_v45, 2000 }
 0x597   : > { %v11861_v60 = vpop.eup %11860 }
 0x598   : > { %v11049_v3 = vpack.c.bf16 %v11859_v4, %v11861_v60  ;;  %v16869_v60 = vadd.s32 %v7512_v54, %v18833_v53 }
 0x59a   : > { %v11863_v36 = vpop.eup %11862  ;;  %vm18207_vm14 = vcmp.lt.s32.totalorder %v16869_v60, 2000 }
 0x59b   : > { %v11865_v62 = vpop.eup %11864  ;;  %11036 = vmatpush3.bf16.xpose.msk.msra.mxu0 %vm16341_vm5, %v18828_v43  ;;  %v7514_v43 = vadd.s32 768, %v7508_v10 }
 0x59c   : > { %11039 = vmatprep.subr.msk.bf16.mxu0 %vm16341_vm5, %v11037_v11  ;;  %v11055_v41 = vpack.c.bf16 %v11863_v36, %v11865_v62  ;;  %v16856_v11 = vadd.s32 %v7508_v10, %v18833_v53 }
 0x5a3   : > { %11042 = vmatpush3.bf16.xpose.msk.msra.mxu0 %vm16341_vm5, %v18829_v59  ;;  %v7554_v59 = vunpack.c.0.s8 %v7553_v42 }
 0x5a4   : > { %11045 = vmatprep.subr.msk.bf16.mxu0 %vm16341_vm5, %v11043_v8 }
 0x5ab   : > { %11048 = vmatpush3.bf16.xpose.msk.msra.mxu0 %vm16341_vm5, %v18830_v16 }
 0x5ac   : > { %11051 = vmatprep.subr.msk.bf16.mxu0 %vm16341_vm5, %v11049_v3  ;;  %v16872_v3 = vadd.s32 %v7513_v20, %v18833_v53 }
 0x5ae   : > { %vm7529_vm12 = vcmp.lt.s32.totalorder %v16872_v3, 2000  ;;  %v19018_v3 = vld [vmem:[#allocation240_spill] sm:$0xff] }
 0x5b3   : > { %11054 = vmatpush3.bf16.xpose.msk.msra.mxu0 %vm16341_vm5, %v18831_v55 }
 0x5b4   : > { %11057 = vmatprep.subr.msk.bf16.mxu0 %vm16341_vm5, %v11055_v41  ;;  %v7515_v41 = vadd.s32 896, %v7508_v10  ;;  %v18834_v10 = vld [vmem:[#allocation19_spill] sm:$0xff] }
 0x5bb   : > { %11060 = vmatpush3.bf16.xpose.msk.msra.mxu0 %vm16341_vm5, %v11058_v13  ;;  %v16859_v13 = vadd.s32 %v7509_v49, %v18833_v53  ;;  %v7557_v49 = vsub.s32 %v7554_v59, %v18834_v10 }
 0x5bd   : > { %vm7525_vm10 = vcmp.lt.s32.totalorder %v16859_v13, 2000  ;;  %v18932_v13 = vld [vmem:[#allocation170_spill] sm:$0xff] }
 0x5c2   : > { %9848 = vmatmul.mubr.msk.f32.vlgmr.msra.gmra.mrb[126].mxu0 %vm6835_vm11, %v11894_v35  ;;  %v16862_v35 = vadd.s32 %v7510_v51, %v18833_v53  ;;  %vm7524_vm11 = vcmp.lt.s32.totalorder %v16856_v11, 2000  ;;  %v19015_v11 = vld [vmem:[#allocation217_spill] sm:$0xff] }
 0x5c4   : > { %vm7526_vm15 = vcmp.lt.s32.totalorder %v16862_v35, 2000 }
 0x5d5   : > { %v7289_v28 = vpop.f32.mrb[120].mxu0 }
 0x5d6   : > { %v7291_v56 = vpop.f32.mrb[121].mxu0  ;;  %v7290_v8 = vadd.f32 %v7289_v28, %v6834_v29 }
 0x5d7   : > { %v7292_v4 = vadd.f32 %v7291_v56, %v6834_v29 }
 0x5d8   : > { %v16879_v28 = vsel %vm7524_vm11, %v7290_v8, -inf }
 0x5d9   : > { %v16883_v56 = vsel %vm7525_vm10, %v7292_v4, -inf  ;;  %v7604_v4 = vsel %vm7603_vm7, %v16879_v28, -inf }
 0x5da   : > { %v7548_v34 = vcombine.low %v16879_v28, %v16883_v56 }
 0x615   : > { %v7360_v46 = vpop.f32.mrb[122].mxu0 }
 0x616   : > { %v7362_v24 = vpop.f32.mrb[123].mxu0  ;;  %v7361_v36 = vadd.f32 %v7360_v46, %v6834_v29 }
 0x617   : > { %v7363_v62 = vadd.f32 %v7362_v24, %v6834_v29 }
 0x618   : > { %v16889_v46 = vsel %vm7526_vm15, %v7361_v36, -inf  ;;  %v7558_v36 = vrot.slane %v7548_v34, %v7557_v49 }
 0x619   : > { %v16893_v24 = vsel %vm7527_vm0, %v7363_v62, -inf  ;;  %v7605_v62 = vsel %vm7603_vm7, %v16883_v56, -inf }
 0x61a   : > { %v7549_v54 = vcombine.low %v16889_v46, %v16893_v24 }
 0x61c   : > { %v7565_v59 = vrot.slane %v7549_v54, %v7557_v49  ;;  %v7607_v54 = vsel %vm7603_vm7, %v16893_v24, -inf }
 0x655   : > { %v7431_v57 = vpop.f32.mrb[124].mxu0 }
 0x656   : > { %v7433_v37 = vpop.f32.mrb[125].mxu0  ;;  %v7432_v16 = vadd.f32 %v7431_v57, %v6834_v29  ;;  %v16896_v57 = vadd.s32 %v7514_v43, %v18833_v53 }
 0x657   : > { %v7434_v55 = vadd.f32 %v7433_v37, %v6834_v29  ;;  %v16899_v37 = vadd.s32 %v7515_v41, %v18833_v53  ;;  %v7606_v41 = vsel %vm7603_vm7, %v16889_v46, -inf }
 0x658   : > { %v16906_v51 = vsel %vm18207_vm14, %v7432_v16, -inf  ;;  %vm18206_vm9 = vcmp.lt.s32.totalorder %v16896_v57, 2000 }
 0x659   : > { %v16910_v48 = vsel %vm7529_vm12, %v7434_v55, -inf  ;;  %v7608_v53 = vsel %vm7603_vm7, %v16906_v51, -inf  ;;  %vm18205_vm13 = vcmp.lt.s32.totalorder %v16899_v37, 2000 }
 0x65a   : > { %v7610_v38 = vsel %vm7603_vm7, %v16910_v48, -inf  ;;  %v7550_v16 = vcombine.low %v16906_v51, %v16910_v48 }
 0x65b   : > { %v7611_v17 = vmax.f32 %v7605_v62, %v7610_v38  ;;  %v7580_v38 = vcombine.low %v7558_v36, %v7565_v59  ;;  %v11895_v36 = vld [vmem:[%s12265_s28 + $0x80] sm:$0xff]  ;;  %v11896_v59 = vld [vmem:[%s12265_s28 + $0x88] sm:$0xff] }
 0x695   : > { %v7502_v20 = vpop.f32.mrb[126].mxu0 }
 0x696   : > { %v7503_v42 = vadd.f32 %v7502_v20, %v6834_v29  ;;  %v7504_v8 = vpop.f32.mrb[127].mxu0  ;;  %v7609_v20 = vmax.f32 %v7604_v4, %v7608_v53  ;;  %v7572_v4 = vrot.slane %v7550_v16, %v7557_v49  ;;  %v11898_v16 = vld [vmem:[%s12265_s28 + $0x8] sm:$0xff] }
 0x697   : > { %v7505_v43 = vadd.f32 %v7504_v8, %v6834_v29 }
 0x698   : > { %v16930_v55 = vsel %vm18206_vm9, %v7503_v42, -inf }
 0x699   : > { %v7612_v34 = vsel %vm7603_vm7, %v16930_v55, -inf  ;;  %v16936_v29 = vsel %vm18205_vm13, %v7505_v43, -inf  ;;  %v7616_v43 = vmax.f32 %v7609_v20, %v7611_v17  ;;  %v11897_v17 = vld [vmem:[%s12265_s28] sm:$0xff] }
 0x69a   : > { %v7613_v8 = vmax.f32 %v7606_v41, %v7612_v34  ;;  %v7551_v25 = vcombine.low %v16930_v55, %v16936_v29  ;;  %v7614_v42 = vsel %vm7603_vm7, %v16936_v29, -inf  ;;  %v7588_v34 = vrot.slane %v7580_v38, %v7557_v49  ;;  %v11901_v38 = vld [vmem:[%s12265_s28 + $0x10] sm:$0xff] }
 0x69b   : > { %v7615_v53 = vmax.f32 %v7607_v54, %v7614_v42  ;;  %v11064_v20 = vpack.c.bf16 %v11898_v16, %v11897_v17  ;;  %v18835_v54 = vld [vmem:[#allocation20_spill] sm:$0xff]  ;;  %v18843_v42 = vld [vmem:[#allocation46_spill] sm:$0xff]  ;;  %v18853_v17 = vld [vmem:[#allocation49_spill] sm:$0xff] }
 0x69c   : > { %v7579_v62 = vrot.slane %v7551_v25, %v7557_v49  ;;  %v11061_v25 = vpack.c.bf16 %v11896_v59, %v11895_v36  ;;  %vm18836_vm1 = vcmp.lt.s32.totalorder %v18835_v54, 2000  ;;  %vm18844_vm5 = vcmp.lt.s32.totalorder %v18843_v42, 2000  ;;  %v18847_v36 = vld [vmem:[#allocation24_spill] sm:$0xff]  ;;  %v18849_v59 = vld [vmem:[#allocation26_spill] sm:$0xff]  ;;  %v18861_v42 = vld [vmem:[#allocation51_spill] sm:$0xff] }
 0x69d   : > { %v7617_v39 = vmax.f32 %v7613_v8, %v7615_v53  ;;  %v18837_v8 = vld [vmem:[#allocation21_spill] sm:$0xff]  ;;  %v18845_v53 = vld [vmem:[#allocation47_spill] sm:$0xff] }
 0x69e   : > { %v7581_v26 = vcombine.low %v7572_v4, %v7579_v62  ;;  %vm18838_vm4 = vcmp.lt.s32.totalorder %v18837_v8, 2000  ;;  %vm18846_vm13 = vcmp.lt.s32.totalorder %v18845_v53, 2000  ;;  %v11902_v4 = vld [vmem:[%s12265_s28 + $0x18] sm:$0xff]  ;;  %v11905_v16 = vld [vmem:[%s12265_s28 + $0x20] sm:$0xff]  ;;  %v11906_v54 = vld [vmem:[%s12265_s28 + $0x28] sm:$0xff] }
 0x69f   : > { %v7618_v41 = vmax.f32 %v7616_v43, %v7617_v39  ;;  %vm11065_vm8 = vmpackc.low %vm18838_vm4, %vm18836_vm1  ;;  %v11900_v39 = vld [vmem:[%s12265_s28 + $0x98] sm:$0xff]  ;;  %v11070_v62 = vpack.c.bf16 %v11902_v4, %v11901_v38  ;;  %v11903_v43 = vld [vmem:[%s12265_s28 + $0xa0] sm:$0xff]  ;;  %vm18848_vm1 = vcmp.lt.s32.totalorder %v18847_v36, 2000  ;;  %vm18850_vm4 = vcmp.lt.s32.totalorder %v18849_v59, 2000 }
 0x6a0   : > { %v7595_v50 = vrot.slane %v7581_v26, %v7557_v49  ;;  %v11899_v26 = vld [vmem:[%s12265_s28 + $0x90] sm:$0xff]  ;;  %vm11068_vm9 = vmpackc.low %vm18846_vm13, %vm18844_vm5  ;;  %vm18854_vm13 = vcmp.lt.s32.totalorder %v18853_v17, 2000  ;;  %v11076_v8 = vpack.c.bf16 %v11906_v54, %v11905_v16  ;;  %v11910_v38 = vld [vmem:[%s12265_s28 + $0x38] sm:$0xff] }
 0x6a1   : > { %7619 = vmax.xlane.f32.xlu1 %v7618_v41  ;;  %v18839_v49 = vld [vmem:[#allocation44_spill] sm:$0xff] }
 0x6a2   : > { %v7596_v32 = vcombine.low %v7588_v34, %v7595_v50  ;;  %v11067_v50 = vpack.c.bf16 %v11900_v39, %v11899_v26  ;;  %vm18840_vm2 = vcmp.lt.s32.totalorder %v18839_v49, 2000  ;;  %v11904_v41 = vld [vmem:[%s12265_s28 + $0xa8] sm:$0xff]  ;;  %v11908_v26 = vld [vmem:[%s12265_s28 + $0xb8] sm:$0xff]  ;;  %v11909_v53 = vld [vmem:[%s12265_s28 + $0x30] sm:$0xff] }
 0x6a3   : > { %v11073_v34 = vpack.c.bf16 %v11904_v41, %v11903_v43  ;;  %v18855_v49 = vld [vmem:[#allocation28_spill] sm:$0xff]  ;;  %v11082_v4 = vpack.c.bf16 %v11910_v38, %v11909_v53  ;;  %v18865_v43 = vld [vmem:[#allocation34_spill] sm:$0xff]  ;;  %v18873_v38 = vld [vmem:[#allocation37_spill] sm:$0xff] }
 0x6a4   : > { %7601 = vst [vmem:[%s7600_s3] sm:$0xff] %v7596_v32  ;;  %v18841_v32 = vld [vmem:[#allocation45_spill] sm:$0xff]  ;;  %v7602_v41 = vld [vmem:[#allocation2] sm:$0x1]  ;;  %v11912_v17 = vld [vmem:[%s12265_s28 + $0xc8] sm:$0xff] }
 0x6a5   : > { %vm18842_vm3 = vcmp.lt.s32.totalorder %v18841_v32, 2000  ;;  %v18859_v32 = vld [vmem:[#allocation50_spill] sm:$0xff]  ;;  %v18871_v53 = vld [vmem:[#allocation36_spill] sm:$0xff] }
 0x6a6   : > { %vm11062_vm6 = vmpackc.low %vm18842_vm3, %vm18840_vm2 }
 0x6a7   : > { %11063 = vmatprep.subr.msk.bf16.mxu0 %vm11062_vm6, %v11061_v25  ;;  %vm11071_vm2 = vmpackc.low %vm18850_vm4, %vm18848_vm1  ;;  %v18851_v25 = vld [vmem:[#allocation48_spill] sm:$0xff]  ;;  %vm18860_vm1 = vcmp.lt.s32.totalorder %v18859_v32, 2000  ;;  %vm18862_vm4 = vcmp.lt.s32.totalorder %v18861_v42, 2000  ;;  %v11916_v32 = vld [vmem:[%s12265_s28 + $0xd8] sm:$0xff] }
 0x6a8   : > { %11066 = vmatpush3.bf16.msk.msra.mxu0 %vm11065_vm8, %v11064_v20  ;;  %vm18852_vm3 = vcmp.lt.s32.totalorder %v18851_v25, 2000  ;;  %v11907_v20 = vld [vmem:[%s12265_s28 + $0xb0] sm:$0xff]  ;;  %vm11080_vm14 = vmpackc.low %vm18862_vm4, %vm18860_vm1  ;;  %v11911_v25 = vld [vmem:[%s12265_s28 + $0xc0] sm:$0xff]  ;;  %vm18874_vm1 = vcmp.lt.s32.totalorder %v18873_v38, 2000 }
 0x6a9   : > { %11069 = vmatprep.subr.msk.bf16.mxu0 %vm11068_vm9, %v11067_v50  ;;  %vm11074_vm6 = vmpackc.low %vm18854_vm13, %vm18852_vm3  ;;  %v11079_v39 = vpack.c.bf16 %v11908_v26, %v11907_v20  ;;  %vm18856_vm9 = vcmp.lt.s32.totalorder %v18855_v49, 2000  ;;  %v18857_v50 = vld [vmem:[#allocation30_spill] sm:$0xff]  ;;  %vm18866_vm3 = vcmp.lt.s32.totalorder %v18865_v43, 2000  ;;  %v11085_v16 = vpack.c.bf16 %v11912_v17, %v11911_v25  ;;  %v11914_v20 = vld [vmem:[%s12265_s28 + $0x48] sm:$0xff] }
 0x6aa   : > { %vm18858_vm8 = vcmp.lt.s32.totalorder %v18857_v50, 2000  ;;  %v18869_v49 = vld [vmem:[#allocation53_spill] sm:$0xff]  ;;  %v18877_v25 = vld [vmem:[#allocation55_spill] sm:$0xff]  ;;  %v18879_v17 = vld [vmem:[#allocation38_spill] sm:$0xff] }
 0x6ab   : > { %vm11077_vm5 = vmpackc.low %vm18858_vm8, %vm18856_vm9  ;;  %vm18870_vm9 = vcmp.lt.s32.totalorder %v18869_v49, 2000  ;;  %v11915_v50 = vld [vmem:[%s12265_s28 + $0xd0] sm:$0xff]  ;;  %v18891_v38 = vld [vmem:[#allocation58_spill] sm:$0xff] }
 0x6ac   : > { %11072 = vmatpush3.bf16.msk.msra.mxu0 %vm11071_vm2, %v11070_v62  ;;  %v18863_v62 = vld [vmem:[#allocation32_spill] sm:$0xff]  ;;  %v11091_v42 = vpack.c.bf16 %v11916_v32, %v11915_v50  ;;  %v11924_v50 = vld [vmem:[%s12265_s28 + $0xf8] sm:$0xff] }
 0x6ad   : > { %11075 = vmatprep.subr.msk.bf16.mxu0 %vm11074_vm6, %v11073_v34  ;;  %vm18864_vm2 = vcmp.lt.s32.totalorder %v18863_v62, 2000  ;;  %vm18208_vm6 = vcmask 0   ;;  %v11918_v62 = vld [vmem:[%s12265_s28 + $0x58] sm:$0xff]  ;;  %v11923_v49 = vld [vmem:[%s12265_s28 + $0xf0] sm:$0xff] }
 0x6ae   : > { %vm11083_vm13 = vmpackc.low %vm18866_vm3, %vm18864_vm2  ;;  %vm18878_vm3 = vcmp.lt.s32.totalorder %v18877_v25, 2000  ;;  %v11103_v32 = vpack.c.bf16 %v11924_v50, %v11923_v49 }
 0x6b0   : > { %11078 = vmatpush3.bf16.msk.msra.mxu0 %vm11077_vm5, %v11076_v8  ;;  %v11913_v8 = vld [vmem:[%s12265_s28 + $0x40] sm:$0xff]  ;;  %vm18872_vm5 = vcmp.lt.s32.totalorder %v18871_v53, 2000  ;;  %v18889_v53 = vld [vmem:[#allocation41_spill] sm:$0xff] }
 0x6b1   : > { %11081 = vmatprep.subr.msk.bf16.mxu0 %vm11080_vm14, %v11079_v39  ;;  %v11088_v26 = vpack.c.bf16 %v11914_v20, %v11913_v8  ;;  %v18867_v39 = vld [vmem:[#allocation52_spill] sm:$0xff]  ;;  %vm11089_vm4 = vmpackc.low %vm18874_vm1, %vm18872_vm5 }
 0x6b2   : > { %vm18868_vm14 = vcmp.lt.s32.totalorder %v18867_v39, 2000  ;;  %v11922_v8 = vld [vmem:[%s12265_s28 + $0x68] sm:$0xff]  ;;  %v18885_v39 = vld [vmem:[#allocation57_spill] sm:$0xff] }
 0x6b3   : > { %vm11086_vm8 = vmpackc.low %vm18870_vm9, %vm18868_vm14  ;;  %vm18880_vm14 = vcmp.lt.s32.totalorder %v18879_v17, 2000  ;;  %vm18886_vm1 = vcmp.lt.s32.totalorder %v18885_v39, 2000  ;;  %v18895_v17 = vld [vmem:[#allocation42_spill] sm:$0xff] }
 0x6b4   : > { %11084 = vmatpush3.bf16.msk.msra.mxu0 %vm11083_vm13, %v11082_v4  ;;  %v11917_v4 = vld [vmem:[%s12265_s28 + $0x50] sm:$0xff] }
 0x6b5   : > { %11087 = vmatprep.subr.msk.bf16.mxu0 %vm11086_vm8, %v11085_v16  ;;  %v11094_v43 = vpack.c.bf16 %v11918_v62, %v11917_v4  ;;  %v18881_v16 = vld [vmem:[#allocation39_spill] sm:$0xff] }
 0x6b6   : > { %vm18882_vm9 = vcmp.lt.s32.totalorder %v18881_v16, 2000  ;;  %v18893_v4 = vld [vmem:[#allocation59_spill] sm:$0xff] }
 0x6b7   : > { %vm11095_vm8 = vmpackc.low %vm18882_vm9, %vm18880_vm14  ;;  %vm18892_vm14 = vcmp.lt.s32.totalorder %v18891_v38, 2000  ;;  %vm18894_vm9 = vcmp.lt.s32.totalorder %v18893_v4, 2000  ;;  %v18897_v16 = vld [vmem:[#allocation43_spill] sm:$0xff] }
 0x6b8   : > { %11090 = vmatpush3.bf16.msk.msra.mxu0 %vm11089_vm4, %v11088_v26  ;;  %v18883_v26 = vld [vmem:[#allocation56_spill] sm:$0xff] }
 0x6b9   : > { %vm18884_vm5 = vcmp.lt.s32.totalorder %v18883_v26, 2000  ;;  %v17053_v26 = vsub.s32 0, %v18834_v10 }
 0x6ba   : > { %vm11098_vm4 = vmpackc.low %vm18886_vm1, %vm18884_vm5  ;;  %vm18898_vm5 = vcmp.lt.s32.totalorder %v18897_v16, 2000  ;;  %v11932_v16 = vld [vmem:[%s12265_s28 + $0x198] sm:$0xff] }
 0x72e   : > { %v7620_v34 = vpop.xlane.xlu1 %7619 }
 0x72f   : > { %v7621_v36 = vmax.f32 %v7602_v41, %v7620_v34  ;;  %v11920_v34 = vld [vmem:[%s12265_s28 + $0xe8] sm:$0xff] }
 0x731   : > { %v7622_v59 = vsub.f32 %v7602_v41, %v7621_v36  ;;  %8266 = vst.msk [vmem:[#allocation2] sm:$0x1] %vm18208_vm6, %v7621_v36  ;;  %7627 = vperm.xlu0 %11609, %v7621_v36   ;;  %v11919_v41 = vld [vmem:[%s12265_s28 + $0xe0] sm:$0xff]  ;;  %vm11104_vm6 = vmpackc.low %vm18894_vm9, %vm18892_vm14 }
 0x732   : > { %v11097_v36 = vpack.c.bf16 %v11920_v34, %v11919_v41  ;;  %v11926_v41 = vld [vmem:[%s12265_s28 + $0x78] sm:$0xff] }
 0x733   : > { %v7623_v54 = vmul.f32 1.442695, %v7622_v59  ;;  %v18875_v59 = vld [vmem:[#allocation54_spill] sm:$0xff] }
 0x734   : > { %vm18876_vm2 = vcmp.lt.s32.totalorder %v18875_v59, 2000  ;;  %v11927_v59 = vld [vmem:[%s12265_s28 + $0x180] sm:$0xff] }
 0x735   : > { %11866 = vpow2.f32 %v7623_v54  ;;  %vm11092_vm13 = vmpackc.low %vm18878_vm3, %vm18876_vm2  ;;  %v11921_v54 = vld [vmem:[%s12265_s28 + $0x60] sm:$0xff]  ;;  %vm18890_vm3 = vcmp.lt.s32.totalorder %v18889_v53, 2000 }
 0x736   : > { %11093 = vmatprep.subr.msk.bf16.mxu0 %vm11092_vm13, %v11091_v42  ;;  %v11100_v20 = vpack.c.bf16 %v11922_v8, %v11921_v54  ;;  %v18887_v42 = vld [vmem:[#allocation40_spill] sm:$0xff]  ;;  %v18901_v8 = vld [vmem:[#allocation77_spill] sm:$0xff] }
 0x737   : > { %11096 = vmatpush3.bf16.msk.msra.mxu0 %vm11095_vm8, %v11094_v43  ;;  %vm18888_vm2 = vcmp.lt.s32.totalorder %v18887_v42, 2000  ;;  %v11925_v43 = vld [vmem:[%s12265_s28 + $0x70] sm:$0xff]  ;;  %vm18896_vm8 = vcmp.lt.s32.totalorder %v18895_v17, 2000 }
 0x738   : > { %11099 = vmatprep.subr.msk.bf16.mxu0 %vm11098_vm4, %v11097_v36  ;;  %vm11101_vm13 = vmpackc.low %vm18890_vm3, %vm18888_vm2  ;;  %v11106_v34 = vpack.c.bf16 %v11926_v41, %v11925_v43  ;;  %v11928_v36 = vld [vmem:[%s12265_s28 + $0x188] sm:$0xff]  ;;  %vm18902_vm2 = vcmp.lt.s32.totalorder %v18901_v8, 2000  ;;  %v11931_v17 = vld [vmem:[%s12265_s28 + $0x190] sm:$0xff] }
 0x739   : > { %v11109_v25 = vpack.c.bf16 %v11928_v36, %v11927_v59  ;;  %vm11107_vm1 = vmpackc.low %vm18898_vm5, %vm18896_vm8  ;;  %v18899_v54 = vld [vmem:[#allocation76_spill] sm:$0xff] }
 0x73a   : > { %vm18900_vm4 = vcmp.lt.s32.totalorder %v18899_v54, 2000  ;;  %v11930_v59 = vld [vmem:[%s12265_s28 + $0x108] sm:$0xff]  ;;  %v11115_v54 = vpack.c.bf16 %v11932_v16, %v11931_v17  ;;  %v11935_v17 = vld [vmem:[%s12265_s28 + $0x1a0] sm:$0xff] }
 0x73b   : > { %11102 = vmatpush3.bf16.msk.msra.mxu0 %vm11101_vm13, %v11100_v20  ;;  %vm11110_vm3 = vmpackc.low %vm18902_vm2, %vm18900_vm4  ;;  %v18903_v8 = vld [vmem:[#allocation60_spill] sm:$0xff] }
 0x73c   : > { %11105 = vmatprep.subr.msk.bf16.mxu0 %vm11104_vm6, %v11103_v32  ;;  %vm18904_vm6 = vcmp.lt.s32.totalorder %v18903_v8, 2000  ;;  %v11936_v16 = vld [vmem:[%s12265_s28 + $0x1a8] sm:$0xff] }
 0x73d   : > { %v11121_v8 = vpack.c.bf16 %v11936_v16, %v11935_v17  ;;  %v11937_v17 = vld [vmem:[%s12265_s28 + $0x120] sm:$0xff]  ;;  %v11938_v16 = vld [vmem:[%s12265_s28 + $0x128] sm:$0xff] }
 0x73f   : > { %v17037_v62 = vpop.eup %11866  ;;  %11108 = vmatpush3.bf16.msk.msra.mxu0 %vm11107_vm1, %v11106_v34 }
 0x740   : > { %7691 = vperm.xlu1 %11608, %v17037_v62   ;;  %11111 = vmatprep.subr.msk.bf16.mxu0 %vm11110_vm3, %v11109_v25  ;;  %vm18921_vm3 = vcmp.lt.s32.totalorder %v16869_v60, 2000 }
 0x7b0   : > { %v7628_v20 = vpop.permute.xlu0 %7627 }
 0x7b1   : > { %v7633_v39 = vrot.slane %v7628_v20, %v17053_v26 }
 0x7b3   : > { %v7634_v49 = vsub.f32 %v16879_v28, %v7633_v39  ;;  %v7635_v50 = vsub.f32 %v16883_v56, %v7633_v39  ;;  %v7636_v32 = vsub.f32 %v16889_v46, %v7633_v39  ;;  %v7637_v42 = vsub.f32 %v16893_v24, %v7633_v39 }
 0x7b4   : > { %v7638_v53 = vsub.f32 %v16906_v51, %v7633_v39  ;;  %v7639_v38 = vsub.f32 %v16910_v48, %v7633_v39  ;;  %v7640_v10 = vsub.f32 %v16930_v55, %v7633_v39  ;;  %v7641_v46 = vsub.f32 %v16936_v29, %v7633_v39  ;;  %v11929_v55 = vld [vmem:[%s12265_s28 + $0x100] sm:$0xff]  ;;  %v18905_v29 = vld [vmem:[#allocation61_spill] sm:$0xff] }
 0x7b5   : > { %v7642_v4 = vmul.f32 1.442695, %v7634_v49  ;;  %v7644_v43 = vmul.f32 1.442695, %v7635_v50  ;;  %v7646_v41 = vmul.f32 1.442695, %v7636_v32  ;;  %v11112_v36 = vpack.c.bf16 %v11930_v59, %v11929_v55 }
 0x7b6   : > { %v7648_v34 = vmul.f32 1.442695, %v7637_v42  ;;  %v7650_v28 = vmul.f32 1.442695, %v7638_v53  ;;  %v7652_v56 = vmul.f32 1.442695, %v7639_v38 }
 0x7b7   : > { %11868 = vpow2.f32 %v7642_v4  ;;  %v7654_v24 = vmul.f32 1.442695, %v7640_v10  ;;  %v7656_v51 = vmul.f32 1.442695, %v7641_v46  ;;  %vm18906_vm13 = vcmp.lt.s32.totalorder %v18905_v29, 2000  ;;  %v18907_v49 = vld [vmem:[#allocation78_spill] sm:$0xff] }
 0x7b8   : > { %11870 = vpow2.f32 %v7644_v43  ;;  %vm11113_vm14 = vmpackc.low %vm18906_vm13, %vm18904_vm6  ;;  %vm18908_vm9 = vcmp.lt.s32.totalorder %v18907_v49, 2000  ;;  %v18909_v50 = vld [vmem:[#allocation79_spill] sm:$0xff]  ;;  %v11934_v46 = vld [vmem:[%s12265_s28 + $0x118] sm:$0xff] }
 0x7b9   : > { %11872 = vpow2.f32 %v7646_v41  ;;  %vm18910_vm8 = vcmp.lt.s32.totalorder %v18909_v50, 2000  ;;  %v18913_v55 = vld [vmem:[#allocation167_spill] sm:$0xff]  ;;  %v18914_v59 = vld [vmem:[#allocation168_spill] sm:$0xff]  ;;  %v18915_v29 = vld [vmem:[#allocation62_spill] sm:$0xff] }
 0x7ba   : > { %11874 = vpow2.f32 %v7648_v34  ;;  %vm17085_vm5 = vmpackc.low %vm18910_vm8, %vm18908_vm9  ;;  %vm18916_vm1 = vcmp.lt.s32.totalorder %v18915_v29, 2000  ;;  %v11124_v29 = vpack.c.bf16 %v11938_v16, %v11937_v17  ;;  %v18942_v17 = vld [vmem:[#allocation83_spill] sm:$0xff] }
 0x7bb   : > { %11876 = vpow2.f32 %v7650_v28  ;;  %vm18924_vm6 = vmmov %vm18921_vm3 }
 0x7bc   : > { %11878 = vpow2.f32 %v7652_v56  ;;  %v11933_v56 = vld [vmem:[%s12265_s28 + $0x110] sm:$0xff] }
 0x7bd   : > { %11880 = vpow2.f32 %v7654_v24  ;;  %v11118_v24 = vpack.c.bf16 %v11934_v46, %v11933_v56  ;;  %v18927_v56 = vld [vmem:[#allocation81_spill] sm:$0xff] }
 0x7be   : > { %11882 = vpow2.f32 %v7656_v51 }
 0x7c1   : > { %v17064_v48 = vpop.eup %11868 }
 0x7c2   : > { %v11871_v25 = vpop.eup %11870  ;;  %v7658_v20 = vsel %vm7524_vm11, %v17064_v48, 0.0 }
 0x7c3   : > { %v17077_v39 = vpop.eup %11872  ;;  %9180 = vmatprep.mubr.msk.f32.mxu0 %vm7525_vm10, %v11871_v25  ;;  %v7659_v42 = vsel %vm7525_vm10, %v11871_v25, 0.0  ;;  %v7668_v53 = vsel %vm7603_vm7, %v7658_v20, 0.0  ;;  %v18917_v20 = vld [vmem:[#allocation63_spill] sm:$0xff] }
 0x7c4   : > { %v17092_v38 = vpop.eup %11874  ;;  %9181 = vmatmul.mubr.msk.f32.vlgmr.msra.gmra.mrb[128].mxu0 %vm7524_vm11, %v17064_v48  ;;  %v7660_v4 = vsel %vm7526_vm15, %v17077_v39, 0.0  ;;  %v7669_v43 = vsel %vm7603_vm7, %v7659_v42, 0.0  ;;  %vm18918_vm4 = vcmp.lt.s32.totalorder %v18917_v20, 2000  ;;  %v18922_v42 = vld [vmem:[#allocation138_spill] sm:$0xff]  ;;  %v11939_v20 = vld [vmem:[%s12265_s28 + $0x1b0] sm:$0xff] }
 0x7c5   : > { %v17101_v41 = vpop.eup %11876  ;;  %11114 = vmatpush3.bf16.msk.msra.mxu0 %vm11113_vm14, %v11112_v36  ;;  %9214 = vmatprep.mubr.msk.f32.mxu0 %vm7527_vm0, %v17092_v38  ;;  %v7661_v10 = vsel %vm7527_vm0, %v17092_v38, 0.0  ;;  %v7670_v34 = vadd.f32 %v7669_v43, %v7668_v53  ;;  %v7671_v51 = vsel %vm7603_vm7, %v7660_v4, 0.0  ;;  %v11255_v36 = vpack.c.bf16 %v18914_v59, %v18913_v55  ;;  %vm17127_vm2 = vmpackc.low %vm18918_vm4, %vm18916_vm1  ;;  %v18923_v53 = vld [vmem:[#allocation137_spill] sm:$0xff]  ;;  %v18925_v43 = vld [vmem:[#allocation80_spill] sm:$0xff] }
 0x7c6   : > { %v17109_v28 = vpop.eup %11878  ;;  %11117 = vmatprep.subr.msk.bf16.mxu0 %vm17085_vm5, %v11115_v54  ;;  %v7662_v49 = vsel %vm18921_vm3, %v17101_v41, 0.0  ;;  %v11257_v4 = vpack.c.bf16 %v18923_v53, %v18922_v42  ;;  %vm18926_vm13 = vcmp.lt.s32.totalorder %v18925_v43, 2000  ;;  %vm18928_vm14 = vcmp.lt.s32.totalorder %v18927_v56, 2000  ;;  %v11940_v42 = vld [vmem:[%s12265_s28 + $0x1b8] sm:$0xff] }
 0x7c7   : > { %9248 = vmatprep.mubr.msk.f32.mxu1 %vm7529_vm12, %v17109_v28  ;;  %v7672_v50 = vadd.f32 %v7671_v51, %v7670_v34  ;;  %v17134_v32 = vpop.eup %11880  ;;  %vm17145_vm9 = vmpackc.low %vm18928_vm14, %vm18926_vm13  ;;  %v7673_v34 = vsel %vm7603_vm7, %v7661_v10, 0.0  ;;  %v7663_v51 = vsel %vm7529_vm12, %v17109_v28, 0.0  ;;  %v7675_v10 = vsel %vm7603_vm7, %v7662_v49, 0.0  ;;  %v18935_v43 = vld [vmem:[#allocation65_spill] sm:$0xff]  ;;  %v18938_v49 = vld [vmem:[#allocation143_spill] sm:$0xff] }
 0x7c8   : > { %9249 = vmatmul.mubr.msk.f32.vlgmr.msra.gmra.mrb[136].mxu1 %vm18924_vm6, %v17101_v41  ;;  %v17155_v59 = vpop.eup %11882  ;;  %v11127_v53 = vpack.c.bf16 %v11940_v42, %v11939_v20  ;;  %vm18936_vm8 = vcmp.lt.s32.totalorder %v18935_v43, 2000  ;;  %vm18937_vm1 = vcmp.lt.s32.totalorder %v16896_v57, 2000  ;;  %vm18944_vm6 = vcmp.lt.s32.totalorder %v16899_v37, 2000  ;;  %v18946_v42 = vld [vmem:[#allocation172_spill] sm:$0xff]  ;;  %v11943_v43 = vld [vmem:[%s12265_s28 + $0x1c0] sm:$0xff] }
 0x7c9   : > { %11256 = vmatpush3.bf16.msra.mxu1 %v11255_v36  ;;  %9284 = vmatprep.mubr.msk.f32.mxu1 %vm7525_vm10, %v11871_v25  ;;  %v7674_v55 = vadd.f32 %v7673_v34, %v7672_v50  ;;  %v18931_v36 = vld [vmem:[#allocation169_spill] sm:$0xff]  ;;  %v18933_v50 = vld [vmem:[#allocation64_spill] sm:$0xff]  ;;  %v18940_v34 = vld [vmem:[#allocation82_spill] sm:$0xff]  ;;  %v7665_v46 = vsel %vm18944_vm6, %v17155_v59, 0.0 }
 0x7ca   : > { %11258 = vmatprep.subr.bf16.mxu1 %v11257_v4  ;;  %11120 = vmatpush3.bf16.msk.msra.mxu0 %vm17127_vm2, %v11118_v24  ;;  %v11259_v25 = vpack.c.bf16 %v18932_v13, %v18931_v36  ;;  %vm18934_vm10 = vcmp.lt.s32.totalorder %v18933_v50, 2000  ;;  %v7664_v24 = vsel %vm18937_vm1, %v17134_v32, 0.0  ;;  %v18939_v4 = vld [vmem:[#allocation142_spill] sm:$0xff]  ;;  %vm18941_vm4 = vcmp.lt.s32.totalorder %v18940_v34, 2000  ;;  %v11941_v36 = vld [vmem:[%s12265_s28 + $0x130] sm:$0xff] }
 0x7cb   : > { %11123 = vmatprep.subr.msk.bf16.mxu0 %vm17145_vm9, %v11121_v8  ;;  %vm11125_vm5 = vmpackc.low %vm18936_vm8, %vm18934_vm10  ;;  %v7676_v54 = vadd.f32 %v7675_v10, %v7674_v55  ;;  %v11261_v56 = vpack.c.bf16 %v18939_v4, %v18938_v49  ;;  %vm18943_vm2 = vcmp.lt.s32.totalorder %v18942_v17, 2000  ;;  %v7677_v8 = vsel %vm7603_vm7, %v7663_v51, 0.0  ;;  %v11942_v13 = vld [vmem:[%s12265_s28 + $0x138] sm:$0xff]  ;;  %v18945_v10 = vld [vmem:[#allocation171_spill] sm:$0xff] }
 0x7cc   : > { %vm11128_vm3 = vmpackc.low %vm18943_vm2, %vm18941_vm4  ;;  %v11130_v20 = vpack.c.bf16 %v11942_v13, %v11941_v36  ;;  %v7679_v55 = vsel %vm7603_vm7, %v7664_v24, 0.0  ;;  %v11263_v50 = vpack.c.bf16 %v18946_v42, %v18945_v10  ;;  %v11944_v51 = vld [vmem:[%s12265_s28 + $0x1c8] sm:$0xff]  ;;  %v18947_v49 = vld [vmem:[#allocation66_spill] sm:$0xff]  ;;  %vm18965_vm2 = vcmp.lt.s32.totalorder %v18689_v0, 2000 }
 0x7cd   : > { %11260 = vmatpush3.bf16.msra.mxu1 %v11259_v25  ;;  %v7678_v16 = vadd.f32 %v7677_v8, %v7676_v54  ;;  %v11133_v25 = vpack.c.bf16 %v11944_v51, %v11943_v43  ;;  %vm18948_vm13 = vcmp.lt.s32.totalorder %v18947_v49, 2000  ;;  %v18949_v54 = vld [vmem:[#allocation67_spill] sm:$0xff]  ;;  %v18952_v34 = vld [vmem:[#allocation146_spill] sm:$0xff]  ;;  %v18953_v17 = vld [vmem:[#allocation84_spill] sm:$0xff]  ;;  %v7681_v8 = vsel %vm7603_vm7, %v7665_v46, 0.0 }
 0x7ce   : > { %11262 = vmatprep.subr.bf16.mxu1 %v11261_v56  ;;  %11126 = vmatpush3.bf16.msk.msra.mxu0 %vm11125_vm5, %v11124_v29  ;;  %vm18950_vm14 = vcmp.lt.s32.totalorder %v18949_v54, 2000  ;;  %v18951_v56 = vld [vmem:[#allocation147_spill] sm:$0xff]  ;;  %vm18954_vm10 = vcmp.lt.s32.totalorder %v18953_v17, 2000  ;;  %v18955_v24 = vld [vmem:[#allocation85_spill] sm:$0xff]  ;;  %v18959_v46 = vld [vmem:[#allocation68_spill] sm:$0xff] }
 0x7cf   : > { %11129 = vmatprep.subr.msk.bf16.mxu0 %vm11128_vm3, %v11127_v53  ;;  %vm11131_vm9 = vmpackc.low %vm18950_vm14, %vm18948_vm13  ;;  %v7680_v4 = vadd.f32 %v7679_v55, %v7678_v16  ;;  %v11265_v29 = vpack.c.bf16 %v18952_v34, %v18951_v56  ;;  %vm18956_vm8 = vcmp.lt.s32.totalorder %v18955_v24, 2000  ;;  %v11945_v53 = vld [vmem:[%s12265_s28 + $0x140] sm:$0xff]  ;;  %v11946_v13 = vld [vmem:[%s12265_s28 + $0x148] sm:$0xff]  ;;  %vm18960_vm7 = vcmp.lt.s32.totalorder %v18959_v46, 2000 }
 0x7d0   : > { %vm11134_vm5 = vmpackc.low %vm18956_vm8, %vm18954_vm10  ;;  %v11136_v10 = vpack.c.bf16 %v11946_v13, %v11945_v53  ;;  %v18957_v16 = vld [vmem:[#allocation173_spill] sm:$0xff]  ;;  %v18958_v55 = vld [vmem:[#allocation174_spill] sm:$0xff]  ;;  %vm18966_vm3 = vcmp.lt.s32.totalorder %v18691_v6, 2000  ;;  %vm18975_vm10 = vcmp.lt.s32.totalorder %v18693_v1, 2000  ;;  %vm18976_vm8 = vcmp.lt.s32.totalorder %v18695_v58, 2000 }
 0x7d1   : > { %11264 = vmatpush3.bf16.msra.mxu1 %v11263_v50  ;;  %v7682_v36 = vadd.f32 %v7681_v8, %v7680_v4  ;;  %v11267_v42 = vpack.c.bf16 %v18958_v55, %v18957_v16  ;;  %v11947_v43 = vld [vmem:[%s12265_s28 + $0x1d0] sm:$0xff]  ;;  %v11948_v51 = vld [vmem:[%s12265_s28 + $0x1d8] sm:$0xff]  ;;  %v18964_v4 = vld [vmem:[#allocation151_spill] sm:$0xff] }
 0x7d2   : > { %11266 = vmatprep.subr.bf16.mxu1 %v11265_v29  ;;  %11132 = vmatpush3.bf16.msk.msra.mxu0 %vm11131_vm9, %v11130_v20  ;;  %v11139_v49 = vpack.c.bf16 %v11948_v51, %v11947_v43  ;;  %v18961_v50 = vld [vmem:[#allocation69_spill] sm:$0xff]  ;;  %v18963_v54 = vld [vmem:[#allocation152_spill] sm:$0xff]  ;;  %vm11140_vm6 = vmpackc.low %vm18966_vm3, %vm18965_vm2  ;;  %vm18985_vm2 = vcmp.lt.s32.totalorder %v18697_v18, 2000  ;;  %vm18986_vm3 = vcmp.lt.s32.totalorder %v18699_v7, 2000 }
 0x7d3   : > { %11135 = vmatprep.subr.msk.bf16.mxu0 %vm11134_vm5, %v11133_v25  ;;  %7683 = vadd.xlane.f32.xlu0 %v7682_v36  ;;  %vm18962_vm1 = vcmp.lt.s32.totalorder %v18961_v50, 2000  ;;  %v11269_v56 = vpack.c.bf16 %v18964_v4, %v18963_v54  ;;  %v11949_v20 = vld [vmem:[%s12265_s28 + $0x150] sm:$0xff]  ;;  %v11950_v34 = vld [vmem:[%s12265_s28 + $0x158] sm:$0xff]  ;;  %v18967_v29 = vld [vmem:[#allocation175_spill] sm:$0xff] }
 0x7d4   : > { %vm11137_vm4 = vmpackc.low %vm18962_vm1, %vm18960_vm7  ;;  %v11142_v25 = vpack.c.bf16 %v11950_v34, %v11949_v20  ;;  %v18968_v17 = vld [vmem:[#allocation176_spill] sm:$0xff]  ;;  %v11951_v8 = vld [vmem:[%s12265_s28 + $0x1e0] sm:$0xff] }
 0x7d5   : > { %11268 = vmatpush3.bf16.msra.mxu1 %v11267_v42  ;;  %v11271_v24 = vpack.c.bf16 %v18968_v17, %v18967_v29  ;;  %v11952_v36 = vld [vmem:[%s12265_s28 + $0x1e8] sm:$0xff]  ;;  %v18969_v0 = vld [vmem:[#allocation70_spill] sm:$0xff]  ;;  %vm11146_vm5 = vmpackc.low %vm18976_vm8, %vm18975_vm10  ;;  %vm18995_vm10 = vcmp.lt.s32.totalorder %v18769_v33, 2000  ;;  %vm18996_vm8 = vcmp.lt.s32.totalorder %v18771_v31, 2000 }
 0x7d6   : > { %11270 = vmatprep.subr.bf16.mxu1 %v11269_v56  ;;  %11138 = vmatpush3.bf16.msk.msra.mxu0 %vm11137_vm4, %v11136_v10  ;;  %v11145_v53 = vpack.c.bf16 %v11952_v36, %v11951_v8  ;;  %vm18970_vm13 = vcmp.lt.s32.totalorder %v18969_v0, 2000  ;;  %v18971_v6 = vld [vmem:[#allocation71_spill] sm:$0xff]  ;;  %v18974_v16 = vld [vmem:[#allocation182_spill] sm:$0xff]  ;;  %v18977_v51 = vld [vmem:[#allocation177_spill] sm:$0xff] }
 0x7d7   : > { %11141 = vmatprep.subr.msk.bf16.mxu0 %vm11140_vm6, %v11139_v49  ;;  %vm18972_vm14 = vcmp.lt.s32.totalorder %v18971_v6, 2000  ;;  %v18973_v13 = vld [vmem:[#allocation155_spill] sm:$0xff]  ;;  %v18978_v49 = vld [vmem:[#allocation178_spill] sm:$0xff]  ;;  %v11955_v50 = vld [vmem:[%s12265_s28 + $0x1f0] sm:$0xff] }
 0x7d8   : > { %vm11143_vm9 = vmpackc.low %vm18972_vm14, %vm18970_vm13  ;;  %v11273_v55 = vpack.c.bf16 %v18974_v16, %v18973_v13  ;;  %v11953_v10 = vld [vmem:[%s12265_s28 + $0x160] sm:$0xff]  ;;  %v11954_v42 = vld [vmem:[%s12265_s28 + $0x168] sm:$0xff]  ;;  %v11275_v46 = vpack.c.bf16 %v18978_v49, %v18977_v51 }
 0x7d9   : > { %11272 = vmatpush3.bf16.msra.mxu1 %v11271_v24  ;;  %v11148_v43 = vpack.c.bf16 %v11954_v42, %v11953_v10  ;;  %v11956_v54 = vld [vmem:[%s12265_s28 + $0x1f8] sm:$0xff]  ;;  %v18979_v1 = vld [vmem:[#allocation72_spill] sm:$0xff]  ;;  %v18983_v56 = vld [vmem:[#allocation183_spill] sm:$0xff] }
 0x7da   : > { %11274 = vmatprep.subr.bf16.mxu1 %v11273_v55  ;;  %11144 = vmatpush3.bf16.msk.msra.mxu0 %vm11143_vm9, %v11142_v25  ;;  %v11151_v4 = vpack.c.bf16 %v11956_v54, %v11955_v50  ;;  %vm18980_vm7 = vcmp.lt.s32.totalorder %v18979_v1, 2000  ;;  %v18981_v58 = vld [vmem:[#allocation73_spill] sm:$0xff]  ;;  %v18984_v20 = vld [vmem:[#allocation184_spill] sm:$0xff]  ;;  %vm11152_vm6 = vmpackc.low %vm18986_vm3, %vm18985_vm2  ;;  %vm19003_vm2 = vcmp.lt.s32.totalorder %v18773_v14, 2000  ;;  %vm19004_vm3 = vcmp.lt.s32.totalorder %v18775_v23, 2000 }
 0x7db   : > { %11147 = vmatprep.subr.msk.bf16.mxu0 %vm11146_vm5, %v11145_v53  ;;  %vm18982_vm1 = vcmp.lt.s32.totalorder %v18981_v58, 2000  ;;  %v11277_v34 = vpack.c.bf16 %v18984_v20, %v18983_v56  ;;  %v11957_v25 = vld [vmem:[%s12265_s28 + $0x170] sm:$0xff]  ;;  %v11958_v29 = vld [vmem:[%s12265_s28 + $0x178] sm:$0xff]  ;;  %v18987_v24 = vld [vmem:[#allocation179_spill] sm:$0xff] }
 0x7dc   : > { %vm11149_vm4 = vmpackc.low %vm18982_vm1, %vm18980_vm7  ;;  %v11154_v17 = vpack.c.bf16 %v11958_v29, %v11957_v25  ;;  %v18988_v8 = vld [vmem:[#allocation180_spill] sm:$0xff]  ;;  %v11959_v53 = vld [vmem:[%s12265_s28 + $0x380] sm:$0xff]  ;;  %vm18999_vm7 = vcmp.lt.s32.totalorder %v18737_v63, 2000  ;;  %vm19000_vm1 = vcmp.lt.s32.totalorder %v18739_v61, 2000 }
 0x7dd   : > { %11276 = vmatpush3.bf16.msra.mxu1 %v11275_v46  ;;  %v11279_v36 = vpack.c.bf16 %v18988_v8, %v18987_v24  ;;  %v11960_v0 = vld [vmem:[%s12265_s28 + $0x388] sm:$0xff]  ;;  %v18989_v18 = vld [vmem:[#allocation74_spill] sm:$0xff]  ;;  %v18993_v13 = vld [vmem:[#allocation185_spill] sm:$0xff] }
 0x7de   : > { %11278 = vmatprep.subr.bf16.mxu1 %v11277_v34  ;;  %11150 = vmatpush3.bf16.msk.msra.mxu0 %vm11149_vm4, %v11148_v43  ;;  %v11205_v6 = vpack.c.bf16 %v11960_v0, %v11959_v53  ;;  %vm18990_vm13 = vcmp.lt.s32.totalorder %v18989_v18, 2000  ;;  %v18991_v7 = vld [vmem:[#allocation75_spill] sm:$0xff]  ;;  %v18994_v16 = vld [vmem:[#allocation158_spill] sm:$0xff]  ;;  %vm11206_vm5 = vmpackc.low %vm18996_vm8, %vm18995_vm10  ;;  %vm19012_vm8 = vcmp.lt.s32.totalorder %v18777_v47, 2000 }
 0x7df   : > { %11153 = vmatprep.subr.msk.bf16.mxu0 %vm11152_vm6, %v11151_v4  ;;  %vm18992_vm14 = vcmp.lt.s32.totalorder %v18991_v7, 2000  ;;  %v11281_v55 = vpack.c.bf16 %v18994_v16, %v18993_v13  ;;  %v11961_v10 = vld [vmem:[%s12265_s28 + $0x300] sm:$0xff]  ;;  %v11962_v42 = vld [vmem:[%s12265_s28 + $0x308] sm:$0xff]  ;;  %v18997_v51 = vld [vmem:[#allocation181_spill] sm:$0xff] }
 0x7e0   : > { %vm11155_vm9 = vmpackc.low %vm18992_vm14, %vm18990_vm13  ;;  %v11208_v43 = vpack.c.bf16 %v11962_v42, %v11961_v10  ;;  %v18998_v49 = vld [vmem:[#allocation133_spill] sm:$0xff]  ;;  %v19001_v33 = vld [vmem:[#allocation236_spill] sm:$0xff]  ;;  %vm19007_vm13 = vcmp.lt.s32.totalorder %v16899_v37, 2000  ;;  %vm19008_vm14 = vcmp.lt.s32.totalorder %v18741_v15, 2000 }
 0x7e1   : > { %11280 = vmatpush3.bf16.msra.mxu1 %v11279_v36  ;;  %v11283_v46 = vpack.c.bf16 %v18998_v49, %v18997_v51  ;;  %v11963_v50 = vld [vmem:[%s12265_s28 + $0x390] sm:$0xff]  ;;  %v11964_v54 = vld [vmem:[%s12265_s28 + $0x398] sm:$0xff]  ;;  %vm11209_vm4 = vmpackc.low %vm19000_vm1, %vm18999_vm7  ;;  %vm19017_vm1 = vcmp.lt.s32.totalorder %v18747_v52, 2000 }
 0x7e2   : > { %11282 = vmatprep.subr.bf16.mxu1 %v11281_v55  ;;  %11156 = vmatpush3.bf16.msk.msra.mxu0 %vm11155_vm9, %v11154_v17  ;;  %v11211_v4 = vpack.c.bf16 %v11964_v54, %v11963_v50  ;;  %v19002_v31 = vld [vmem:[#allocation237_spill] sm:$0xff]  ;;  %vm11212_vm6 = vmpackc.low %vm19004_vm3, %vm19003_vm2  ;;  %v19005_v61 = vld [vmem:[#allocation212_spill] sm:$0xff]  ;;  %vm19009_vm9 = vcmp.lt.s32.totalorder %v18743_v19, 2000  ;;  %vm19021_vm2 = vcmp.lt.s32.totalorder %v18783_v27, 2000 }
 0x7e3   : > { %11207 = vmatprep.subr.msk.bf16.mxu0 %vm11206_vm5, %v11205_v6  ;;  %v11317_v1 = vpack.c.bf16 %v19002_v31, %v19001_v33  ;;  %v11965_v58 = vld [vmem:[%s12265_s28 + $0x310] sm:$0xff]  ;;  %v11966_v56 = vld [vmem:[%s12265_s28 + $0x318] sm:$0xff]  ;;  %v11967_v25 = vld [vmem:[%s12265_s28 + $0x3a0] sm:$0xff]  ;;  %vm19013_vm5 = vcmp.lt.s32.totalorder %v18779_v2, 2000 }
 0x7e4   : > { %v11214_v63 = vpack.c.bf16 %v11966_v56, %v11965_v58  ;;  %v19006_v20 = vld [vmem:[#allocation213_spill] sm:$0xff]  ;;  %v11968_v14 = vld [vmem:[%s12265_s28 + $0x3a8] sm:$0xff]  ;;  %vm11215_vm10 = vmpackc.low %vm19009_vm9, %vm19008_vm14  ;;  %vm19028_vm9 = vcmp.lt.s32.totalorder %v18785_v22, 2000 }
 0x7e5   : > { %11284 = vmatpush3.bf16.msra.mxu1 %v11283_v46  ;;  %9215 = vmatmul.mubr.msk.f32.vlgmr.msra.gmra.mrb[130].mxu0 %vm7526_vm15, %v17077_v39  ;;  %v11319_v34 = vpack.c.bf16 %v19006_v20, %v19005_v61  ;;  %v11217_v23 = vpack.c.bf16 %v11968_v14, %v11967_v25  ;;  %v19010_v29 = vld [vmem:[#allocation238_spill] sm:$0xff]  ;;  %v19011_v17 = vld [vmem:[#allocation239_spill] sm:$0xff]  ;;  %vm11218_vm7 = vmpackc.low %vm19013_vm5, %vm19012_vm8  ;;  %vm19032_vm5 = vcmp.lt.s32.totalorder %v18753_v21, 2000 }
 0x7e6   : > { %11318 = vmatprep.subr.bf16.mxu1 %v11317_v1  ;;  %11210 = vmatpush3.bf16.msk.msra.mxu0 %vm11209_vm4, %v11208_v43  ;;  %v11321_v24 = vpack.c.bf16 %v19011_v17, %v19010_v29  ;;  %v11969_v15 = vld [vmem:[%s12265_s28 + $0x320] sm:$0xff]  ;;  %v11970_v19 = vld [vmem:[%s12265_s28 + $0x328] sm:$0xff]  ;;  %v11971_v47 = vld [vmem:[%s12265_s28 + $0x3b0] sm:$0xff]  ;;  %vm19020_vm4 = vcmp.lt.s32.totalorder %v18781_v9, 2000 }
 0x7e7   : > { %9282 = vmatprep.mubr.msk.f32.mxu0 %vm19007_vm13, %v17155_v59  ;;  %11213 = vmatprep.subr.msk.bf16.mxu0 %vm11212_vm6, %v11211_v4  ;;  %v11220_v8 = vpack.c.bf16 %v11970_v19, %v11969_v15  ;;  %v19014_v36 = vld [vmem:[#allocation214_spill] sm:$0xff]  ;;  %vm11224_vm3 = vmpackc.low %vm19021_vm2, %vm19020_vm4  ;;  %v11973_v6 = vld [vmem:[%s12265_s28 + $0x330] sm:$0xff]  ;;  %vm19024_vm6 = vcmp.lt.s32.totalorder %v18749_v5, 2000  ;;  %vm19025_vm13 = vcmp.lt.s32.totalorder %v18751_v44, 2000 }
 0x7e8   : > { %9285 = vmatmul.mubr.msk.f32.vlgmr.msra.gmra.mrb[138].mxu1 %vm7524_vm11, %v17064_v48  ;;  %v11323_v48 = vpack.c.bf16 %v19015_v11, %v19014_v36  ;;  %v11972_v2 = vld [vmem:[%s12265_s28 + $0x3b8] sm:$0xff]  ;;  %vm19016_vm11 = vcmp.lt.s32.totalorder %v18745_v40, 2000  ;;  %v19023_v13 = vld [vmem:[#allocation219_spill] sm:$0xff]  ;;  %vm11227_vm14 = vmpackc.low %vm19025_vm13, %vm19024_vm6 }
 0x7e9   : > { %11320 = vmatpush3.bf16.msra.mxu1 %v11319_v34  ;;  %9288 = vmatprep.mubr.msk.f32.mxu1 %vm7529_vm12, %v17109_v28  ;;  %v11223_v53 = vpack.c.bf16 %v11972_v2, %v11971_v47  ;;  %vm11221_vm12 = vmpackc.low %vm19017_vm1, %vm19016_vm11  ;;  %v19019_v28 = vld [vmem:[#allocation241_spill] sm:$0xff]  ;;  %v19022_v40 = vld [vmem:[#allocation218_spill] sm:$0xff] }
 0x7ea   : > { %11322 = vmatprep.subr.bf16.mxu1 %v11321_v24  ;;  %11216 = vmatpush3.bf16.msk.msra.mxu0 %vm11215_vm10, %v11214_v63  ;;  %v11325_v0 = vpack.c.bf16 %v19019_v28, %v19018_v3  ;;  %v11974_v18 = vld [vmem:[%s12265_s28 + $0x338] sm:$0xff]  ;;  %v11327_v52 = vpack.c.bf16 %v19023_v13, %v19022_v40  ;;  %v11975_v16 = vld [vmem:[%s12265_s28 + $0x3c0] sm:$0xff]  ;;  %v11976_v55 = vld [vmem:[%s12265_s28 + $0x3c8] sm:$0xff]  ;;  %vm19029_vm10 = vcmp.lt.s32.totalorder %v18787_v12, 2000 }
 0x7eb   : > { %11219 = vmatprep.subr.msk.bf16.mxu0 %vm11218_vm7, %v11217_v23  ;;  %v11226_v7 = vpack.c.bf16 %v11974_v18, %v11973_v6  ;;  %v11229_v10 = vpack.c.bf16 %v11976_v55, %v11975_v16  ;;  %v19026_v9 = vld [vmem:[#allocation242_spill] sm:$0xff]  ;;  %v19027_v27 = vld [vmem:[#allocation243_spill] sm:$0xff]  ;;  %vm11230_vm8 = vmpackc.low %vm19029_vm10, %vm19028_vm9  ;;  %vm19033_vm7 = vcmp.lt.s32.totalorder %v18755_v30, 2000 }
 0x7ec   : > { %v11329_v42 = vpack.c.bf16 %v19027_v27, %v19026_v9  ;;  %v11977_v43 = vld [vmem:[%s12265_s28 + $0x340] sm:$0xff]  ;;  %v11978_v51 = vld [vmem:[%s12265_s28 + $0x348] sm:$0xff]  ;;  %v11979_v50 = vld [vmem:[%s12265_s28 + $0x3d0] sm:$0xff] }
 0x7ed   : > { %11324 = vmatpush3.bf16.msra.mxu1 %v11323_v48  ;;  %v11232_v49 = vpack.c.bf16 %v11978_v51, %v11977_v43  ;;  %v19030_v5 = vld [vmem:[#allocation220_spill] sm:$0xff]  ;;  %v19031_v46 = vld [vmem:[#allocation223_spill] sm:$0xff]  ;;  %v11980_v54 = vld [vmem:[%s12265_s28 + $0x3d8] sm:$0xff] }
 0x7ee   : > { %11326 = vmatprep.subr.bf16.mxu1 %v11325_v0  ;;  %11222 = vmatpush3.bf16.msk.msra.mxu0 %vm11221_vm12, %v11220_v8  ;;  %v11331_v44 = vpack.c.bf16 %v19031_v46, %v19030_v5  ;;  %v11235_v4 = vpack.c.bf16 %v11980_v54, %v11979_v50  ;;  %vm11233_vm11 = vmpackc.low %vm19033_vm7, %vm19032_vm5  ;;  %v19034_v22 = vld [vmem:[#allocation244_spill] sm:$0xff]  ;;  %v19035_v12 = vld [vmem:[#allocation247_spill] sm:$0xff] }
 0x7ef   : > { %11225 = vmatprep.subr.msk.bf16.mxu0 %vm11224_vm3, %v11223_v53  ;;  %v11333_v33 = vpack.c.bf16 %v19035_v12, %v19034_v22  ;;  %v19036_v31 = vld [vmem:[#allocation25_spill] sm:$0xff]  ;;  %v19038_v1 = vld [vmem:[#allocation131_spill] sm:$0xff]  ;;  %v19040_v21 = vld [vmem:[#allocation224_spill] sm:$0xff] }
 0x7f0   : > { %vm19037_vm1 = vcmp.lt.s32.totalorder %v19036_v31, 2000  ;;  %vm19039_vm12 = vcmp.lt.s32.totalorder %v19038_v1, 2000  ;;  %v11981_v58 = vld [vmem:[%s12265_s28 + $0x350] sm:$0xff]  ;;  %v11982_v56 = vld [vmem:[%s12265_s28 + $0x358] sm:$0xff]  ;;  %v11983_v20 = vld [vmem:[%s12265_s28 + $0x3e0] sm:$0xff] }
 0x7f1   : > { %11328 = vmatpush3.bf16.msra.mxu1 %v11327_v52  ;;  %vm11236_vm4 = vmpackc.low %vm19039_vm12, %vm19037_vm1  ;;  %v11238_v63 = vpack.c.bf16 %v11982_v56, %v11981_v58  ;;  %v19041_v61 = vld [vmem:[#allocation225_spill] sm:$0xff]  ;;  %v11984_v34 = vld [vmem:[%s12265_s28 + $0x3e8] sm:$0xff] }
 0x7f2   : > { %11330 = vmatprep.subr.bf16.mxu1 %v11329_v42  ;;  %11228 = vmatpush3.bf16.msk.msra.mxu0 %vm11227_vm14, %v11226_v7  ;;  %v11335_v30 = vpack.c.bf16 %v19041_v61, %v19040_v21  ;;  %v11241_v25 = vpack.c.bf16 %v11984_v34, %v11983_v20  ;;  %v19042_v14 = vld [vmem:[#allocation148_spill] sm:$0xff]  ;;  %v19044_v23 = vld [vmem:[#allocation35_spill] sm:$0xff]  ;;  %v19047_v17 = vld [vmem:[#allocation249_spill] sm:$0xff] }
 0x7f3   : > { %11231 = vmatprep.subr.msk.bf16.mxu0 %vm11230_vm8, %v11229_v10  ;;  %vm19043_vm2 = vcmp.lt.s32.totalorder %v19042_v14, 2000  ;;  %vm19045_vm3 = vcmp.lt.s32.totalorder %v19044_v23, 2000  ;;  %v19046_v29 = vld [vmem:[#allocation248_spill] sm:$0xff]  ;;  %v19048_v15 = vld [vmem:[#allocation29_spill] sm:$0xff]  ;;  %v11985_v8 = vld [vmem:[%s12265_s28 + $0x360] sm:$0xff] }
 0x7f4   : > { %vm11239_vm6 = vmpackc.low %vm19045_vm3, %vm19043_vm2  ;;  %v11337_v24 = vpack.c.bf16 %v19047_v17, %v19046_v29  ;;  %vm19049_vm13 = vcmp.lt.s32.totalorder %v19048_v15, 2000  ;;  %v19050_v19 = vld [vmem:[#allocation141_spill] sm:$0xff]  ;;  %v11986_v36 = vld [vmem:[%s12265_s28 + $0x368] sm:$0xff]  ;;  %vm19082_vm3 = vcmp.lt.s32.totalorder %v16896_v57, 2000 }
 0x7f5   : > { %11332 = vmatpush3.bf16.msra.mxu1 %v11331_v44  ;;  %vm19051_vm14 = vcmp.lt.s32.totalorder %v19050_v19, 2000  ;;  %v11244_v11 = vpack.c.bf16 %v11986_v36, %v11985_v8  ;;  %v19052_v48 = vld [vmem:[#allocation226_spill] sm:$0xff]  ;;  %v19053_v47 = vld [vmem:[#allocation229_spill] sm:$0xff]  ;;  %v19054_v0 = vld [vmem:[#allocation132_spill] sm:$0xff] }
 0x7f6   : > { %11334 = vmatprep.subr.bf16.mxu1 %v11333_v33  ;;  %11234 = vmatpush3.bf16.msk.msra.mxu0 %vm11233_vm11, %v11232_v49  ;;  %vm11242_vm9 = vmpackc.low %vm19051_vm14, %vm19049_vm13  ;;  %v11339_v2 = vpack.c.bf16 %v19053_v47, %v19052_v48  ;;  %v11987_v53 = vld [vmem:[%s12265_s28 + $0x3f0] sm:$0xff]  ;;  %v11988_v3 = vld [vmem:[%s12265_s28 + $0x3f8] sm:$0xff]  ;;  %vm19055_vm10 = vcmp.lt.s32.totalorder %v19054_v0, 2000  ;;  %vm19156_vm13 = vcmask 0   ;;  %vm8264_vm14 = vcmask 253952  }
 0x7f7   : > { %11237 = vmatprep.subr.msk.bf16.mxu0 %vm11236_vm4, %v11235_v4  ;;  %v11247_v28 = vpack.c.bf16 %v11988_v3, %v11987_v53  ;;  %v19056_v6 = vld [vmem:[#allocation135_spill] sm:$0xff]  ;;  %v19058_v18 = vld [vmem:[#allocation33_spill] sm:$0xff]  ;;  %v19060_v7 = vld [vmem:[#allocation156_spill] sm:$0xff] }
 0x7f8   : > { %vm19057_vm8 = vcmp.lt.s32.totalorder %v19056_v6, 2000  ;;  %vm19059_vm7 = vcmp.lt.s32.totalorder %v19058_v18, 2000  ;;  %vm19061_vm11 = vcmp.lt.s32.totalorder %v19060_v7, 2000  ;;  %v11989_v40 = vld [vmem:[%s12265_s28 + $0x370] sm:$0xff]  ;;  %v11990_v13 = vld [vmem:[%s12265_s28 + $0x378] sm:$0xff]  ;;  %v19069_v51 = vld [vmem:[#allocation139_spill] sm:$0xff] }
 0x7f9   : > { %11336 = vmatpush3.bf16.msra.mxu1 %v11335_v30  ;;  %vm11245_vm5 = vmpackc.low %vm19057_vm8, %vm19055_vm10  ;;  %v11250_v52 = vpack.c.bf16 %v11990_v13, %v11989_v40  ;;  %v19062_v16 = vld [vmem:[#allocation208_spill] sm:$0xff]  ;;  %v19063_v55 = vld [vmem:[#allocation210_spill] sm:$0xff]  ;;  %vm19070_vm4 = vcmp.lt.s32.totalorder %v19069_v51, 2000  ;;  %vm19157_vm10 = vcmask (!%p9292_p5), 261120   ;;  %vm8479_vm8 = vcmask (!%p9292_p5), 516096  }
 0x7fa   : > { %11338 = vmatprep.subr.bf16.mxu1 %v11337_v24  ;;  %11240 = vmatpush3.bf16.msk.msra.mxu0 %vm11239_vm6, %v11238_v63  ;;  %vm11248_vm1 = vmpackc.low %vm19061_vm11, %vm19059_vm7  ;;  %v19064_v10 = vpack.c.bf16 %v19062_v16, %v19063_v55  ;;  %v19065_v9 = vld [vmem:[#allocation230_spill] sm:$0xff]  ;;  %v19066_v27 = vld [vmem:[#allocation233_spill] sm:$0xff]  ;;  %vm19085_vm6 = vcmp.lt.s32.totalorder %v16869_v60, 2000 }
 0x7fb   : > { %11243 = vmatprep.subr.msk.bf16.mxu0 %vm11242_vm9, %v11241_v25  ;;  %v11343_v42 = vpack.c.bf16 %v19066_v27, %v19065_v9  ;;  %v19067_v43 = vld [vmem:[#allocation136_spill] sm:$0xff]  ;;  %v19072_v5 = vld [vmem:[#allocation201_spill] sm:$0xff]  ;;  %v19073_v44 = vld [vmem:[#allocation215_spill] sm:$0xff]  ;;  %vm12134_vm9 = vmmov (!%p9292_p5), 0  }
 0x7fc   : > { %vm19068_vm12 = vcmp.lt.s32.totalorder %v19067_v43, 2000  ;;  %v19071_v49 = vld [vmem:[#allocation200_spill] sm:$0xff]  ;;  %v19077_v22 = vld [vmem:[#allocation235_spill] sm:$0xff]  ;;  %v19078_v33 = vld [vmem:[#allocation186_spill] sm:$0xff] }
 0x7fd   : > { %11340 = vmatpush3.bf16.msra.mxu1 %v11339_v2  ;;  %vm11251_vm2 = vmpackc.low %vm19070_vm4, %vm19068_vm12  ;;  %v11285_v46 = vpack.c.bf16 %v19072_v5, %v19071_v49  ;;  %v19074_v50 = vld [vmem:[#allocation216_spill] sm:$0xff]  ;;  %v19079_v31 = vld [vmem:[#allocation187_spill] sm:$0xff] }
 0x7fe   : > { %11342 = vmatprep.subr.bf16.mxu1 %v19064_v10  ;;  %11246 = vmatpush3.bf16.msk.msra.mxu0 %vm11245_vm5, %v11244_v11  ;;  %v19075_v54 = vpack.c.bf16 %v19073_v44, %v19074_v50  ;;  %v19076_v4 = vld [vmem:[#allocation108_spill] sm:$0xff]  ;;  %v11287_v1 = vpack.c.bf16 %v19079_v31, %v19078_v33  ;;  %v19080_v58 = vld [vmem:[#allocation202_spill] sm:$0xff]  ;;  %v19081_v56 = vld [vmem:[#allocation203_spill] sm:$0xff]  ;;  %vm19158_vm5 = vcmask (!%p9292_p5), 0  }
 0x7ff   : > { %11249 = vmatprep.subr.msk.bf16.mxu0 %vm11248_vm1, %v11247_v28  ;;  %v11347_v12 = vpack.c.bf16 %v19077_v22, %v19076_v4  ;;  %v11289_v63 = vpack.c.bf16 %v19081_v56, %v19080_v58  ;;  %v19083_v21 = vld [vmem:[#allocation188_spill] sm:$0xff]  ;;  %v19084_v61 = vld [vmem:[#allocation189_spill] sm:$0xff]  ;;  %v19088_v14 = vld [vmem:[#allocation190_spill] sm:$0xff] }
 0x800   : > { %v11291_v30 = vpack.c.bf16 %v19084_v61, %v19083_v21  ;;  %v19086_v20 = vld [vmem:[#allocation204_spill] sm:$0xff]  ;;  %v19087_v34 = vld [vmem:[#allocation205_spill] sm:$0xff]  ;;  %v19089_v23 = vld [vmem:[#allocation191_spill] sm:$0xff] }
 0x801   : > { %11344 = vmatpush3.bf16.msra.mxu1 %v11343_v42  ;;  %v11293_v25 = vpack.c.bf16 %v19087_v34, %v19086_v20  ;;  %v11295_v29 = vpack.c.bf16 %v19089_v23, %v19088_v14  ;;  %v19090_v17 = vld [vmem:[#allocation206_spill] sm:$0xff]  ;;  %v19091_v24 = vld [vmem:[#allocation207_spill] sm:$0xff]  ;;  %v19093_v15 = vld [vmem:[#allocation193_spill] sm:$0xff] }
 0x802   : > { %11346 = vmatprep.subr.bf16.mxu1 %v19075_v54  ;;  %11252 = vmatpush3.bf16.msk.msra.mxu0 %vm11251_vm2, %v11250_v52  ;;  %v11297_v45 = vpack.c.bf16 %v19091_v24, %v19090_v17  ;;  %v19094_v8 = vld [vmem:[#allocation162_spill] sm:$0xff]  ;;  %v19095_v36 = vld [vmem:[#allocation161_spill] sm:$0xff]  ;;  %v19097_v11 = vld [vmem:[#allocation195_spill] sm:$0xff] }
 0x803   : > { %11286 = vmatprep.subr.bf16.mxu0 %v11285_v46  ;;  %v11301_v60 = vpack.c.bf16 %v19095_v36, %v19094_v8  ;;  %v19098_v47 = vld [vmem:[#allocation164_spill] sm:$0xff]  ;;  %v19099_v2 = vld [vmem:[#allocation163_spill] sm:$0xff]  ;;  %v19102_v6 = vld [vmem:[#allocation166_spill] sm:$0xff] }
 0x804   : > { %v11305_v53 = vpack.c.bf16 %v19099_v2, %v19098_v47  ;;  %v19100_v3 = vld [vmem:[#allocation160_spill] sm:$0xff]  ;;  %v19101_v28 = vld [vmem:[#allocation159_spill] sm:$0xff]  ;;  %v19103_v18 = vld [vmem:[#allocation165_spill] sm:$0xff] }
 0x805   : > { %11348 = vmatpush3.bf16.msra.mxu1 %v11347_v12  ;;  %9283 = vmatmul.mubr.msk.f32.vlgmr.msra.gmra.mrb[132].mxu0 %vm19082_vm3, %v17134_v32  ;;  %v11307_v0 = vpack.c.bf16 %v19101_v28, %v19100_v3  ;;  %v11309_v7 = vpack.c.bf16 %v19103_v18, %v19102_v6  ;;  %v19104_v40 = vld [vmem:[#allocation196_spill] sm:$0xff]  ;;  %v19105_v13 = vld [vmem:[#allocation197_spill] sm:$0xff]  ;;  %v19107_v55 = vld [vmem:[#allocation211_spill] sm:$0xff] }
 0x806   : > { %11288 = vmatpush3.bf16.msra.mxu0 %v11287_v1  ;;  %9286 = vmatprep.mubr.msk.f32.mxu0 %vm7527_vm0, %v17092_v38  ;;  %v19092_v38 = vld [vmem:[#allocation192_spill] sm:$0xff]  ;;  %v11311_v52 = vpack.c.bf16 %v19105_v13, %v19104_v40  ;;  %v19106_v16 = vld [vmem:[#allocation209_spill] sm:$0xff]  ;;  %v19108_v9 = vld [vmem:[#allocation198_spill] sm:$0xff]  ;;  %vm19116_vm0 = vcmp.lt.s32.totalorder %v16899_v37, 2000 }
 0x807   : > { %11290 = vmatprep.subr.bf16.mxu0 %v11289_v63  ;;  %v11299_v19 = vpack.c.bf16 %v19093_v15, %v19092_v38  ;;  %v11313_v10 = vpack.c.bf16 %v19107_v55, %v19106_v16  ;;  %v19109_v27 = vld [vmem:[#allocation199_spill] sm:$0xff]  ;;  %v19110_v43 = vld [vmem:[#allocation256_spill] sm:$0xff]  ;;  %v19111_v51 = vld [vmem:[#allocation257_spill] sm:$0xff] }
 0x808   : > { %9289 = vmatmul.mubr.msk.f32.vlgmr.msra.gmra.mrb[140].mxu1 %vm19085_vm6, %v17101_v41  ;;  %v19096_v41 = vld [vmem:[#allocation194_spill] sm:$0xff]  ;;  %v11315_v42 = vpack.c.bf16 %v19109_v27, %v19108_v9  ;;  %v19112_v49 = vpack.c.bf16 %v19110_v43, %v19111_v51  ;;  %v19113_v5 = vld [vmem:[#allocation221_spill] sm:$0xff]  ;;  %v19118_v54 = vld [vmem:[#allocation259_spill] sm:$0xff] }
 0x809   : > { %v11303_v48 = vpack.c.bf16 %v19097_v11, %v19096_v41  ;;  %v19114_v46 = vld [vmem:[#allocation222_spill] sm:$0xff]  ;;  %v19120_v22 = vld [vmem:[#allocation227_spill] sm:$0xff]  ;;  %v19121_v12 = vld [vmem:[#allocation228_spill] sm:$0xff] }
 0x80a   : > { %11292 = vmatpush3.bf16.msra.mxu0 %v11291_v30  ;;  %v19115_v44 = vpack.c.bf16 %v19113_v5, %v19114_v46  ;;  %v19117_v50 = vld [vmem:[#allocation258_spill] sm:$0xff]  ;;  %v19122_v33 = vpack.c.bf16 %v19120_v22, %v19121_v12  ;;  %v19123_v31 = vld [vmem:[#allocation260_spill] sm:$0xff]  ;;  %v19124_v1 = vld [vmem:[#allocation261_spill] sm:$0xff]  ;;  %v7692_v46 = vpop.permute.xlu1 %7691 }
 0x80b   : > { %11294 = vmatprep.subr.bf16.mxu0 %v11293_v25  ;;  %v19119_v4 = vpack.c.bf16 %v19117_v50, %v19118_v54  ;;  %v19125_v35 = vpack.c.bf16 %v19123_v31, %v19124_v1  ;;  %v19127_v58 = vld [vmem:[#allocation232_spill] sm:$0xff]  ;;  %v19129_v63 = vld [vmem:[#allocation262_spill] sm:$0xff]  ;;  %v19130_v21 = vld [vmem:[#allocation263_spill] sm:$0xff] }
 0x80c   : > { %v19131_v37 = vpack.c.bf16 %v19129_v63, %v19130_v21  ;;  %v19133_v61 = vld [vmem:[#allocation265_spill] sm:$0xff]  ;;  %v19135_v34 = vld [vmem:[#allocation234_spill] sm:$0xff]  ;;  %v19138_v23 = vld [vmem:[#allocation267_spill] sm:$0xff] }
 0x80d   : > { %v19134_v20 = vld [vmem:[#allocation109_spill] sm:$0xff]  ;;  %v19137_v14 = vld [vmem:[#allocation266_spill] sm:$0xff]  ;;  %v19142_v38 = vld [vmem:[#allocation268_spill] sm:$0xff] }
 0x80e   : > { %11296 = vmatpush3.bf16.msra.mxu0 %v11295_v29  ;;  %v19136_v25 = vpack.c.bf16 %v19134_v20, %v19135_v34  ;;  %v11369_v29 = vpack.c.bf16 %v19138_v23, %v19137_v14  ;;  %v19139_v17 = vld [vmem:[#allocation245_spill] sm:$0xff]  ;;  %v19140_v24 = vld [vmem:[#allocation246_spill] sm:$0xff]  ;;  %v19145_v36 = vld [vmem:[#allocation251_spill] sm:$0xff] }
 0x80f   : > { %11298 = vmatprep.subr.bf16.mxu0 %v11297_v45  ;;  %v19141_v45 = vpack.c.bf16 %v19139_v17, %v19140_v24  ;;  %v19143_v15 = vld [vmem:[#allocation269_spill] sm:$0xff]  ;;  %v19144_v8 = vld [vmem:[#allocation250_spill] sm:$0xff]  ;;  %v19148_v11 = vld [vmem:[#allocation271_spill] sm:$0xff] }
 0x810   : > { %v19147_v41 = vld [vmem:[#allocation270_spill] sm:$0xff]  ;;  %v19149_v47 = vld [vmem:[#allocation252_spill] sm:$0xff]  ;;  %v19150_v2 = vld [vmem:[#allocation253_spill] sm:$0xff] }
 0x811   : > { %v19152_v3 = vld [vmem:[#allocation254_spill] sm:$0xff]  ;;  %v19153_v28 = vld [vmem:[#allocation255_spill] sm:$0xff] }
 0x812   : > { %11300 = vmatpush3.bf16.msra.mxu0 %v11299_v19  ;;  %v11373_v19 = vpack.c.bf16 %v19143_v15, %v19142_v38  ;;  %v7666_v6 = vld [vmem:[#allocation3] sm:$0x1]  ;;  %v7688_v50 = vld [vmem:[#allocation4] sm:$0x1]  ;;  %v8291_v14 = vld [vmem:[#allocation2] sm:$0x1] (!%p9292_p5) }
 0x813   : > { %11302 = vmatprep.subr.bf16.mxu0 %v11301_v60  ;;  %v19146_v60 = vpack.c.bf16 %v19144_v8, %v19145_v36  ;;  %v7667_v18 = vmul.f32 %v17037_v62, %v7666_v6  ;;  %v7697_v62 = vrot.slane %v7692_v46, %v17053_v26  ;;  %v8311_v17 = vld [vmem:[%s17675_s12] sm:$0xff] (!%p9292_p5)  ;;  %v8312_v24 = vld [vmem:[%s17675_s12 + $0x8] sm:$0xff] (!%p9292_p5)  ;;  %v12133_v38 = vmov (!%p9292_p5), 0.0|0.0  }
 0x814   : > { %11387 = vmatprep.subr.bf16.mxu1 (!%p9292_p5), %v12133_v38  ;;  %v11388_v15 = vpack.c.bf16 (!%p9292_p5), %v8312_v24, %v8311_v17  ;;  %v8315_v36 = vld [vmem:[%s17675_s12 + $0x20] sm:$0xff] (!%p9292_p5) }
 0x815   : > { %v7698_v12 = vmul.f32 %v7697_v62, %v7688_v50 }
 0x816   : > { %11304 = vmatpush3.bf16.msra.mxu0 %v11303_v48  ;;  %v11377_v48 = vpack.c.bf16 %v19148_v11, %v19147_v41  ;;  %11389 = vmatpush3.bf16.msra.mxu1 (!%p9292_p5), %v11388_v15  ;;  %v8327_v41 = vld [vmem:[%s17676_s13] sm:$0xff] (!%p9292_p5)  ;;  %v8328_v11 = vld [vmem:[%s17676_s13 + $0x8] sm:$0xff] (!%p9292_p5) }
 0x817   : > { %11306 = vmatprep.subr.bf16.mxu0 %v11305_v53  ;;  %v19151_v53 = vpack.c.bf16 %v19149_v47, %v19150_v2  ;;  %11390 = vmatprep.subr.bf16.mxu1 (!%p9292_p5), %v12133_v38  ;;  %v11382_v47 = vpack.c.bf16 (!%p9292_p5), %v8328_v11, %v8327_v41  ;;  %v8317_v2 = vld [vmem:[%s17675_s12 + $0x30] sm:$0xff] (!%p9292_p5) }
 0x81a   : > { %11308 = vmatpush3.bf16.msra.mxu0 %v11307_v0  ;;  %v19154_v0 = vpack.c.bf16 %v19152_v3, %v19153_v28  ;;  %v8329_v28 = vld [vmem:[%s17676_s13 + $0x10] sm:$0xff] (!%p9292_p5) }
 0x81b   : > { %11310 = vmatprep.subr.bf16.mxu0 %v11309_v7 }
 0x81e   : > { %11312 = vmatpush3.bf16.msra.mxu0 %v11311_v52 }
 0x81f   : > { %11314 = vmatprep.subr.bf16.mxu0 %v11313_v10 }
 0x822   : > { %11316 = vmatpush3.bf16.msra.mxu0 %v11315_v42 }
 0x823   : > { %11350 = vmatprep.subr.bf16.mxu0 %v19112_v49 }
 0x825   : > { %9287 = vmatmul.mubr.msk.f32.vlgmr.msra.gmra.mrb[134].mxu0 %vm7526_vm15, %v17077_v39  ;;  %v19126_v39 = vld [vmem:[#allocation231_spill] sm:$0xff]  ;;  %vm19155_vm15 = vmmov %vm19082_vm3 }
 0x826   : > { %11352 = vmatpush3.bf16.msra.mxu0 %v19115_v44  ;;  %9290 = vmatprep.mubr.msk.f32.mxu0 %vm19116_vm0, %v17155_v59  ;;  %v19128_v56 = vpack.c.bf16 %v19126_v39, %v19127_v58  ;;  %v19132_v59 = vld [vmem:[#allocation264_spill] sm:$0xff] }
 0x827   : > { %11354 = vmatprep.subr.bf16.mxu0 %v19119_v4  ;;  %v11365_v30 = vpack.c.bf16 %v19133_v61, %v19132_v59  ;;  %v7981_v59 = vld [vmem:[#allocation5] sm:$0x1] }
 0x828   : > { %v7982_v20 = vmul.f32 %v7981_v59, %v7697_v62 }
 0x82a   : > { %11356 = vmatpush3.bf16.msra.mxu0 %v19122_v33 }
 0x82b   : > { %11358 = vmatprep.subr.bf16.mxu0 %v19125_v35 }
 0x82e   : > { %11360 = vmatpush3.bf16.msra.mxu0 %v19128_v56 }
 0x82f   : > { %11362 = vmatprep.subr.bf16.mxu0 %v19131_v37 }
 0x832   : > { %11364 = vmatpush3.bf16.msra.mxu0 %v19136_v25 }
 0x833   : > { %11366 = vmatprep.subr.bf16.mxu0 %v11365_v30 }
 0x836   : > { %11368 = vmatpush3.bf16.msra.mxu0 %v19141_v45  ;;  %v8313_v45 = vld [vmem:[%s17675_s12 + $0x10] sm:$0xff] (!%p9292_p5) }
 0x837   : > { %11370 = vmatprep.subr.bf16.mxu0 %v11369_v29  ;;  %v12132_v29 = vmov (!%p9292_p5), 0  }
 0x838   : > { %11992 = vset.pattern.permute.xlu1 (!%p9292_p5), %v12132_v29  ;;  %11991 = vset.pattern.permute.xlu0 (!%p9292_p5), %v12132_v29 }
 0x839   : > { %8294 = vperm.xlu1 (!%p9292_p5), %11992, %v8291_v14  }
 0x83a   : > { %11372 = vmatpush3.bf16.msra.mxu0 %v19146_v60  ;;  %v8316_v60 = vld [vmem:[%s17675_s12 + $0x28] sm:$0xff] (!%p9292_p5) }
 0x83b   : > { %11374 = vmatprep.subr.bf16.mxu0 %v11373_v19  ;;  %v8314_v19 = vld [vmem:[%s17675_s12 + $0x18] sm:$0xff] (!%p9292_p5) }
 0x83c   : > { %v11391_v8 = vpack.c.bf16 (!%p9292_p5), %v8314_v19, %v8313_v45 }
 0x83e   : > { %11376 = vmatpush3.bf16.msra.mxu0 %v19151_v53  ;;  %11392 = vmatpush3.bf16.msra.mxu1 (!%p9292_p5), %v11391_v8  ;;  %v8318_v53 = vld [vmem:[%s17675_s12 + $0x38] sm:$0xff] (!%p9292_p5) }
 0x83f   : > { %11378 = vmatprep.subr.bf16.mxu0 %v11377_v48  ;;  %v11394_v48 = vpack.c.bf16 (!%p9292_p5), %v8316_v60, %v8315_v36  ;;  %11393 = vmatprep.subr.bf16.mxu1 (!%p9292_p5), %v12133_v38  ;;  %v11397_v6 = vpack.c.bf16 (!%p9292_p5), %v8318_v53, %v8317_v2 }
 0x842   : > { %11380 = vmatpush3.bf16.msra.mxu0 %v19154_v0  ;;  %v8330_v0 = vld [vmem:[%s17676_s13 + $0x18] sm:$0xff] (!%p9292_p5)  ;;  %11395 = vmatpush3.bf16.msra.mxu1 (!%p9292_p5), %v11394_v48 }
 0x843   : > { %11381 = vmatprep.subr.bf16.mxu0 (!%p9292_p5), %v12133_v38  ;;  %11396 = vmatprep.subr.bf16.mxu1 (!%p9292_p5), %v12133_v38 }
 0x845   : > { %9291 = vmatmul.mubr.msk.f32.vlgmr.msra.gmra.mrb[136].mxu0 %vm19155_vm15, %v17134_v32 }
 0x846   : > { %11383 = vmatpush3.bf16.msra.mxu0 (!%p9292_p5), %v11382_v47  ;;  %11398 = vmatpush3.bf16.msra.mxu1 (!%p9292_p5), %v11397_v6 }
 0x847   : > { %11384 = vmatprep.subr.bf16.mxu0 (!%p9292_p5), %v12133_v38  ;;  %11399 = vmatprep.subr.bf16.mxu1 (!%p9292_p5), %v12133_v38 }
 0x860   : > { %v7684_v7 = vpop.xlane.xlu0 %7683 }
 0x861   : > { %v7685_v40 = vadd.f32 %v7684_v7, %v7667_v18  ;;  %v11385_v18 = vpack.c.bf16 (!%p9292_p5), %v8330_v0, %v8329_v28  ;;  %v8319_v7 = vld [vmem:[%s17675_s12 + $0x40] sm:$0xff] (!%p9292_p5) }
 0x863   : > { %7687 = vst.msk [vmem:[#allocation3] sm:$0x1] %vm19156_vm13, %v7685_v40  ;;  %v8320_v40 = vld [vmem:[%s17675_s12 + $0x48] sm:$0xff] (!%p9292_p5)  ;;  %11386 = vmatpush3.bf16.msra.mxu0 (!%p9292_p5), %v11385_v18 }
 0x86a   : > { %v8271_v23 = vld [vmem:[#allocation3] sm:$0x1] (!%p9292_p5) }
 0x86b   : > { %11993 = vrcp.f32 (!%p9292_p5), %v8271_v23  ;;  %v8484_v23 = vstv (!%p9292_p5), %s8483_s23 }
 0x875   : > { %v11994_v3 = vpop.eup (!%p9292_p5), %11993 }
 0x876   : > { %8277 = vperm.xlu0 (!%p9292_p5), %11991, %v11994_v3  }
 0x897   : > { %v9881_v13 = vpop.f32.mrb[128].mxu0 }
 0x898   : > { %v9882_v52 = vpop.f32.mrb[129].mxu0 }
 0x899   : > { %v9883_v16 = vadd.f32 %v9882_v52, %v9881_v13  ;;  %v11400_v13 = vpack.c.bf16 (!%p9292_p5), %v8320_v40, %v8319_v7  ;;  %v12135_v52 = vmov (!%p9292_p5), 0.0  }
 0x89a   : > { %10783 = vmatprep.mubr.msk.f32.mxu0 (!%p9292_p5), %vm12134_vm9, %v12135_v52  ;;  %10818 = vmatprep.mubr.msk.f32.mxu1 (!%p9292_p5), %vm12134_vm9, %v12135_v52 }
 0x89b   : > { %v9951_v55 = vpop.f32.mrb[136].mxu1  ;;  %11401 = vmatpush3.bf16.msra.mxu1 (!%p9292_p5), %v11400_v13 }
 0x89c   : > { %v9952_v10 = vpop.f32.mrb[137].mxu1  ;;  %11402 = vmatprep.subr.bf16.mxu1 (!%p9292_p5), %v12133_v38 }
 0x89d   : > { %v9953_v9 = vadd.f32 %v9952_v10, %v9951_v55  ;;  %v8322_v55 = vld [vmem:[%s17675_s12 + $0x58] sm:$0xff] (!%p9292_p5) }
 0x8b8   : > { %v9916_v27 = vpop.f32.mrb[130].mxu0 }
 0x8b9   : > { %v9917_v42 = vpop.f32.mrb[131].mxu0 }
 0x8ba   : > { %v9918_v43 = vadd.f32 %v9917_v42, %v9916_v27  ;;  %v8324_v27 = vld [vmem:[%s17675_s12 + $0x68] sm:$0xff] (!%p9292_p5) }
 0x8bb   : > { %v10021_v51 = vpop.f32.mrb[138].mxu1 }
 0x8bc   : > { %v7836_v49 = vadd.f32 %v9918_v43, %v9883_v16  ;;  %v10022_v57 = vpop.f32.mrb[139].mxu1  ;;  %v8321_v16 = vld [vmem:[%s17675_s12 + $0x50] sm:$0xff] (!%p9292_p5) }
 0x8bd   : > { %v10023_v32 = vadd.f32 %v10022_v57, %v10021_v51  ;;  %v11403_v10 = vpack.c.bf16 (!%p9292_p5), %v8322_v55, %v8321_v16  ;;  %v8325_v43 = vld [vmem:[%s17675_s12 + $0x70] sm:$0xff] (!%p9292_p5)  ;;  %v8326_v51 = vld [vmem:[%s17675_s12 + $0x78] sm:$0xff] (!%p9292_p5)  ;;  %v8289_v57 = vld [vmem:[#allocation12] sm:$0xff] (!%p9292_p5) }
 0x8be   : > { %v7906_v5 = vadd.f32 %v9953_v9, %v7836_v49  ;;  %v8323_v9 = vld [vmem:[%s17675_s12 + $0x60] sm:$0xff] (!%p9292_p5)  ;;  %v11409_v49 = vpack.c.bf16 (!%p9292_p5), %v8326_v51, %v8325_v43 }
 0x8bf   : > { %11404 = vmatpush3.bf16.msra.mxu1 (!%p9292_p5), %v11403_v10  ;;  %v11406_v42 = vpack.c.bf16 (!%p9292_p5), %v8324_v27, %v8323_v9 }
 0x8c0   : > { %11405 = vmatprep.subr.bf16.mxu1 (!%p9292_p5), %v12133_v38 }
 0x8c3   : > { %11407 = vmatpush3.bf16.msra.mxu1 (!%p9292_p5), %v11406_v42 }
 0x8c4   : > { %11408 = vmatprep.subr.bf16.mxu1 (!%p9292_p5), %v12133_v38 }
 0x8c7   : > { %11410 = vmatpush3.bf16.msra.mxu1 (!%p9292_p5), %v11409_v49 }
 0x8d8   : > { %v9986_v44 = vpop.f32.mrb[132].mxu0 }
 0x8d9   : > { %v9987_v54 = vpop.f32.mrb[133].mxu0 }
 0x8da   : > { %v9988_v4 = vadd.f32 %v9987_v54, %v9986_v44 }
 0x8db   : > { %v10091_v22 = vpop.f32.mrb[140].mxu1 }
 0x8dc   : > { %v7976_v33 = vadd.f32 %v9988_v4, %v7906_v5  ;;  %v10092_v31 = vpop.f32.mrb[141].mxu1  ;;  %v8295_v5 = vpop.permute.xlu1 (!%p9292_p5), %8294 }
 0x8dd   : > { %v10093_v1 = vadd.f32 %v10092_v31, %v10091_v22  ;;  %v8300_v46 = vrot.slane (!%p9292_p5), %v8295_v5, %v17053_v26 }
 0x8de   : > { %v7979_v35 = vadd.f32 %v7976_v33, %v7698_v12 }
 0x8df   : > { %v8301_v62 = vsub.f32 (!%p9292_p5), %v8289_v57, %v8300_v46 }
 0x8e0   : > { %7980 = vst [vmem:[#allocation4] sm:$0x1] %v7979_v35 }
 0x8e1   : > { %v8303_v50 = vmul.f32 (!%p9292_p5), 1.442695, %v8301_v62 }
 0x8e3   : > { %11995 = vpow2.f32 (!%p9292_p5), %v8303_v50 }
 0x8e7   : > { %v8274_v12 = vld [vmem:[#allocation4] sm:$0x1] (!%p9292_p5) }
 0x8ed   : > { %v11996_v35 = vpop.eup (!%p9292_p5), %11995 }
 0x8f5   : > { %v8278_v4 = vpop.permute.xlu0 (!%p9292_p5), %8277 }
 0x8f6   : > { %v8283_v33 = vrot.slane (!%p9292_p5), %v8278_v4, %v17053_v26  ;;  %v8474_v26 = vld [vmem:[%s17677_s14] sm:$0x1] (!%p9292_p5) }
 0x8f8   : > { %v10056_v39 = vpop.f32.mrb[134].mxu0 }
 0x8f9   : > { %v10057_v58 = vpop.f32.mrb[135].mxu0 }
 0x8fa   : > { %v10058_v56 = vadd.f32 %v10057_v58, %v10056_v39  ;;  %v8307_v58 = vmul.f32 (!%p9292_p5), %v11996_v35, %v8283_v33 }
 0x8fc   : > { %v8120_v63 = vadd.f32 %v10058_v56, %v10023_v32  ;;  %v8290_v32 = vld [vmem:[#allocation12 + $0x8] sm:$0xff] (!%p9292_p5)  ;;  %8309 = vst [vmem:[#allocation12] sm:$0xff] (!%p9292_p5), %v8307_v58 }
 0x8fd   : > { %v8302_v44 = vsub.f32 (!%p9292_p5), %v8290_v32, %v8300_v46 }
 0x8fe   : > { %v8190_v21 = vadd.f32 %v10093_v1, %v8120_v63  ;;  %v8284_v1 = vmul.f32 (!%p9292_p5), %v8283_v33, %v8274_v12 }
 0x8ff   : > { %v8305_v54 = vmul.f32 (!%p9292_p5), 1.442695, %v8302_v44 }
 0x900   : > { %8287 = vst [vmem:[#allocation8] sm:$0x1] (!%p9292_p5), %v8284_v1  ;;  %10819 = vmatmul.mubr.f32.vlgmr.msra.gmra.mrb[0].mxu1 (!%p9292_p5), %v8284_v1 }
 0x901   : > { %11997 = vpow2.f32 (!%p9292_p5), %v8305_v54 }
 0x90b   : > { %v11998_v39 = vpop.eup (!%p9292_p5), %11997 }
 0x90c   : > { %v8308_v56 = vmul.f32 (!%p9292_p5), %v11998_v39, %v8283_v33 }
 0x90e   : > { %8310 = vst [vmem:[#allocation12 + $0x8] sm:$0xff] (!%p9292_p5), %v8308_v56 }
 0x918   : > { %v10126_v37 = vpop.f32.mrb[136].mxu0 }
 0x919   : > { %v10127_v61 = vpop.f32.mrb[137].mxu0 }
 0x91a   : > { %v10128_v30 = vadd.f32 %v10127_v61, %v10126_v37  ;;  %8270 = sbr.rel (%p9292_p5) target bundleno = 2738 (0xab2), region = 96 }
 0x91c   : > { %v8260_v34 = vadd.f32 %v10128_v30, %v8190_v21 }
 0x91e   : > { %v8263_v25 = vadd.f32 %v8260_v34, %v7982_v20  ;;  %v8477_v20 = vld [vmem:[%s17678_s15] sm:$0x1] (!%p9292_p5) }
 0x920   : > { %8265 = vst.msk [vmem:[#allocation5] sm:$0x1] %vm8264_vm14, %v8263_v25 }
 0x927   : > { %v8285_v22 = vld [vmem:[#allocation5] sm:$0x1] }
 0x928   : > { %v8286_v31 = vmul.f32 %v8285_v22, %v8283_v33 }
 0x92a   : > { %8288 = vst.msk [vmem:[#allocation10] sm:$0x1] %vm8264_vm14, %v8286_v31  ;;  %10784 = vmatmul.mubr.msk.f32.vlgmr.msra.gmra.mrb[0].mxu0 %vm19157_vm10, %v8286_v31 }
 0x9d3   : > { %v8470_v21 = vpop.f32.mrb[0].mxu1 }
 0x9d4   : > { %v10820_v61 = vpop.f32.mrb[1].mxu1 }
 0x9fd   : > { %v8400_v63 = vpop.f32.mrb[0].mxu0 }
 0x9fe   : > { %v8471_v37 = vadd.f32 %v8470_v21, %v8400_v63  ;;  %v10785_v59 = vpop.f32.mrb[1].mxu0 }
 0xa00   : > { %v8475_v30 = vadd.f32 %v8474_v26, %v8471_v37 }
 0xa02   : > { %v8476_v34 = vmax.f32 %v8475_v30, 0.0 }
 0xa04   : > { %v8478_v25 = vmul.f32 %v8477_v20, %v8476_v34 }
 0xa06   : > { %v8480_v14 = vsel %vm8479_vm8, %v8478_v25, 0.0 }
 0xa07   : > { %8481 = vadd.xlane.f32.xlu0 %v8480_v14 }
 0xa94   : > { %v8482_v29 = vpop.xlane.xlu0 %8481 }
 0xa95   : > { %v8485_v17 = vadd.f32 %v8484_v23, %v8482_v29 }
 0xa97   : > { %v9294_v24 = vmul.f32 -1.442695, %v8485_v17 }
 0xa99   : > { %11999 = vpow2.f32 %v9294_v24 }
 0xaa3   : > { %v12000_v45 = vpop.eup %11999 }
 0xaa4   : > { %v8489_v38 = vadd.f32 1.0, %v12000_v45 }
 0xaa6   : > { %12001 = vrcp.f32 %v8489_v38 }
 0xab0   : > { %v12002_v15 = vpop.eup %12001 }
 0xab1   : > { %8492 = vst.msk [vmem:[#allocation13] sm:$0x1] %vm19158_vm5, %v12002_v15 }
 0xab2 PF: > { %p11559_p6 = scmp.eq.s32.totalorder %s12257_s25, 1  ;;  %s12136_s24 = smov [#allocation10]  }
 0xab3   : > { %s8511_s16 = sshll.u32 %s12136_s24, 4  ;;  %s12137_s3 = smov [#allocation8]   ;;  %s8512_s16 = int_to_ptr.vmem [resolvable:$true] %s8511_s16 }
 0xab4   : > { %s8500_s28 = sshll.u32 %s12137_s3, 4  ;;  %s12003_s21 = scalar_lea.vmem %s8512_s16, 16  ;;  %s8501_s28 = int_to_ptr.vmem [resolvable:$true] %s8500_s28 }
 0xab5   : > { %p12004_p7 = scmp.ne.s32.totalorder %s8512_s16, %s12003_s21  ;;  %s12009_s26 = scalar_lea.vmem %s8512_s16, 32 }
 0xab6   : > { %p12010_p10 = scmp.lt.s32.totalorder %s8512_s16, %s8512_s16  ;;  %p12011_p11 = scmp.lt.s32.totalorder %s12009_s26, %s12003_s21 }
 0xab7   : > { %p12005_p8 = pnand %p12004_p7, %p11559_p6 }
 0xab8   : > { %p12012_p12 = por %p12011_p11, %p12010_p10 }
 0xab9   : > { %p12006_p9 = pneg %p12005_p8 }
 0xabb   : > { %p12013_p13 = pnand %p12012_p12, %p12006_p9 }
 0xabd   : > { %12016 = shalt.err (!%p12013_p13)
}
 0xabe   : > { %s12017_s4 = scalar_lea.hbm %s17681_s18, 16 }
 0xabf   : > { %p12018_p0 = scmp.ne.s32.totalorder %s17681_s18, %s12017_s4  ;;  %p12023_p3 = scmp.lt.u32.totalorder %s12017_s4, %s17681_s18 }
 0xac1   : > { %p12019_p1 = pnand %p12018_p0, %p11559_p6 }
 0xac3   : > { %p12020_p2 = pneg %p12019_p1 }
 0xac5   : > { %p12025_p4 = pnand %p12023_p3, %p12020_p2 }
 0xac7   : > { %12028 = shalt.err (!%p12025_p4)
}
 0xac8   : > { %11546 = dma.vmem_to_hbm [thread:$0]  (%p11559_p6), %s8512_s16, 16, %s17681_s18, [#allocation11]  }
 0xac9   : > { %s12029_s26 = scalar_lea.vmem %s8501_s28, 16  ;;  %s12035_s0 = scalar_lea.vmem %s8501_s28, 32 }
 0xaca   : > { %p12030_p5 = scmp.ne.s32.totalorder %s8501_s28, %s12029_s26  ;;  %p12036_p9 = scmp.lt.s32.totalorder %s8501_s28, %s8501_s28 }
 0xacb   : > { %p12037_p10 = scmp.lt.s32.totalorder %s12035_s0, %s12029_s26 }
 0xacc   : > { %p12031_p7 = pnand %p12030_p5, %p11559_p6 }
 0xacd   : > { %p12038_p11 = por %p12037_p10, %p12036_p9 }
 0xace   : > { %p12032_p8 = pneg %p12031_p7 }
 0xad0   : > { %p12039_p12 = pnand %p12038_p11, %p12032_p8 }
 0xad2   : > { %12042 = shalt.err (!%p12039_p12)
}
 0xad3   : > { %s12043_s30 = scalar_lea.hbm %s17680_s17, 16 }
 0xad4   : > { %p12044_p13 = scmp.ne.s32.totalorder %s17680_s17, %s12043_s30  ;;  %p12049_p2 = scmp.lt.u32.totalorder %s12043_s30, %s17680_s17 }
 0xad6   : > { %p12045_p0 = pnand %p12044_p13, %p11559_p6 }
 0xad8   : > { %p12046_p1 = pneg %p12045_p0 }
 0xada   : > { %p12051_p3 = pnand %p12049_p2, %p12046_p1 }
 0xadc   : > { %12054 = shalt.err (!%p12051_p3)
}
 0xadd   : > { %11544 = dma.vmem_to_hbm [thread:$0]  (%p11559_p6), %s8501_s28, 16, %s17680_s17, [#allocation9]  }
 0xade   : > { %s12138_s26 = smov [#allocation12]   ;;  %s12139_s27 = smov [#allocation13]  }
 0xadf   : > { %s8522_s0 = sshll.u32 %s12138_s26, 4  ;;  %s8533_s4 = sshll.u32 %s12139_s27, 4  ;;  %s8523_s0 = int_to_ptr.vmem [resolvable:$true] %s8522_s0  ;;  %s8534_s4 = int_to_ptr.vmem [resolvable:$true] %s8533_s4 }
 0xae0   : > { %s12055_s1 = scalar_lea.vmem %s8523_s0, 256  ;;  %p12062_p8 = scmp.lt.s32.totalorder %s8523_s0, %s8523_s0 }
 0xae1   : > { %p12056_p4 = scmp.ne.s32.totalorder %s8523_s0, %s12055_s1  ;;  %p12063_p9 = scmp.lt.s32.totalorder %s12055_s1, %s12055_s1 }
 0xae3   : > { %p12057_p5 = pnand %p12056_p4, %p11559_p6  ;;  %p12064_p10 = por %p12063_p9, %p12062_p8 }
 0xae5   : > { %p12058_p7 = pneg %p12057_p5 }
 0xae7   : > { %p12065_p11 = pnand %p12064_p10, %p12058_p7 }
 0xae9   : > { %12068 = shalt.err (!%p12065_p11)
}
 0xaea   : > { %s12069_s28 = scalar_lea.hbm %s17682_s19, 256 }
 0xaeb   : > { %p12070_p12 = scmp.ne.s32.totalorder %s17682_s19, %s12069_s28  ;;  %p12075_p1 = scmp.lt.u32.totalorder %s12069_s28, %s17682_s19 }
 0xaed   : > { %p12071_p13 = pnand %p12070_p12, %p11559_p6 }
 0xaef   : > { %p12072_p0 = pneg %p12071_p13 }
 0xaf1   : > { %p12077_p2 = pnand %p12075_p1, %p12072_p0 }
 0xaf3   : > { %12080 = shalt.err (!%p12077_p2)
}
 0xaf4   : > { %11548 = dma.vmem_to_hbm [thread:$0]  (%p11559_p6), %s8523_s0, 256, %s17682_s19, [#allocation11]  }
 0xaf5   : > { %s12081_s1 = scalar_lea.vmem %s8534_s4, 16  ;;  %s12087_s30 = scalar_lea.vmem %s8534_s4, 32 }
 0xaf6   : > { %p12082_p3 = scmp.ne.s32.totalorder %s8534_s4, %s12081_s1  ;;  %p12088_p7 = scmp.lt.s32.totalorder %s8534_s4, %s8534_s4 }
 0xaf7   : > { %p12089_p8 = scmp.lt.s32.totalorder %s12087_s30, %s12081_s1 }
 0xaf8   : > { %p12083_p4 = pnand %p12082_p3, %p11559_p6 }
 0xaf9   : > { %p12090_p9 = por %p12089_p8, %p12088_p7 }
 0xafa   : > { %p12084_p5 = pneg %p12083_p4 }
 0xafc   : > { %p12091_p10 = pnand %p12090_p9, %p12084_p5 }
 0xafe   : > { %12094 = shalt.err (!%p12091_p10)
}
 0xaff   : > { %s12095_s16 = scalar_lea.hbm %s17683_s20, 16 }
 0xb00   : > { %p12096_p11 = scmp.ne.s32.totalorder %s17683_s20, %s12095_s16  ;;  %p12101_p0 = scmp.lt.u32.totalorder %s12095_s16, %s17683_s20 }
 0xb02   : > { %p12097_p12 = pnand %p12096_p11, %p11559_p6 }
 0xb04   : > { %p12098_p13 = pneg %p12097_p12 }
 0xb06   : > { %p12103_p1 = pnand %p12101_p0, %p12098_p13 }
 0xb08   : > { %12106 = shalt.err (!%p12103_p1)
}
 0xb09   : > { %11550 = dma.vmem_to_hbm [thread:$0]  (%p11559_p6), %s8534_s4, 16, %s17683_s20, [#allocation14]  }
 0xb0a   : > { %12112 = dma.done.wait (%p11559_p6), [#allocation9], 16  }
 0xb0b   : > { %12114 = vsyncadd (%p11559_p6), [#allocation9], 4294967280 }
 0xb0c   : > { %12116 = dma.done.wait (%p11559_p6), [#allocation11], 272  }
 0xb0d   : > { %12118 = vsyncadd (%p11559_p6), [#allocation11], 4294967024 }
 0xb0e   : > { %12120 = dma.done.wait (%p11559_p6), [#allocation14], 16  }
 0xb0f   : > { %12122 = vsyncadd (%p11559_p6), [#allocation14], 4294967280 }
 0xb10 PF: > { %s36_s2 = sadd.s32 1, %s12125_s2  }
 0xb11   : > { %p33_p2 = scmp.ge.s32.totalorder %s36_s2, 4  }
 0xb13   :  { %35 = sbr.rel (!%p33_p2) target bundleno = 11 (0xb), region = 151 }
 0xb1a   :  { %8558 = vsyncpa [#allocation9], 1 }
 0xb1b   :  { %8560 = vsyncpa [#allocation9 + $0x1], 1 }
 0xb1c   :  { %8561 = vsyncpa [#allocation11], 1 }
 0xb1d   :  { %8562 = vsyncpa [#allocation14], 1 }

</bundles_post_ra>
